<compile_context>
chip_gen: v6e
topology: v6e:2x2x1
jax: 0.10.0
libtpu: 0.0.40
codegen_flags: <defaults>
</compile_context>

<pallas_src>
import functools

import jax
import jax.numpy as jnp
from jax.scipy.linalg import expm as _scipy_expm
from jax.experimental import pallas as pl
from jax.experimental.pallas import tpu as pltpu

MAX_POWER = 5                 # same as the torch module
NPOW = 2 * MAX_POWER + 1      # powers -MAX_POWER .. MAX_POWER
EXPM_SCALE_LOG2 = 6           # scaling-and-squaring depth
EXPM_TERMS = 6                # Taylor terms for expm(A / 2**s)


def _round_up(x, m):
    return ((x + m - 1) // m) * m


def group_sample_kernel(a_ref, pw_ref, o_ref):
    """a_ref: (1, d, d, nb)  pw_ref: (1, S, d, d, nb)  o_ref: (1, d, d, nb).

    nb samples ride on the 128-lane axis; every op below covers the whole batch.
    """
    d = a_ref.shape[1]
    nb = a_ref.shape[-1]
    n_steps = pw_ref.shape[1]

    def bmm(x, y):
        # Batched matmul over the lane (sample) axis:
        #   out[i, j, n] = sum_k x[i, k, n] * y[k, j, n]
        # Each k-term is one broadcast-FMA over (d, d, nb) = d vregs (nb=128).
        out = x[:, 0:1, :] * y[0:1, :, :]
        for k in range(1, d):
            out = out + x[:, k:k + 1, :] * y[k:k + 1, :, :]
        return out

    row = jax.lax.broadcasted_iota(jnp.int32, (d, d, nb), 0)
    col = jax.lax.broadcasted_iota(jnp.int32, (d, d, nb), 1)
    eye = jnp.where(row == col, 1.0, 0.0).astype(jnp.float32)

    # ---- g = expm(A) via scaling-and-squaring + short Taylor series ----
    As = a_ref[0] * (1.0 / float(2 ** EXPM_SCALE_LOG2))
    term = As
    g = eye + As
    for t in range(2, EXPM_TERMS + 1):
        term = bmm(term, As) * (1.0 / float(t))
        g = g + term
    for _ in range(EXPM_SCALE_LOG2):
        g = bmm(g, g)

    # ---- discrete generator powers: pre-gathered h[i]^{ks[i,k]} per step ----
    for s in range(n_steps):
        g = bmm(g, pw_ref[0, s])

    o_ref[0] = g.astype(o_ref.dtype)


def _power_table(h, h_inv):
    """hpow[i, n + MAX_POWER] = h_i^n for n in [-MAX_POWER, MAX_POWER]."""
    M, d, _ = h.shape
    eye = jnp.eye(d, dtype=jnp.float32)
    rows = []
    for i in range(M):
        entries = []
        for n in range(-MAX_POWER, MAX_POWER + 1):
            base = h[i] if n > 0 else h_inv[i]
            mat = eye
            for _ in range(abs(n)):
                mat = mat @ base
            entries.append(mat)
        rows.append(jnp.stack(entries))
    return jnp.stack(rows)                          # (M, NPOW, d, d)


@functools.partial(jax.jit, static_argnames=("block_n",))
def group_samples(z, ks, perms, lie_algebra, h, h_inv, *, block_n=128):
    """Pallas equivalent of noise2samples(z, ks, lie_algebra, h)."""
    N, D = z.shape
    _, M, K = ks.shape
    d = lie_algebra.shape[-1]
    S = M * K

    # ---------------- wrapper-side precompute (pure layout / gather glue) -------------
    # A = sum_j z[n, j] * lie[j]
    A_all = jnp.einsum('nl,lij->nij', z.astype(jnp.float32),
                       lie_algebra.astype(jnp.float32))          # (N, d, d)

    # Pre-gather the per-(sample, k, perm-step) discrete power matrices:
    #   pw_sel[n, kk*M + j] = h[i]^{ks[n, i, kk]},  i = perms[n, kk, j]
    hpow = _power_table(h.astype(jnp.float32), h_inv.astype(jnp.float32))  # (M, NPOW, d, d)
    ks_t = jnp.transpose(ks.astype(jnp.int32), (0, 2, 1))        # (N, K, M)
    perms_i = perms.astype(jnp.int32)                            # (N, K, M)
    p_sel = jnp.take_along_axis(ks_t, perms_i, axis=2)           # ks[n, perm[n,kk,j], kk]
    pw_sel = hpow[perms_i, p_sel + MAX_POWER]                    # (N, K, M, d, d)
    pw_sel = pw_sel.reshape(N, S, d, d)

    # ---------------- batch / grid geometry -------------------------------------------
    if N >= 2 * block_n:
        nb = block_n                                  # full 128-lane batches
    else:
        # Small N: split into (at least) 2 lane-aligned sub-batches so both v7x
        # TensorCores get work; pad up rather than shrink below 8 lanes.
        nb = max(8, _round_up(pl.cdiv(N, 2), 8))
    G = max(2, pl.cdiv(N, nb))
    N_pad = G * nb
    if N_pad > N:
        A_all = jnp.pad(A_all, ((0, N_pad - N), (0, 0), (0, 0)))
        pw_sel = jnp.pad(pw_sel, ((0, N_pad - N), (0, 0), (0, 0), (0, 0)))

    # Batch-in-lanes layout: samples on the trailing (lane) axis of each slab.
    A_blk = A_all.reshape(G, nb, d, d).transpose(0, 2, 3, 1)               # (G, d, d, nb)
    pw_blk = pw_sel.reshape(G, nb, S, d, d).transpose(0, 2, 3, 4, 1)       # (G, S, d, d, nb)

    out = pl.pallas_call(
        group_sample_kernel,
        out_shape=jax.ShapeDtypeStruct((G, d, d, nb), jnp.float32),
        grid=(G,),
        in_specs=[
            pl.BlockSpec((1, d, d, nb), lambda n: (n, 0, 0, 0)),
            pl.BlockSpec((1, S, d, d, nb), lambda n: (n, 0, 0, 0, 0)),
        ],
        out_specs=pl.BlockSpec((1, d, d, nb), lambda n: (n, 0, 0, 0)),
        compiler_params=pltpu.CompilerParams(
            dimension_semantics=("parallel",)),
    )(A_blk, pw_blk)

    return out.transpose(0, 3, 1, 2).reshape(N_pad, d, d)[:N]


# ------------------------- pure-JAX reference -------------------------
def _ref_noise2sample(z, ks, perm, lie, h, hinv):
    d = lie.shape[-1]
    K = ks.shape[1]
    M = h.shape[0]
    eye = jnp.eye(d, dtype=jnp.float32)
    A = jnp.einsum('j,jab->ab', z, lie)
    g = _scipy_expm(A)
    for kk in range(K):
        for j in range(M):
            i = perm[kk, j]
            n = ks[i, kk]
            Me = jnp.where(n > 0, h[i], hinv[i])
            na = jnp.abs(n)
            pw = eye
            for p in range(MAX_POWER):
                pw = pw @ jnp.where(na > p, Me, eye)
            g = g @ pw
    return g


if __name__ == "__main__":
    # Small synthetic continuous+discrete group: d = 8, 3 Lie-algebra generators
    # (skew-symmetric), 2 discrete generators (permutation matrices), 16 samples.
    d, D, M, K, N = 8, 3, 2, 3, 16

    key = jax.random.PRNGKey(0)
    k_lie, k_z, k_ks, k_perm = jax.random.split(key, 4)

    # Lie algebra generators: skew-symmetric -> group is orthogonal.
    B = 0.3 * jax.random.normal(k_lie, (D, d, d), dtype=jnp.float32)
    lie_algebra = B - jnp.swapaxes(B, -1, -2)

    # Discrete generators: permutation matrices (cyclic shift, pairwise swap).
    eye_d = jnp.eye(d, dtype=jnp.float32)
    cyc = eye_d[jnp.roll(jnp.arange(d), 1)]
    swap_idx = jnp.arange(d).at[0].set(1).at[1].set(0)
    swp = eye_d[swap_idx]
    discrete_generators = jnp.stack([cyc, swp]).astype(jnp.float32)

    # TODO(synk): matrix inverse has no Pallas equivalent; precomputed here (glue).
    discrete_inverses = jnp.linalg.inv(discrete_generators).astype(jnp.float32)

    # Noise, integer powers, and per-(sample, k) random permutations
    # (torch.randperm with vmap randomness='different').
    z = jax.random.normal(k_z, (N, D), dtype=jnp.float32)
    ks = jax.random.randint(k_ks, (N, M, K), -MAX_POWER, MAX_POWER + 1,
                            dtype=jnp.int32)
    perm_keys = jax.random.split(k_perm, N * K)
    perms = jnp.stack(
        [jax.random.permutation(pk, M) for pk in perm_keys]
    ).reshape(N, K, M).astype(jnp.int32)

    out = group_samples(z, ks, perms, lie_algebra,
                        discrete_generators, discrete_inverses)
    out = jax.block_until_ready(out)

    ref = jax.vmap(_ref_noise2sample, in_axes=(0, 0, 0, None, None, None))(
        z, ks, perms, lie_algebra, discrete_generators, discrete_inverses)
    ref = jax.block_until_ready(ref)

    max_err = float(jnp.max(jnp.abs(out - ref)))
    assert out.shape == (N, d, d)
    assert max_err < 1e-4, f"mismatch vs reference: {max_err}"
    print("KERNEL_OK")
</pallas_src>

<mosaic_0001>
module attributes {stable_mosaic.version = 11 : i64} {
  func.func @group_sample_kernel(%arg0: i32, %arg1: memref<1x8x8x8xf32, #tpu.memory_space<vmem>>, %arg2: memref<1x6x8x8x8xf32, #tpu.memory_space<vmem>>, %arg3: memref<1x8x8x8xf32, #tpu.memory_space<vmem>>) attributes {dimension_semantics = [#tpu.dimension_semantics<parallel>], iteration_bounds = array<i64: 2>, scalar_prefetch = 0 : i64, scratch_operands = 0 : i64, tpu.core_type = #tpu.core_type<tc>, window_params = [{transform_indices = @transform_0, window_bounds = array<i64: 1, 8, 8, 8>}, {transform_indices = @transform_1, window_bounds = array<i64: 1, 6, 8, 8, 8>}, {transform_indices = @transform_2, window_bounds = array<i64: 1, 8, 8, 8>}]} {
    %0 = tpu.iota {dimensions = array<i32: 0>} : vector<8x8x8xi32>
    %1 = tpu.iota {dimensions = array<i32: 1>} : vector<8x8x8xi32>
    %2 = arith.cmpi eq, %0, %1 : vector<8x8x8xi32>
    %cst = arith.constant 1.000000e+00 : f32
    %cst_0 = arith.constant 0.000000e+00 : f32
    %3 = vector.broadcast %cst : f32 to vector<8x8x8xf32>
    %4 = vector.broadcast %cst_0 : f32 to vector<8x8x8xf32>
    %5 = arith.select %2, %3, %4 : vector<8x8x8xi1>, vector<8x8x8xf32>
    %c0 = arith.constant 0 : index
    %c0_1 = arith.constant 0 : index
    %c0_2 = arith.constant 0 : index
    %c0_3 = arith.constant 0 : index
    %6 = vector.load %arg1[%c0, %c0_1, %c0_2, %c0_3] : memref<1x8x8x8xf32, #tpu.memory_space<vmem>>, vector<1x8x8x8xf32>
    %7 = vector.shape_cast %6 : vector<1x8x8x8xf32> to vector<8x8x8xf32>
    %cst_4 = arith.constant 1.562500e-02 : f32
    %8 = vector.broadcast %cst_4 : f32 to vector<8x8x8xf32>
    %9 = arith.mulf %7, %8 : vector<8x8x8xf32>
    %10 = arith.addf %5, %9 : vector<8x8x8xf32>
    %11 = vector.extract_strided_slice %9 {offsets = [0, 0, 0], sizes = [8, 1, 8], strides = [1, 1, 1]} : vector<8x8x8xf32> to vector<8x1x8xf32>
    %12 = vector.extract_strided_slice %9 {offsets = [0, 0, 0], sizes = [1, 8, 8], strides = [1, 1, 1]} : vector<8x8x8xf32> to vector<1x8x8xf32>
    %13 = vector.broadcast %11 : vector<8x1x8xf32> to vector<8x8x8xf32>
    %14 = vector.broadcast %12 : vector<1x8x8xf32> to vector<8x8x8xf32>
    %15 = arith.mulf %13, %14 : vector<8x8x8xf32>
    %16 = vector.extract_strided_slice %9 {offsets = [0, 1, 0], sizes = [8, 1, 8], strides = [1, 1, 1]} : vector<8x8x8xf32> to vector<8x1x8xf32>
    %17 = vector.extract_strided_slice %9 {offsets = [1, 0, 0], sizes = [1, 8, 8], strides = [1, 1, 1]} : vector<8x8x8xf32> to vector<1x8x8xf32>
    %18 = vector.broadcast %16 : vector<8x1x8xf32> to vector<8x8x8xf32>
    %19 = vector.broadcast %17 : vector<1x8x8xf32> to vector<8x8x8xf32>
    %20 = arith.mulf %18, %19 : vector<8x8x8xf32>
    %21 = arith.addf %15, %20 : vector<8x8x8xf32>
    %22 = vector.extract_strided_slice %9 {offsets = [0, 2, 0], sizes = [8, 1, 8], strides = [1, 1, 1]} : vector<8x8x8xf32> to vector<8x1x8xf32>
    %23 = vector.extract_strided_slice %9 {offsets = [2, 0, 0], sizes = [1, 8, 8], strides = [1, 1, 1]} : vector<8x8x8xf32> to vector<1x8x8xf32>
    %24 = vector.broadcast %22 : vector<8x1x8xf32> to vector<8x8x8xf32>
    %25 = vector.broadcast %23 : vector<1x8x8xf32> to vector<8x8x8xf32>
    %26 = arith.mulf %24, %25 : vector<8x8x8xf32>
    %27 = arith.addf %21, %26 : vector<8x8x8xf32>
    %28 = vector.extract_strided_slice %9 {offsets = [0, 3, 0], sizes = [8, 1, 8], strides = [1, 1, 1]} : vector<8x8x8xf32> to vector<8x1x8xf32>
    %29 = vector.extract_strided_slice %9 {offsets = [3, 0, 0], sizes = [1, 8, 8], strides = [1, 1, 1]} : vector<8x8x8xf32> to vector<1x8x8xf32>
    %30 = vector.broadcast %28 : vector<8x1x8xf32> to vector<8x8x8xf32>
    %31 = vector.broadcast %29 : vector<1x8x8xf32> to vector<8x8x8xf32>
    %32 = arith.mulf %30, %31 : vector<8x8x8xf32>
    %33 = arith.addf %27, %32 : vector<8x8x8xf32>
    %34 = vector.extract_strided_slice %9 {offsets = [0, 4, 0], sizes = [8, 1, 8], strides = [1, 1, 1]} : vector<8x8x8xf32> to vector<8x1x8xf32>
    %35 = vector.extract_strided_slice %9 {offsets = [4, 0, 0], sizes = [1, 8, 8], strides = [1, 1, 1]} : vector<8x8x8xf32> to vector<1x8x8xf32>
    %36 = vector.broadcast %34 : vector<8x1x8xf32> to vector<8x8x8xf32>
    %37 = vector.broadcast %35 : vector<1x8x8xf32> to vector<8x8x8xf32>
    %38 = arith.mulf %36, %37 : vector<8x8x8xf32>
    %39 = arith.addf %33, %38 : vector<8x8x8xf32>
    %40 = vector.extract_strided_slice %9 {offsets = [0, 5, 0], sizes = [8, 1, 8], strides = [1, 1, 1]} : vector<8x8x8xf32> to vector<8x1x8xf32>
    %41 = vector.extract_strided_slice %9 {offsets = [5, 0, 0], sizes = [1, 8, 8], strides = [1, 1, 1]} : vector<8x8x8xf32> to vector<1x8x8xf32>
    %42 = vector.broadcast %40 : vector<8x1x8xf32> to vector<8x8x8xf32>
    %43 = vector.broadcast %41 : vector<1x8x8xf32> to vector<8x8x8xf32>
    %44 = arith.mulf %42, %43 : vector<8x8x8xf32>
    %45 = arith.addf %39, %44 : vector<8x8x8xf32>
    %46 = vector.extract_strided_slice %9 {offsets = [0, 6, 0], sizes = [8, 1, 8], strides = [1, 1, 1]} : vector<8x8x8xf32> to vector<8x1x8xf32>
    %47 = vector.extract_strided_slice %9 {offsets = [6, 0, 0], sizes = [1, 8, 8], strides = [1, 1, 1]} : vector<8x8x8xf32> to vector<1x8x8xf32>
    %48 = vector.broadcast %46 : vector<8x1x8xf32> to vector<8x8x8xf32>
    %49 = vector.broadcast %47 : vector<1x8x8xf32> to vector<8x8x8xf32>
    %50 = arith.mulf %48, %49 : vector<8x8x8xf32>
    %51 = arith.addf %45, %50 : vector<8x8x8xf32>
    %52 = vector.extract_strided_slice %9 {offsets = [0, 7, 0], sizes = [8, 1, 8], strides = [1, 1, 1]} : vector<8x8x8xf32> to vector<8x1x8xf32>
    %53 = vector.extract_strided_slice %9 {offsets = [7, 0, 0], sizes = [1, 8, 8], strides = [1, 1, 1]} : vector<8x8x8xf32> to vector<1x8x8xf32>
    %54 = vector.broadcast %52 : vector<8x1x8xf32> to vector<8x8x8xf32>
    %55 = vector.broadcast %53 : vector<1x8x8xf32> to vector<8x8x8xf32>
    %56 = arith.mulf %54, %55 : vector<8x8x8xf32>
    %57 = arith.addf %51, %56 : vector<8x8x8xf32>
    %cst_5 = arith.constant 5.000000e-01 : f32
    %58 = vector.broadcast %cst_5 : f32 to vector<8x8x8xf32>
    %59 = arith.mulf %57, %58 : vector<8x8x8xf32>
    %60 = arith.addf %10, %59 : vector<8x8x8xf32>
    %61 = vector.extract_strided_slice %59 {offsets = [0, 0, 0], sizes = [8, 1, 8], strides = [1, 1, 1]} : vector<8x8x8xf32> to vector<8x1x8xf32>
    %62 = vector.extract_strided_slice %9 {offsets = [0, 0, 0], sizes = [1, 8, 8], strides = [1, 1, 1]} : vector<8x8x8xf32> to vector<1x8x8xf32>
    %63 = vector.broadcast %61 : vector<8x1x8xf32> to vector<8x8x8xf32>
    %64 = vector.broadcast %62 : vector<1x8x8xf32> to vector<8x8x8xf32>
    %65 = arith.mulf %63, %64 : vector<8x8x8xf32>
    %66 = vector.extract_strided_slice %59 {offsets = [0, 1, 0], sizes = [8, 1, 8], strides = [1, 1, 1]} : vector<8x8x8xf32> to vector<8x1x8xf32>
    %67 = vector.extract_strided_slice %9 {offsets = [1, 0, 0], sizes = [1, 8, 8], strides = [1, 1, 1]} : vector<8x8x8xf32> to vector<1x8x8xf32>
    %68 = vector.broadcast %66 : vector<8x1x8xf32> to vector<8x8x8xf32>
    %69 = vector.broadcast %67 : vector<1x8x8xf32> to vector<8x8x8xf32>
    %70 = arith.mulf %68, %69 : vector<8x8x8xf32>
    %71 = arith.addf %65, %70 : vector<8x8x8xf32>
    %72 = vector.extract_strided_slice %59 {offsets = [0, 2, 0], sizes = [8, 1, 8], strides = [1, 1, 1]} : vector<8x8x8xf32> to vector<8x1x8xf32>
    %73 = vector.extract_strided_slice %9 {offsets = [2, 0, 0], sizes = [1, 8, 8], strides = [1, 1, 1]} : vector<8x8x8xf32> to vector<1x8x8xf32>
    %74 = vector.broadcast %72 : vector<8x1x8xf32> to vector<8x8x8xf32>
    %75 = vector.broadcast %73 : vector<1x8x8xf32> to vector<8x8x8xf32>
    %76 = arith.mulf %74, %75 : vector<8x8x8xf32>
    %77 = arith.addf %71, %76 : vector<8x8x8xf32>
    %78 = vector.extract_strided_slice %59 {offsets = [0, 3, 0], sizes = [8, 1, 8], strides = [1, 1, 1]} : vector<8x8x8xf32> to vector<8x1x8xf32>
    %79 = vector.extract_strided_slice %9 {offsets = [3, 0, 0], sizes = [1, 8, 8], strides = [1, 1, 1]} : vector<8x8x8xf32> to vector<1x8x8xf32>
    %80 = vector.broadcast %78 : vector<8x1x8xf32> to vector<8x8x8xf32>
    %81 = vector.broadcast %79 : vector<1x8x8xf32> to vector<8x8x8xf32>
    %82 = arith.mulf %80, %81 : vector<8x8x8xf32>
    %83 = arith.addf %77, %82 : vector<8x8x8xf32>
    %84 = vector.extract_strided_slice %59 {offsets = [0, 4, 0], sizes = [8, 1, 8], strides = [1, 1, 1]} : vector<8x8x8xf32> to vector<8x1x8xf32>
    %85 = vector.extract_strided_slice %9 {offsets = [4, 0, 0], sizes = [1, 8, 8], strides = [1, 1, 1]} : vector<8x8x8xf32> to vector<1x8x8xf32>
    %86 = vector.broadcast %84 : vector<8x1x8xf32> to vector<8x8x8xf32>
    %87 = vector.broadcast %85 : vector<1x8x8xf32> to vector<8x8x8xf32>
    %88 = arith.mulf %86, %87 : vector<8x8x8xf32>
    %89 = arith.addf %83, %88 : vector<8x8x8xf32>
    %90 = vector.extract_strided_slice %59 {offsets = [0, 5, 0], sizes = [8, 1, 8], strides = [1, 1, 1]} : vector<8x8x8xf32> to vector<8x1x8xf32>
    %91 = vector.extract_strided_slice %9 {offsets = [5, 0, 0], sizes = [1, 8, 8], strides = [1, 1, 1]} : vector<8x8x8xf32> to vector<1x8x8xf32>
    %92 = vector.broadcast %90 : vector<8x1x8xf32> to vector<8x8x8xf32>
    %93 = vector.broadcast %91 : vector<1x8x8xf32> to vector<8x8x8xf32>
    %94 = arith.mulf %92, %93 : vector<8x8x8xf32>
    %95 = arith.addf %89, %94 : vector<8x8x8xf32>
    %96 = vector.extract_strided_slice %59 {offsets = [0, 6, 0], sizes = [8, 1, 8], strides = [1, 1, 1]} : vector<8x8x8xf32> to vector<8x1x8xf32>
    %97 = vector.extract_strided_slice %9 {offsets = [6, 0, 0], sizes = [1, 8, 8], strides = [1, 1, 1]} : vector<8x8x8xf32> to vector<1x8x8xf32>
    %98 = vector.broadcast %96 : vector<8x1x8xf32> to vector<8x8x8xf32>
    %99 = vector.broadcast %97 : vector<1x8x8xf32> to vector<8x8x8xf32>
    %100 = arith.mulf %98, %99 : vector<8x8x8xf32>
    %101 = arith.addf %95, %100 : vector<8x8x8xf32>
    %102 = vector.extract_strided_slice %59 {offsets = [0, 7, 0], sizes = [8, 1, 8], strides = [1, 1, 1]} : vector<8x8x8xf32> to vector<8x1x8xf32>
    %103 = vector.extract_strided_slice %9 {offsets = [7, 0, 0], sizes = [1, 8, 8], strides = [1, 1, 1]} : vector<8x8x8xf32> to vector<1x8x8xf32>
    %104 = vector.broadcast %102 : vector<8x1x8xf32> to vector<8x8x8xf32>
    %105 = vector.broadcast %103 : vector<1x8x8xf32> to vector<8x8x8xf32>
    %106 = arith.mulf %104, %105 : vector<8x8x8xf32>
    %107 = arith.addf %101, %106 : vector<8x8x8xf32>
    %cst_6 = arith.constant 0.333333343 : f32
    %108 = vector.broadcast %cst_6 : f32 to vector<8x8x8xf32>
    %109 = arith.mulf %107, %108 : vector<8x8x8xf32>
    %110 = arith.addf %60, %109 : vector<8x8x8xf32>
    %111 = vector.extract_strided_slice %109 {offsets = [0, 0, 0], sizes = [8, 1, 8], strides = [1, 1, 1]} : vector<8x8x8xf32> to vector<8x1x8xf32>
    %112 = vector.extract_strided_slice %9 {offsets = [0, 0, 0], sizes = [1, 8, 8], strides = [1, 1, 1]} : vector<8x8x8xf32> to vector<1x8x8xf32>
    %113 = vector.broadcast %111 : vector<8x1x8xf32> to vector<8x8x8xf32>
    %114 = vector.broadcast %112 : vector<1x8x8xf32> to vector<8x8x8xf32>
    %115 = arith.mulf %113, %114 : vector<8x8x8xf32>
    %116 = vector.extract_strided_slice %109 {offsets = [0, 1, 0], sizes = [8, 1, 8], strides = [1, 1, 1]} : vector<8x8x8xf32> to vector<8x1x8xf32>
    %117 = vector.extract_strided_slice %9 {offsets = [1, 0, 0], sizes = [1, 8, 8], strides = [1, 1, 1]} : vector<8x8x8xf32> to vector<1x8x8xf32>
    %118 = vector.broadcast %116 : vector<8x1x8xf32> to vector<8x8x8xf32>
    %119 = vector.broadcast %117 : vector<1x8x8xf32> to vector<8x8x8xf32>
    %120 = arith.mulf %118, %119 : vector<8x8x8xf32>
    %121 = arith.addf %115, %120 : vector<8x8x8xf32>
    %122 = vector.extract_strided_slice %109 {offsets = [0, 2, 0], sizes = [8, 1, 8], strides = [1, 1, 1]} : vector<8x8x8xf32> to vector<8x1x8xf32>
    %123 = vector.extract_strided_slice %9 {offsets = [2, 0, 0], sizes = [1, 8, 8], strides = [1, 1, 1]} : vector<8x8x8xf32> to vector<1x8x8xf32>
    %124 = vector.broadcast %122 : vector<8x1x8xf32> to vector<8x8x8xf32>
    %125 = vector.broadcast %123 : vector<1x8x8xf32> to vector<8x8x8xf32>
    %126 = arith.mulf %124, %125 : vector<8x8x8xf32>
    %127 = arith.addf %121, %126 : vector<8x8x8xf32>
    %128 = vector.extract_strided_slice %109 {offsets = [0, 3, 0], sizes = [8, 1, 8], strides = [1, 1, 1]} : vector<8x8x8xf32> to vector<8x1x8xf32>
    %129 = vector.extract_strided_slice %9 {offsets = [3, 0, 0], sizes = [1, 8, 8], strides = [1, 1, 1]} : vector<8x8x8xf32> to vector<1x8x8xf32>
    %130 = vector.broadcast %128 : vector<8x1x8xf32> to vector<8x8x8xf32>
    %131 = vector.broadcast %129 : vector<1x8x8xf32> to vector<8x8x8xf32>
    %132 = arith.mulf %130, %131 : vector<8x8x8xf32>
    %133 = arith.addf %127, %132 : vector<8x8x8xf32>
    %134 = vector.extract_strided_slice %109 {offsets = [0, 4, 0], sizes = [8, 1, 8], strides = [1, 1, 1]} : vector<8x8x8xf32> to vector<8x1x8xf32>
    %135 = vector.extract_strided_slice %9 {offsets = [4, 0, 0], sizes = [1, 8, 8], strides = [1, 1, 1]} : vector<8x8x8xf32> to vector<1x8x8xf32>
    %136 = vector.broadcast %134 : vector<8x1x8xf32> to vector<8x8x8xf32>
    %137 = vector.broadcast %135 : vector<1x8x8xf32> to vector<8x8x8xf32>
    %138 = arith.mulf %136, %137 : vector<8x8x8xf32>
    %139 = arith.addf %133, %138 : vector<8x8x8xf32>
    %140 = vector.extract_strided_slice %109 {offsets = [0, 5, 0], sizes = [8, 1, 8], strides = [1, 1, 1]} : vector<8x8x8xf32> to vector<8x1x8xf32>
    %141 = vector.extract_strided_slice %9 {offsets = [5, 0, 0], sizes = [1, 8, 8], strides = [1, 1, 1]} : vector<8x8x8xf32> to vector<1x8x8xf32>
    %142 = vector.broadcast %140 : vector<8x1x8xf32> to vector<8x8x8xf32>
    %143 = vector.broadcast %141 : vector<1x8x8xf32> to vector<8x8x8xf32>
    %144 = arith.mulf %142, %143 : vector<8x8x8xf32>
    %145 = arith.addf %139, %144 : vector<8x8x8xf32>
    %146 = vector.extract_strided_slice %109 {offsets = [0, 6, 0], sizes = [8, 1, 8], strides = [1, 1, 1]} : vector<8x8x8xf32> to vector<8x1x8xf32>
    %147 = vector.extract_strided_slice %9 {offsets = [6, 0, 0], sizes = [1, 8, 8], strides = [1, 1, 1]} : vector<8x8x8xf32> to vector<1x8x8xf32>
    %148 = vector.broadcast %146 : vector<8x1x8xf32> to vector<8x8x8xf32>
    %149 = vector.broadcast %147 : vector<1x8x8xf32> to vector<8x8x8xf32>
    %150 = arith.mulf %148, %149 : vector<8x8x8xf32>
    %151 = arith.addf %145, %150 : vector<8x8x8xf32>
    %152 = vector.extract_strided_slice %109 {offsets = [0, 7, 0], sizes = [8, 1, 8], strides = [1, 1, 1]} : vector<8x8x8xf32> to vector<8x1x8xf32>
    %153 = vector.extract_strided_slice %9 {offsets = [7, 0, 0], sizes = [1, 8, 8], strides = [1, 1, 1]} : vector<8x8x8xf32> to vector<1x8x8xf32>
    %154 = vector.broadcast %152 : vector<8x1x8xf32> to vector<8x8x8xf32>
    %155 = vector.broadcast %153 : vector<1x8x8xf32> to vector<8x8x8xf32>
    %156 = arith.mulf %154, %155 : vector<8x8x8xf32>
    %157 = arith.addf %151, %156 : vector<8x8x8xf32>
    %cst_7 = arith.constant 2.500000e-01 : f32
    %158 = vector.broadcast %cst_7 : f32 to vector<8x8x8xf32>
    %159 = arith.mulf %157, %158 : vector<8x8x8xf32>
    %160 = arith.addf %110, %159 : vector<8x8x8xf32>
    %161 = vector.extract_strided_slice %159 {offsets = [0, 0, 0], sizes = [8, 1, 8], strides = [1, 1, 1]} : vector<8x8x8xf32> to vector<8x1x8xf32>
    %162 = vector.extract_strided_slice %9 {offsets = [0, 0, 0], sizes = [1, 8, 8], strides = [1, 1, 1]} : vector<8x8x8xf32> to vector<1x8x8xf32>
    %163 = vector.broadcast %161 : vector<8x1x8xf32> to vector<8x8x8xf32>
    %164 = vector.broadcast %162 : vector<1x8x8xf32> to vector<8x8x8xf32>
    %165 = arith.mulf %163, %164 : vector<8x8x8xf32>
    %166 = vector.extract_strided_slice %159 {offsets = [0, 1, 0], sizes = [8, 1, 8], strides = [1, 1, 1]} : vector<8x8x8xf32> to vector<8x1x8xf32>
    %167 = vector.extract_strided_slice %9 {offsets = [1, 0, 0], sizes = [1, 8, 8], strides = [1, 1, 1]} : vector<8x8x8xf32> to vector<1x8x8xf32>
    %168 = vector.broadcast %166 : vector<8x1x8xf32> to vector<8x8x8xf32>
    %169 = vector.broadcast %167 : vector<1x8x8xf32> to vector<8x8x8xf32>
    %170 = arith.mulf %168, %169 : vector<8x8x8xf32>
    %171 = arith.addf %165, %170 : vector<8x8x8xf32>
    %172 = vector.extract_strided_slice %159 {offsets = [0, 2, 0], sizes = [8, 1, 8], strides = [1, 1, 1]} : vector<8x8x8xf32> to vector<8x1x8xf32>
    %173 = vector.extract_strided_slice %9 {offsets = [2, 0, 0], sizes = [1, 8, 8], strides = [1, 1, 1]} : vector<8x8x8xf32> to vector<1x8x8xf32>
    %174 = vector.broadcast %172 : vector<8x1x8xf32> to vector<8x8x8xf32>
    %175 = vector.broadcast %173 : vector<1x8x8xf32> to vector<8x8x8xf32>
    %176 = arith.mulf %174, %175 : vector<8x8x8xf32>
    %177 = arith.addf %171, %176 : vector<8x8x8xf32>
    %178 = vector.extract_strided_slice %159 {offsets = [0, 3, 0], sizes = [8, 1, 8], strides = [1, 1, 1]} : vector<8x8x8xf32> to vector<8x1x8xf32>
    %179 = vector.extract_strided_slice %9 {offsets = [3, 0, 0], sizes = [1, 8, 8], strides = [1, 1, 1]} : vector<8x8x8xf32> to vector<1x8x8xf32>
    %180 = vector.broadcast %178 : vector<8x1x8xf32> to vector<8x8x8xf32>
    %181 = vector.broadcast %179 : vector<1x8x8xf32> to vector<8x8x8xf32>
    %182 = arith.mulf %180, %181 : vector<8x8x8xf32>
    %183 = arith.addf %177, %182 : vector<8x8x8xf32>
    %184 = vector.extract_strided_slice %159 {offsets = [0, 4, 0], sizes = [8, 1, 8], strides = [1, 1, 1]} : vector<8x8x8xf32> to vector<8x1x8xf32>
    %185 = vector.extract_strided_slice %9 {offsets = [4, 0, 0], sizes = [1, 8, 8], strides = [1, 1, 1]} : vector<8x8x8xf32> to vector<1x8x8xf32>
    %186 = vector.broadcast %184 : vector<8x1x8xf32> to vector<8x8x8xf32>
    %187 = vector.broadcast %185 : vector<1x8x8xf32> to vector<8x8x8xf32>
    %188 = arith.mulf %186, %187 : vector<8x8x8xf32>
    %189 = arith.addf %183, %188 : vector<8x8x8xf32>
    %190 = vector.extract_strided_slice %159 {offsets = [0, 5, 0], sizes = [8, 1, 8], strides = [1, 1, 1]} : vector<8x8x8xf32> to vector<8x1x8xf32>
    %191 = vector.extract_strided_slice %9 {offsets = [5, 0, 0], sizes = [1, 8, 8], strides = [1, 1, 1]} : vector<8x8x8xf32> to vector<1x8x8xf32>
    %192 = vector.broadcast %190 : vector<8x1x8xf32> to vector<8x8x8xf32>
    %193 = vector.broadcast %191 : vector<1x8x8xf32> to vector<8x8x8xf32>
    %194 = arith.mulf %192, %193 : vector<8x8x8xf32>
    %195 = arith.addf %189, %194 : vector<8x8x8xf32>
    %196 = vector.extract_strided_slice %159 {offsets = [0, 6, 0], sizes = [8, 1, 8], strides = [1, 1, 1]} : vector<8x8x8xf32> to vector<8x1x8xf32>
    %197 = vector.extract_strided_slice %9 {offsets = [6, 0, 0], sizes = [1, 8, 8], strides = [1, 1, 1]} : vector<8x8x8xf32> to vector<1x8x8xf32>
    %198 = vector.broadcast %196 : vector<8x1x8xf32> to vector<8x8x8xf32>
    %199 = vector.broadcast %197 : vector<1x8x8xf32> to vector<8x8x8xf32>
    %200 = arith.mulf %198, %199 : vector<8x8x8xf32>
    %201 = arith.addf %195, %200 : vector<8x8x8xf32>
    %202 = vector.extract_strided_slice %159 {offsets = [0, 7, 0], sizes = [8, 1, 8], strides = [1, 1, 1]} : vector<8x8x8xf32> to vector<8x1x8xf32>
    %203 = vector.extract_strided_slice %9 {offsets = [7, 0, 0], sizes = [1, 8, 8], strides = [1, 1, 1]} : vector<8x8x8xf32> to vector<1x8x8xf32>
    %204 = vector.broadcast %202 : vector<8x1x8xf32> to vector<8x8x8xf32>
    %205 = vector.broadcast %203 : vector<1x8x8xf32> to vector<8x8x8xf32>
    %206 = arith.mulf %204, %205 : vector<8x8x8xf32>
    %207 = arith.addf %201, %206 : vector<8x8x8xf32>
    %cst_8 = arith.constant 2.000000e-01 : f32
    %208 = vector.broadcast %cst_8 : f32 to vector<8x8x8xf32>
    %209 = arith.mulf %207, %208 : vector<8x8x8xf32>
    %210 = arith.addf %160, %209 : vector<8x8x8xf32>
    %211 = vector.extract_strided_slice %209 {offsets = [0, 0, 0], sizes = [8, 1, 8], strides = [1, 1, 1]} : vector<8x8x8xf32> to vector<8x1x8xf32>
    %212 = vector.extract_strided_slice %9 {offsets = [0, 0, 0], sizes = [1, 8, 8], strides = [1, 1, 1]} : vector<8x8x8xf32> to vector<1x8x8xf32>
    %213 = vector.broadcast %211 : vector<8x1x8xf32> to vector<8x8x8xf32>
    %214 = vector.broadcast %212 : vector<1x8x8xf32> to vector<8x8x8xf32>
    %215 = arith.mulf %213, %214 : vector<8x8x8xf32>
    %216 = vector.extract_strided_slice %209 {offsets = [0, 1, 0], sizes = [8, 1, 8], strides = [1, 1, 1]} : vector<8x8x8xf32> to vector<8x1x8xf32>
    %217 = vector.extract_strided_slice %9 {offsets = [1, 0, 0], sizes = [1, 8, 8], strides = [1, 1, 1]} : vector<8x8x8xf32> to vector<1x8x8xf32>
    %218 = vector.broadcast %216 : vector<8x1x8xf32> to vector<8x8x8xf32>
    %219 = vector.broadcast %217 : vector<1x8x8xf32> to vector<8x8x8xf32>
    %220 = arith.mulf %218, %219 : vector<8x8x8xf32>
    %221 = arith.addf %215, %220 : vector<8x8x8xf32>
    %222 = vector.extract_strided_slice %209 {offsets = [0, 2, 0], sizes = [8, 1, 8], strides = [1, 1, 1]} : vector<8x8x8xf32> to vector<8x1x8xf32>
    %223 = vector.extract_strided_slice %9 {offsets = [2, 0, 0], sizes = [1, 8, 8], strides = [1, 1, 1]} : vector<8x8x8xf32> to vector<1x8x8xf32>
    %224 = vector.broadcast %222 : vector<8x1x8xf32> to vector<8x8x8xf32>
    %225 = vector.broadcast %223 : vector<1x8x8xf32> to vector<8x8x8xf32>
    %226 = arith.mulf %224, %225 : vector<8x8x8xf32>
    %227 = arith.addf %221, %226 : vector<8x8x8xf32>
    %228 = vector.extract_strided_slice %209 {offsets = [0, 3, 0], sizes = [8, 1, 8], strides = [1, 1, 1]} : vector<8x8x8xf32> to vector<8x1x8xf32>
    %229 = vector.extract_strided_slice %9 {offsets = [3, 0, 0], sizes = [1, 8, 8], strides = [1, 1, 1]} : vector<8x8x8xf32> to vector<1x8x8xf32>
    %230 = vector.broadcast %228 : vector<8x1x8xf32> to vector<8x8x8xf32>
    %231 = vector.broadcast %229 : vector<1x8x8xf32> to vector<8x8x8xf32>
    %232 = arith.mulf %230, %231 : vector<8x8x8xf32>
    %233 = arith.addf %227, %232 : vector<8x8x8xf32>
    %234 = vector.extract_strided_slice %209 {offsets = [0, 4, 0], sizes = [8, 1, 8], strides = [1, 1, 1]} : vector<8x8x8xf32> to vector<8x1x8xf32>
    %235 = vector.extract_strided_slice %9 {offsets = [4, 0, 0], sizes = [1, 8, 8], strides = [1, 1, 1]} : vector<8x8x8xf32> to vector<1x8x8xf32>
    %236 = vector.broadcast %234 : vector<8x1x8xf32> to vector<8x8x8xf32>
    %237 = vector.broadcast %235 : vector<1x8x8xf32> to vector<8x8x8xf32>
    %238 = arith.mulf %236, %237 : vector<8x8x8xf32>
    %239 = arith.addf %233, %238 : vector<8x8x8xf32>
    %240 = vector.extract_strided_slice %209 {offsets = [0, 5, 0], sizes = [8, 1, 8], strides = [1, 1, 1]} : vector<8x8x8xf32> to vector<8x1x8xf32>
    %241 = vector.extract_strided_slice %9 {offsets = [5, 0, 0], sizes = [1, 8, 8], strides = [1, 1, 1]} : vector<8x8x8xf32> to vector<1x8x8xf32>
    %242 = vector.broadcast %240 : vector<8x1x8xf32> to vector<8x8x8xf32>
    %243 = vector.broadcast %241 : vector<1x8x8xf32> to vector<8x8x8xf32>
    %244 = arith.mulf %242, %243 : vector<8x8x8xf32>
    %245 = arith.addf %239, %244 : vector<8x8x8xf32>
    %246 = vector.extract_strided_slice %209 {offsets = [0, 6, 0], sizes = [8, 1, 8], strides = [1, 1, 1]} : vector<8x8x8xf32> to vector<8x1x8xf32>
    %247 = vector.extract_strided_slice %9 {offsets = [6, 0, 0], sizes = [1, 8, 8], strides = [1, 1, 1]} : vector<8x8x8xf32> to vector<1x8x8xf32>
    %248 = vector.broadcast %246 : vector<8x1x8xf32> to vector<8x8x8xf32>
    %249 = vector.broadcast %247 : vector<1x8x8xf32> to vector<8x8x8xf32>
    %250 = arith.mulf %248, %249 : vector<8x8x8xf32>
    %251 = arith.addf %245, %250 : vector<8x8x8xf32>
    %252 = vector.extract_strided_slice %209 {offsets = [0, 7, 0], sizes = [8, 1, 8], strides = [1, 1, 1]} : vector<8x8x8xf32> to vector<8x1x8xf32>
    %253 = vector.extract_strided_slice %9 {offsets = [7, 0, 0], sizes = [1, 8, 8], strides = [1, 1, 1]} : vector<8x8x8xf32> to vector<1x8x8xf32>
    %254 = vector.broadcast %252 : vector<8x1x8xf32> to vector<8x8x8xf32>
    %255 = vector.broadcast %253 : vector<1x8x8xf32> to vector<8x8x8xf32>
    %256 = arith.mulf %254, %255 : vector<8x8x8xf32>
    %257 = arith.addf %251, %256 : vector<8x8x8xf32>
    %cst_9 = arith.constant 0.166666672 : f32
    %258 = vector.broadcast %cst_9 : f32 to vector<8x8x8xf32>
    %259 = arith.mulf %257, %258 : vector<8x8x8xf32>
    %260 = arith.addf %210, %259 : vector<8x8x8xf32>
    %261 = vector.extract_strided_slice %260 {offsets = [0, 0, 0], sizes = [8, 1, 8], strides = [1, 1, 1]} : vector<8x8x8xf32> to vector<8x1x8xf32>
    %262 = vector.extract_strided_slice %260 {offsets = [0, 0, 0], sizes = [1, 8, 8], strides = [1, 1, 1]} : vector<8x8x8xf32> to vector<1x8x8xf32>
    %263 = vector.broadcast %261 : vector<8x1x8xf32> to vector<8x8x8xf32>
    %264 = vector.broadcast %262 : vector<1x8x8xf32> to vector<8x8x8xf32>
    %265 = arith.mulf %263, %264 : vector<8x8x8xf32>
    %266 = vector.extract_strided_slice %260 {offsets = [0, 1, 0], sizes = [8, 1, 8], strides = [1, 1, 1]} : vector<8x8x8xf32> to vector<8x1x8xf32>
    %267 = vector.extract_strided_slice %260 {offsets = [1, 0, 0], sizes = [1, 8, 8], strides = [1, 1, 1]} : vector<8x8x8xf32> to vector<1x8x8xf32>
    %268 = vector.broadcast %266 : vector<8x1x8xf32> to vector<8x8x8xf32>
    %269 = vector.broadcast %267 : vector<1x8x8xf32> to vector<8x8x8xf32>
    %270 = arith.mulf %268, %269 : vector<8x8x8xf32>
    %271 = arith.addf %265, %270 : vector<8x8x8xf32>
    %272 = vector.extract_strided_slice %260 {offsets = [0, 2, 0], sizes = [8, 1, 8], strides = [1, 1, 1]} : vector<8x8x8xf32> to vector<8x1x8xf32>
    %273 = vector.extract_strided_slice %260 {offsets = [2, 0, 0], sizes = [1, 8, 8], strides = [1, 1, 1]} : vector<8x8x8xf32> to vector<1x8x8xf32>
    %274 = vector.broadcast %272 : vector<8x1x8xf32> to vector<8x8x8xf32>
    %275 = vector.broadcast %273 : vector<1x8x8xf32> to vector<8x8x8xf32>
    %276 = arith.mulf %274, %275 : vector<8x8x8xf32>
    %277 = arith.addf %271, %276 : vector<8x8x8xf32>
    %278 = vector.extract_strided_slice %260 {offsets = [0, 3, 0], sizes = [8, 1, 8], strides = [1, 1, 1]} : vector<8x8x8xf32> to vector<8x1x8xf32>
    %279 = vector.extract_strided_slice %260 {offsets = [3, 0, 0], sizes = [1, 8, 8], strides = [1, 1, 1]} : vector<8x8x8xf32> to vector<1x8x8xf32>
    %280 = vector.broadcast %278 : vector<8x1x8xf32> to vector<8x8x8xf32>
    %281 = vector.broadcast %279 : vector<1x8x8xf32> to vector<8x8x8xf32>
    %282 = arith.mulf %280, %281 : vector<8x8x8xf32>
    %283 = arith.addf %277, %282 : vector<8x8x8xf32>
    %284 = vector.extract_strided_slice %260 {offsets = [0, 4, 0], sizes = [8, 1, 8], strides = [1, 1, 1]} : vector<8x8x8xf32> to vector<8x1x8xf32>
    %285 = vector.extract_strided_slice %260 {offsets = [4, 0, 0], sizes = [1, 8, 8], strides = [1, 1, 1]} : vector<8x8x8xf32> to vector<1x8x8xf32>
    %286 = vector.broadcast %284 : vector<8x1x8xf32> to vector<8x8x8xf32>
    %287 = vector.broadcast %285 : vector<1x8x8xf32> to vector<8x8x8xf32>
    %288 = arith.mulf %286, %287 : vector<8x8x8xf32>
    %289 = arith.addf %283, %288 : vector<8x8x8xf32>
    %290 = vector.extract_strided_slice %260 {offsets = [0, 5, 0], sizes = [8, 1, 8], strides = [1, 1, 1]} : vector<8x8x8xf32> to vector<8x1x8xf32>
    %291 = vector.extract_strided_slice %260 {offsets = [5, 0, 0], sizes = [1, 8, 8], strides = [1, 1, 1]} : vector<8x8x8xf32> to vector<1x8x8xf32>
    %292 = vector.broadcast %290 : vector<8x1x8xf32> to vector<8x8x8xf32>
    %293 = vector.broadcast %291 : vector<1x8x8xf32> to vector<8x8x8xf32>
    %294 = arith.mulf %292, %293 : vector<8x8x8xf32>
    %295 = arith.addf %289, %294 : vector<8x8x8xf32>
    %296 = vector.extract_strided_slice %260 {offsets = [0, 6, 0], sizes = [8, 1, 8], strides = [1, 1, 1]} : vector<8x8x8xf32> to vector<8x1x8xf32>
    %297 = vector.extract_strided_slice %260 {offsets = [6, 0, 0], sizes = [1, 8, 8], strides = [1, 1, 1]} : vector<8x8x8xf32> to vector<1x8x8xf32>
    %298 = vector.broadcast %296 : vector<8x1x8xf32> to vector<8x8x8xf32>
    %299 = vector.broadcast %297 : vector<1x8x8xf32> to vector<8x8x8xf32>
    %300 = arith.mulf %298, %299 : vector<8x8x8xf32>
    %301 = arith.addf %295, %300 : vector<8x8x8xf32>
    %302 = vector.extract_strided_slice %260 {offsets = [0, 7, 0], sizes = [8, 1, 8], strides = [1, 1, 1]} : vector<8x8x8xf32> to vector<8x1x8xf32>
    %303 = vector.extract_strided_slice %260 {offsets = [7, 0, 0], sizes = [1, 8, 8], strides = [1, 1, 1]} : vector<8x8x8xf32> to vector<1x8x8xf32>
    %304 = vector.broadcast %302 : vector<8x1x8xf32> to vector<8x8x8xf32>
    %305 = vector.broadcast %303 : vector<1x8x8xf32> to vector<8x8x8xf32>
    %306 = arith.mulf %304, %305 : vector<8x8x8xf32>
    %307 = arith.addf %301, %306 : vector<8x8x8xf32>
    %308 = vector.extract_strided_slice %307 {offsets = [0, 0, 0], sizes = [8, 1, 8], strides = [1, 1, 1]} : vector<8x8x8xf32> to vector<8x1x8xf32>
    %309 = vector.extract_strided_slice %307 {offsets = [0, 0, 0], sizes = [1, 8, 8], strides = [1, 1, 1]} : vector<8x8x8xf32> to vector<1x8x8xf32>
    %310 = vector.broadcast %308 : vector<8x1x8xf32> to vector<8x8x8xf32>
    %311 = vector.broadcast %309 : vector<1x8x8xf32> to vector<8x8x8xf32>
    %312 = arith.mulf %310, %311 : vector<8x8x8xf32>
    %313 = vector.extract_strided_slice %307 {offsets = [0, 1, 0], sizes = [8, 1, 8], strides = [1, 1, 1]} : vector<8x8x8xf32> to vector<8x1x8xf32>
    %314 = vector.extract_strided_slice %307 {offsets = [1, 0, 0], sizes = [1, 8, 8], strides = [1, 1, 1]} : vector<8x8x8xf32> to vector<1x8x8xf32>
    %315 = vector.broadcast %313 : vector<8x1x8xf32> to vector<8x8x8xf32>
    %316 = vector.broadcast %314 : vector<1x8x8xf32> to vector<8x8x8xf32>
    %317 = arith.mulf %315, %316 : vector<8x8x8xf32>
    %318 = arith.addf %312, %317 : vector<8x8x8xf32>
    %319 = vector.extract_strided_slice %307 {offsets = [0, 2, 0], sizes = [8, 1, 8], strides = [1, 1, 1]} : vector<8x8x8xf32> to vector<8x1x8xf32>
    %320 = vector.extract_strided_slice %307 {offsets = [2, 0, 0], sizes = [1, 8, 8], strides = [1, 1, 1]} : vector<8x8x8xf32> to vector<1x8x8xf32>
    %321 = vector.broadcast %319 : vector<8x1x8xf32> to vector<8x8x8xf32>
    %322 = vector.broadcast %320 : vector<1x8x8xf32> to vector<8x8x8xf32>
    %323 = arith.mulf %321, %322 : vector<8x8x8xf32>
    %324 = arith.addf %318, %323 : vector<8x8x8xf32>
    %325 = vector.extract_strided_slice %307 {offsets = [0, 3, 0], sizes = [8, 1, 8], strides = [1, 1, 1]} : vector<8x8x8xf32> to vector<8x1x8xf32>
    %326 = vector.extract_strided_slice %307 {offsets = [3, 0, 0], sizes = [1, 8, 8], strides = [1, 1, 1]} : vector<8x8x8xf32> to vector<1x8x8xf32>
    %327 = vector.broadcast %325 : vector<8x1x8xf32> to vector<8x8x8xf32>
    %328 = vector.broadcast %326 : vector<1x8x8xf32> to vector<8x8x8xf32>
    %329 = arith.mulf %327, %328 : vector<8x8x8xf32>
    %330 = arith.addf %324, %329 : vector<8x8x8xf32>
    %331 = vector.extract_strided_slice %307 {offsets = [0, 4, 0], sizes = [8, 1, 8], strides = [1, 1, 1]} : vector<8x8x8xf32> to vector<8x1x8xf32>
    %332 = vector.extract_strided_slice %307 {offsets = [4, 0, 0], sizes = [1, 8, 8], strides = [1, 1, 1]} : vector<8x8x8xf32> to vector<1x8x8xf32>
    %333 = vector.broadcast %331 : vector<8x1x8xf32> to vector<8x8x8xf32>
    %334 = vector.broadcast %332 : vector<1x8x8xf32> to vector<8x8x8xf32>
    %335 = arith.mulf %333, %334 : vector<8x8x8xf32>
    %336 = arith.addf %330, %335 : vector<8x8x8xf32>
    %337 = vector.extract_strided_slice %307 {offsets = [0, 5, 0], sizes = [8, 1, 8], strides = [1, 1, 1]} : vector<8x8x8xf32> to vector<8x1x8xf32>
    %338 = vector.extract_strided_slice %307 {offsets = [5, 0, 0], sizes = [1, 8, 8], strides = [1, 1, 1]} : vector<8x8x8xf32> to vector<1x8x8xf32>
    %339 = vector.broadcast %337 : vector<8x1x8xf32> to vector<8x8x8xf32>
    %340 = vector.broadcast %338 : vector<1x8x8xf32> to vector<8x8x8xf32>
    %341 = arith.mulf %339, %340 : vector<8x8x8xf32>
    %342 = arith.addf %336, %341 : vector<8x8x8xf32>
    %343 = vector.extract_strided_slice %307 {offsets = [0, 6, 0], sizes = [8, 1, 8], strides = [1, 1, 1]} : vector<8x8x8xf32> to vector<8x1x8xf32>
    %344 = vector.extract_strided_slice %307 {offsets = [6, 0, 0], sizes = [1, 8, 8], strides = [1, 1, 1]} : vector<8x8x8xf32> to vector<1x8x8xf32>
    %345 = vector.broadcast %343 : vector<8x1x8xf32> to vector<8x8x8xf32>
    %346 = vector.broadcast %344 : vector<1x8x8xf32> to vector<8x8x8xf32>
    %347 = arith.mulf %345, %346 : vector<8x8x8xf32>
    %348 = arith.addf %342, %347 : vector<8x8x8xf32>
    %349 = vector.extract_strided_slice %307 {offsets = [0, 7, 0], sizes = [8, 1, 8], strides = [1, 1, 1]} : vector<8x8x8xf32> to vector<8x1x8xf32>
    %350 = vector.extract_strided_slice %307 {offsets = [7, 0, 0], sizes = [1, 8, 8], strides = [1, 1, 1]} : vector<8x8x8xf32> to vector<1x8x8xf32>
    %351 = vector.broadcast %349 : vector<8x1x8xf32> to vector<8x8x8xf32>
    %352 = vector.broadcast %350 : vector<1x8x8xf32> to vector<8x8x8xf32>
    %353 = arith.mulf %351, %352 : vector<8x8x8xf32>
    %354 = arith.addf %348, %353 : vector<8x8x8xf32>
    %355 = vector.extract_strided_slice %354 {offsets = [0, 0, 0], sizes = [8, 1, 8], strides = [1, 1, 1]} : vector<8x8x8xf32> to vector<8x1x8xf32>
    %356 = vector.extract_strided_slice %354 {offsets = [0, 0, 0], sizes = [1, 8, 8], strides = [1, 1, 1]} : vector<8x8x8xf32> to vector<1x8x8xf32>
    %357 = vector.broadcast %355 : vector<8x1x8xf32> to vector<8x8x8xf32>
    %358 = vector.broadcast %356 : vector<1x8x8xf32> to vector<8x8x8xf32>
    %359 = arith.mulf %357, %358 : vector<8x8x8xf32>
    %360 = vector.extract_strided_slice %354 {offsets = [0, 1, 0], sizes = [8, 1, 8], strides = [1, 1, 1]} : vector<8x8x8xf32> to vector<8x1x8xf32>
    %361 = vector.extract_strided_slice %354 {offsets = [1, 0, 0], sizes = [1, 8, 8], strides = [1, 1, 1]} : vector<8x8x8xf32> to vector<1x8x8xf32>
    %362 = vector.broadcast %360 : vector<8x1x8xf32> to vector<8x8x8xf32>
    %363 = vector.broadcast %361 : vector<1x8x8xf32> to vector<8x8x8xf32>
    %364 = arith.mulf %362, %363 : vector<8x8x8xf32>
    %365 = arith.addf %359, %364 : vector<8x8x8xf32>
    %366 = vector.extract_strided_slice %354 {offsets = [0, 2, 0], sizes = [8, 1, 8], strides = [1, 1, 1]} : vector<8x8x8xf32> to vector<8x1x8xf32>
    %367 = vector.extract_strided_slice %354 {offsets = [2, 0, 0], sizes = [1, 8, 8], strides = [1, 1, 1]} : vector<8x8x8xf32> to vector<1x8x8xf32>
    %368 = vector.broadcast %366 : vector<8x1x8xf32> to vector<8x8x8xf32>
    %369 = vector.broadcast %367 : vector<1x8x8xf32> to vector<8x8x8xf32>
    %370 = arith.mulf %368, %369 : vector<8x8x8xf32>
    %371 = arith.addf %365, %370 : vector<8x8x8xf32>
    %372 = vector.extract_strided_slice %354 {offsets = [0, 3, 0], sizes = [8, 1, 8], strides = [1, 1, 1]} : vector<8x8x8xf32> to vector<8x1x8xf32>
    %373 = vector.extract_strided_slice %354 {offsets = [3, 0, 0], sizes = [1, 8, 8], strides = [1, 1, 1]} : vector<8x8x8xf32> to vector<1x8x8xf32>
    %374 = vector.broadcast %372 : vector<8x1x8xf32> to vector<8x8x8xf32>
    %375 = vector.broadcast %373 : vector<1x8x8xf32> to vector<8x8x8xf32>
    %376 = arith.mulf %374, %375 : vector<8x8x8xf32>
    %377 = arith.addf %371, %376 : vector<8x8x8xf32>
    %378 = vector.extract_strided_slice %354 {offsets = [0, 4, 0], sizes = [8, 1, 8], strides = [1, 1, 1]} : vector<8x8x8xf32> to vector<8x1x8xf32>
    %379 = vector.extract_strided_slice %354 {offsets = [4, 0, 0], sizes = [1, 8, 8], strides = [1, 1, 1]} : vector<8x8x8xf32> to vector<1x8x8xf32>
    %380 = vector.broadcast %378 : vector<8x1x8xf32> to vector<8x8x8xf32>
    %381 = vector.broadcast %379 : vector<1x8x8xf32> to vector<8x8x8xf32>
    %382 = arith.mulf %380, %381 : vector<8x8x8xf32>
    %383 = arith.addf %377, %382 : vector<8x8x8xf32>
    %384 = vector.extract_strided_slice %354 {offsets = [0, 5, 0], sizes = [8, 1, 8], strides = [1, 1, 1]} : vector<8x8x8xf32> to vector<8x1x8xf32>
    %385 = vector.extract_strided_slice %354 {offsets = [5, 0, 0], sizes = [1, 8, 8], strides = [1, 1, 1]} : vector<8x8x8xf32> to vector<1x8x8xf32>
    %386 = vector.broadcast %384 : vector<8x1x8xf32> to vector<8x8x8xf32>
    %387 = vector.broadcast %385 : vector<1x8x8xf32> to vector<8x8x8xf32>
    %388 = arith.mulf %386, %387 : vector<8x8x8xf32>
    %389 = arith.addf %383, %388 : vector<8x8x8xf32>
    %390 = vector.extract_strided_slice %354 {offsets = [0, 6, 0], sizes = [8, 1, 8], strides = [1, 1, 1]} : vector<8x8x8xf32> to vector<8x1x8xf32>
    %391 = vector.extract_strided_slice %354 {offsets = [6, 0, 0], sizes = [1, 8, 8], strides = [1, 1, 1]} : vector<8x8x8xf32> to vector<1x8x8xf32>
    %392 = vector.broadcast %390 : vector<8x1x8xf32> to vector<8x8x8xf32>
    %393 = vector.broadcast %391 : vector<1x8x8xf32> to vector<8x8x8xf32>
    %394 = arith.mulf %392, %393 : vector<8x8x8xf32>
    %395 = arith.addf %389, %394 : vector<8x8x8xf32>
    %396 = vector.extract_strided_slice %354 {offsets = [0, 7, 0], sizes = [8, 1, 8], strides = [1, 1, 1]} : vector<8x8x8xf32> to vector<8x1x8xf32>
    %397 = vector.extract_strided_slice %354 {offsets = [7, 0, 0], sizes = [1, 8, 8], strides = [1, 1, 1]} : vector<8x8x8xf32> to vector<1x8x8xf32>
    %398 = vector.broadcast %396 : vector<8x1x8xf32> to vector<8x8x8xf32>
    %399 = vector.broadcast %397 : vector<1x8x8xf32> to vector<8x8x8xf32>
    %400 = arith.mulf %398, %399 : vector<8x8x8xf32>
    %401 = arith.addf %395, %400 : vector<8x8x8xf32>
    %402 = vector.extract_strided_slice %401 {offsets = [0, 0, 0], sizes = [8, 1, 8], strides = [1, 1, 1]} : vector<8x8x8xf32> to vector<8x1x8xf32>
    %403 = vector.extract_strided_slice %401 {offsets = [0, 0, 0], sizes = [1, 8, 8], strides = [1, 1, 1]} : vector<8x8x8xf32> to vector<1x8x8xf32>
    %404 = vector.broadcast %402 : vector<8x1x8xf32> to vector<8x8x8xf32>
    %405 = vector.broadcast %403 : vector<1x8x8xf32> to vector<8x8x8xf32>
    %406 = arith.mulf %404, %405 : vector<8x8x8xf32>
    %407 = vector.extract_strided_slice %401 {offsets = [0, 1, 0], sizes = [8, 1, 8], strides = [1, 1, 1]} : vector<8x8x8xf32> to vector<8x1x8xf32>
    %408 = vector.extract_strided_slice %401 {offsets = [1, 0, 0], sizes = [1, 8, 8], strides = [1, 1, 1]} : vector<8x8x8xf32> to vector<1x8x8xf32>
    %409 = vector.broadcast %407 : vector<8x1x8xf32> to vector<8x8x8xf32>
    %410 = vector.broadcast %408 : vector<1x8x8xf32> to vector<8x8x8xf32>
    %411 = arith.mulf %409, %410 : vector<8x8x8xf32>
    %412 = arith.addf %406, %411 : vector<8x8x8xf32>
    %413 = vector.extract_strided_slice %401 {offsets = [0, 2, 0], sizes = [8, 1, 8], strides = [1, 1, 1]} : vector<8x8x8xf32> to vector<8x1x8xf32>
    %414 = vector.extract_strided_slice %401 {offsets = [2, 0, 0], sizes = [1, 8, 8], strides = [1, 1, 1]} : vector<8x8x8xf32> to vector<1x8x8xf32>
    %415 = vector.broadcast %413 : vector<8x1x8xf32> to vector<8x8x8xf32>
    %416 = vector.broadcast %414 : vector<1x8x8xf32> to vector<8x8x8xf32>
    %417 = arith.mulf %415, %416 : vector<8x8x8xf32>
    %418 = arith.addf %412, %417 : vector<8x8x8xf32>
    %419 = vector.extract_strided_slice %401 {offsets = [0, 3, 0], sizes = [8, 1, 8], strides = [1, 1, 1]} : vector<8x8x8xf32> to vector<8x1x8xf32>
    %420 = vector.extract_strided_slice %401 {offsets = [3, 0, 0], sizes = [1, 8, 8], strides = [1, 1, 1]} : vector<8x8x8xf32> to vector<1x8x8xf32>
    %421 = vector.broadcast %419 : vector<8x1x8xf32> to vector<8x8x8xf32>
    %422 = vector.broadcast %420 : vector<1x8x8xf32> to vector<8x8x8xf32>
    %423 = arith.mulf %421, %422 : vector<8x8x8xf32>
    %424 = arith.addf %418, %423 : vector<8x8x8xf32>
    %425 = vector.extract_strided_slice %401 {offsets = [0, 4, 0], sizes = [8, 1, 8], strides = [1, 1, 1]} : vector<8x8x8xf32> to vector<8x1x8xf32>
    %426 = vector.extract_strided_slice %401 {offsets = [4, 0, 0], sizes = [1, 8, 8], strides = [1, 1, 1]} : vector<8x8x8xf32> to vector<1x8x8xf32>
    %427 = vector.broadcast %425 : vector<8x1x8xf32> to vector<8x8x8xf32>
    %428 = vector.broadcast %426 : vector<1x8x8xf32> to vector<8x8x8xf32>
    %429 = arith.mulf %427, %428 : vector<8x8x8xf32>
    %430 = arith.addf %424, %429 : vector<8x8x8xf32>
    %431 = vector.extract_strided_slice %401 {offsets = [0, 5, 0], sizes = [8, 1, 8], strides = [1, 1, 1]} : vector<8x8x8xf32> to vector<8x1x8xf32>
    %432 = vector.extract_strided_slice %401 {offsets = [5, 0, 0], sizes = [1, 8, 8], strides = [1, 1, 1]} : vector<8x8x8xf32> to vector<1x8x8xf32>
    %433 = vector.broadcast %431 : vector<8x1x8xf32> to vector<8x8x8xf32>
    %434 = vector.broadcast %432 : vector<1x8x8xf32> to vector<8x8x8xf32>
    %435 = arith.mulf %433, %434 : vector<8x8x8xf32>
    %436 = arith.addf %430, %435 : vector<8x8x8xf32>
    %437 = vector.extract_strided_slice %401 {offsets = [0, 6, 0], sizes = [8, 1, 8], strides = [1, 1, 1]} : vector<8x8x8xf32> to vector<8x1x8xf32>
    %438 = vector.extract_strided_slice %401 {offsets = [6, 0, 0], sizes = [1, 8, 8], strides = [1, 1, 1]} : vector<8x8x8xf32> to vector<1x8x8xf32>
    %439 = vector.broadcast %437 : vector<8x1x8xf32> to vector<8x8x8xf32>
    %440 = vector.broadcast %438 : vector<1x8x8xf32> to vector<8x8x8xf32>
    %441 = arith.mulf %439, %440 : vector<8x8x8xf32>
    %442 = arith.addf %436, %441 : vector<8x8x8xf32>
    %443 = vector.extract_strided_slice %401 {offsets = [0, 7, 0], sizes = [8, 1, 8], strides = [1, 1, 1]} : vector<8x8x8xf32> to vector<8x1x8xf32>
    %444 = vector.extract_strided_slice %401 {offsets = [7, 0, 0], sizes = [1, 8, 8], strides = [1, 1, 1]} : vector<8x8x8xf32> to vector<1x8x8xf32>
    %445 = vector.broadcast %443 : vector<8x1x8xf32> to vector<8x8x8xf32>
    %446 = vector.broadcast %444 : vector<1x8x8xf32> to vector<8x8x8xf32>
    %447 = arith.mulf %445, %446 : vector<8x8x8xf32>
    %448 = arith.addf %442, %447 : vector<8x8x8xf32>
    %449 = vector.extract_strided_slice %448 {offsets = [0, 0, 0], sizes = [8, 1, 8], strides = [1, 1, 1]} : vector<8x8x8xf32> to vector<8x1x8xf32>
    %450 = vector.extract_strided_slice %448 {offsets = [0, 0, 0], sizes = [1, 8, 8], strides = [1, 1, 1]} : vector<8x8x8xf32> to vector<1x8x8xf32>
    %451 = vector.broadcast %449 : vector<8x1x8xf32> to vector<8x8x8xf32>
    %452 = vector.broadcast %450 : vector<1x8x8xf32> to vector<8x8x8xf32>
    %453 = arith.mulf %451, %452 : vector<8x8x8xf32>
    %454 = vector.extract_strided_slice %448 {offsets = [0, 1, 0], sizes = [8, 1, 8], strides = [1, 1, 1]} : vector<8x8x8xf32> to vector<8x1x8xf32>
    %455 = vector.extract_strided_slice %448 {offsets = [1, 0, 0], sizes = [1, 8, 8], strides = [1, 1, 1]} : vector<8x8x8xf32> to vector<1x8x8xf32>
    %456 = vector.broadcast %454 : vector<8x1x8xf32> to vector<8x8x8xf32>
    %457 = vector.broadcast %455 : vector<1x8x8xf32> to vector<8x8x8xf32>
    %458 = arith.mulf %456, %457 : vector<8x8x8xf32>
    %459 = arith.addf %453, %458 : vector<8x8x8xf32>
    %460 = vector.extract_strided_slice %448 {offsets = [0, 2, 0], sizes = [8, 1, 8], strides = [1, 1, 1]} : vector<8x8x8xf32> to vector<8x1x8xf32>
    %461 = vector.extract_strided_slice %448 {offsets = [2, 0, 0], sizes = [1, 8, 8], strides = [1, 1, 1]} : vector<8x8x8xf32> to vector<1x8x8xf32>
    %462 = vector.broadcast %460 : vector<8x1x8xf32> to vector<8x8x8xf32>
    %463 = vector.broadcast %461 : vector<1x8x8xf32> to vector<8x8x8xf32>
    %464 = arith.mulf %462, %463 : vector<8x8x8xf32>
    %465 = arith.addf %459, %464 : vector<8x8x8xf32>
    %466 = vector.extract_strided_slice %448 {offsets = [0, 3, 0], sizes = [8, 1, 8], strides = [1, 1, 1]} : vector<8x8x8xf32> to vector<8x1x8xf32>
    %467 = vector.extract_strided_slice %448 {offsets = [3, 0, 0], sizes = [1, 8, 8], strides = [1, 1, 1]} : vector<8x8x8xf32> to vector<1x8x8xf32>
    %468 = vector.broadcast %466 : vector<8x1x8xf32> to vector<8x8x8xf32>
    %469 = vector.broadcast %467 : vector<1x8x8xf32> to vector<8x8x8xf32>
    %470 = arith.mulf %468, %469 : vector<8x8x8xf32>
    %471 = arith.addf %465, %470 : vector<8x8x8xf32>
    %472 = vector.extract_strided_slice %448 {offsets = [0, 4, 0], sizes = [8, 1, 8], strides = [1, 1, 1]} : vector<8x8x8xf32> to vector<8x1x8xf32>
    %473 = vector.extract_strided_slice %448 {offsets = [4, 0, 0], sizes = [1, 8, 8], strides = [1, 1, 1]} : vector<8x8x8xf32> to vector<1x8x8xf32>
    %474 = vector.broadcast %472 : vector<8x1x8xf32> to vector<8x8x8xf32>
    %475 = vector.broadcast %473 : vector<1x8x8xf32> to vector<8x8x8xf32>
    %476 = arith.mulf %474, %475 : vector<8x8x8xf32>
    %477 = arith.addf %471, %476 : vector<8x8x8xf32>
    %478 = vector.extract_strided_slice %448 {offsets = [0, 5, 0], sizes = [8, 1, 8], strides = [1, 1, 1]} : vector<8x8x8xf32> to vector<8x1x8xf32>
    %479 = vector.extract_strided_slice %448 {offsets = [5, 0, 0], sizes = [1, 8, 8], strides = [1, 1, 1]} : vector<8x8x8xf32> to vector<1x8x8xf32>
    %480 = vector.broadcast %478 : vector<8x1x8xf32> to vector<8x8x8xf32>
    %481 = vector.broadcast %479 : vector<1x8x8xf32> to vector<8x8x8xf32>
    %482 = arith.mulf %480, %481 : vector<8x8x8xf32>
    %483 = arith.addf %477, %482 : vector<8x8x8xf32>
    %484 = vector.extract_strided_slice %448 {offsets = [0, 6, 0], sizes = [8, 1, 8], strides = [1, 1, 1]} : vector<8x8x8xf32> to vector<8x1x8xf32>
    %485 = vector.extract_strided_slice %448 {offsets = [6, 0, 0], sizes = [1, 8, 8], strides = [1, 1, 1]} : vector<8x8x8xf32> to vector<1x8x8xf32>
    %486 = vector.broadcast %484 : vector<8x1x8xf32> to vector<8x8x8xf32>
    %487 = vector.broadcast %485 : vector<1x8x8xf32> to vector<8x8x8xf32>
    %488 = arith.mulf %486, %487 : vector<8x8x8xf32>
    %489 = arith.addf %483, %488 : vector<8x8x8xf32>
    %490 = vector.extract_strided_slice %448 {offsets = [0, 7, 0], sizes = [8, 1, 8], strides = [1, 1, 1]} : vector<8x8x8xf32> to vector<8x1x8xf32>
    %491 = vector.extract_strided_slice %448 {offsets = [7, 0, 0], sizes = [1, 8, 8], strides = [1, 1, 1]} : vector<8x8x8xf32> to vector<1x8x8xf32>
    %492 = vector.broadcast %490 : vector<8x1x8xf32> to vector<8x8x8xf32>
    %493 = vector.broadcast %491 : vector<1x8x8xf32> to vector<8x8x8xf32>
    %494 = arith.mulf %492, %493 : vector<8x8x8xf32>
    %495 = arith.addf %489, %494 : vector<8x8x8xf32>
    %496 = vector.extract_strided_slice %495 {offsets = [0, 0, 0], sizes = [8, 1, 8], strides = [1, 1, 1]} : vector<8x8x8xf32> to vector<8x1x8xf32>
    %497 = vector.extract_strided_slice %495 {offsets = [0, 0, 0], sizes = [1, 8, 8], strides = [1, 1, 1]} : vector<8x8x8xf32> to vector<1x8x8xf32>
    %498 = vector.broadcast %496 : vector<8x1x8xf32> to vector<8x8x8xf32>
    %499 = vector.broadcast %497 : vector<1x8x8xf32> to vector<8x8x8xf32>
    %500 = arith.mulf %498, %499 : vector<8x8x8xf32>
    %501 = vector.extract_strided_slice %495 {offsets = [0, 1, 0], sizes = [8, 1, 8], strides = [1, 1, 1]} : vector<8x8x8xf32> to vector<8x1x8xf32>
    %502 = vector.extract_strided_slice %495 {offsets = [1, 0, 0], sizes = [1, 8, 8], strides = [1, 1, 1]} : vector<8x8x8xf32> to vector<1x8x8xf32>
    %503 = vector.broadcast %501 : vector<8x1x8xf32> to vector<8x8x8xf32>
    %504 = vector.broadcast %502 : vector<1x8x8xf32> to vector<8x8x8xf32>
    %505 = arith.mulf %503, %504 : vector<8x8x8xf32>
    %506 = arith.addf %500, %505 : vector<8x8x8xf32>
    %507 = vector.extract_strided_slice %495 {offsets = [0, 2, 0], sizes = [8, 1, 8], strides = [1, 1, 1]} : vector<8x8x8xf32> to vector<8x1x8xf32>
    %508 = vector.extract_strided_slice %495 {offsets = [2, 0, 0], sizes = [1, 8, 8], strides = [1, 1, 1]} : vector<8x8x8xf32> to vector<1x8x8xf32>
    %509 = vector.broadcast %507 : vector<8x1x8xf32> to vector<8x8x8xf32>
    %510 = vector.broadcast %508 : vector<1x8x8xf32> to vector<8x8x8xf32>
    %511 = arith.mulf %509, %510 : vector<8x8x8xf32>
    %512 = arith.addf %506, %511 : vector<8x8x8xf32>
    %513 = vector.extract_strided_slice %495 {offsets = [0, 3, 0], sizes = [8, 1, 8], strides = [1, 1, 1]} : vector<8x8x8xf32> to vector<8x1x8xf32>
    %514 = vector.extract_strided_slice %495 {offsets = [3, 0, 0], sizes = [1, 8, 8], strides = [1, 1, 1]} : vector<8x8x8xf32> to vector<1x8x8xf32>
    %515 = vector.broadcast %513 : vector<8x1x8xf32> to vector<8x8x8xf32>
    %516 = vector.broadcast %514 : vector<1x8x8xf32> to vector<8x8x8xf32>
    %517 = arith.mulf %515, %516 : vector<8x8x8xf32>
    %518 = arith.addf %512, %517 : vector<8x8x8xf32>
    %519 = vector.extract_strided_slice %495 {offsets = [0, 4, 0], sizes = [8, 1, 8], strides = [1, 1, 1]} : vector<8x8x8xf32> to vector<8x1x8xf32>
    %520 = vector.extract_strided_slice %495 {offsets = [4, 0, 0], sizes = [1, 8, 8], strides = [1, 1, 1]} : vector<8x8x8xf32> to vector<1x8x8xf32>
    %521 = vector.broadcast %519 : vector<8x1x8xf32> to vector<8x8x8xf32>
    %522 = vector.broadcast %520 : vector<1x8x8xf32> to vector<8x8x8xf32>
    %523 = arith.mulf %521, %522 : vector<8x8x8xf32>
    %524 = arith.addf %518, %523 : vector<8x8x8xf32>
    %525 = vector.extract_strided_slice %495 {offsets = [0, 5, 0], sizes = [8, 1, 8], strides = [1, 1, 1]} : vector<8x8x8xf32> to vector<8x1x8xf32>
    %526 = vector.extract_strided_slice %495 {offsets = [5, 0, 0], sizes = [1, 8, 8], strides = [1, 1, 1]} : vector<8x8x8xf32> to vector<1x8x8xf32>
    %527 = vector.broadcast %525 : vector<8x1x8xf32> to vector<8x8x8xf32>
    %528 = vector.broadcast %526 : vector<1x8x8xf32> to vector<8x8x8xf32>
    %529 = arith.mulf %527, %528 : vector<8x8x8xf32>
    %530 = arith.addf %524, %529 : vector<8x8x8xf32>
    %531 = vector.extract_strided_slice %495 {offsets = [0, 6, 0], sizes = [8, 1, 8], strides = [1, 1, 1]} : vector<8x8x8xf32> to vector<8x1x8xf32>
    %532 = vector.extract_strided_slice %495 {offsets = [6, 0, 0], sizes = [1, 8, 8], strides = [1, 1, 1]} : vector<8x8x8xf32> to vector<1x8x8xf32>
    %533 = vector.broadcast %531 : vector<8x1x8xf32> to vector<8x8x8xf32>
    %534 = vector.broadcast %532 : vector<1x8x8xf32> to vector<8x8x8xf32>
    %535 = arith.mulf %533, %534 : vector<8x8x8xf32>
    %536 = arith.addf %530, %535 : vector<8x8x8xf32>
    %537 = vector.extract_strided_slice %495 {offsets = [0, 7, 0], sizes = [8, 1, 8], strides = [1, 1, 1]} : vector<8x8x8xf32> to vector<8x1x8xf32>
    %538 = vector.extract_strided_slice %495 {offsets = [7, 0, 0], sizes = [1, 8, 8], strides = [1, 1, 1]} : vector<8x8x8xf32> to vector<1x8x8xf32>
    %539 = vector.broadcast %537 : vector<8x1x8xf32> to vector<8x8x8xf32>
    %540 = vector.broadcast %538 : vector<1x8x8xf32> to vector<8x8x8xf32>
    %541 = arith.mulf %539, %540 : vector<8x8x8xf32>
    %542 = arith.addf %536, %541 : vector<8x8x8xf32>
    %c0_10 = arith.constant 0 : index
    %c0_11 = arith.constant 0 : index
    %c0_12 = arith.constant 0 : index
    %c0_13 = arith.constant 0 : index
    %c0_14 = arith.constant 0 : index
    %543 = vector.load %arg2[%c0_10, %c0_11, %c0_12, %c0_13, %c0_14] : memref<1x6x8x8x8xf32, #tpu.memory_space<vmem>>, vector<1x1x8x8x8xf32>
    %544 = vector.shape_cast %543 : vector<1x1x8x8x8xf32> to vector<8x8x8xf32>
    %545 = vector.extract_strided_slice %542 {offsets = [0, 0, 0], sizes = [8, 1, 8], strides = [1, 1, 1]} : vector<8x8x8xf32> to vector<8x1x8xf32>
    %546 = vector.extract_strided_slice %544 {offsets = [0, 0, 0], sizes = [1, 8, 8], strides = [1, 1, 1]} : vector<8x8x8xf32> to vector<1x8x8xf32>
    %547 = vector.broadcast %545 : vector<8x1x8xf32> to vector<8x8x8xf32>
    %548 = vector.broadcast %546 : vector<1x8x8xf32> to vector<8x8x8xf32>
    %549 = arith.mulf %547, %548 : vector<8x8x8xf32>
    %550 = vector.extract_strided_slice %542 {offsets = [0, 1, 0], sizes = [8, 1, 8], strides = [1, 1, 1]} : vector<8x8x8xf32> to vector<8x1x8xf32>
    %551 = vector.extract_strided_slice %544 {offsets = [1, 0, 0], sizes = [1, 8, 8], strides = [1, 1, 1]} : vector<8x8x8xf32> to vector<1x8x8xf32>
    %552 = vector.broadcast %550 : vector<8x1x8xf32> to vector<8x8x8xf32>
    %553 = vector.broadcast %551 : vector<1x8x8xf32> to vector<8x8x8xf32>
    %554 = arith.mulf %552, %553 : vector<8x8x8xf32>
    %555 = arith.addf %549, %554 : vector<8x8x8xf32>
    %556 = vector.extract_strided_slice %542 {offsets = [0, 2, 0], sizes = [8, 1, 8], strides = [1, 1, 1]} : vector<8x8x8xf32> to vector<8x1x8xf32>
    %557 = vector.extract_strided_slice %544 {offsets = [2, 0, 0], sizes = [1, 8, 8], strides = [1, 1, 1]} : vector<8x8x8xf32> to vector<1x8x8xf32>
    %558 = vector.broadcast %556 : vector<8x1x8xf32> to vector<8x8x8xf32>
    %559 = vector.broadcast %557 : vector<1x8x8xf32> to vector<8x8x8xf32>
    %560 = arith.mulf %558, %559 : vector<8x8x8xf32>
    %561 = arith.addf %555, %560 : vector<8x8x8xf32>
    %562 = vector.extract_strided_slice %542 {offsets = [0, 3, 0], sizes = [8, 1, 8], strides = [1, 1, 1]} : vector<8x8x8xf32> to vector<8x1x8xf32>
    %563 = vector.extract_strided_slice %544 {offsets = [3, 0, 0], sizes = [1, 8, 8], strides = [1, 1, 1]} : vector<8x8x8xf32> to vector<1x8x8xf32>
    %564 = vector.broadcast %562 : vector<8x1x8xf32> to vector<8x8x8xf32>
    %565 = vector.broadcast %563 : vector<1x8x8xf32> to vector<8x8x8xf32>
    %566 = arith.mulf %564, %565 : vector<8x8x8xf32>
    %567 = arith.addf %561, %566 : vector<8x8x8xf32>
    %568 = vector.extract_strided_slice %542 {offsets = [0, 4, 0], sizes = [8, 1, 8], strides = [1, 1, 1]} : vector<8x8x8xf32> to vector<8x1x8xf32>
    %569 = vector.extract_strided_slice %544 {offsets = [4, 0, 0], sizes = [1, 8, 8], strides = [1, 1, 1]} : vector<8x8x8xf32> to vector<1x8x8xf32>
    %570 = vector.broadcast %568 : vector<8x1x8xf32> to vector<8x8x8xf32>
    %571 = vector.broadcast %569 : vector<1x8x8xf32> to vector<8x8x8xf32>
    %572 = arith.mulf %570, %571 : vector<8x8x8xf32>
    %573 = arith.addf %567, %572 : vector<8x8x8xf32>
    %574 = vector.extract_strided_slice %542 {offsets = [0, 5, 0], sizes = [8, 1, 8], strides = [1, 1, 1]} : vector<8x8x8xf32> to vector<8x1x8xf32>
    %575 = vector.extract_strided_slice %544 {offsets = [5, 0, 0], sizes = [1, 8, 8], strides = [1, 1, 1]} : vector<8x8x8xf32> to vector<1x8x8xf32>
    %576 = vector.broadcast %574 : vector<8x1x8xf32> to vector<8x8x8xf32>
    %577 = vector.broadcast %575 : vector<1x8x8xf32> to vector<8x8x8xf32>
    %578 = arith.mulf %576, %577 : vector<8x8x8xf32>
    %579 = arith.addf %573, %578 : vector<8x8x8xf32>
    %580 = vector.extract_strided_slice %542 {offsets = [0, 6, 0], sizes = [8, 1, 8], strides = [1, 1, 1]} : vector<8x8x8xf32> to vector<8x1x8xf32>
    %581 = vector.extract_strided_slice %544 {offsets = [6, 0, 0], sizes = [1, 8, 8], strides = [1, 1, 1]} : vector<8x8x8xf32> to vector<1x8x8xf32>
    %582 = vector.broadcast %580 : vector<8x1x8xf32> to vector<8x8x8xf32>
    %583 = vector.broadcast %581 : vector<1x8x8xf32> to vector<8x8x8xf32>
    %584 = arith.mulf %582, %583 : vector<8x8x8xf32>
    %585 = arith.addf %579, %584 : vector<8x8x8xf32>
    %586 = vector.extract_strided_slice %542 {offsets = [0, 7, 0], sizes = [8, 1, 8], strides = [1, 1, 1]} : vector<8x8x8xf32> to vector<8x1x8xf32>
    %587 = vector.extract_strided_slice %544 {offsets = [7, 0, 0], sizes = [1, 8, 8], strides = [1, 1, 1]} : vector<8x8x8xf32> to vector<1x8x8xf32>
    %588 = vector.broadcast %586 : vector<8x1x8xf32> to vector<8x8x8xf32>
    %589 = vector.broadcast %587 : vector<1x8x8xf32> to vector<8x8x8xf32>
    %590 = arith.mulf %588, %589 : vector<8x8x8xf32>
    %591 = arith.addf %585, %590 : vector<8x8x8xf32>
    %c0_15 = arith.constant 0 : index
    %c1 = arith.constant 1 : index
    %c0_16 = arith.constant 0 : index
    %c0_17 = arith.constant 0 : index
    %c0_18 = arith.constant 0 : index
    %592 = vector.load %arg2[%c0_15, %c1, %c0_16, %c0_17, %c0_18] : memref<1x6x8x8x8xf32, #tpu.memory_space<vmem>>, vector<1x1x8x8x8xf32>
    %593 = vector.shape_cast %592 : vector<1x1x8x8x8xf32> to vector<8x8x8xf32>
    %594 = vector.extract_strided_slice %591 {offsets = [0, 0, 0], sizes = [8, 1, 8], strides = [1, 1, 1]} : vector<8x8x8xf32> to vector<8x1x8xf32>
    %595 = vector.extract_strided_slice %593 {offsets = [0, 0, 0], sizes = [1, 8, 8], strides = [1, 1, 1]} : vector<8x8x8xf32> to vector<1x8x8xf32>
    %596 = vector.broadcast %594 : vector<8x1x8xf32> to vector<8x8x8xf32>
    %597 = vector.broadcast %595 : vector<1x8x8xf32> to vector<8x8x8xf32>
    %598 = arith.mulf %596, %597 : vector<8x8x8xf32>
    %599 = vector.extract_strided_slice %591 {offsets = [0, 1, 0], sizes = [8, 1, 8], strides = [1, 1, 1]} : vector<8x8x8xf32> to vector<8x1x8xf32>
    %600 = vector.extract_strided_slice %593 {offsets = [1, 0, 0], sizes = [1, 8, 8], strides = [1, 1, 1]} : vector<8x8x8xf32> to vector<1x8x8xf32>
    %601 = vector.broadcast %599 : vector<8x1x8xf32> to vector<8x8x8xf32>
    %602 = vector.broadcast %600 : vector<1x8x8xf32> to vector<8x8x8xf32>
    %603 = arith.mulf %601, %602 : vector<8x8x8xf32>
    %604 = arith.addf %598, %603 : vector<8x8x8xf32>
    %605 = vector.extract_strided_slice %591 {offsets = [0, 2, 0], sizes = [8, 1, 8], strides = [1, 1, 1]} : vector<8x8x8xf32> to vector<8x1x8xf32>
    %606 = vector.extract_strided_slice %593 {offsets = [2, 0, 0], sizes = [1, 8, 8], strides = [1, 1, 1]} : vector<8x8x8xf32> to vector<1x8x8xf32>
    %607 = vector.broadcast %605 : vector<8x1x8xf32> to vector<8x8x8xf32>
    %608 = vector.broadcast %606 : vector<1x8x8xf32> to vector<8x8x8xf32>
    %609 = arith.mulf %607, %608 : vector<8x8x8xf32>
    %610 = arith.addf %604, %609 : vector<8x8x8xf32>
    %611 = vector.extract_strided_slice %591 {offsets = [0, 3, 0], sizes = [8, 1, 8], strides = [1, 1, 1]} : vector<8x8x8xf32> to vector<8x1x8xf32>
    %612 = vector.extract_strided_slice %593 {offsets = [3, 0, 0], sizes = [1, 8, 8], strides = [1, 1, 1]} : vector<8x8x8xf32> to vector<1x8x8xf32>
    %613 = vector.broadcast %611 : vector<8x1x8xf32> to vector<8x8x8xf32>
    %614 = vector.broadcast %612 : vector<1x8x8xf32> to vector<8x8x8xf32>
    %615 = arith.mulf %613, %614 : vector<8x8x8xf32>
    %616 = arith.addf %610, %615 : vector<8x8x8xf32>
    %617 = vector.extract_strided_slice %591 {offsets = [0, 4, 0], sizes = [8, 1, 8], strides = [1, 1, 1]} : vector<8x8x8xf32> to vector<8x1x8xf32>
    %618 = vector.extract_strided_slice %593 {offsets = [4, 0, 0], sizes = [1, 8, 8], strides = [1, 1, 1]} : vector<8x8x8xf32> to vector<1x8x8xf32>
    %619 = vector.broadcast %617 : vector<8x1x8xf32> to vector<8x8x8xf32>
    %620 = vector.broadcast %618 : vector<1x8x8xf32> to vector<8x8x8xf32>
    %621 = arith.mulf %619, %620 : vector<8x8x8xf32>
    %622 = arith.addf %616, %621 : vector<8x8x8xf32>
    %623 = vector.extract_strided_slice %591 {offsets = [0, 5, 0], sizes = [8, 1, 8], strides = [1, 1, 1]} : vector<8x8x8xf32> to vector<8x1x8xf32>
    %624 = vector.extract_strided_slice %593 {offsets = [5, 0, 0], sizes = [1, 8, 8], strides = [1, 1, 1]} : vector<8x8x8xf32> to vector<1x8x8xf32>
    %625 = vector.broadcast %623 : vector<8x1x8xf32> to vector<8x8x8xf32>
    %626 = vector.broadcast %624 : vector<1x8x8xf32> to vector<8x8x8xf32>
    %627 = arith.mulf %625, %626 : vector<8x8x8xf32>
    %628 = arith.addf %622, %627 : vector<8x8x8xf32>
    %629 = vector.extract_strided_slice %591 {offsets = [0, 6, 0], sizes = [8, 1, 8], strides = [1, 1, 1]} : vector<8x8x8xf32> to vector<8x1x8xf32>
    %630 = vector.extract_strided_slice %593 {offsets = [6, 0, 0], sizes = [1, 8, 8], strides = [1, 1, 1]} : vector<8x8x8xf32> to vector<1x8x8xf32>
    %631 = vector.broadcast %629 : vector<8x1x8xf32> to vector<8x8x8xf32>
    %632 = vector.broadcast %630 : vector<1x8x8xf32> to vector<8x8x8xf32>
    %633 = arith.mulf %631, %632 : vector<8x8x8xf32>
    %634 = arith.addf %628, %633 : vector<8x8x8xf32>
    %635 = vector.extract_strided_slice %591 {offsets = [0, 7, 0], sizes = [8, 1, 8], strides = [1, 1, 1]} : vector<8x8x8xf32> to vector<8x1x8xf32>
    %636 = vector.extract_strided_slice %593 {offsets = [7, 0, 0], sizes = [1, 8, 8], strides = [1, 1, 1]} : vector<8x8x8xf32> to vector<1x8x8xf32>
    %637 = vector.broadcast %635 : vector<8x1x8xf32> to vector<8x8x8xf32>
    %638 = vector.broadcast %636 : vector<1x8x8xf32> to vector<8x8x8xf32>
    %639 = arith.mulf %637, %638 : vector<8x8x8xf32>
    %640 = arith.addf %634, %639 : vector<8x8x8xf32>
    %c0_19 = arith.constant 0 : index
    %c2 = arith.constant 2 : index
    %c0_20 = arith.constant 0 : index
    %c0_21 = arith.constant 0 : index
    %c0_22 = arith.constant 0 : index
    %641 = vector.load %arg2[%c0_19, %c2, %c0_20, %c0_21, %c0_22] : memref<1x6x8x8x8xf32, #tpu.memory_space<vmem>>, vector<1x1x8x8x8xf32>
    %642 = vector.shape_cast %641 : vector<1x1x8x8x8xf32> to vector<8x8x8xf32>
    %643 = vector.extract_strided_slice %640 {offsets = [0, 0, 0], sizes = [8, 1, 8], strides = [1, 1, 1]} : vector<8x8x8xf32> to vector<8x1x8xf32>
    %644 = vector.extract_strided_slice %642 {offsets = [0, 0, 0], sizes = [1, 8, 8], strides = [1, 1, 1]} : vector<8x8x8xf32> to vector<1x8x8xf32>
    %645 = vector.broadcast %643 : vector<8x1x8xf32> to vector<8x8x8xf32>
    %646 = vector.broadcast %644 : vector<1x8x8xf32> to vector<8x8x8xf32>
    %647 = arith.mulf %645, %646 : vector<8x8x8xf32>
    %648 = vector.extract_strided_slice %640 {offsets = [0, 1, 0], sizes = [8, 1, 8], strides = [1, 1, 1]} : vector<8x8x8xf32> to vector<8x1x8xf32>
    %649 = vector.extract_strided_slice %642 {offsets = [1, 0, 0], sizes = [1, 8, 8], strides = [1, 1, 1]} : vector<8x8x8xf32> to vector<1x8x8xf32>
    %650 = vector.broadcast %648 : vector<8x1x8xf32> to vector<8x8x8xf32>
    %651 = vector.broadcast %649 : vector<1x8x8xf32> to vector<8x8x8xf32>
    %652 = arith.mulf %650, %651 : vector<8x8x8xf32>
    %653 = arith.addf %647, %652 : vector<8x8x8xf32>
    %654 = vector.extract_strided_slice %640 {offsets = [0, 2, 0], sizes = [8, 1, 8], strides = [1, 1, 1]} : vector<8x8x8xf32> to vector<8x1x8xf32>
    %655 = vector.extract_strided_slice %642 {offsets = [2, 0, 0], sizes = [1, 8, 8], strides = [1, 1, 1]} : vector<8x8x8xf32> to vector<1x8x8xf32>
    %656 = vector.broadcast %654 : vector<8x1x8xf32> to vector<8x8x8xf32>
    %657 = vector.broadcast %655 : vector<1x8x8xf32> to vector<8x8x8xf32>
    %658 = arith.mulf %656, %657 : vector<8x8x8xf32>
    %659 = arith.addf %653, %658 : vector<8x8x8xf32>
    %660 = vector.extract_strided_slice %640 {offsets = [0, 3, 0], sizes = [8, 1, 8], strides = [1, 1, 1]} : vector<8x8x8xf32> to vector<8x1x8xf32>
    %661 = vector.extract_strided_slice %642 {offsets = [3, 0, 0], sizes = [1, 8, 8], strides = [1, 1, 1]} : vector<8x8x8xf32> to vector<1x8x8xf32>
    %662 = vector.broadcast %660 : vector<8x1x8xf32> to vector<8x8x8xf32>
    %663 = vector.broadcast %661 : vector<1x8x8xf32> to vector<8x8x8xf32>
    %664 = arith.mulf %662, %663 : vector<8x8x8xf32>
    %665 = arith.addf %659, %664 : vector<8x8x8xf32>
    %666 = vector.extract_strided_slice %640 {offsets = [0, 4, 0], sizes = [8, 1, 8], strides = [1, 1, 1]} : vector<8x8x8xf32> to vector<8x1x8xf32>
    %667 = vector.extract_strided_slice %642 {offsets = [4, 0, 0], sizes = [1, 8, 8], strides = [1, 1, 1]} : vector<8x8x8xf32> to vector<1x8x8xf32>
    %668 = vector.broadcast %666 : vector<8x1x8xf32> to vector<8x8x8xf32>
    %669 = vector.broadcast %667 : vector<1x8x8xf32> to vector<8x8x8xf32>
    %670 = arith.mulf %668, %669 : vector<8x8x8xf32>
    %671 = arith.addf %665, %670 : vector<8x8x8xf32>
    %672 = vector.extract_strided_slice %640 {offsets = [0, 5, 0], sizes = [8, 1, 8], strides = [1, 1, 1]} : vector<8x8x8xf32> to vector<8x1x8xf32>
    %673 = vector.extract_strided_slice %642 {offsets = [5, 0, 0], sizes = [1, 8, 8], strides = [1, 1, 1]} : vector<8x8x8xf32> to vector<1x8x8xf32>
    %674 = vector.broadcast %672 : vector<8x1x8xf32> to vector<8x8x8xf32>
    %675 = vector.broadcast %673 : vector<1x8x8xf32> to vector<8x8x8xf32>
    %676 = arith.mulf %674, %675 : vector<8x8x8xf32>
    %677 = arith.addf %671, %676 : vector<8x8x8xf32>
    %678 = vector.extract_strided_slice %640 {offsets = [0, 6, 0], sizes = [8, 1, 8], strides = [1, 1, 1]} : vector<8x8x8xf32> to vector<8x1x8xf32>
    %679 = vector.extract_strided_slice %642 {offsets = [6, 0, 0], sizes = [1, 8, 8], strides = [1, 1, 1]} : vector<8x8x8xf32> to vector<1x8x8xf32>
    %680 = vector.broadcast %678 : vector<8x1x8xf32> to vector<8x8x8xf32>
    %681 = vector.broadcast %679 : vector<1x8x8xf32> to vector<8x8x8xf32>
    %682 = arith.mulf %680, %681 : vector<8x8x8xf32>
    %683 = arith.addf %677, %682 : vector<8x8x8xf32>
    %684 = vector.extract_strided_slice %640 {offsets = [0, 7, 0], sizes = [8, 1, 8], strides = [1, 1, 1]} : vector<8x8x8xf32> to vector<8x1x8xf32>
    %685 = vector.extract_strided_slice %642 {offsets = [7, 0, 0], sizes = [1, 8, 8], strides = [1, 1, 1]} : vector<8x8x8xf32> to vector<1x8x8xf32>
    %686 = vector.broadcast %684 : vector<8x1x8xf32> to vector<8x8x8xf32>
    %687 = vector.broadcast %685 : vector<1x8x8xf32> to vector<8x8x8xf32>
    %688 = arith.mulf %686, %687 : vector<8x8x8xf32>
    %689 = arith.addf %683, %688 : vector<8x8x8xf32>
    %c0_23 = arith.constant 0 : index
    %c3 = arith.constant 3 : index
    %c0_24 = arith.constant 0 : index
    %c0_25 = arith.constant 0 : index
    %c0_26 = arith.constant 0 : index
    %690 = vector.load %arg2[%c0_23, %c3, %c0_24, %c0_25, %c0_26] : memref<1x6x8x8x8xf32, #tpu.memory_space<vmem>>, vector<1x1x8x8x8xf32>
    %691 = vector.shape_cast %690 : vector<1x1x8x8x8xf32> to vector<8x8x8xf32>
    %692 = vector.extract_strided_slice %689 {offsets = [0, 0, 0], sizes = [8, 1, 8], strides = [1, 1, 1]} : vector<8x8x8xf32> to vector<8x1x8xf32>
    %693 = vector.extract_strided_slice %691 {offsets = [0, 0, 0], sizes = [1, 8, 8], strides = [1, 1, 1]} : vector<8x8x8xf32> to vector<1x8x8xf32>
    %694 = vector.broadcast %692 : vector<8x1x8xf32> to vector<8x8x8xf32>
    %695 = vector.broadcast %693 : vector<1x8x8xf32> to vector<8x8x8xf32>
    %696 = arith.mulf %694, %695 : vector<8x8x8xf32>
    %697 = vector.extract_strided_slice %689 {offsets = [0, 1, 0], sizes = [8, 1, 8], strides = [1, 1, 1]} : vector<8x8x8xf32> to vector<8x1x8xf32>
    %698 = vector.extract_strided_slice %691 {offsets = [1, 0, 0], sizes = [1, 8, 8], strides = [1, 1, 1]} : vector<8x8x8xf32> to vector<1x8x8xf32>
    %699 = vector.broadcast %697 : vector<8x1x8xf32> to vector<8x8x8xf32>
    %700 = vector.broadcast %698 : vector<1x8x8xf32> to vector<8x8x8xf32>
    %701 = arith.mulf %699, %700 : vector<8x8x8xf32>
    %702 = arith.addf %696, %701 : vector<8x8x8xf32>
    %703 = vector.extract_strided_slice %689 {offsets = [0, 2, 0], sizes = [8, 1, 8], strides = [1, 1, 1]} : vector<8x8x8xf32> to vector<8x1x8xf32>
    %704 = vector.extract_strided_slice %691 {offsets = [2, 0, 0], sizes = [1, 8, 8], strides = [1, 1, 1]} : vector<8x8x8xf32> to vector<1x8x8xf32>
    %705 = vector.broadcast %703 : vector<8x1x8xf32> to vector<8x8x8xf32>
    %706 = vector.broadcast %704 : vector<1x8x8xf32> to vector<8x8x8xf32>
    %707 = arith.mulf %705, %706 : vector<8x8x8xf32>
    %708 = arith.addf %702, %707 : vector<8x8x8xf32>
    %709 = vector.extract_strided_slice %689 {offsets = [0, 3, 0], sizes = [8, 1, 8], strides = [1, 1, 1]} : vector<8x8x8xf32> to vector<8x1x8xf32>
    %710 = vector.extract_strided_slice %691 {offsets = [3, 0, 0], sizes = [1, 8, 8], strides = [1, 1, 1]} : vector<8x8x8xf32> to vector<1x8x8xf32>
    %711 = vector.broadcast %709 : vector<8x1x8xf32> to vector<8x8x8xf32>
    %712 = vector.broadcast %710 : vector<1x8x8xf32> to vector<8x8x8xf32>
    %713 = arith.mulf %711, %712 : vector<8x8x8xf32>
    %714 = arith.addf %708, %713 : vector<8x8x8xf32>
    %715 = vector.extract_strided_slice %689 {offsets = [0, 4, 0], sizes = [8, 1, 8], strides = [1, 1, 1]} : vector<8x8x8xf32> to vector<8x1x8xf32>
    %716 = vector.extract_strided_slice %691 {offsets = [4, 0, 0], sizes = [1, 8, 8], strides = [1, 1, 1]} : vector<8x8x8xf32> to vector<1x8x8xf32>
    %717 = vector.broadcast %715 : vector<8x1x8xf32> to vector<8x8x8xf32>
    %718 = vector.broadcast %716 : vector<1x8x8xf32> to vector<8x8x8xf32>
    %719 = arith.mulf %717, %718 : vector<8x8x8xf32>
    %720 = arith.addf %714, %719 : vector<8x8x8xf32>
    %721 = vector.extract_strided_slice %689 {offsets = [0, 5, 0], sizes = [8, 1, 8], strides = [1, 1, 1]} : vector<8x8x8xf32> to vector<8x1x8xf32>
    %722 = vector.extract_strided_slice %691 {offsets = [5, 0, 0], sizes = [1, 8, 8], strides = [1, 1, 1]} : vector<8x8x8xf32> to vector<1x8x8xf32>
    %723 = vector.broadcast %721 : vector<8x1x8xf32> to vector<8x8x8xf32>
    %724 = vector.broadcast %722 : vector<1x8x8xf32> to vector<8x8x8xf32>
    %725 = arith.mulf %723, %724 : vector<8x8x8xf32>
    %726 = arith.addf %720, %725 : vector<8x8x8xf32>
    %727 = vector.extract_strided_slice %689 {offsets = [0, 6, 0], sizes = [8, 1, 8], strides = [1, 1, 1]} : vector<8x8x8xf32> to vector<8x1x8xf32>
    %728 = vector.extract_strided_slice %691 {offsets = [6, 0, 0], sizes = [1, 8, 8], strides = [1, 1, 1]} : vector<8x8x8xf32> to vector<1x8x8xf32>
    %729 = vector.broadcast %727 : vector<8x1x8xf32> to vector<8x8x8xf32>
    %730 = vector.broadcast %728 : vector<1x8x8xf32> to vector<8x8x8xf32>
    %731 = arith.mulf %729, %730 : vector<8x8x8xf32>
    %732 = arith.addf %726, %731 : vector<8x8x8xf32>
    %733 = vector.extract_strided_slice %689 {offsets = [0, 7, 0], sizes = [8, 1, 8], strides = [1, 1, 1]} : vector<8x8x8xf32> to vector<8x1x8xf32>
    %734 = vector.extract_strided_slice %691 {offsets = [7, 0, 0], sizes = [1, 8, 8], strides = [1, 1, 1]} : vector<8x8x8xf32> to vector<1x8x8xf32>
    %735 = vector.broadcast %733 : vector<8x1x8xf32> to vector<8x8x8xf32>
    %736 = vector.broadcast %734 : vector<1x8x8xf32> to vector<8x8x8xf32>
    %737 = arith.mulf %735, %736 : vector<8x8x8xf32>
    %738 = arith.addf %732, %737 : vector<8x8x8xf32>
    %c0_27 = arith.constant 0 : index
    %c4 = arith.constant 4 : index
    %c0_28 = arith.constant 0 : index
    %c0_29 = arith.constant 0 : index
    %c0_30 = arith.constant 0 : index
    %739 = vector.load %arg2[%c0_27, %c4, %c0_28, %c0_29, %c0_30] : memref<1x6x8x8x8xf32, #tpu.memory_space<vmem>>, vector<1x1x8x8x8xf32>
    %740 = vector.shape_cast %739 : vector<1x1x8x8x8xf32> to vector<8x8x8xf32>
    %741 = vector.extract_strided_slice %738 {offsets = [0, 0, 0], sizes = [8, 1, 8], strides = [1, 1, 1]} : vector<8x8x8xf32> to vector<8x1x8xf32>
    %742 = vector.extract_strided_slice %740 {offsets = [0, 0, 0], sizes = [1, 8, 8], strides = [1, 1, 1]} : vector<8x8x8xf32> to vector<1x8x8xf32>
    %743 = vector.broadcast %741 : vector<8x1x8xf32> to vector<8x8x8xf32>
    %744 = vector.broadcast %742 : vector<1x8x8xf32> to vector<8x8x8xf32>
    %745 = arith.mulf %743, %744 : vector<8x8x8xf32>
    %746 = vector.extract_strided_slice %738 {offsets = [0, 1, 0], sizes = [8, 1, 8], strides = [1, 1, 1]} : vector<8x8x8xf32> to vector<8x1x8xf32>
    %747 = vector.extract_strided_slice %740 {offsets = [1, 0, 0], sizes = [1, 8, 8], strides = [1, 1, 1]} : vector<8x8x8xf32> to vector<1x8x8xf32>
    %748 = vector.broadcast %746 : vector<8x1x8xf32> to vector<8x8x8xf32>
    %749 = vector.broadcast %747 : vector<1x8x8xf32> to vector<8x8x8xf32>
    %750 = arith.mulf %748, %749 : vector<8x8x8xf32>
    %751 = arith.addf %745, %750 : vector<8x8x8xf32>
    %752 = vector.extract_strided_slice %738 {offsets = [0, 2, 0], sizes = [8, 1, 8], strides = [1, 1, 1]} : vector<8x8x8xf32> to vector<8x1x8xf32>
    %753 = vector.extract_strided_slice %740 {offsets = [2, 0, 0], sizes = [1, 8, 8], strides = [1, 1, 1]} : vector<8x8x8xf32> to vector<1x8x8xf32>
    %754 = vector.broadcast %752 : vector<8x1x8xf32> to vector<8x8x8xf32>
    %755 = vector.broadcast %753 : vector<1x8x8xf32> to vector<8x8x8xf32>
    %756 = arith.mulf %754, %755 : vector<8x8x8xf32>
    %757 = arith.addf %751, %756 : vector<8x8x8xf32>
    %758 = vector.extract_strided_slice %738 {offsets = [0, 3, 0], sizes = [8, 1, 8], strides = [1, 1, 1]} : vector<8x8x8xf32> to vector<8x1x8xf32>
    %759 = vector.extract_strided_slice %740 {offsets = [3, 0, 0], sizes = [1, 8, 8], strides = [1, 1, 1]} : vector<8x8x8xf32> to vector<1x8x8xf32>
    %760 = vector.broadcast %758 : vector<8x1x8xf32> to vector<8x8x8xf32>
    %761 = vector.broadcast %759 : vector<1x8x8xf32> to vector<8x8x8xf32>
    %762 = arith.mulf %760, %761 : vector<8x8x8xf32>
    %763 = arith.addf %757, %762 : vector<8x8x8xf32>
    %764 = vector.extract_strided_slice %738 {offsets = [0, 4, 0], sizes = [8, 1, 8], strides = [1, 1, 1]} : vector<8x8x8xf32> to vector<8x1x8xf32>
    %765 = vector.extract_strided_slice %740 {offsets = [4, 0, 0], sizes = [1, 8, 8], strides = [1, 1, 1]} : vector<8x8x8xf32> to vector<1x8x8xf32>
    %766 = vector.broadcast %764 : vector<8x1x8xf32> to vector<8x8x8xf32>
    %767 = vector.broadcast %765 : vector<1x8x8xf32> to vector<8x8x8xf32>
    %768 = arith.mulf %766, %767 : vector<8x8x8xf32>
    %769 = arith.addf %763, %768 : vector<8x8x8xf32>
    %770 = vector.extract_strided_slice %738 {offsets = [0, 5, 0], sizes = [8, 1, 8], strides = [1, 1, 1]} : vector<8x8x8xf32> to vector<8x1x8xf32>
    %771 = vector.extract_strided_slice %740 {offsets = [5, 0, 0], sizes = [1, 8, 8], strides = [1, 1, 1]} : vector<8x8x8xf32> to vector<1x8x8xf32>
    %772 = vector.broadcast %770 : vector<8x1x8xf32> to vector<8x8x8xf32>
    %773 = vector.broadcast %771 : vector<1x8x8xf32> to vector<8x8x8xf32>
    %774 = arith.mulf %772, %773 : vector<8x8x8xf32>
    %775 = arith.addf %769, %774 : vector<8x8x8xf32>
    %776 = vector.extract_strided_slice %738 {offsets = [0, 6, 0], sizes = [8, 1, 8], strides = [1, 1, 1]} : vector<8x8x8xf32> to vector<8x1x8xf32>
    %777 = vector.extract_strided_slice %740 {offsets = [6, 0, 0], sizes = [1, 8, 8], strides = [1, 1, 1]} : vector<8x8x8xf32> to vector<1x8x8xf32>
    %778 = vector.broadcast %776 : vector<8x1x8xf32> to vector<8x8x8xf32>
    %779 = vector.broadcast %777 : vector<1x8x8xf32> to vector<8x8x8xf32>
    %780 = arith.mulf %778, %779 : vector<8x8x8xf32>
    %781 = arith.addf %775, %780 : vector<8x8x8xf32>
    %782 = vector.extract_strided_slice %738 {offsets = [0, 7, 0], sizes = [8, 1, 8], strides = [1, 1, 1]} : vector<8x8x8xf32> to vector<8x1x8xf32>
    %783 = vector.extract_strided_slice %740 {offsets = [7, 0, 0], sizes = [1, 8, 8], strides = [1, 1, 1]} : vector<8x8x8xf32> to vector<1x8x8xf32>
    %784 = vector.broadcast %782 : vector<8x1x8xf32> to vector<8x8x8xf32>
    %785 = vector.broadcast %783 : vector<1x8x8xf32> to vector<8x8x8xf32>
    %786 = arith.mulf %784, %785 : vector<8x8x8xf32>
    %787 = arith.addf %781, %786 : vector<8x8x8xf32>
    %c0_31 = arith.constant 0 : index
    %c5 = arith.constant 5 : index
    %c0_32 = arith.constant 0 : index
    %c0_33 = arith.constant 0 : index
    %c0_34 = arith.constant 0 : index
    %788 = vector.load %arg2[%c0_31, %c5, %c0_32, %c0_33, %c0_34] : memref<1x6x8x8x8xf32, #tpu.memory_space<vmem>>, vector<1x1x8x8x8xf32>
    %789 = vector.shape_cast %788 : vector<1x1x8x8x8xf32> to vector<8x8x8xf32>
    %790 = vector.extract_strided_slice %787 {offsets = [0, 0, 0], sizes = [8, 1, 8], strides = [1, 1, 1]} : vector<8x8x8xf32> to vector<8x1x8xf32>
    %791 = vector.extract_strided_slice %789 {offsets = [0, 0, 0], sizes = [1, 8, 8], strides = [1, 1, 1]} : vector<8x8x8xf32> to vector<1x8x8xf32>
    %792 = vector.broadcast %790 : vector<8x1x8xf32> to vector<8x8x8xf32>
    %793 = vector.broadcast %791 : vector<1x8x8xf32> to vector<8x8x8xf32>
    %794 = arith.mulf %792, %793 : vector<8x8x8xf32>
    %795 = vector.extract_strided_slice %787 {offsets = [0, 1, 0], sizes = [8, 1, 8], strides = [1, 1, 1]} : vector<8x8x8xf32> to vector<8x1x8xf32>
    %796 = vector.extract_strided_slice %789 {offsets = [1, 0, 0], sizes = [1, 8, 8], strides = [1, 1, 1]} : vector<8x8x8xf32> to vector<1x8x8xf32>
    %797 = vector.broadcast %795 : vector<8x1x8xf32> to vector<8x8x8xf32>
    %798 = vector.broadcast %796 : vector<1x8x8xf32> to vector<8x8x8xf32>
    %799 = arith.mulf %797, %798 : vector<8x8x8xf32>
    %800 = arith.addf %794, %799 : vector<8x8x8xf32>
    %801 = vector.extract_strided_slice %787 {offsets = [0, 2, 0], sizes = [8, 1, 8], strides = [1, 1, 1]} : vector<8x8x8xf32> to vector<8x1x8xf32>
    %802 = vector.extract_strided_slice %789 {offsets = [2, 0, 0], sizes = [1, 8, 8], strides = [1, 1, 1]} : vector<8x8x8xf32> to vector<1x8x8xf32>
    %803 = vector.broadcast %801 : vector<8x1x8xf32> to vector<8x8x8xf32>
    %804 = vector.broadcast %802 : vector<1x8x8xf32> to vector<8x8x8xf32>
    %805 = arith.mulf %803, %804 : vector<8x8x8xf32>
    %806 = arith.addf %800, %805 : vector<8x8x8xf32>
    %807 = vector.extract_strided_slice %787 {offsets = [0, 3, 0], sizes = [8, 1, 8], strides = [1, 1, 1]} : vector<8x8x8xf32> to vector<8x1x8xf32>
    %808 = vector.extract_strided_slice %789 {offsets = [3, 0, 0], sizes = [1, 8, 8], strides = [1, 1, 1]} : vector<8x8x8xf32> to vector<1x8x8xf32>
    %809 = vector.broadcast %807 : vector<8x1x8xf32> to vector<8x8x8xf32>
    %810 = vector.broadcast %808 : vector<1x8x8xf32> to vector<8x8x8xf32>
    %811 = arith.mulf %809, %810 : vector<8x8x8xf32>
    %812 = arith.addf %806, %811 : vector<8x8x8xf32>
    %813 = vector.extract_strided_slice %787 {offsets = [0, 4, 0], sizes = [8, 1, 8], strides = [1, 1, 1]} : vector<8x8x8xf32> to vector<8x1x8xf32>
    %814 = vector.extract_strided_slice %789 {offsets = [4, 0, 0], sizes = [1, 8, 8], strides = [1, 1, 1]} : vector<8x8x8xf32> to vector<1x8x8xf32>
    %815 = vector.broadcast %813 : vector<8x1x8xf32> to vector<8x8x8xf32>
    %816 = vector.broadcast %814 : vector<1x8x8xf32> to vector<8x8x8xf32>
    %817 = arith.mulf %815, %816 : vector<8x8x8xf32>
    %818 = arith.addf %812, %817 : vector<8x8x8xf32>
    %819 = vector.extract_strided_slice %787 {offsets = [0, 5, 0], sizes = [8, 1, 8], strides = [1, 1, 1]} : vector<8x8x8xf32> to vector<8x1x8xf32>
    %820 = vector.extract_strided_slice %789 {offsets = [5, 0, 0], sizes = [1, 8, 8], strides = [1, 1, 1]} : vector<8x8x8xf32> to vector<1x8x8xf32>
    %821 = vector.broadcast %819 : vector<8x1x8xf32> to vector<8x8x8xf32>
    %822 = vector.broadcast %820 : vector<1x8x8xf32> to vector<8x8x8xf32>
    %823 = arith.mulf %821, %822 : vector<8x8x8xf32>
    %824 = arith.addf %818, %823 : vector<8x8x8xf32>
    %825 = vector.extract_strided_slice %787 {offsets = [0, 6, 0], sizes = [8, 1, 8], strides = [1, 1, 1]} : vector<8x8x8xf32> to vector<8x1x8xf32>
    %826 = vector.extract_strided_slice %789 {offsets = [6, 0, 0], sizes = [1, 8, 8], strides = [1, 1, 1]} : vector<8x8x8xf32> to vector<1x8x8xf32>
    %827 = vector.broadcast %825 : vector<8x1x8xf32> to vector<8x8x8xf32>
    %828 = vector.broadcast %826 : vector<1x8x8xf32> to vector<8x8x8xf32>
    %829 = arith.mulf %827, %828 : vector<8x8x8xf32>
    %830 = arith.addf %824, %829 : vector<8x8x8xf32>
    %831 = vector.extract_strided_slice %787 {offsets = [0, 7, 0], sizes = [8, 1, 8], strides = [1, 1, 1]} : vector<8x8x8xf32> to vector<8x1x8xf32>
    %832 = vector.extract_strided_slice %789 {offsets = [7, 0, 0], sizes = [1, 8, 8], strides = [1, 1, 1]} : vector<8x8x8xf32> to vector<1x8x8xf32>
    %833 = vector.broadcast %831 : vector<8x1x8xf32> to vector<8x8x8xf32>
    %834 = vector.broadcast %832 : vector<1x8x8xf32> to vector<8x8x8xf32>
    %835 = arith.mulf %833, %834 : vector<8x8x8xf32>
    %836 = arith.addf %830, %835 : vector<8x8x8xf32>
    %c0_35 = arith.constant 0 : index
    %c0_36 = arith.constant 0 : index
    %c0_37 = arith.constant 0 : index
    %c0_38 = arith.constant 0 : index
    %837 = vector.load %arg3[%c0_35, %c0_36, %c0_37, %c0_38] : memref<1x8x8x8xf32, #tpu.memory_space<vmem>>, vector<1x8x8x8xf32>
    %838 = vector.shape_cast %837 : vector<1x8x8x8xf32> to vector<8x8x8xf32>
    %839 = vector.shape_cast %836 : vector<8x8x8xf32> to vector<1x8x8x8xf32>
    tpu.vector_store %arg3[%c0_35, %c0_36, %c0_37, %c0_38], %839 {strides = array<i32>} : memref<1x8x8x8xf32, #tpu.memory_space<vmem>>, vector<1x8x8x8xf32>,
    return
  }
  func.func @transform_0(%arg0: i32) -> (i32, i32, i32, i32) {
    %c0_i32 = arith.constant 0 : i32
    %c0_i32_0 = arith.constant 0 : i32
    %c0_i32_1 = arith.constant 0 : i32
    %c0_i32_2 = arith.constant 0 : i32
    return %arg0, %c0_i32, %c0_i32_0, %c0_i32_1 : i32, i32, i32, i32
  }
  func.func @transform_1(%arg0: i32) -> (i32, i32, i32, i32, i32) {
    %c0_i32 = arith.constant 0 : i32
    %c0_i32_0 = arith.constant 0 : i32
    %c0_i32_1 = arith.constant 0 : i32
    %c0_i32_2 = arith.constant 0 : i32
    %c0_i32_3 = arith.constant 0 : i32
    return %arg0, %c0_i32, %c0_i32_0, %c0_i32_1, %c0_i32_2 : i32, i32, i32, i32, i32
  }
  func.func @transform_2(%arg0: i32) -> (i32, i32, i32, i32) {
    %c0_i32 = arith.constant 0 : i32
    %c0_i32_0 = arith.constant 0 : i32
    %c0_i32_1 = arith.constant 0 : i32
    %c0_i32_2 = arith.constant 0 : i32
    return %arg0, %c0_i32, %c0_i32_0, %c0_i32_1 : i32, i32, i32, i32
  }
}

</mosaic_0001>

<bundles_post_ra>
// kernel: group_samples.1
= control target key start
LH: loop header
LB: loop body
LE: loop exit
PB: predicated region body
PF: predicated region fallthrough
CT: control target
= control target key end

     0   :  { %s6895_s9 = smov 0   ;;  %s10324_s0 = inlined_call_operand.vmem [shape: f32[2,8,8,8], index: 0, kind: input, shape index: {}]   ;;  %s10325_s1 = inlined_call_operand.vmem [shape: f32[2,6,8,8,8], index: 1, kind: input, shape index: {}]   ;;  %s10326_s2 = inlined_call_operand.vmem [shape: f32[2,8,8,8], index: 2, kind: output, shape index: {}]  }
   0x1 LB: > { %s6807_s10 = sadd.s32 4294967295, %s6877_s9   ;;  %p6811_p0 = scmp.ge.s32.totalorder %s6877_s9, 1  ;;  %s6877_s9 = sphi %s6895_s9, %s12_s9  }
   0x2   : > { %p122_p1 = scmp.lt.s32.totalorder %s6877_s9, 3 }
   0x4   : > { %p123_p2 = pnand %p6811_p0, %p122_p1 }
   0x5   : > { %p149_p3 = scmp.lt.s32.totalorder (!%p123_p2), %s6807_s10, 1 }
   0x6   : > { %126 = sbr.rel (%p123_p2) target bundleno = 832 (0x340), region = 28 }
   0xb   : > { %v164_v0 = vlaneseq  ;;  %s10328_s10 = smov (!%p149_p3, %s6807_s10), 1  ;;  %v6879_v3 = vmov 0.0   ;;  %vm6731_vm8 = vcmask 64512  }
   0xc   : > { %s6859_s11 = sshll.u32 %s10328_s10, 6  ;;  %s6861_s15 = smul.u32 384, %s10328_s10 }
   0xd   : > { %v6905_v1 = vshrl.u32 %v164_v0, 7  ;;  %s153_s14 = scalar_lea.vmem %s10324_s0, %s6859_s11  ;;  %s163_s21 = scalar_lea.vmem %s10326_s2, %s6859_s11 }
   0xe   : > { %v182_v2 = vld [vmem:[%s153_s14] sm:$0xff]  ;;  %v183_v5 = vld [vmem:[%s153_s14 + $0x8] sm:$0xff]  ;;  %v184_v6 = vld [vmem:[%s153_s14 + $0x10] sm:$0xff]  ;;  %s9394_s18 = scalar_lea.vmem %s10325_s1, %s6861_s15 }
   0xf   : > { %vm166_vm0 = vcmp.eq.s32.totalorder %v6905_v1, 0  ;;  %vm167_vm1 = vcmp.eq.s32.totalorder %v6905_v1, 1  ;;  %vm168_vm2 = vcmp.eq.s32.totalorder %v6905_v1, 2  ;;  %vm169_vm3 = vcmp.eq.s32.totalorder %v6905_v1, 3  ;;  %v185_v7 = vld [vmem:[%s153_s14 + $0x18] sm:$0xff]  ;;  %v186_v11 = vld [vmem:[%s153_s14 + $0x20] sm:$0xff] }
  0x10   : > { %vm170_vm4 = vcmp.eq.s32.totalorder %v6905_v1, 4  ;;  %vm171_vm5 = vcmp.eq.s32.totalorder %v6905_v1, 5  ;;  %vm172_vm6 = vcmp.eq.s32.totalorder %v6905_v1, 6  ;;  %vm173_vm7 = vcmp.eq.s32.totalorder %v6905_v1, 7  ;;  %v187_v12 = vld [vmem:[%s153_s14 + $0x28] sm:$0xff]  ;;  %v188_v13 = vld [vmem:[%s153_s14 + $0x30] sm:$0xff] }
  0x11   : > { %v174_v4 = vsel %vm166_vm0, 1.0, %v6879_v3  ;;  %v6921_v8 = vsel %vm167_vm1, 1.0, %v6879_v3  ;;  %v6923_v9 = vsel %vm168_vm2, 1.0, %v6879_v3  ;;  %v6925_v10 = vsel %vm169_vm3, 1.0, %v6879_v3  ;;  %v189_v18 = vld [vmem:[%s153_s14 + $0x38] sm:$0xff] }
  0x12   : > { %v6929_v14 = vsel %vm170_vm4, 1.0, %v6879_v3  ;;  %v6933_v15 = vsel %vm171_vm5, 1.0, %v6879_v3  ;;  %v6937_v16 = vsel %vm172_vm6, 1.0, %v6879_v3  ;;  %v6941_v17 = vsel %vm173_vm7, 1.0, %v6879_v3 }
  0x13   : > { %v6943_v19 = vmul.f32 0.015625, %v182_v2  ;;  %v6945_v20 = vmul.f32 0.015625, %v183_v5  ;;  %v6947_v21 = vmul.f32 0.015625, %v184_v6  ;;  %v6949_v22 = vmul.f32 0.015625, %v185_v7 }
  0x14   : > { %v6951_v23 = vmul.f32 0.015625, %v186_v11  ;;  %v6953_v24 = vmul.f32 0.015625, %v187_v12  ;;  %v6955_v25 = vmul.f32 0.015625, %v188_v13  ;;  %v6957_v26 = vmul.f32 0.015625, %v189_v18 }
  0x15   : > { %v6960_v27 = vadd.f32 %v6943_v19, %v174_v4  ;;  %v6963_v28 = vsub.s32 0, %v6905_v1  ;;  %v6966_v29 = vsub.s32 1, %v6905_v1  ;;  %v6969_v30 = vsub.s32 2, %v6905_v1 }
  0x16   : > { %v6972_v31 = vsub.s32 3, %v6905_v1  ;;  %v6975_v32 = vsub.s32 4, %v6905_v1  ;;  %v6978_v33 = vsub.s32 5, %v6905_v1  ;;  %v6981_v34 = vsub.s32 6, %v6905_v1 }
  0x17   : > { %v209_v35 = vrot.slane %v6943_v19, %v6963_v28  ;;  %v213_v36 = vrot.slane %v6945_v20, %v6963_v28  ;;  %v217_v37 = vrot.slane %v6947_v21, %v6963_v28  ;;  %v221_v38 = vrot.slane %v6949_v22, %v6963_v28 }
  0x18   : > { %v225_v39 = vrot.slane %v6951_v23, %v6963_v28  ;;  %v229_v40 = vrot.slane %v6953_v24, %v6963_v28  ;;  %v233_v41 = vrot.slane %v6955_v25, %v6963_v28  ;;  %v237_v42 = vrot.slane %v6957_v26, %v6963_v28 }
  0x19   : > { %v238_v43 = vmul.f32 %v209_v35, %v6943_v19  ;;  %v239_v44 = vmul.f32 %v213_v36, %v6943_v19  ;;  %v240_v45 = vmul.f32 %v217_v37, %v6943_v19  ;;  %v241_v46 = vmul.f32 %v221_v38, %v6943_v19 }
  0x1a   : > { %v242_v47 = vmul.f32 %v225_v39, %v6943_v19  ;;  %v243_v48 = vmul.f32 %v229_v40, %v6943_v19  ;;  %v244_v49 = vmul.f32 %v233_v41, %v6943_v19  ;;  %v245_v50 = vmul.f32 %v237_v42, %v6943_v19 }
  0x1b   : > { %v249_v51 = vrot.slane %v6943_v19, %v6966_v29  ;;  %v253_v52 = vrot.slane %v6945_v20, %v6966_v29  ;;  %v257_v53 = vrot.slane %v6947_v21, %v6966_v29  ;;  %v261_v54 = vrot.slane %v6949_v22, %v6966_v29 }
  0x1c   : > { %v265_v55 = vrot.slane %v6951_v23, %v6966_v29  ;;  %v269_v56 = vrot.slane %v6953_v24, %v6966_v29  ;;  %v273_v57 = vrot.slane %v6955_v25, %v6966_v29  ;;  %v277_v58 = vrot.slane %v6957_v26, %v6966_v29 }
  0x1d   : > { %v278_v59 = vmul.f32 %v249_v51, %v6945_v20  ;;  %v279_v60 = vmul.f32 %v253_v52, %v6945_v20  ;;  %v280_v61 = vmul.f32 %v257_v53, %v6945_v20  ;;  %v281_v62 = vmul.f32 %v261_v54, %v6945_v20 }
  0x1e   : > { %v282_v63 = vmul.f32 %v265_v55, %v6945_v20  ;;  %v283_v0 = vmul.f32 %v269_v56, %v6945_v20  ;;  %v284_v2 = vmul.f32 %v273_v57, %v6945_v20  ;;  %v285_v3 = vmul.f32 %v277_v58, %v6945_v20 }
  0x1f   : > { %v286_v4 = vadd.f32 %v278_v59, %v238_v43  ;;  %v287_v5 = vadd.f32 %v279_v60, %v239_v44  ;;  %v288_v6 = vadd.f32 %v280_v61, %v240_v45  ;;  %v289_v7 = vadd.f32 %v281_v62, %v241_v46 }
  0x20   : > { %v290_v11 = vadd.f32 %v282_v63, %v242_v47  ;;  %v291_v12 = vadd.f32 %v283_v0, %v243_v48  ;;  %v292_v13 = vadd.f32 %v284_v2, %v244_v49  ;;  %v293_v18 = vadd.f32 %v285_v3, %v245_v50 }
  0x21   : > { %v297_v35 = vrot.slane %v6943_v19, %v6969_v30  ;;  %v301_v36 = vrot.slane %v6945_v20, %v6969_v30  ;;  %v305_v37 = vrot.slane %v6947_v21, %v6969_v30  ;;  %v309_v38 = vrot.slane %v6949_v22, %v6969_v30 }
  0x22   : > { %v313_v39 = vrot.slane %v6951_v23, %v6969_v30  ;;  %v317_v40 = vrot.slane %v6953_v24, %v6969_v30  ;;  %v321_v41 = vrot.slane %v6955_v25, %v6969_v30  ;;  %v325_v42 = vrot.slane %v6957_v26, %v6969_v30 }
  0x23   : > { %v326_v43 = vmul.f32 %v297_v35, %v6947_v21  ;;  %v327_v44 = vmul.f32 %v301_v36, %v6947_v21  ;;  %v328_v45 = vmul.f32 %v305_v37, %v6947_v21  ;;  %v329_v46 = vmul.f32 %v309_v38, %v6947_v21 }
  0x24   : > { %v330_v47 = vmul.f32 %v313_v39, %v6947_v21  ;;  %v331_v48 = vmul.f32 %v317_v40, %v6947_v21  ;;  %v332_v49 = vmul.f32 %v321_v41, %v6947_v21  ;;  %v333_v50 = vmul.f32 %v325_v42, %v6947_v21 }
  0x25   : > { %v334_v51 = vadd.f32 %v326_v43, %v286_v4  ;;  %v335_v52 = vadd.f32 %v327_v44, %v287_v5  ;;  %v336_v53 = vadd.f32 %v328_v45, %v288_v6  ;;  %v337_v54 = vadd.f32 %v329_v46, %v289_v7 }
  0x26   : > { %v338_v55 = vadd.f32 %v330_v47, %v290_v11  ;;  %v339_v56 = vadd.f32 %v331_v48, %v291_v12  ;;  %v340_v57 = vadd.f32 %v332_v49, %v292_v13  ;;  %v341_v58 = vadd.f32 %v333_v50, %v293_v18 }
  0x27   : > { %v345_v59 = vrot.slane %v6943_v19, %v6972_v31  ;;  %v349_v60 = vrot.slane %v6945_v20, %v6972_v31  ;;  %v353_v61 = vrot.slane %v6947_v21, %v6972_v31  ;;  %v357_v62 = vrot.slane %v6949_v22, %v6972_v31 }
  0x28   : > { %v361_v63 = vrot.slane %v6951_v23, %v6972_v31  ;;  %v365_v0 = vrot.slane %v6953_v24, %v6972_v31  ;;  %v369_v2 = vrot.slane %v6955_v25, %v6972_v31  ;;  %v373_v3 = vrot.slane %v6957_v26, %v6972_v31 }
  0x29   : > { %v374_v4 = vmul.f32 %v345_v59, %v6949_v22  ;;  %v375_v5 = vmul.f32 %v349_v60, %v6949_v22  ;;  %v376_v6 = vmul.f32 %v353_v61, %v6949_v22  ;;  %v377_v7 = vmul.f32 %v357_v62, %v6949_v22 }
  0x2a   : > { %v378_v11 = vmul.f32 %v361_v63, %v6949_v22  ;;  %v379_v12 = vmul.f32 %v365_v0, %v6949_v22  ;;  %v380_v13 = vmul.f32 %v369_v2, %v6949_v22  ;;  %v381_v18 = vmul.f32 %v373_v3, %v6949_v22 }
  0x2b   : > { %v382_v35 = vadd.f32 %v374_v4, %v334_v51  ;;  %v383_v36 = vadd.f32 %v375_v5, %v335_v52  ;;  %v384_v37 = vadd.f32 %v376_v6, %v336_v53  ;;  %v385_v38 = vadd.f32 %v377_v7, %v337_v54 }
  0x2c   : > { %v386_v39 = vadd.f32 %v378_v11, %v338_v55  ;;  %v387_v40 = vadd.f32 %v379_v12, %v339_v56  ;;  %v388_v41 = vadd.f32 %v380_v13, %v340_v57  ;;  %v389_v42 = vadd.f32 %v381_v18, %v341_v58 }
  0x2d   : > { %v393_v43 = vrot.slane %v6943_v19, %v6975_v32  ;;  %v397_v44 = vrot.slane %v6945_v20, %v6975_v32  ;;  %v401_v45 = vrot.slane %v6947_v21, %v6975_v32  ;;  %v405_v46 = vrot.slane %v6949_v22, %v6975_v32 }
  0x2e   : > { %v409_v47 = vrot.slane %v6951_v23, %v6975_v32  ;;  %v413_v48 = vrot.slane %v6953_v24, %v6975_v32  ;;  %v417_v49 = vrot.slane %v6955_v25, %v6975_v32  ;;  %v421_v50 = vrot.slane %v6957_v26, %v6975_v32 }
  0x2f   : > { %v422_v51 = vmul.f32 %v393_v43, %v6951_v23  ;;  %v423_v52 = vmul.f32 %v397_v44, %v6951_v23  ;;  %v424_v53 = vmul.f32 %v401_v45, %v6951_v23  ;;  %v425_v54 = vmul.f32 %v405_v46, %v6951_v23 }
  0x30   : > { %v426_v55 = vmul.f32 %v409_v47, %v6951_v23  ;;  %v427_v56 = vmul.f32 %v413_v48, %v6951_v23  ;;  %v428_v57 = vmul.f32 %v417_v49, %v6951_v23  ;;  %v429_v58 = vmul.f32 %v421_v50, %v6951_v23 }
  0x31   : > { %v430_v59 = vadd.f32 %v422_v51, %v382_v35  ;;  %v431_v60 = vadd.f32 %v423_v52, %v383_v36  ;;  %v432_v61 = vadd.f32 %v424_v53, %v384_v37  ;;  %v433_v62 = vadd.f32 %v425_v54, %v385_v38 }
  0x32   : > { %v434_v63 = vadd.f32 %v426_v55, %v386_v39  ;;  %v435_v0 = vadd.f32 %v427_v56, %v387_v40  ;;  %v436_v2 = vadd.f32 %v428_v57, %v388_v41  ;;  %v437_v3 = vadd.f32 %v429_v58, %v389_v42 }
  0x33   : > { %v441_v4 = vrot.slane %v6943_v19, %v6978_v33  ;;  %v445_v5 = vrot.slane %v6945_v20, %v6978_v33  ;;  %v449_v6 = vrot.slane %v6947_v21, %v6978_v33  ;;  %v453_v7 = vrot.slane %v6949_v22, %v6978_v33 }
  0x34   : > { %v457_v11 = vrot.slane %v6951_v23, %v6978_v33  ;;  %v461_v12 = vrot.slane %v6953_v24, %v6978_v33  ;;  %v465_v13 = vrot.slane %v6955_v25, %v6978_v33  ;;  %v469_v18 = vrot.slane %v6957_v26, %v6978_v33 }
  0x35   : > { %v470_v35 = vmul.f32 %v441_v4, %v6953_v24  ;;  %v471_v36 = vmul.f32 %v445_v5, %v6953_v24  ;;  %v472_v37 = vmul.f32 %v449_v6, %v6953_v24  ;;  %v473_v38 = vmul.f32 %v453_v7, %v6953_v24 }
  0x36   : > { %v474_v39 = vmul.f32 %v457_v11, %v6953_v24  ;;  %v475_v40 = vmul.f32 %v461_v12, %v6953_v24  ;;  %v476_v41 = vmul.f32 %v465_v13, %v6953_v24  ;;  %v477_v42 = vmul.f32 %v469_v18, %v6953_v24 }
  0x37   : > { %v478_v43 = vadd.f32 %v470_v35, %v430_v59  ;;  %v479_v44 = vadd.f32 %v471_v36, %v431_v60  ;;  %v480_v45 = vadd.f32 %v472_v37, %v432_v61  ;;  %v481_v46 = vadd.f32 %v473_v38, %v433_v62 }
  0x38   : > { %v482_v47 = vadd.f32 %v474_v39, %v434_v63  ;;  %v483_v48 = vadd.f32 %v475_v40, %v435_v0  ;;  %v484_v49 = vadd.f32 %v476_v41, %v436_v2  ;;  %v485_v50 = vadd.f32 %v477_v42, %v437_v3 }
  0x39   : > { %v489_v51 = vrot.slane %v6943_v19, %v6981_v34  ;;  %v493_v52 = vrot.slane %v6945_v20, %v6981_v34  ;;  %v497_v53 = vrot.slane %v6947_v21, %v6981_v34  ;;  %v501_v54 = vrot.slane %v6949_v22, %v6981_v34 }
  0x3a   : > { %v505_v55 = vrot.slane %v6951_v23, %v6981_v34  ;;  %v509_v56 = vrot.slane %v6953_v24, %v6981_v34  ;;  %v513_v57 = vrot.slane %v6955_v25, %v6981_v34  ;;  %v517_v58 = vrot.slane %v6957_v26, %v6981_v34 }
  0x3b   : > { %v518_v59 = vmul.f32 %v489_v51, %v6955_v25  ;;  %v519_v60 = vmul.f32 %v493_v52, %v6955_v25  ;;  %v520_v61 = vmul.f32 %v497_v53, %v6955_v25  ;;  %v521_v62 = vmul.f32 %v501_v54, %v6955_v25 }
  0x3c   : > { %v522_v63 = vmul.f32 %v505_v55, %v6955_v25  ;;  %v523_v0 = vmul.f32 %v509_v56, %v6955_v25  ;;  %v524_v2 = vmul.f32 %v513_v57, %v6955_v25  ;;  %v525_v3 = vmul.f32 %v517_v58, %v6955_v25 }
  0x3d   : > { %v199_v4 = vadd.f32 %v6945_v20, %v6921_v8  ;;  %v200_v5 = vadd.f32 %v6947_v21, %v6923_v9  ;;  %v201_v6 = vadd.f32 %v6949_v22, %v6925_v10  ;;  %v202_v7 = vadd.f32 %v6951_v23, %v6929_v14 }
  0x3e   : > { %v203_v11 = vadd.f32 %v6953_v24, %v6933_v15  ;;  %v204_v12 = vadd.f32 %v6955_v25, %v6937_v16  ;;  %v205_v13 = vadd.f32 %v6957_v26, %v6941_v17  ;;  %v526_v18 = vadd.f32 %v518_v59, %v478_v43 }
  0x3f   : > { %v527_v8 = vadd.f32 %v519_v60, %v479_v44  ;;  %v528_v35 = vadd.f32 %v520_v61, %v480_v45  ;;  %v529_v36 = vadd.f32 %v521_v62, %v481_v46  ;;  %v7166_v9 = vsub.s32 7, %v6905_v1 }
  0x40   : > { %v530_v10 = vadd.f32 %v522_v63, %v482_v47  ;;  %v531_v37 = vadd.f32 %v523_v0, %v483_v48  ;;  %v532_v38 = vadd.f32 %v524_v2, %v484_v49  ;;  %v533_v14 = vadd.f32 %v525_v3, %v485_v50 }
  0x41   : > { %v537_v15 = vrot.slane %v6943_v19, %v7166_v9  ;;  %v541_v16 = vrot.slane %v6945_v20, %v7166_v9  ;;  %v545_v17 = vrot.slane %v6947_v21, %v7166_v9  ;;  %v549_v39 = vrot.slane %v6949_v22, %v7166_v9 }
  0x42   : > { %v553_v1 = vrot.slane %v6951_v23, %v7166_v9  ;;  %v557_v40 = vrot.slane %v6953_v24, %v7166_v9  ;;  %v561_v41 = vrot.slane %v6955_v25, %v7166_v9  ;;  %v565_v42 = vrot.slane %v6957_v26, %v7166_v9 }
  0x43   : > { %v566_v43 = vmul.f32 %v537_v15, %v6957_v26  ;;  %v567_v44 = vmul.f32 %v541_v16, %v6957_v26  ;;  %v568_v45 = vmul.f32 %v545_v17, %v6957_v26  ;;  %v569_v46 = vmul.f32 %v549_v39, %v6957_v26 }
  0x44   : > { %v570_v47 = vmul.f32 %v553_v1, %v6957_v26  ;;  %v571_v48 = vmul.f32 %v557_v40, %v6957_v26  ;;  %v572_v49 = vmul.f32 %v561_v41, %v6957_v26  ;;  %v573_v50 = vmul.f32 %v565_v42, %v6957_v26 }
  0x45   : > { %v574_v51 = vadd.f32 %v566_v43, %v526_v18  ;;  %v575_v52 = vadd.f32 %v567_v44, %v527_v8  ;;  %v576_v53 = vadd.f32 %v568_v45, %v528_v35  ;;  %v577_v54 = vadd.f32 %v569_v46, %v529_v36 }
  0x46   : > { %v578_v55 = vadd.f32 %v570_v47, %v530_v10  ;;  %v579_v56 = vadd.f32 %v571_v48, %v531_v37  ;;  %v580_v57 = vadd.f32 %v572_v49, %v532_v38  ;;  %v581_v58 = vadd.f32 %v573_v50, %v533_v14 }
  0x47   : > { %v7192_v59 = vmul.f32 0.5, %v574_v51  ;;  %v7194_v60 = vmul.f32 0.5, %v575_v52  ;;  %v7196_v61 = vmul.f32 0.5, %v576_v53  ;;  %v7198_v62 = vmul.f32 0.5, %v577_v54 }
  0x48   : > { %v7200_v63 = vmul.f32 0.5, %v578_v55  ;;  %v7202_v0 = vmul.f32 0.5, %v579_v56  ;;  %v7204_v2 = vmul.f32 0.5, %v580_v57  ;;  %v7206_v3 = vmul.f32 0.5, %v581_v58 }
  0x49   : > { %v7210_v18 = vadd.f32 %v7192_v59, %v6960_v27  ;;  %v7213_v8 = vadd.f32 %v7194_v60, %v199_v4  ;;  %v7216_v35 = vadd.f32 %v7196_v61, %v200_v5  ;;  %v7219_v36 = vadd.f32 %v7198_v62, %v201_v6 }
  0x4a   : > { %v7222_v10 = vadd.f32 %v7200_v63, %v202_v7  ;;  %v7225_v37 = vadd.f32 %v7202_v0, %v203_v11  ;;  %v7228_v38 = vadd.f32 %v7204_v2, %v204_v12  ;;  %v7231_v27 = vadd.f32 %v7206_v3, %v205_v13 }
  0x4b   : > { %v601_v4 = vrot.slane %v7192_v59, %v6963_v28  ;;  %v605_v5 = vrot.slane %v7194_v60, %v6963_v28  ;;  %v609_v6 = vrot.slane %v7196_v61, %v6963_v28  ;;  %v613_v7 = vrot.slane %v7198_v62, %v6963_v28 }
  0x4c   : > { %v617_v11 = vrot.slane %v7200_v63, %v6963_v28  ;;  %v621_v12 = vrot.slane %v7202_v0, %v6963_v28  ;;  %v625_v13 = vrot.slane %v7204_v2, %v6963_v28  ;;  %v629_v14 = vrot.slane %v7206_v3, %v6963_v28 }
  0x4d   : > { %v630_v15 = vmul.f32 %v601_v4, %v6943_v19  ;;  %v631_v16 = vmul.f32 %v605_v5, %v6943_v19  ;;  %v632_v17 = vmul.f32 %v609_v6, %v6943_v19  ;;  %v633_v39 = vmul.f32 %v613_v7, %v6943_v19 }
  0x4e   : > { %v634_v1 = vmul.f32 %v617_v11, %v6943_v19  ;;  %v635_v40 = vmul.f32 %v621_v12, %v6943_v19  ;;  %v636_v41 = vmul.f32 %v625_v13, %v6943_v19  ;;  %v637_v42 = vmul.f32 %v629_v14, %v6943_v19 }
  0x4f   : > { %v641_v43 = vrot.slane %v7192_v59, %v6966_v29  ;;  %v645_v44 = vrot.slane %v7194_v60, %v6966_v29  ;;  %v649_v45 = vrot.slane %v7196_v61, %v6966_v29  ;;  %v653_v46 = vrot.slane %v7198_v62, %v6966_v29 }
  0x50   : > { %v657_v47 = vrot.slane %v7200_v63, %v6966_v29  ;;  %v661_v48 = vrot.slane %v7202_v0, %v6966_v29  ;;  %v665_v49 = vrot.slane %v7204_v2, %v6966_v29  ;;  %v669_v50 = vrot.slane %v7206_v3, %v6966_v29 }
  0x51   : > { %v670_v51 = vmul.f32 %v641_v43, %v6945_v20  ;;  %v671_v52 = vmul.f32 %v645_v44, %v6945_v20  ;;  %v672_v53 = vmul.f32 %v649_v45, %v6945_v20  ;;  %v673_v54 = vmul.f32 %v653_v46, %v6945_v20 }
  0x52   : > { %v674_v55 = vmul.f32 %v657_v47, %v6945_v20  ;;  %v675_v56 = vmul.f32 %v661_v48, %v6945_v20  ;;  %v676_v57 = vmul.f32 %v665_v49, %v6945_v20  ;;  %v677_v58 = vmul.f32 %v669_v50, %v6945_v20 }
  0x53   : > { %v678_v4 = vadd.f32 %v670_v51, %v630_v15  ;;  %v679_v5 = vadd.f32 %v671_v52, %v631_v16  ;;  %v680_v6 = vadd.f32 %v672_v53, %v632_v17  ;;  %v681_v7 = vadd.f32 %v673_v54, %v633_v39 }
  0x54   : > { %v682_v11 = vadd.f32 %v674_v55, %v634_v1  ;;  %v683_v12 = vadd.f32 %v675_v56, %v635_v40  ;;  %v684_v13 = vadd.f32 %v676_v57, %v636_v41  ;;  %v685_v14 = vadd.f32 %v677_v58, %v637_v42 }
  0x55   : > { %v689_v43 = vrot.slane %v7192_v59, %v6969_v30  ;;  %v693_v44 = vrot.slane %v7194_v60, %v6969_v30  ;;  %v697_v45 = vrot.slane %v7196_v61, %v6969_v30  ;;  %v701_v46 = vrot.slane %v7198_v62, %v6969_v30 }
  0x56   : > { %v705_v15 = vrot.slane %v7200_v63, %v6969_v30  ;;  %v709_v16 = vrot.slane %v7202_v0, %v6969_v30  ;;  %v713_v17 = vrot.slane %v7204_v2, %v6969_v30  ;;  %v717_v39 = vrot.slane %v7206_v3, %v6969_v30 }
  0x57   : > { %v718_v1 = vmul.f32 %v689_v43, %v6947_v21  ;;  %v719_v40 = vmul.f32 %v693_v44, %v6947_v21  ;;  %v720_v41 = vmul.f32 %v697_v45, %v6947_v21  ;;  %v721_v42 = vmul.f32 %v701_v46, %v6947_v21 }
  0x58   : > { %v722_v47 = vmul.f32 %v705_v15, %v6947_v21  ;;  %v723_v48 = vmul.f32 %v709_v16, %v6947_v21  ;;  %v724_v49 = vmul.f32 %v713_v17, %v6947_v21  ;;  %v725_v50 = vmul.f32 %v717_v39, %v6947_v21 }
  0x59   : > { %v726_v51 = vadd.f32 %v718_v1, %v678_v4  ;;  %v727_v52 = vadd.f32 %v719_v40, %v679_v5  ;;  %v728_v53 = vadd.f32 %v720_v41, %v680_v6  ;;  %v729_v54 = vadd.f32 %v721_v42, %v681_v7 }
  0x5a   : > { %v730_v55 = vadd.f32 %v722_v47, %v682_v11  ;;  %v731_v56 = vadd.f32 %v723_v48, %v683_v12  ;;  %v732_v57 = vadd.f32 %v724_v49, %v684_v13  ;;  %v733_v58 = vadd.f32 %v725_v50, %v685_v14 }
  0x5b   : > { %v737_v43 = vrot.slane %v7192_v59, %v6972_v31  ;;  %v741_v44 = vrot.slane %v7194_v60, %v6972_v31  ;;  %v745_v45 = vrot.slane %v7196_v61, %v6972_v31  ;;  %v749_v46 = vrot.slane %v7198_v62, %v6972_v31 }
  0x5c   : > { %v753_v4 = vrot.slane %v7200_v63, %v6972_v31  ;;  %v757_v5 = vrot.slane %v7202_v0, %v6972_v31  ;;  %v761_v6 = vrot.slane %v7204_v2, %v6972_v31  ;;  %v765_v7 = vrot.slane %v7206_v3, %v6972_v31 }
  0x5d   : > { %v766_v11 = vmul.f32 %v737_v43, %v6949_v22  ;;  %v767_v12 = vmul.f32 %v741_v44, %v6949_v22  ;;  %v768_v13 = vmul.f32 %v745_v45, %v6949_v22  ;;  %v769_v14 = vmul.f32 %v749_v46, %v6949_v22 }
  0x5e   : > { %v770_v15 = vmul.f32 %v753_v4, %v6949_v22  ;;  %v771_v16 = vmul.f32 %v757_v5, %v6949_v22  ;;  %v772_v17 = vmul.f32 %v761_v6, %v6949_v22  ;;  %v773_v39 = vmul.f32 %v765_v7, %v6949_v22 }
  0x5f   : > { %v774_v1 = vadd.f32 %v766_v11, %v726_v51  ;;  %v775_v40 = vadd.f32 %v767_v12, %v727_v52  ;;  %v776_v41 = vadd.f32 %v768_v13, %v728_v53  ;;  %v777_v42 = vadd.f32 %v769_v14, %v729_v54 }
  0x60   : > { %v778_v47 = vadd.f32 %v770_v15, %v730_v55  ;;  %v779_v48 = vadd.f32 %v771_v16, %v731_v56  ;;  %v780_v49 = vadd.f32 %v772_v17, %v732_v57  ;;  %v781_v50 = vadd.f32 %v773_v39, %v733_v58 }
  0x61   : > { %v785_v43 = vrot.slane %v7192_v59, %v6975_v32  ;;  %v789_v44 = vrot.slane %v7194_v60, %v6975_v32  ;;  %v793_v45 = vrot.slane %v7196_v61, %v6975_v32  ;;  %v797_v46 = vrot.slane %v7198_v62, %v6975_v32 }
  0x62   : > { %v801_v51 = vrot.slane %v7200_v63, %v6975_v32  ;;  %v805_v52 = vrot.slane %v7202_v0, %v6975_v32  ;;  %v809_v53 = vrot.slane %v7204_v2, %v6975_v32  ;;  %v813_v54 = vrot.slane %v7206_v3, %v6975_v32 }
  0x63   : > { %v814_v55 = vmul.f32 %v785_v43, %v6951_v23  ;;  %v815_v56 = vmul.f32 %v789_v44, %v6951_v23  ;;  %v816_v57 = vmul.f32 %v793_v45, %v6951_v23  ;;  %v817_v58 = vmul.f32 %v797_v46, %v6951_v23 }
  0x64   : > { %v818_v4 = vmul.f32 %v801_v51, %v6951_v23  ;;  %v819_v5 = vmul.f32 %v805_v52, %v6951_v23  ;;  %v820_v6 = vmul.f32 %v809_v53, %v6951_v23  ;;  %v821_v7 = vmul.f32 %v813_v54, %v6951_v23 }
  0x65   : > { %v822_v11 = vadd.f32 %v814_v55, %v774_v1  ;;  %v823_v12 = vadd.f32 %v815_v56, %v775_v40  ;;  %v824_v13 = vadd.f32 %v816_v57, %v776_v41  ;;  %v825_v14 = vadd.f32 %v817_v58, %v777_v42 }
  0x66   : > { %v826_v15 = vadd.f32 %v818_v4, %v778_v47  ;;  %v827_v16 = vadd.f32 %v819_v5, %v779_v48  ;;  %v828_v17 = vadd.f32 %v820_v6, %v780_v49  ;;  %v829_v39 = vadd.f32 %v821_v7, %v781_v50 }
  0x67   : > { %v833_v43 = vrot.slane %v7192_v59, %v6978_v33  ;;  %v837_v44 = vrot.slane %v7194_v60, %v6978_v33  ;;  %v841_v45 = vrot.slane %v7196_v61, %v6978_v33  ;;  %v845_v46 = vrot.slane %v7198_v62, %v6978_v33 }
  0x68   : > { %v849_v1 = vrot.slane %v7200_v63, %v6978_v33  ;;  %v853_v40 = vrot.slane %v7202_v0, %v6978_v33  ;;  %v857_v41 = vrot.slane %v7204_v2, %v6978_v33  ;;  %v861_v42 = vrot.slane %v7206_v3, %v6978_v33 }
  0x69   : > { %v862_v47 = vmul.f32 %v833_v43, %v6953_v24  ;;  %v863_v48 = vmul.f32 %v837_v44, %v6953_v24  ;;  %v864_v49 = vmul.f32 %v841_v45, %v6953_v24  ;;  %v865_v50 = vmul.f32 %v845_v46, %v6953_v24 }
  0x6a   : > { %v866_v51 = vmul.f32 %v849_v1, %v6953_v24  ;;  %v867_v52 = vmul.f32 %v853_v40, %v6953_v24  ;;  %v868_v53 = vmul.f32 %v857_v41, %v6953_v24  ;;  %v869_v54 = vmul.f32 %v861_v42, %v6953_v24 }
  0x6b   : > { %v870_v55 = vadd.f32 %v862_v47, %v822_v11  ;;  %v871_v56 = vadd.f32 %v863_v48, %v823_v12  ;;  %v872_v57 = vadd.f32 %v864_v49, %v824_v13  ;;  %v873_v58 = vadd.f32 %v865_v50, %v825_v14 }
  0x6c   : > { %v874_v4 = vadd.f32 %v866_v51, %v826_v15  ;;  %v875_v5 = vadd.f32 %v867_v52, %v827_v16  ;;  %v876_v6 = vadd.f32 %v868_v53, %v828_v17  ;;  %v877_v7 = vadd.f32 %v869_v54, %v829_v39 }
  0x6d   : > { %v881_v43 = vrot.slane %v7192_v59, %v6981_v34  ;;  %v885_v44 = vrot.slane %v7194_v60, %v6981_v34  ;;  %v889_v45 = vrot.slane %v7196_v61, %v6981_v34  ;;  %v893_v46 = vrot.slane %v7198_v62, %v6981_v34 }
  0x6e   : > { %v897_v11 = vrot.slane %v7200_v63, %v6981_v34  ;;  %v901_v12 = vrot.slane %v7202_v0, %v6981_v34  ;;  %v905_v13 = vrot.slane %v7204_v2, %v6981_v34  ;;  %v909_v14 = vrot.slane %v7206_v3, %v6981_v34 }
  0x6f   : > { %v910_v15 = vmul.f32 %v881_v43, %v6955_v25  ;;  %v911_v16 = vmul.f32 %v885_v44, %v6955_v25  ;;  %v912_v17 = vmul.f32 %v889_v45, %v6955_v25  ;;  %v913_v39 = vmul.f32 %v893_v46, %v6955_v25 }
  0x70   : > { %v914_v1 = vmul.f32 %v897_v11, %v6955_v25  ;;  %v915_v40 = vmul.f32 %v901_v12, %v6955_v25  ;;  %v916_v41 = vmul.f32 %v905_v13, %v6955_v25  ;;  %v917_v42 = vmul.f32 %v909_v14, %v6955_v25 }
  0x71   : > { %v918_v47 = vadd.f32 %v910_v15, %v870_v55  ;;  %v919_v48 = vadd.f32 %v911_v16, %v871_v56  ;;  %v920_v49 = vadd.f32 %v912_v17, %v872_v57  ;;  %v921_v50 = vadd.f32 %v913_v39, %v873_v58 }
  0x72   : > { %v922_v51 = vadd.f32 %v914_v1, %v874_v4  ;;  %v923_v52 = vadd.f32 %v915_v40, %v875_v5  ;;  %v924_v53 = vadd.f32 %v916_v41, %v876_v6  ;;  %v925_v54 = vadd.f32 %v917_v42, %v877_v7 }
  0x73   : > { %v929_v43 = vrot.slane %v7192_v59, %v7166_v9  ;;  %v933_v44 = vrot.slane %v7194_v60, %v7166_v9  ;;  %v937_v45 = vrot.slane %v7196_v61, %v7166_v9  ;;  %v941_v46 = vrot.slane %v7198_v62, %v7166_v9 }
  0x74   : > { %v945_v55 = vrot.slane %v7200_v63, %v7166_v9  ;;  %v949_v56 = vrot.slane %v7202_v0, %v7166_v9  ;;  %v953_v57 = vrot.slane %v7204_v2, %v7166_v9  ;;  %v957_v59 = vrot.slane %v7206_v3, %v7166_v9 }
  0x75   : > { %v958_v60 = vmul.f32 %v929_v43, %v6957_v26  ;;  %v959_v58 = vmul.f32 %v933_v44, %v6957_v26  ;;  %v960_v61 = vmul.f32 %v937_v45, %v6957_v26  ;;  %v961_v62 = vmul.f32 %v941_v46, %v6957_v26 }
  0x76   : > { %v962_v4 = vmul.f32 %v945_v55, %v6957_v26  ;;  %v963_v63 = vmul.f32 %v949_v56, %v6957_v26  ;;  %v964_v0 = vmul.f32 %v953_v57, %v6957_v26  ;;  %v965_v5 = vmul.f32 %v957_v59, %v6957_v26 }
  0x77   : > { %v966_v2 = vadd.f32 %v958_v60, %v918_v47  ;;  %v967_v6 = vadd.f32 %v959_v58, %v919_v48  ;;  %v968_v7 = vadd.f32 %v960_v61, %v920_v49  ;;  %v969_v3 = vadd.f32 %v961_v62, %v921_v50 }
  0x78   : > { %v970_v11 = vadd.f32 %v962_v4, %v922_v51  ;;  %v971_v12 = vadd.f32 %v963_v63, %v923_v52  ;;  %v972_v13 = vadd.f32 %v964_v0, %v924_v53  ;;  %v973_v14 = vadd.f32 %v965_v5, %v925_v54 }
  0x79   : > { %v7425_v15 = vmul.f32 0.33333334, %v966_v2  ;;  %v7427_v16 = vmul.f32 0.33333334, %v967_v6  ;;  %v7429_v17 = vmul.f32 0.33333334, %v968_v7 }
  0x7a   : > { %v7431_v39 = vmul.f32 0.33333334, %v969_v3  ;;  %v7433_v1 = vmul.f32 0.33333334, %v970_v11  ;;  %v7435_v40 = vmul.f32 0.33333334, %v971_v12 }
  0x7b   : > { %v7437_v41 = vmul.f32 0.33333334, %v972_v13  ;;  %v7439_v42 = vmul.f32 0.33333334, %v973_v14  ;;  %v7443_v47 = vadd.f32 %v7425_v15, %v7210_v18  ;;  %v7447_v48 = vadd.f32 %v7427_v16, %v7213_v8 }
  0x7c   : > { %v7451_v49 = vadd.f32 %v7429_v17, %v7216_v35  ;;  %v7455_v50 = vadd.f32 %v7431_v39, %v7219_v36  ;;  %v7459_v51 = vadd.f32 %v7433_v1, %v7222_v10  ;;  %v7463_v18 = vadd.f32 %v7435_v40, %v7225_v37 }
  0x7d   : > { %v7467_v8 = vadd.f32 %v7437_v41, %v7228_v38  ;;  %v993_v35 = vrot.slane %v7425_v15, %v6963_v28  ;;  %v997_v52 = vrot.slane %v7427_v16, %v6963_v28  ;;  %v1001_v36 = vrot.slane %v7429_v17, %v6963_v28 }
  0x7e   : > { %v1005_v10 = vrot.slane %v7431_v39, %v6963_v28  ;;  %v1009_v37 = vrot.slane %v7433_v1, %v6963_v28  ;;  %v1013_v53 = vrot.slane %v7435_v40, %v6963_v28  ;;  %v1017_v38 = vrot.slane %v7437_v41, %v6963_v28 }
  0x7f   : > { %v1021_v54 = vrot.slane %v7439_v42, %v6963_v28  ;;  %v1022_v43 = vmul.f32 %v993_v35, %v6943_v19  ;;  %v1023_v44 = vmul.f32 %v997_v52, %v6943_v19  ;;  %v1024_v45 = vmul.f32 %v1001_v36, %v6943_v19 }
  0x80   : > { %v1025_v46 = vmul.f32 %v1005_v10, %v6943_v19  ;;  %v1026_v55 = vmul.f32 %v1009_v37, %v6943_v19  ;;  %v1027_v56 = vmul.f32 %v1013_v53, %v6943_v19  ;;  %v1028_v57 = vmul.f32 %v1017_v38, %v6943_v19 }
  0x81   : > { %v1029_v59 = vmul.f32 %v1021_v54, %v6943_v19  ;;  %v1033_v60 = vrot.slane %v7425_v15, %v6966_v29  ;;  %v1037_v58 = vrot.slane %v7427_v16, %v6966_v29  ;;  %v1041_v61 = vrot.slane %v7429_v17, %v6966_v29 }
  0x82   : > { %v1045_v62 = vrot.slane %v7431_v39, %v6966_v29  ;;  %v1049_v4 = vrot.slane %v7433_v1, %v6966_v29  ;;  %v1053_v63 = vrot.slane %v7435_v40, %v6966_v29  ;;  %v1057_v0 = vrot.slane %v7437_v41, %v6966_v29 }
  0x83   : > { %v1061_v5 = vrot.slane %v7439_v42, %v6966_v29  ;;  %v1062_v2 = vmul.f32 %v1033_v60, %v6945_v20  ;;  %v1063_v6 = vmul.f32 %v1037_v58, %v6945_v20  ;;  %v1064_v7 = vmul.f32 %v1041_v61, %v6945_v20 }
  0x84   : > { %v1065_v3 = vmul.f32 %v1045_v62, %v6945_v20  ;;  %v1066_v11 = vmul.f32 %v1049_v4, %v6945_v20  ;;  %v1067_v12 = vmul.f32 %v1053_v63, %v6945_v20  ;;  %v1068_v13 = vmul.f32 %v1057_v0, %v6945_v20 }
  0x85   : > { %v1069_v14 = vmul.f32 %v1061_v5, %v6945_v20  ;;  %v1070_v35 = vadd.f32 %v1062_v2, %v1022_v43  ;;  %v1071_v52 = vadd.f32 %v1063_v6, %v1023_v44  ;;  %v1072_v36 = vadd.f32 %v1064_v7, %v1024_v45 }
  0x86   : > { %v1073_v10 = vadd.f32 %v1065_v3, %v1025_v46  ;;  %v1074_v37 = vadd.f32 %v1066_v11, %v1026_v55  ;;  %v1075_v53 = vadd.f32 %v1067_v12, %v1027_v56  ;;  %v1076_v38 = vadd.f32 %v1068_v13, %v1028_v57 }
  0x87   : > { %v1077_v54 = vadd.f32 %v1069_v14, %v1029_v59  ;;  %v1081_v60 = vrot.slane %v7425_v15, %v6969_v30  ;;  %v1085_v58 = vrot.slane %v7427_v16, %v6969_v30  ;;  %v1089_v61 = vrot.slane %v7429_v17, %v6969_v30 }
  0x88   : > { %v1093_v62 = vrot.slane %v7431_v39, %v6969_v30  ;;  %v1097_v43 = vrot.slane %v7433_v1, %v6969_v30  ;;  %v1101_v44 = vrot.slane %v7435_v40, %v6969_v30  ;;  %v1105_v45 = vrot.slane %v7437_v41, %v6969_v30 }
  0x89   : > { %v1109_v46 = vrot.slane %v7439_v42, %v6969_v30  ;;  %v1110_v55 = vmul.f32 %v1081_v60, %v6947_v21  ;;  %v1111_v56 = vmul.f32 %v1085_v58, %v6947_v21  ;;  %v1112_v57 = vmul.f32 %v1089_v61, %v6947_v21 }
  0x8a   : > { %v1113_v59 = vmul.f32 %v1093_v62, %v6947_v21  ;;  %v1114_v4 = vmul.f32 %v1097_v43, %v6947_v21  ;;  %v1115_v63 = vmul.f32 %v1101_v44, %v6947_v21  ;;  %v1116_v0 = vmul.f32 %v1105_v45, %v6947_v21 }
  0x8b   : > { %v1117_v5 = vmul.f32 %v1109_v46, %v6947_v21  ;;  %v1118_v2 = vadd.f32 %v1110_v55, %v1070_v35  ;;  %v1119_v6 = vadd.f32 %v1111_v56, %v1071_v52  ;;  %v1120_v7 = vadd.f32 %v1112_v57, %v1072_v36 }
  0x8c   : > { %v1121_v3 = vadd.f32 %v1113_v59, %v1073_v10  ;;  %v1122_v11 = vadd.f32 %v1114_v4, %v1074_v37  ;;  %v1123_v12 = vadd.f32 %v1115_v63, %v1075_v53  ;;  %v1124_v13 = vadd.f32 %v1116_v0, %v1076_v38 }
  0x8d   : > { %v1125_v14 = vadd.f32 %v1117_v5, %v1077_v54  ;;  %v1129_v60 = vrot.slane %v7425_v15, %v6972_v31  ;;  %v1133_v58 = vrot.slane %v7427_v16, %v6972_v31  ;;  %v1137_v61 = vrot.slane %v7429_v17, %v6972_v31 }
  0x8e   : > { %v1141_v62 = vrot.slane %v7431_v39, %v6972_v31  ;;  %v1145_v35 = vrot.slane %v7433_v1, %v6972_v31  ;;  %v1149_v52 = vrot.slane %v7435_v40, %v6972_v31  ;;  %v1153_v36 = vrot.slane %v7437_v41, %v6972_v31 }
  0x8f   : > { %v1157_v10 = vrot.slane %v7439_v42, %v6972_v31  ;;  %v1158_v37 = vmul.f32 %v1129_v60, %v6949_v22  ;;  %v1159_v53 = vmul.f32 %v1133_v58, %v6949_v22  ;;  %v1160_v38 = vmul.f32 %v1137_v61, %v6949_v22 }
  0x90   : > { %v1161_v54 = vmul.f32 %v1141_v62, %v6949_v22  ;;  %v1162_v43 = vmul.f32 %v1145_v35, %v6949_v22  ;;  %v1163_v44 = vmul.f32 %v1149_v52, %v6949_v22  ;;  %v1164_v45 = vmul.f32 %v1153_v36, %v6949_v22 }
  0x91   : > { %v1165_v46 = vmul.f32 %v1157_v10, %v6949_v22  ;;  %v1166_v55 = vadd.f32 %v1158_v37, %v1118_v2  ;;  %v1167_v56 = vadd.f32 %v1159_v53, %v1119_v6  ;;  %v1168_v57 = vadd.f32 %v1160_v38, %v1120_v7 }
  0x92   : > { %v1169_v59 = vadd.f32 %v1161_v54, %v1121_v3  ;;  %v1170_v4 = vadd.f32 %v1162_v43, %v1122_v11  ;;  %v1171_v63 = vadd.f32 %v1163_v44, %v1123_v12  ;;  %v1172_v0 = vadd.f32 %v1164_v45, %v1124_v13 }
  0x93   : > { %v1173_v5 = vadd.f32 %v1165_v46, %v1125_v14  ;;  %v1177_v60 = vrot.slane %v7425_v15, %v6975_v32  ;;  %v1181_v58 = vrot.slane %v7427_v16, %v6975_v32  ;;  %v1185_v61 = vrot.slane %v7429_v17, %v6975_v32 }
  0x94   : > { %v1189_v62 = vrot.slane %v7431_v39, %v6975_v32  ;;  %v1193_v2 = vrot.slane %v7433_v1, %v6975_v32  ;;  %v1197_v6 = vrot.slane %v7435_v40, %v6975_v32  ;;  %v1201_v7 = vrot.slane %v7437_v41, %v6975_v32 }
  0x95   : > { %v1205_v3 = vrot.slane %v7439_v42, %v6975_v32  ;;  %v1206_v11 = vmul.f32 %v1177_v60, %v6951_v23  ;;  %v1207_v12 = vmul.f32 %v1181_v58, %v6951_v23  ;;  %v1208_v13 = vmul.f32 %v1185_v61, %v6951_v23 }
  0x96   : > { %v1209_v14 = vmul.f32 %v1189_v62, %v6951_v23  ;;  %v1210_v35 = vmul.f32 %v1193_v2, %v6951_v23  ;;  %v1211_v52 = vmul.f32 %v1197_v6, %v6951_v23  ;;  %v1212_v36 = vmul.f32 %v1201_v7, %v6951_v23 }
  0x97   : > { %v1213_v10 = vmul.f32 %v1205_v3, %v6951_v23  ;;  %v1214_v37 = vadd.f32 %v1206_v11, %v1166_v55  ;;  %v1215_v53 = vadd.f32 %v1207_v12, %v1167_v56  ;;  %v1216_v38 = vadd.f32 %v1208_v13, %v1168_v57 }
  0x98   : > { %v1217_v54 = vadd.f32 %v1209_v14, %v1169_v59  ;;  %v1218_v43 = vadd.f32 %v1210_v35, %v1170_v4  ;;  %v1219_v44 = vadd.f32 %v1211_v52, %v1171_v63  ;;  %v1220_v45 = vadd.f32 %v1212_v36, %v1172_v0 }
  0x99   : > { %v1221_v46 = vadd.f32 %v1213_v10, %v1173_v5  ;;  %v1225_v60 = vrot.slane %v7425_v15, %v6978_v33  ;;  %v1229_v58 = vrot.slane %v7427_v16, %v6978_v33  ;;  %v1233_v61 = vrot.slane %v7429_v17, %v6978_v33 }
  0x9a   : > { %v1237_v62 = vrot.slane %v7431_v39, %v6978_v33  ;;  %v1241_v55 = vrot.slane %v7433_v1, %v6978_v33  ;;  %v1245_v56 = vrot.slane %v7435_v40, %v6978_v33  ;;  %v1249_v57 = vrot.slane %v7437_v41, %v6978_v33 }
  0x9b   : > { %v1253_v59 = vrot.slane %v7439_v42, %v6978_v33  ;;  %v1254_v4 = vmul.f32 %v1225_v60, %v6953_v24  ;;  %v1255_v63 = vmul.f32 %v1229_v58, %v6953_v24  ;;  %v1256_v0 = vmul.f32 %v1233_v61, %v6953_v24 }
  0x9c   : > { %v1257_v5 = vmul.f32 %v1237_v62, %v6953_v24  ;;  %v1258_v2 = vmul.f32 %v1241_v55, %v6953_v24  ;;  %v1259_v6 = vmul.f32 %v1245_v56, %v6953_v24  ;;  %v1260_v7 = vmul.f32 %v1249_v57, %v6953_v24 }
  0x9d   : > { %v1261_v3 = vmul.f32 %v1253_v59, %v6953_v24  ;;  %v1262_v11 = vadd.f32 %v1254_v4, %v1214_v37  ;;  %v1263_v12 = vadd.f32 %v1255_v63, %v1215_v53  ;;  %v1264_v13 = vadd.f32 %v1256_v0, %v1216_v38 }
  0x9e   : > { %v1265_v14 = vadd.f32 %v1257_v5, %v1217_v54  ;;  %v1266_v35 = vadd.f32 %v1258_v2, %v1218_v43  ;;  %v1267_v52 = vadd.f32 %v1259_v6, %v1219_v44  ;;  %v1268_v36 = vadd.f32 %v1260_v7, %v1220_v45 }
  0x9f   : > { %v1269_v10 = vadd.f32 %v1261_v3, %v1221_v46  ;;  %v1273_v60 = vrot.slane %v7425_v15, %v6981_v34  ;;  %v1277_v58 = vrot.slane %v7427_v16, %v6981_v34  ;;  %v1281_v61 = vrot.slane %v7429_v17, %v6981_v34 }
  0xa0   : > { %v1285_v62 = vrot.slane %v7431_v39, %v6981_v34  ;;  %v1289_v37 = vrot.slane %v7433_v1, %v6981_v34  ;;  %v1293_v53 = vrot.slane %v7435_v40, %v6981_v34  ;;  %v1297_v38 = vrot.slane %v7437_v41, %v6981_v34 }
  0xa1   : > { %v1301_v54 = vrot.slane %v7439_v42, %v6981_v34  ;;  %v1302_v43 = vmul.f32 %v1273_v60, %v6955_v25  ;;  %v1303_v44 = vmul.f32 %v1277_v58, %v6955_v25  ;;  %v1304_v45 = vmul.f32 %v1281_v61, %v6955_v25 }
  0xa2   : > { %v1305_v46 = vmul.f32 %v1285_v62, %v6955_v25  ;;  %v1306_v55 = vmul.f32 %v1289_v37, %v6955_v25  ;;  %v1307_v56 = vmul.f32 %v1293_v53, %v6955_v25  ;;  %v1308_v57 = vmul.f32 %v1297_v38, %v6955_v25 }
  0xa3   : > { %v1309_v59 = vmul.f32 %v1301_v54, %v6955_v25  ;;  %v1310_v4 = vadd.f32 %v1302_v43, %v1262_v11  ;;  %v1311_v63 = vadd.f32 %v1303_v44, %v1263_v12  ;;  %v1312_v0 = vadd.f32 %v1304_v45, %v1264_v13 }
  0xa4   : > { %v1313_v5 = vadd.f32 %v1305_v46, %v1265_v14  ;;  %v1314_v2 = vadd.f32 %v1306_v55, %v1266_v35  ;;  %v1315_v6 = vadd.f32 %v1307_v56, %v1267_v52  ;;  %v1316_v7 = vadd.f32 %v1308_v57, %v1268_v36 }
  0xa5   : > { %v1317_v3 = vadd.f32 %v1309_v59, %v1269_v10  ;;  %v1321_v60 = vrot.slane %v7425_v15, %v7166_v9  ;;  %v1325_v58 = vrot.slane %v7427_v16, %v7166_v9  ;;  %v1329_v61 = vrot.slane %v7429_v17, %v7166_v9 }
  0xa6   : > { %v1333_v62 = vrot.slane %v7431_v39, %v7166_v9  ;;  %v1337_v11 = vrot.slane %v7433_v1, %v7166_v9  ;;  %v1341_v12 = vrot.slane %v7435_v40, %v7166_v9  ;;  %v1345_v13 = vrot.slane %v7437_v41, %v7166_v9 }
  0xa7   : > { %v1349_v15 = vrot.slane %v7439_v42, %v7166_v9  ;;  %v1350_v16 = vmul.f32 %v1321_v60, %v6957_v26  ;;  %v1351_v14 = vmul.f32 %v1325_v58, %v6957_v26  ;;  %v1352_v17 = vmul.f32 %v1329_v61, %v6957_v26 }
  0xa8   : > { %v1353_v39 = vmul.f32 %v1333_v62, %v6957_v26  ;;  %v1354_v35 = vmul.f32 %v1337_v11, %v6957_v26  ;;  %v1355_v1 = vmul.f32 %v1341_v12, %v6957_v26  ;;  %v1356_v40 = vmul.f32 %v1345_v13, %v6957_v26 }
  0xa9   : > { %v1357_v52 = vmul.f32 %v1349_v15, %v6957_v26  ;;  %v1358_v41 = vadd.f32 %v1350_v16, %v1310_v4  ;;  %v1359_v36 = vadd.f32 %v1351_v14, %v1311_v63  ;;  %v1360_v10 = vadd.f32 %v1352_v17, %v1312_v0 }
  0xaa   : > { %v1361_v37 = vadd.f32 %v1353_v39, %v1313_v5  ;;  %v1362_v53 = vadd.f32 %v1354_v35, %v1314_v2  ;;  %v1363_v38 = vadd.f32 %v1355_v1, %v1315_v6  ;;  %v1364_v54 = vadd.f32 %v1356_v40, %v1316_v7 }
  0xab   : > { %v1365_v43 = vadd.f32 %v1357_v52, %v1317_v3  ;;  %v7661_v44 = vmul.f32 0.25, %v1358_v41  ;;  %v7663_v45 = vmul.f32 0.25, %v1359_v36  ;;  %v7665_v46 = vmul.f32 0.25, %v1360_v10 }
  0xac   : > { %v7667_v55 = vmul.f32 0.25, %v1361_v37  ;;  %v7669_v56 = vmul.f32 0.25, %v1362_v53  ;;  %v7671_v57 = vmul.f32 0.25, %v1363_v38  ;;  %v7675_v59 = vadd.f32 %v7439_v42, %v7231_v27 }
  0xad   : > { %v7677_v4 = vmul.f32 0.25, %v1364_v54  ;;  %v7679_v63 = vmul.f32 0.25, %v1365_v43  ;;  %v7683_v0 = vadd.f32 %v7661_v44, %v7443_v47  ;;  %v7687_v5 = vadd.f32 %v7663_v45, %v7447_v48 }
  0xae   : > { %v7691_v2 = vadd.f32 %v7665_v46, %v7451_v49  ;;  %v7695_v27 = vadd.f32 %v7667_v55, %v7455_v50  ;;  %v7699_v42 = vadd.f32 %v7669_v56, %v7459_v51  ;;  %v7703_v47 = vadd.f32 %v7671_v57, %v7463_v18 }
  0xaf   : > { %v7707_v48 = vadd.f32 %v7677_v4, %v7467_v8  ;;  %v1385_v49 = vrot.slane %v7661_v44, %v6963_v28  ;;  %v1389_v6 = vrot.slane %v7663_v45, %v6963_v28  ;;  %v1393_v50 = vrot.slane %v7665_v46, %v6963_v28 }
  0xb0   : > { %v1397_v51 = vrot.slane %v7667_v55, %v6963_v28  ;;  %v1401_v18 = vrot.slane %v7669_v56, %v6963_v28  ;;  %v1405_v7 = vrot.slane %v7671_v57, %v6963_v28  ;;  %v1409_v8 = vrot.slane %v7677_v4, %v6963_v28 }
  0xb1   : > { %v1413_v3 = vrot.slane %v7679_v63, %v6963_v28  ;;  %v1414_v60 = vmul.f32 %v1385_v49, %v6943_v19  ;;  %v1415_v58 = vmul.f32 %v1389_v6, %v6943_v19  ;;  %v1416_v61 = vmul.f32 %v1393_v50, %v6943_v19 }
  0xb2   : > { %v1417_v62 = vmul.f32 %v1397_v51, %v6943_v19  ;;  %v1418_v11 = vmul.f32 %v1401_v18, %v6943_v19  ;;  %v1419_v12 = vmul.f32 %v1405_v7, %v6943_v19  ;;  %v1420_v13 = vmul.f32 %v1409_v8, %v6943_v19 }
  0xb3   : > { %v1421_v15 = vmul.f32 %v1413_v3, %v6943_v19  ;;  %v1425_v16 = vrot.slane %v7661_v44, %v6966_v29  ;;  %v1429_v14 = vrot.slane %v7663_v45, %v6966_v29  ;;  %v1433_v17 = vrot.slane %v7665_v46, %v6966_v29 }
  0xb4   : > { %v1437_v39 = vrot.slane %v7667_v55, %v6966_v29  ;;  %v1441_v35 = vrot.slane %v7669_v56, %v6966_v29  ;;  %v1445_v1 = vrot.slane %v7671_v57, %v6966_v29  ;;  %v1449_v40 = vrot.slane %v7677_v4, %v6966_v29 }
  0xb5   : > { %v1453_v52 = vrot.slane %v7679_v63, %v6966_v29  ;;  %v1454_v41 = vmul.f32 %v1425_v16, %v6945_v20  ;;  %v1455_v36 = vmul.f32 %v1429_v14, %v6945_v20  ;;  %v1456_v10 = vmul.f32 %v1433_v17, %v6945_v20 }
  0xb6   : > { %v1457_v37 = vmul.f32 %v1437_v39, %v6945_v20  ;;  %v1458_v53 = vmul.f32 %v1441_v35, %v6945_v20  ;;  %v1459_v38 = vmul.f32 %v1445_v1, %v6945_v20  ;;  %v1460_v54 = vmul.f32 %v1449_v40, %v6945_v20 }
  0xb7   : > { %v1461_v43 = vmul.f32 %v1453_v52, %v6945_v20  ;;  %v1462_v49 = vadd.f32 %v1454_v41, %v1414_v60  ;;  %v1463_v6 = vadd.f32 %v1455_v36, %v1415_v58  ;;  %v1464_v50 = vadd.f32 %v1456_v10, %v1416_v61 }
  0xb8   : > { %v1465_v51 = vadd.f32 %v1457_v37, %v1417_v62  ;;  %v1466_v18 = vadd.f32 %v1458_v53, %v1418_v11  ;;  %v1467_v7 = vadd.f32 %v1459_v38, %v1419_v12  ;;  %v1468_v8 = vadd.f32 %v1460_v54, %v1420_v13 }
  0xb9   : > { %v1469_v3 = vadd.f32 %v1461_v43, %v1421_v15  ;;  %v1473_v16 = vrot.slane %v7661_v44, %v6969_v30  ;;  %v1477_v14 = vrot.slane %v7663_v45, %v6969_v30  ;;  %v1481_v17 = vrot.slane %v7665_v46, %v6969_v30 }
  0xba   : > { %v1485_v39 = vrot.slane %v7667_v55, %v6969_v30  ;;  %v1489_v60 = vrot.slane %v7669_v56, %v6969_v30  ;;  %v1493_v58 = vrot.slane %v7671_v57, %v6969_v30  ;;  %v1497_v61 = vrot.slane %v7677_v4, %v6969_v30 }
  0xbb   : > { %v1501_v62 = vrot.slane %v7679_v63, %v6969_v30  ;;  %v1502_v11 = vmul.f32 %v1473_v16, %v6947_v21  ;;  %v1503_v12 = vmul.f32 %v1477_v14, %v6947_v21  ;;  %v1504_v13 = vmul.f32 %v1481_v17, %v6947_v21 }
  0xbc   : > { %v1505_v15 = vmul.f32 %v1485_v39, %v6947_v21  ;;  %v1506_v35 = vmul.f32 %v1489_v60, %v6947_v21  ;;  %v1507_v1 = vmul.f32 %v1493_v58, %v6947_v21  ;;  %v1508_v40 = vmul.f32 %v1497_v61, %v6947_v21 }
  0xbd   : > { %v1509_v52 = vmul.f32 %v1501_v62, %v6947_v21  ;;  %v1510_v41 = vadd.f32 %v1502_v11, %v1462_v49  ;;  %v1511_v36 = vadd.f32 %v1503_v12, %v1463_v6  ;;  %v1512_v10 = vadd.f32 %v1504_v13, %v1464_v50 }
  0xbe   : > { %v1513_v37 = vadd.f32 %v1505_v15, %v1465_v51  ;;  %v1514_v53 = vadd.f32 %v1506_v35, %v1466_v18  ;;  %v1515_v38 = vadd.f32 %v1507_v1, %v1467_v7  ;;  %v1516_v54 = vadd.f32 %v1508_v40, %v1468_v8 }
  0xbf   : > { %v1517_v43 = vadd.f32 %v1509_v52, %v1469_v3  ;;  %v1521_v16 = vrot.slane %v7661_v44, %v6972_v31  ;;  %v1525_v14 = vrot.slane %v7663_v45, %v6972_v31  ;;  %v1529_v17 = vrot.slane %v7665_v46, %v6972_v31 }
  0xc0   : > { %v1533_v39 = vrot.slane %v7667_v55, %v6972_v31  ;;  %v1537_v49 = vrot.slane %v7669_v56, %v6972_v31  ;;  %v1541_v6 = vrot.slane %v7671_v57, %v6972_v31  ;;  %v1545_v50 = vrot.slane %v7677_v4, %v6972_v31 }
  0xc1   : > { %v1549_v51 = vrot.slane %v7679_v63, %v6972_v31  ;;  %v1550_v18 = vmul.f32 %v1521_v16, %v6949_v22  ;;  %v1551_v7 = vmul.f32 %v1525_v14, %v6949_v22  ;;  %v1552_v8 = vmul.f32 %v1529_v17, %v6949_v22 }
  0xc2   : > { %v1553_v3 = vmul.f32 %v1533_v39, %v6949_v22  ;;  %v1554_v60 = vmul.f32 %v1537_v49, %v6949_v22  ;;  %v1555_v58 = vmul.f32 %v1541_v6, %v6949_v22  ;;  %v1556_v61 = vmul.f32 %v1545_v50, %v6949_v22 }
  0xc3   : > { %v1557_v62 = vmul.f32 %v1549_v51, %v6949_v22  ;;  %v1558_v11 = vadd.f32 %v1550_v18, %v1510_v41  ;;  %v1559_v12 = vadd.f32 %v1551_v7, %v1511_v36  ;;  %v1560_v13 = vadd.f32 %v1552_v8, %v1512_v10 }
  0xc4   : > { %v1561_v15 = vadd.f32 %v1553_v3, %v1513_v37  ;;  %v1562_v35 = vadd.f32 %v1554_v60, %v1514_v53  ;;  %v1563_v1 = vadd.f32 %v1555_v58, %v1515_v38  ;;  %v1564_v40 = vadd.f32 %v1556_v61, %v1516_v54 }
  0xc5   : > { %v1565_v52 = vadd.f32 %v1557_v62, %v1517_v43  ;;  %v1569_v16 = vrot.slane %v7661_v44, %v6975_v32  ;;  %v1573_v14 = vrot.slane %v7663_v45, %v6975_v32  ;;  %v1577_v17 = vrot.slane %v7665_v46, %v6975_v32 }
  0xc6   : > { %v1581_v39 = vrot.slane %v7667_v55, %v6975_v32  ;;  %v1585_v41 = vrot.slane %v7669_v56, %v6975_v32  ;;  %v1589_v36 = vrot.slane %v7671_v57, %v6975_v32  ;;  %v1593_v10 = vrot.slane %v7677_v4, %v6975_v32 }
  0xc7   : > { %v1597_v37 = vrot.slane %v7679_v63, %v6975_v32  ;;  %v1598_v53 = vmul.f32 %v1569_v16, %v6951_v23  ;;  %v1599_v38 = vmul.f32 %v1573_v14, %v6951_v23  ;;  %v1600_v54 = vmul.f32 %v1577_v17, %v6951_v23 }
  0xc8   : > { %v1601_v43 = vmul.f32 %v1581_v39, %v6951_v23  ;;  %v1602_v49 = vmul.f32 %v1585_v41, %v6951_v23  ;;  %v1603_v6 = vmul.f32 %v1589_v36, %v6951_v23  ;;  %v1604_v50 = vmul.f32 %v1593_v10, %v6951_v23 }
  0xc9   : > { %v1605_v51 = vmul.f32 %v1597_v37, %v6951_v23  ;;  %v1606_v18 = vadd.f32 %v1598_v53, %v1558_v11  ;;  %v1607_v7 = vadd.f32 %v1599_v38, %v1559_v12  ;;  %v1608_v8 = vadd.f32 %v1600_v54, %v1560_v13 }
  0xca   : > { %v1609_v3 = vadd.f32 %v1601_v43, %v1561_v15  ;;  %v1610_v60 = vadd.f32 %v1602_v49, %v1562_v35  ;;  %v1611_v58 = vadd.f32 %v1603_v6, %v1563_v1  ;;  %v1612_v61 = vadd.f32 %v1604_v50, %v1564_v40 }
  0xcb   : > { %v1613_v62 = vadd.f32 %v1605_v51, %v1565_v52  ;;  %v1617_v16 = vrot.slane %v7661_v44, %v6978_v33  ;;  %v1621_v14 = vrot.slane %v7663_v45, %v6978_v33  ;;  %v1625_v17 = vrot.slane %v7665_v46, %v6978_v33 }
  0xcc   : > { %v1629_v39 = vrot.slane %v7667_v55, %v6978_v33  ;;  %v1633_v11 = vrot.slane %v7669_v56, %v6978_v33  ;;  %v1637_v12 = vrot.slane %v7671_v57, %v6978_v33  ;;  %v1641_v13 = vrot.slane %v7677_v4, %v6978_v33 }
  0xcd   : > { %v1645_v15 = vrot.slane %v7679_v63, %v6978_v33  ;;  %v1646_v35 = vmul.f32 %v1617_v16, %v6953_v24  ;;  %v1647_v1 = vmul.f32 %v1621_v14, %v6953_v24  ;;  %v1648_v40 = vmul.f32 %v1625_v17, %v6953_v24 }
  0xce   : > { %v1649_v52 = vmul.f32 %v1629_v39, %v6953_v24  ;;  %v1650_v41 = vmul.f32 %v1633_v11, %v6953_v24  ;;  %v1651_v36 = vmul.f32 %v1637_v12, %v6953_v24  ;;  %v1652_v10 = vmul.f32 %v1641_v13, %v6953_v24 }
  0xcf   : > { %v1653_v37 = vmul.f32 %v1645_v15, %v6953_v24  ;;  %v1654_v53 = vadd.f32 %v1646_v35, %v1606_v18  ;;  %v1655_v38 = vadd.f32 %v1647_v1, %v1607_v7  ;;  %v1656_v54 = vadd.f32 %v1648_v40, %v1608_v8 }
  0xd0   : > { %v1657_v43 = vadd.f32 %v1649_v52, %v1609_v3  ;;  %v1658_v49 = vadd.f32 %v1650_v41, %v1610_v60  ;;  %v1659_v6 = vadd.f32 %v1651_v36, %v1611_v58  ;;  %v1660_v50 = vadd.f32 %v1652_v10, %v1612_v61 }
  0xd1   : > { %v1661_v51 = vadd.f32 %v1653_v37, %v1613_v62  ;;  %v1665_v16 = vrot.slane %v7661_v44, %v6981_v34  ;;  %v1669_v14 = vrot.slane %v7663_v45, %v6981_v34  ;;  %v1673_v17 = vrot.slane %v7665_v46, %v6981_v34 }
  0xd2   : > { %v1677_v39 = vrot.slane %v7667_v55, %v6981_v34  ;;  %v1681_v18 = vrot.slane %v7669_v56, %v6981_v34  ;;  %v1685_v7 = vrot.slane %v7671_v57, %v6981_v34  ;;  %v1689_v8 = vrot.slane %v7677_v4, %v6981_v34 }
  0xd3   : > { %v1693_v3 = vrot.slane %v7679_v63, %v6981_v34  ;;  %v1694_v60 = vmul.f32 %v1665_v16, %v6955_v25  ;;  %v1695_v58 = vmul.f32 %v1669_v14, %v6955_v25  ;;  %v1696_v61 = vmul.f32 %v1673_v17, %v6955_v25 }
  0xd4   : > { %v1697_v62 = vmul.f32 %v1677_v39, %v6955_v25  ;;  %v1698_v11 = vmul.f32 %v1681_v18, %v6955_v25  ;;  %v1699_v12 = vmul.f32 %v1685_v7, %v6955_v25  ;;  %v1700_v13 = vmul.f32 %v1689_v8, %v6955_v25 }
  0xd5   : > { %v1701_v15 = vmul.f32 %v1693_v3, %v6955_v25  ;;  %v1702_v35 = vadd.f32 %v1694_v60, %v1654_v53  ;;  %v1703_v1 = vadd.f32 %v1695_v58, %v1655_v38  ;;  %v1704_v40 = vadd.f32 %v1696_v61, %v1656_v54 }
  0xd6   : > { %v1705_v52 = vadd.f32 %v1697_v62, %v1657_v43  ;;  %v1706_v41 = vadd.f32 %v1698_v11, %v1658_v49  ;;  %v1707_v36 = vadd.f32 %v1699_v12, %v1659_v6  ;;  %v1708_v10 = vadd.f32 %v1700_v13, %v1660_v50 }
  0xd7   : > { %v1709_v37 = vadd.f32 %v1701_v15, %v1661_v51  ;;  %v1713_v16 = vrot.slane %v7661_v44, %v7166_v9  ;;  %v1717_v14 = vrot.slane %v7663_v45, %v7166_v9  ;;  %v1721_v17 = vrot.slane %v7665_v46, %v7166_v9 }
  0xd8   : > { %v1725_v39 = vrot.slane %v7667_v55, %v7166_v9  ;;  %v1729_v53 = vrot.slane %v7669_v56, %v7166_v9  ;;  %v1733_v38 = vrot.slane %v7671_v57, %v7166_v9  ;;  %v1737_v54 = vrot.slane %v7677_v4, %v7166_v9 }
  0xd9   : > { %v1741_v44 = vrot.slane %v7679_v63, %v7166_v9  ;;  %v1742_v45 = vmul.f32 %v1713_v16, %v6957_v26  ;;  %v1743_v43 = vmul.f32 %v1717_v14, %v6957_v26  ;;  %v1744_v46 = vmul.f32 %v1721_v17, %v6957_v26 }
  0xda   : > { %v1745_v55 = vmul.f32 %v1725_v39, %v6957_v26  ;;  %v1746_v49 = vmul.f32 %v1729_v53, %v6957_v26  ;;  %v1747_v56 = vmul.f32 %v1733_v38, %v6957_v26  ;;  %v1748_v57 = vmul.f32 %v1737_v54, %v6957_v26 }
  0xdb   : > { %v1749_v6 = vmul.f32 %v1741_v44, %v6957_v26  ;;  %v1750_v4 = vadd.f32 %v1742_v45, %v1702_v35  ;;  %v1751_v50 = vadd.f32 %v1743_v43, %v1703_v1  ;;  %v1752_v51 = vadd.f32 %v1744_v46, %v1704_v40 }
  0xdc   : > { %v1753_v18 = vadd.f32 %v1745_v55, %v1705_v52  ;;  %v1754_v7 = vadd.f32 %v1746_v49, %v1706_v41  ;;  %v1755_v8 = vadd.f32 %v1747_v56, %v1707_v36  ;;  %v1756_v3 = vadd.f32 %v1748_v57, %v1708_v10 }
  0xdd   : > { %v1757_v60 = vadd.f32 %v1749_v6, %v1709_v37  ;;  %v7901_v58 = vmul.f32 0.2, %v1750_v4  ;;  %v7903_v61 = vmul.f32 0.2, %v1751_v50  ;;  %v7905_v62 = vmul.f32 0.2, %v1752_v51 }
  0xde   : > { %v7907_v11 = vmul.f32 0.2, %v1753_v18  ;;  %v7909_v12 = vmul.f32 0.2, %v1754_v7  ;;  %v7913_v13 = vadd.f32 %v7679_v63, %v7675_v59  ;;  %v7915_v15 = vmul.f32 0.2, %v1755_v8 }
  0xdf   : > { %v7917_v35 = vmul.f32 0.2, %v1756_v3  ;;  %v7919_v1 = vmul.f32 0.2, %v1757_v60  ;;  %v7923_v40 = vadd.f32 %v7901_v58, %v7683_v0  ;;  %v7927_v52 = vadd.f32 %v7903_v61, %v7687_v5 }
  0xe0   : > { %v7931_v41 = vadd.f32 %v7905_v62, %v7691_v2  ;;  %v7935_v59 = vadd.f32 %v7907_v11, %v7695_v27  ;;  %v7939_v63 = vadd.f32 %v7909_v12, %v7699_v42  ;;  %v7943_v0 = vadd.f32 %v7915_v15, %v7703_v47 }
  0xe1   : > { %v7947_v5 = vadd.f32 %v7917_v35, %v7707_v48  ;;  %v1777_v2 = vrot.slane %v7901_v58, %v6963_v28  ;;  %v1781_v36 = vrot.slane %v7903_v61, %v6963_v28  ;;  %v1785_v27 = vrot.slane %v7905_v62, %v6963_v28 }
  0xe2   : > { %v1789_v42 = vrot.slane %v7907_v11, %v6963_v28  ;;  %v1793_v47 = vrot.slane %v7909_v12, %v6963_v28  ;;  %v1797_v10 = vrot.slane %v7915_v15, %v6963_v28  ;;  %v1801_v48 = vrot.slane %v7917_v35, %v6963_v28 }
  0xe3   : > { %v1805_v37 = vrot.slane %v7919_v1, %v6963_v28  ;;  %v1806_v16 = vmul.f32 %v1777_v2, %v6943_v19  ;;  %v1807_v14 = vmul.f32 %v1781_v36, %v6943_v19  ;;  %v1808_v17 = vmul.f32 %v1785_v27, %v6943_v19 }
  0xe4   : > { %v1809_v39 = vmul.f32 %v1789_v42, %v6943_v19  ;;  %v1810_v53 = vmul.f32 %v1793_v47, %v6943_v19  ;;  %v1811_v38 = vmul.f32 %v1797_v10, %v6943_v19  ;;  %v1812_v54 = vmul.f32 %v1801_v48, %v6943_v19 }
  0xe5   : > { %v1813_v44 = vmul.f32 %v1805_v37, %v6943_v19  ;;  %v1817_v45 = vrot.slane %v7901_v58, %v6966_v29  ;;  %v1821_v43 = vrot.slane %v7903_v61, %v6966_v29  ;;  %v1825_v46 = vrot.slane %v7905_v62, %v6966_v29 }
  0xe6   : > { %v1829_v55 = vrot.slane %v7907_v11, %v6966_v29  ;;  %v1833_v49 = vrot.slane %v7909_v12, %v6966_v29  ;;  %v1837_v56 = vrot.slane %v7915_v15, %v6966_v29  ;;  %v1841_v19 = vrot.slane %v7917_v35, %v6966_v29 }
  0xe7   : > { %v1845_v57 = vrot.slane %v7919_v1, %v6966_v29  ;;  %v1846_v6 = vmul.f32 %v1817_v45, %v6945_v20  ;;  %v1847_v4 = vmul.f32 %v1821_v43, %v6945_v20  ;;  %v1848_v50 = vmul.f32 %v1825_v46, %v6945_v20 }
  0xe8   : > { %v1849_v51 = vmul.f32 %v1829_v55, %v6945_v20  ;;  %v1850_v18 = vmul.f32 %v1833_v49, %v6945_v20  ;;  %v1851_v7 = vmul.f32 %v1837_v56, %v6945_v20  ;;  %v1852_v8 = vmul.f32 %v1841_v19, %v6945_v20 }
  0xe9   : > { %v1853_v3 = vmul.f32 %v1845_v57, %v6945_v20  ;;  %v1854_v60 = vadd.f32 %v1846_v6, %v1806_v16  ;;  %v1855_v2 = vadd.f32 %v1847_v4, %v1807_v14  ;;  %v1856_v36 = vadd.f32 %v1848_v50, %v1808_v17 }
  0xea   : > { %v1857_v27 = vadd.f32 %v1849_v51, %v1809_v39  ;;  %v1858_v42 = vadd.f32 %v1850_v18, %v1810_v53  ;;  %v1859_v47 = vadd.f32 %v1851_v7, %v1811_v38  ;;  %v1860_v10 = vadd.f32 %v1852_v8, %v1812_v54 }
  0xeb   : > { %v1861_v48 = vadd.f32 %v1853_v3, %v1813_v44  ;;  %v1865_v37 = vrot.slane %v7901_v58, %v6969_v30  ;;  %v1869_v45 = vrot.slane %v7903_v61, %v6969_v30  ;;  %v1873_v43 = vrot.slane %v7905_v62, %v6969_v30 }
  0xec   : > { %v1877_v20 = vrot.slane %v7907_v11, %v6969_v30  ;;  %v1881_v16 = vrot.slane %v7909_v12, %v6969_v30  ;;  %v1885_v14 = vrot.slane %v7915_v15, %v6969_v30  ;;  %v1889_v17 = vrot.slane %v7917_v35, %v6969_v30 }
  0xed   : > { %v1893_v39 = vrot.slane %v7919_v1, %v6969_v30  ;;  %v1894_v53 = vmul.f32 %v1865_v37, %v6947_v21  ;;  %v1895_v38 = vmul.f32 %v1869_v45, %v6947_v21  ;;  %v1896_v54 = vmul.f32 %v1873_v43, %v6947_v21 }
  0xee   : > { %v1897_v44 = vmul.f32 %v1877_v20, %v6947_v21  ;;  %v1898_v46 = vmul.f32 %v1881_v16, %v6947_v21  ;;  %v1899_v55 = vmul.f32 %v1885_v14, %v6947_v21  ;;  %v1900_v49 = vmul.f32 %v1889_v17, %v6947_v21 }
  0xef   : > { %v1901_v56 = vmul.f32 %v1893_v39, %v6947_v21  ;;  %v1902_v19 = vadd.f32 %v1894_v53, %v1854_v60  ;;  %v1903_v57 = vadd.f32 %v1895_v38, %v1855_v2  ;;  %v1904_v6 = vadd.f32 %v1896_v54, %v1856_v36 }
  0xf0   : > { %v1905_v4 = vadd.f32 %v1897_v44, %v1857_v27  ;;  %v1906_v50 = vadd.f32 %v1898_v46, %v1858_v42  ;;  %v1907_v51 = vadd.f32 %v1899_v55, %v1859_v47  ;;  %v1908_v18 = vadd.f32 %v1900_v49, %v1860_v10 }
  0xf1   : > { %v1909_v7 = vadd.f32 %v1901_v56, %v1861_v48  ;;  %v1913_v8 = vrot.slane %v7901_v58, %v6972_v31  ;;  %v1917_v3 = vrot.slane %v7903_v61, %v6972_v31  ;;  %v1921_v37 = vrot.slane %v7905_v62, %v6972_v31 }
  0xf2   : > { %v1925_v21 = vrot.slane %v7907_v11, %v6972_v31  ;;  %v1929_v60 = vrot.slane %v7909_v12, %v6972_v31  ;;  %v1933_v2 = vrot.slane %v7915_v15, %v6972_v31  ;;  %v1937_v36 = vrot.slane %v7917_v35, %v6972_v31 }
  0xf3   : > { %v1941_v27 = vrot.slane %v7919_v1, %v6972_v31  ;;  %v1942_v42 = vmul.f32 %v1913_v8, %v6949_v22  ;;  %v1943_v47 = vmul.f32 %v1917_v3, %v6949_v22  ;;  %v1944_v10 = vmul.f32 %v1921_v37, %v6949_v22 }
  0xf4   : > { %v1945_v48 = vmul.f32 %v1925_v21, %v6949_v22  ;;  %v1946_v45 = vmul.f32 %v1929_v60, %v6949_v22  ;;  %v1947_v43 = vmul.f32 %v1933_v2, %v6949_v22  ;;  %v1948_v20 = vmul.f32 %v1937_v36, %v6949_v22 }
  0xf5   : > { %v1949_v16 = vmul.f32 %v1941_v27, %v6949_v22  ;;  %v1950_v14 = vadd.f32 %v1942_v42, %v1902_v19  ;;  %v1951_v17 = vadd.f32 %v1943_v47, %v1903_v57  ;;  %v1952_v39 = vadd.f32 %v1944_v10, %v1904_v6 }
  0xf6   : > { %v1953_v53 = vadd.f32 %v1945_v48, %v1905_v4  ;;  %v1954_v38 = vadd.f32 %v1946_v45, %v1906_v50  ;;  %v1955_v54 = vadd.f32 %v1947_v43, %v1907_v51  ;;  %v1956_v44 = vadd.f32 %v1948_v20, %v1908_v18 }
  0xf7   : > { %v1957_v46 = vadd.f32 %v1949_v16, %v1909_v7  ;;  %v1961_v55 = vrot.slane %v7901_v58, %v6975_v32  ;;  %v1965_v49 = vrot.slane %v7903_v61, %v6975_v32  ;;  %v1969_v56 = vrot.slane %v7905_v62, %v6975_v32 }
  0xf8   : > { %v1973_v22 = vrot.slane %v7907_v11, %v6975_v32  ;;  %v1977_v19 = vrot.slane %v7909_v12, %v6975_v32  ;;  %v1981_v57 = vrot.slane %v7915_v15, %v6975_v32  ;;  %v1985_v6 = vrot.slane %v7917_v35, %v6975_v32 }
  0xf9   : > { %v1989_v4 = vrot.slane %v7919_v1, %v6975_v32  ;;  %v1990_v50 = vmul.f32 %v1961_v55, %v6951_v23  ;;  %v1991_v51 = vmul.f32 %v1965_v49, %v6951_v23  ;;  %v1992_v18 = vmul.f32 %v1969_v56, %v6951_v23 }
  0xfa   : > { %v1993_v7 = vmul.f32 %v1973_v22, %v6951_v23  ;;  %v1994_v8 = vmul.f32 %v1977_v19, %v6951_v23  ;;  %v1995_v3 = vmul.f32 %v1981_v57, %v6951_v23  ;;  %v1996_v37 = vmul.f32 %v1985_v6, %v6951_v23 }
  0xfb   : > { %v1997_v21 = vmul.f32 %v1989_v4, %v6951_v23  ;;  %v1998_v60 = vadd.f32 %v1990_v50, %v1950_v14  ;;  %v1999_v2 = vadd.f32 %v1991_v51, %v1951_v17  ;;  %v2000_v36 = vadd.f32 %v1992_v18, %v1952_v39 }
  0xfc   : > { %v2001_v27 = vadd.f32 %v1993_v7, %v1953_v53  ;;  %v2002_v42 = vadd.f32 %v1994_v8, %v1954_v38  ;;  %v2003_v47 = vadd.f32 %v1995_v3, %v1955_v54  ;;  %v2004_v10 = vadd.f32 %v1996_v37, %v1956_v44 }
  0xfd   : > { %v2005_v48 = vadd.f32 %v1997_v21, %v1957_v46  ;;  %v2009_v45 = vrot.slane %v7901_v58, %v6978_v33  ;;  %v2013_v43 = vrot.slane %v7903_v61, %v6978_v33  ;;  %v2017_v20 = vrot.slane %v7905_v62, %v6978_v33 }
  0xfe   : > { %v2021_v23 = vrot.slane %v7907_v11, %v6978_v33  ;;  %v2025_v16 = vrot.slane %v7909_v12, %v6978_v33  ;;  %v2029_v14 = vrot.slane %v7915_v15, %v6978_v33  ;;  %v2033_v17 = vrot.slane %v7917_v35, %v6978_v33 }
  0xff   : > { %v2037_v39 = vrot.slane %v7919_v1, %v6978_v33  ;;  %v2038_v53 = vmul.f32 %v2009_v45, %v6953_v24  ;;  %v2039_v38 = vmul.f32 %v2013_v43, %v6953_v24  ;;  %v2040_v54 = vmul.f32 %v2017_v20, %v6953_v24 }
 0x100   : > { %v2041_v44 = vmul.f32 %v2021_v23, %v6953_v24  ;;  %v2042_v46 = vmul.f32 %v2025_v16, %v6953_v24  ;;  %v2043_v55 = vmul.f32 %v2029_v14, %v6953_v24  ;;  %v2044_v49 = vmul.f32 %v2033_v17, %v6953_v24 }
 0x101   : > { %v2045_v56 = vmul.f32 %v2037_v39, %v6953_v24  ;;  %v2046_v22 = vadd.f32 %v2038_v53, %v1998_v60  ;;  %v2047_v19 = vadd.f32 %v2039_v38, %v1999_v2  ;;  %v2048_v57 = vadd.f32 %v2040_v54, %v2000_v36 }
 0x102   : > { %v2049_v6 = vadd.f32 %v2041_v44, %v2001_v27  ;;  %v2050_v4 = vadd.f32 %v2042_v46, %v2002_v42  ;;  %v2051_v50 = vadd.f32 %v2043_v55, %v2003_v47  ;;  %v2052_v51 = vadd.f32 %v2044_v49, %v2004_v10 }
 0x103   : > { %v2053_v18 = vadd.f32 %v2045_v56, %v2005_v48  ;;  %v2057_v7 = vrot.slane %v7901_v58, %v6981_v34  ;;  %v2061_v8 = vrot.slane %v7903_v61, %v6981_v34  ;;  %v2065_v3 = vrot.slane %v7905_v62, %v6981_v34 }
 0x104   : > { %v2069_v24 = vrot.slane %v7907_v11, %v6981_v34  ;;  %v2073_v37 = vrot.slane %v7909_v12, %v6981_v34  ;;  %v2077_v21 = vrot.slane %v7915_v15, %v6981_v34  ;;  %v2081_v60 = vrot.slane %v7917_v35, %v6981_v34 }
 0x105   : > { %v2085_v2 = vrot.slane %v7919_v1, %v6981_v34  ;;  %v2086_v36 = vmul.f32 %v2057_v7, %v6955_v25  ;;  %v2087_v27 = vmul.f32 %v2061_v8, %v6955_v25  ;;  %v2088_v42 = vmul.f32 %v2065_v3, %v6955_v25 }
 0x106   : > { %v2089_v47 = vmul.f32 %v2069_v24, %v6955_v25  ;;  %v2090_v10 = vmul.f32 %v2073_v37, %v6955_v25  ;;  %v2091_v48 = vmul.f32 %v2077_v21, %v6955_v25  ;;  %v2092_v45 = vmul.f32 %v2081_v60, %v6955_v25 }
 0x107   : > { %v2093_v43 = vmul.f32 %v2085_v2, %v6955_v25  ;;  %v2094_v20 = vadd.f32 %v2086_v36, %v2046_v22  ;;  %v2095_v23 = vadd.f32 %v2087_v27, %v2047_v19  ;;  %v2096_v16 = vadd.f32 %v2088_v42, %v2048_v57 }
 0x108   : > { %v2097_v14 = vadd.f32 %v2089_v47, %v2049_v6  ;;  %v2098_v17 = vadd.f32 %v2090_v10, %v2050_v4  ;;  %v2099_v39 = vadd.f32 %v2091_v48, %v2051_v50  ;;  %v2100_v53 = vadd.f32 %v2092_v45, %v2052_v51 }
 0x109   : > { %v2101_v38 = vadd.f32 %v2093_v43, %v2053_v18  ;;  %v2105_v54 = vrot.slane %v7901_v58, %v7166_v9  ;;  %v2109_v44 = vrot.slane %v7903_v61, %v7166_v9  ;;  %v2113_v46 = vrot.slane %v7905_v62, %v7166_v9 }
 0x10a   : > { %v2117_v25 = vrot.slane %v7907_v11, %v7166_v9  ;;  %v2121_v55 = vrot.slane %v7909_v12, %v7166_v9  ;;  %v2125_v49 = vrot.slane %v7915_v15, %v7166_v9  ;;  %v2129_v56 = vrot.slane %v7917_v35, %v7166_v9 }
 0x10b   : > { %v2133_v58 = vrot.slane %v7919_v1, %v7166_v9  ;;  %v2134_v61 = vmul.f32 %v2105_v54, %v6957_v26  ;;  %v2135_v22 = vmul.f32 %v2109_v44, %v6957_v26  ;;  %v2136_v62 = vmul.f32 %v2113_v46, %v6957_v26 }
 0x10c   : > { %v2137_v11 = vmul.f32 %v2117_v25, %v6957_v26  ;;  %v2138_v19 = vmul.f32 %v2121_v55, %v6957_v26  ;;  %v2139_v12 = vmul.f32 %v2125_v49, %v6957_v26  ;;  %v2140_v15 = vmul.f32 %v2129_v56, %v6957_v26 }
 0x10d   : > { %v2141_v57 = vmul.f32 %v2133_v58, %v6957_v26  ;;  %v2142_v35 = vadd.f32 %v2134_v61, %v2094_v20  ;;  %v2143_v6 = vadd.f32 %v2135_v22, %v2095_v23  ;;  %v2144_v4 = vadd.f32 %v2136_v62, %v2096_v16 }
 0x10e   : > { %v2145_v50 = vadd.f32 %v2137_v11, %v2097_v14  ;;  %v2146_v51 = vadd.f32 %v2138_v19, %v2098_v17  ;;  %v2147_v18 = vadd.f32 %v2139_v12, %v2099_v39  ;;  %v2148_v7 = vadd.f32 %v2140_v15, %v2100_v53 }
 0x10f   : > { %v2149_v8 = vadd.f32 %v2141_v57, %v2101_v38  ;;  %v2150_v3 = vmul.f32 0.16666667, %v2142_v35  ;;  %v1773_v24 = vadd.f32 %v7919_v1, %v7913_v13  ;;  %v2151_v37 = vmul.f32 0.16666667, %v2143_v6 }
 0x110   : > { %v2152_v21 = vmul.f32 0.16666667, %v2144_v4  ;;  %v2153_v60 = vmul.f32 0.16666667, %v2145_v50  ;;  %v2154_v2 = vmul.f32 0.16666667, %v2146_v51 }
 0x111   : > { %v2155_v36 = vmul.f32 0.16666667, %v2147_v18  ;;  %v2156_v27 = vmul.f32 0.16666667, %v2148_v7  ;;  %v8144_v26 = vadd.f32 %v2150_v3, %v7923_v40  ;;  %v2157_v42 = vmul.f32 0.16666667, %v2149_v8 }
 0x112   : > { %v8147_v47 = vadd.f32 %v2151_v37, %v7927_v52  ;;  %v8150_v10 = vadd.f32 %v2152_v21, %v7931_v41  ;;  %v8153_v48 = vadd.f32 %v2153_v60, %v7935_v59  ;;  %v8156_v13 = vadd.f32 %v2154_v2, %v7939_v63 }
 0x113   : > { %v8159_v1 = vadd.f32 %v2155_v36, %v7943_v0  ;;  %v8162_v45 = vadd.f32 %v2156_v27, %v7947_v5  ;;  %v2169_v40 = vrot.slane %v8144_v26, %v6963_v28  ;;  %v8166_v52 = vadd.f32 %v2157_v42, %v1773_v24 }
 0x114   : > { %v2173_v41 = vrot.slane %v8147_v47, %v6963_v28  ;;  %v2177_v59 = vrot.slane %v8150_v10, %v6963_v28  ;;  %v2181_v63 = vrot.slane %v8153_v48, %v6963_v28  ;;  %v2185_v0 = vrot.slane %v8156_v13, %v6963_v28 }
 0x115   : > { %v2189_v5 = vrot.slane %v8159_v1, %v6963_v28  ;;  %v2193_v43 = vrot.slane %v8162_v45, %v6963_v28  ;;  %v2198_v20 = vmul.f32 %v2169_v40, %v8144_v26  ;;  %v2197_v23 = vrot.slane %v8166_v52, %v6963_v28 }
 0x116   : > { %v2199_v16 = vmul.f32 %v2173_v41, %v8144_v26  ;;  %v2200_v14 = vmul.f32 %v2177_v59, %v8144_v26  ;;  %v2201_v17 = vmul.f32 %v2181_v63, %v8144_v26  ;;  %v2202_v39 = vmul.f32 %v2185_v0, %v8144_v26 }
 0x117   : > { %v2203_v53 = vmul.f32 %v2189_v5, %v8144_v26  ;;  %v2204_v38 = vmul.f32 %v2193_v43, %v8144_v26  ;;  %v2209_v54 = vrot.slane %v8144_v26, %v6966_v29  ;;  %v2205_v44 = vmul.f32 %v2197_v23, %v8144_v26 }
 0x118   : > { %v2213_v46 = vrot.slane %v8147_v47, %v6966_v29  ;;  %v2217_v25 = vrot.slane %v8150_v10, %v6966_v29  ;;  %v2221_v55 = vrot.slane %v8153_v48, %v6966_v29  ;;  %v2225_v49 = vrot.slane %v8156_v13, %v6966_v29 }
 0x119   : > { %v2229_v56 = vrot.slane %v8159_v1, %v6966_v29  ;;  %v2233_v58 = vrot.slane %v8162_v45, %v6966_v29  ;;  %v2237_v61 = vrot.slane %v8166_v52, %v6966_v29  ;;  %v2238_v22 = vmul.f32 %v2209_v54, %v8147_v47 }
 0x11a   : > { %v2239_v62 = vmul.f32 %v2213_v46, %v8147_v47  ;;  %v2240_v11 = vmul.f32 %v2217_v25, %v8147_v47  ;;  %v2241_v19 = vmul.f32 %v2221_v55, %v8147_v47  ;;  %v2242_v12 = vmul.f32 %v2225_v49, %v8147_v47 }
 0x11b   : > { %v2243_v15 = vmul.f32 %v2229_v56, %v8147_v47  ;;  %v2244_v57 = vmul.f32 %v2233_v58, %v8147_v47  ;;  %v2245_v35 = vmul.f32 %v2237_v61, %v8147_v47  ;;  %v2246_v6 = vadd.f32 %v2238_v22, %v2198_v20 }
 0x11c   : > { %v2247_v4 = vadd.f32 %v2239_v62, %v2199_v16  ;;  %v2248_v50 = vadd.f32 %v2240_v11, %v2200_v14  ;;  %v2249_v51 = vadd.f32 %v2241_v19, %v2201_v17  ;;  %v2250_v18 = vadd.f32 %v2242_v12, %v2202_v39 }
 0x11d   : > { %v2251_v7 = vadd.f32 %v2243_v15, %v2203_v53  ;;  %v2252_v8 = vadd.f32 %v2244_v57, %v2204_v38  ;;  %v2253_v3 = vadd.f32 %v2245_v35, %v2205_v44  ;;  %v2257_v24 = vrot.slane %v8144_v26, %v6969_v30 }
 0x11e   : > { %v2261_v37 = vrot.slane %v8147_v47, %v6969_v30  ;;  %v2265_v21 = vrot.slane %v8150_v10, %v6969_v30  ;;  %v2269_v60 = vrot.slane %v8153_v48, %v6969_v30  ;;  %v2273_v2 = vrot.slane %v8156_v13, %v6969_v30 }
 0x11f   : > { %v2277_v36 = vrot.slane %v8159_v1, %v6969_v30  ;;  %v2281_v27 = vrot.slane %v8162_v45, %v6969_v30  ;;  %v2285_v42 = vrot.slane %v8166_v52, %v6969_v30  ;;  %v2286_v40 = vmul.f32 %v2257_v24, %v8150_v10 }
 0x120   : > { %v2287_v41 = vmul.f32 %v2261_v37, %v8150_v10  ;;  %v2288_v59 = vmul.f32 %v2265_v21, %v8150_v10  ;;  %v2289_v63 = vmul.f32 %v2269_v60, %v8150_v10  ;;  %v2290_v0 = vmul.f32 %v2273_v2, %v8150_v10 }
 0x121   : > { %v2291_v5 = vmul.f32 %v2277_v36, %v8150_v10  ;;  %v2292_v43 = vmul.f32 %v2281_v27, %v8150_v10  ;;  %v2293_v20 = vmul.f32 %v2285_v42, %v8150_v10  ;;  %v2294_v23 = vadd.f32 %v2286_v40, %v2246_v6 }
 0x122   : > { %v2295_v16 = vadd.f32 %v2287_v41, %v2247_v4  ;;  %v2296_v14 = vadd.f32 %v2288_v59, %v2248_v50  ;;  %v2297_v17 = vadd.f32 %v2289_v63, %v2249_v51  ;;  %v2298_v39 = vadd.f32 %v2290_v0, %v2250_v18 }
 0x123   : > { %v2299_v53 = vadd.f32 %v2291_v5, %v2251_v7  ;;  %v2300_v38 = vadd.f32 %v2292_v43, %v2252_v8  ;;  %v2301_v54 = vadd.f32 %v2293_v20, %v2253_v3  ;;  %v2305_v44 = vrot.slane %v8144_v26, %v6972_v31 }
 0x124   : > { %v2309_v46 = vrot.slane %v8147_v47, %v6972_v31  ;;  %v2313_v25 = vrot.slane %v8150_v10, %v6972_v31  ;;  %v2317_v55 = vrot.slane %v8153_v48, %v6972_v31  ;;  %v2321_v49 = vrot.slane %v8156_v13, %v6972_v31 }
 0x125   : > { %v2325_v56 = vrot.slane %v8159_v1, %v6972_v31  ;;  %v2329_v58 = vrot.slane %v8162_v45, %v6972_v31  ;;  %v2333_v61 = vrot.slane %v8166_v52, %v6972_v31  ;;  %v2334_v22 = vmul.f32 %v2305_v44, %v8153_v48 }
 0x126   : > { %v2335_v62 = vmul.f32 %v2309_v46, %v8153_v48  ;;  %v2336_v11 = vmul.f32 %v2313_v25, %v8153_v48  ;;  %v2337_v19 = vmul.f32 %v2317_v55, %v8153_v48  ;;  %v2338_v12 = vmul.f32 %v2321_v49, %v8153_v48 }
 0x127   : > { %v2339_v15 = vmul.f32 %v2325_v56, %v8153_v48  ;;  %v2340_v57 = vmul.f32 %v2329_v58, %v8153_v48  ;;  %v2341_v35 = vmul.f32 %v2333_v61, %v8153_v48  ;;  %v2342_v6 = vadd.f32 %v2334_v22, %v2294_v23 }
 0x128   : > { %v2343_v4 = vadd.f32 %v2335_v62, %v2295_v16  ;;  %v2344_v50 = vadd.f32 %v2336_v11, %v2296_v14  ;;  %v2345_v51 = vadd.f32 %v2337_v19, %v2297_v17  ;;  %v2346_v18 = vadd.f32 %v2338_v12, %v2298_v39 }
 0x129   : > { %v2347_v7 = vadd.f32 %v2339_v15, %v2299_v53  ;;  %v2348_v8 = vadd.f32 %v2340_v57, %v2300_v38  ;;  %v2349_v3 = vadd.f32 %v2341_v35, %v2301_v54  ;;  %v2353_v24 = vrot.slane %v8144_v26, %v6975_v32 }
 0x12a   : > { %v2357_v37 = vrot.slane %v8147_v47, %v6975_v32  ;;  %v2361_v21 = vrot.slane %v8150_v10, %v6975_v32  ;;  %v2365_v60 = vrot.slane %v8153_v48, %v6975_v32  ;;  %v2369_v2 = vrot.slane %v8156_v13, %v6975_v32 }
 0x12b   : > { %v2373_v36 = vrot.slane %v8159_v1, %v6975_v32  ;;  %v2377_v27 = vrot.slane %v8162_v45, %v6975_v32  ;;  %v2381_v42 = vrot.slane %v8166_v52, %v6975_v32  ;;  %v2382_v40 = vmul.f32 %v2353_v24, %v8156_v13 }
 0x12c   : > { %v2383_v41 = vmul.f32 %v2357_v37, %v8156_v13  ;;  %v2384_v59 = vmul.f32 %v2361_v21, %v8156_v13  ;;  %v2385_v63 = vmul.f32 %v2365_v60, %v8156_v13  ;;  %v2386_v0 = vmul.f32 %v2369_v2, %v8156_v13 }
 0x12d   : > { %v2387_v5 = vmul.f32 %v2373_v36, %v8156_v13  ;;  %v2388_v43 = vmul.f32 %v2377_v27, %v8156_v13  ;;  %v2389_v20 = vmul.f32 %v2381_v42, %v8156_v13  ;;  %v2390_v23 = vadd.f32 %v2382_v40, %v2342_v6 }
 0x12e   : > { %v2391_v16 = vadd.f32 %v2383_v41, %v2343_v4  ;;  %v2392_v14 = vadd.f32 %v2384_v59, %v2344_v50  ;;  %v2393_v17 = vadd.f32 %v2385_v63, %v2345_v51  ;;  %v2394_v39 = vadd.f32 %v2386_v0, %v2346_v18 }
 0x12f   : > { %v2395_v53 = vadd.f32 %v2387_v5, %v2347_v7  ;;  %v2396_v38 = vadd.f32 %v2388_v43, %v2348_v8  ;;  %v2397_v54 = vadd.f32 %v2389_v20, %v2349_v3  ;;  %v2401_v44 = vrot.slane %v8144_v26, %v6978_v33 }
 0x130   : > { %v2405_v46 = vrot.slane %v8147_v47, %v6978_v33  ;;  %v2409_v25 = vrot.slane %v8150_v10, %v6978_v33  ;;  %v2413_v55 = vrot.slane %v8153_v48, %v6978_v33  ;;  %v2417_v49 = vrot.slane %v8156_v13, %v6978_v33 }
 0x131   : > { %v2421_v56 = vrot.slane %v8159_v1, %v6978_v33  ;;  %v2425_v58 = vrot.slane %v8162_v45, %v6978_v33  ;;  %v2429_v61 = vrot.slane %v8166_v52, %v6978_v33  ;;  %v2430_v22 = vmul.f32 %v2401_v44, %v8159_v1 }
 0x132   : > { %v2431_v62 = vmul.f32 %v2405_v46, %v8159_v1  ;;  %v2432_v11 = vmul.f32 %v2409_v25, %v8159_v1  ;;  %v2433_v19 = vmul.f32 %v2413_v55, %v8159_v1  ;;  %v2434_v12 = vmul.f32 %v2417_v49, %v8159_v1 }
 0x133   : > { %v2435_v15 = vmul.f32 %v2421_v56, %v8159_v1  ;;  %v2436_v57 = vmul.f32 %v2425_v58, %v8159_v1  ;;  %v2437_v35 = vmul.f32 %v2429_v61, %v8159_v1  ;;  %v2438_v6 = vadd.f32 %v2430_v22, %v2390_v23 }
 0x134   : > { %v2439_v4 = vadd.f32 %v2431_v62, %v2391_v16  ;;  %v2440_v50 = vadd.f32 %v2432_v11, %v2392_v14  ;;  %v2441_v51 = vadd.f32 %v2433_v19, %v2393_v17  ;;  %v2442_v18 = vadd.f32 %v2434_v12, %v2394_v39 }
 0x135   : > { %v2443_v7 = vadd.f32 %v2435_v15, %v2395_v53  ;;  %v2444_v8 = vadd.f32 %v2436_v57, %v2396_v38  ;;  %v2445_v3 = vadd.f32 %v2437_v35, %v2397_v54  ;;  %v2449_v24 = vrot.slane %v8144_v26, %v6981_v34 }
 0x136   : > { %v2453_v37 = vrot.slane %v8147_v47, %v6981_v34  ;;  %v2457_v21 = vrot.slane %v8150_v10, %v6981_v34  ;;  %v2461_v60 = vrot.slane %v8153_v48, %v6981_v34  ;;  %v2465_v2 = vrot.slane %v8156_v13, %v6981_v34 }
 0x137   : > { %v2469_v36 = vrot.slane %v8159_v1, %v6981_v34  ;;  %v2473_v27 = vrot.slane %v8162_v45, %v6981_v34  ;;  %v2477_v42 = vrot.slane %v8166_v52, %v6981_v34  ;;  %v2478_v40 = vmul.f32 %v2449_v24, %v8162_v45 }
 0x138   : > { %v2479_v41 = vmul.f32 %v2453_v37, %v8162_v45  ;;  %v2480_v59 = vmul.f32 %v2457_v21, %v8162_v45  ;;  %v2481_v63 = vmul.f32 %v2461_v60, %v8162_v45  ;;  %v2482_v0 = vmul.f32 %v2465_v2, %v8162_v45 }
 0x139   : > { %v2483_v5 = vmul.f32 %v2469_v36, %v8162_v45  ;;  %v2484_v43 = vmul.f32 %v2473_v27, %v8162_v45  ;;  %v2485_v20 = vmul.f32 %v2477_v42, %v8162_v45  ;;  %v2486_v23 = vadd.f32 %v2478_v40, %v2438_v6 }
 0x13a   : > { %v2487_v16 = vadd.f32 %v2479_v41, %v2439_v4  ;;  %v2488_v14 = vadd.f32 %v2480_v59, %v2440_v50  ;;  %v2489_v17 = vadd.f32 %v2481_v63, %v2441_v51  ;;  %v2490_v39 = vadd.f32 %v2482_v0, %v2442_v18 }
 0x13b   : > { %v2491_v53 = vadd.f32 %v2483_v5, %v2443_v7  ;;  %v2492_v38 = vadd.f32 %v2484_v43, %v2444_v8  ;;  %v2493_v54 = vadd.f32 %v2485_v20, %v2445_v3  ;;  %v2497_v44 = vrot.slane %v8144_v26, %v7166_v9 }
 0x13c   : > { %v2501_v46 = vrot.slane %v8147_v47, %v7166_v9  ;;  %v2505_v25 = vrot.slane %v8150_v10, %v7166_v9  ;;  %v2509_v55 = vrot.slane %v8153_v48, %v7166_v9  ;;  %v2513_v49 = vrot.slane %v8156_v13, %v7166_v9 }
 0x13d   : > { %v2517_v56 = vrot.slane %v8159_v1, %v7166_v9  ;;  %v2521_v58 = vrot.slane %v8162_v45, %v7166_v9  ;;  %v2525_v26 = vrot.slane %v8166_v52, %v7166_v9  ;;  %v2526_v47 = vmul.f32 %v2497_v44, %v8166_v52 }
 0x13e   : > { %v2527_v61 = vmul.f32 %v2501_v46, %v8166_v52  ;;  %v2528_v10 = vmul.f32 %v2505_v25, %v8166_v52  ;;  %v2529_v48 = vmul.f32 %v2509_v55, %v8166_v52  ;;  %v2530_v22 = vmul.f32 %v2513_v49, %v8166_v52 }
 0x13f   : > { %v2531_v13 = vmul.f32 %v2517_v56, %v8166_v52  ;;  %v2532_v1 = vmul.f32 %v2521_v58, %v8166_v52  ;;  %v2533_v62 = vmul.f32 %v2525_v26, %v8166_v52  ;;  %v8358_v45 = vadd.f32 %v2526_v47, %v2486_v23 }
 0x140   : > { %v8360_v11 = vadd.f32 %v2527_v61, %v2487_v16  ;;  %v8362_v19 = vadd.f32 %v2528_v10, %v2488_v14  ;;  %v8364_v12 = vadd.f32 %v2529_v48, %v2489_v17  ;;  %v8366_v15 = vadd.f32 %v2530_v22, %v2490_v39 }
 0x141   : > { %v8368_v57 = vadd.f32 %v2531_v13, %v2491_v53  ;;  %v8370_v35 = vadd.f32 %v2532_v1, %v2492_v38  ;;  %v8372_v6 = vadd.f32 %v2533_v62, %v2493_v54  ;;  %v2545_v4 = vrot.slane %v8358_v45, %v6963_v28 }
 0x142   : > { %v2549_v52 = vrot.slane %v8360_v11, %v6963_v28  ;;  %v2553_v50 = vrot.slane %v8362_v19, %v6963_v28  ;;  %v2557_v51 = vrot.slane %v8364_v12, %v6963_v28  ;;  %v2561_v18 = vrot.slane %v8366_v15, %v6963_v28 }
 0x143   : > { %v2565_v7 = vrot.slane %v8368_v57, %v6963_v28  ;;  %v2569_v8 = vrot.slane %v8370_v35, %v6963_v28  ;;  %v2573_v3 = vrot.slane %v8372_v6, %v6963_v28  ;;  %v2574_v24 = vmul.f32 %v2545_v4, %v8358_v45 }
 0x144   : > { %v2575_v37 = vmul.f32 %v2549_v52, %v8358_v45  ;;  %v2576_v21 = vmul.f32 %v2553_v50, %v8358_v45  ;;  %v2577_v60 = vmul.f32 %v2557_v51, %v8358_v45  ;;  %v2578_v2 = vmul.f32 %v2561_v18, %v8358_v45 }
 0x145   : > { %v2579_v36 = vmul.f32 %v2565_v7, %v8358_v45  ;;  %v2580_v27 = vmul.f32 %v2569_v8, %v8358_v45  ;;  %v2581_v42 = vmul.f32 %v2573_v3, %v8358_v45  ;;  %v2585_v40 = vrot.slane %v8358_v45, %v6966_v29 }
 0x146   : > { %v2589_v41 = vrot.slane %v8360_v11, %v6966_v29  ;;  %v2593_v59 = vrot.slane %v8362_v19, %v6966_v29  ;;  %v2597_v63 = vrot.slane %v8364_v12, %v6966_v29  ;;  %v2601_v0 = vrot.slane %v8366_v15, %v6966_v29 }
 0x147   : > { %v2605_v5 = vrot.slane %v8368_v57, %v6966_v29  ;;  %v2609_v43 = vrot.slane %v8370_v35, %v6966_v29  ;;  %v2613_v20 = vrot.slane %v8372_v6, %v6966_v29  ;;  %v2614_v23 = vmul.f32 %v2585_v40, %v8360_v11 }
 0x148   : > { %v2615_v16 = vmul.f32 %v2589_v41, %v8360_v11  ;;  %v2616_v14 = vmul.f32 %v2593_v59, %v8360_v11  ;;  %v2617_v17 = vmul.f32 %v2597_v63, %v8360_v11  ;;  %v2618_v39 = vmul.f32 %v2601_v0, %v8360_v11 }
 0x149   : > { %v2619_v53 = vmul.f32 %v2605_v5, %v8360_v11  ;;  %v2620_v38 = vmul.f32 %v2609_v43, %v8360_v11  ;;  %v2621_v54 = vmul.f32 %v2613_v20, %v8360_v11  ;;  %v2622_v44 = vadd.f32 %v2614_v23, %v2574_v24 }
 0x14a   : > { %v2623_v46 = vadd.f32 %v2615_v16, %v2575_v37  ;;  %v2624_v25 = vadd.f32 %v2616_v14, %v2576_v21  ;;  %v2625_v55 = vadd.f32 %v2617_v17, %v2577_v60  ;;  %v2626_v49 = vadd.f32 %v2618_v39, %v2578_v2 }
 0x14b   : > { %v2627_v56 = vadd.f32 %v2619_v53, %v2579_v36  ;;  %v2628_v58 = vadd.f32 %v2620_v38, %v2580_v27  ;;  %v2629_v26 = vadd.f32 %v2621_v54, %v2581_v42  ;;  %v2633_v47 = vrot.slane %v8358_v45, %v6969_v30 }
 0x14c   : > { %v2637_v61 = vrot.slane %v8360_v11, %v6969_v30  ;;  %v2641_v10 = vrot.slane %v8362_v19, %v6969_v30  ;;  %v2645_v48 = vrot.slane %v8364_v12, %v6969_v30  ;;  %v2649_v22 = vrot.slane %v8366_v15, %v6969_v30 }
 0x14d   : > { %v2653_v13 = vrot.slane %v8368_v57, %v6969_v30  ;;  %v2657_v1 = vrot.slane %v8370_v35, %v6969_v30  ;;  %v2661_v62 = vrot.slane %v8372_v6, %v6969_v30  ;;  %v2662_v4 = vmul.f32 %v2633_v47, %v8362_v19 }
 0x14e   : > { %v2663_v52 = vmul.f32 %v2637_v61, %v8362_v19  ;;  %v2664_v50 = vmul.f32 %v2641_v10, %v8362_v19  ;;  %v2665_v51 = vmul.f32 %v2645_v48, %v8362_v19  ;;  %v2666_v18 = vmul.f32 %v2649_v22, %v8362_v19 }
 0x14f   : > { %v2667_v7 = vmul.f32 %v2653_v13, %v8362_v19  ;;  %v2668_v8 = vmul.f32 %v2657_v1, %v8362_v19  ;;  %v2669_v3 = vmul.f32 %v2661_v62, %v8362_v19  ;;  %v2670_v24 = vadd.f32 %v2662_v4, %v2622_v44 }
 0x150   : > { %v2671_v37 = vadd.f32 %v2663_v52, %v2623_v46  ;;  %v2672_v21 = vadd.f32 %v2664_v50, %v2624_v25  ;;  %v2673_v60 = vadd.f32 %v2665_v51, %v2625_v55  ;;  %v2674_v2 = vadd.f32 %v2666_v18, %v2626_v49 }
 0x151   : > { %v2675_v36 = vadd.f32 %v2667_v7, %v2627_v56  ;;  %v2676_v27 = vadd.f32 %v2668_v8, %v2628_v58  ;;  %v2677_v42 = vadd.f32 %v2669_v3, %v2629_v26  ;;  %v2681_v40 = vrot.slane %v8358_v45, %v6972_v31 }
 0x152   : > { %v2685_v41 = vrot.slane %v8360_v11, %v6972_v31  ;;  %v2689_v59 = vrot.slane %v8362_v19, %v6972_v31  ;;  %v2693_v63 = vrot.slane %v8364_v12, %v6972_v31  ;;  %v2697_v0 = vrot.slane %v8366_v15, %v6972_v31 }
 0x153   : > { %v2701_v5 = vrot.slane %v8368_v57, %v6972_v31  ;;  %v2705_v43 = vrot.slane %v8370_v35, %v6972_v31  ;;  %v2709_v20 = vrot.slane %v8372_v6, %v6972_v31  ;;  %v2710_v23 = vmul.f32 %v2681_v40, %v8364_v12 }
 0x154   : > { %v2711_v16 = vmul.f32 %v2685_v41, %v8364_v12  ;;  %v2712_v14 = vmul.f32 %v2689_v59, %v8364_v12  ;;  %v2713_v17 = vmul.f32 %v2693_v63, %v8364_v12  ;;  %v2714_v39 = vmul.f32 %v2697_v0, %v8364_v12 }
 0x155   : > { %v2715_v53 = vmul.f32 %v2701_v5, %v8364_v12  ;;  %v2716_v38 = vmul.f32 %v2705_v43, %v8364_v12  ;;  %v2717_v54 = vmul.f32 %v2709_v20, %v8364_v12  ;;  %v2718_v44 = vadd.f32 %v2710_v23, %v2670_v24 }
 0x156   : > { %v2719_v46 = vadd.f32 %v2711_v16, %v2671_v37  ;;  %v2720_v25 = vadd.f32 %v2712_v14, %v2672_v21  ;;  %v2721_v55 = vadd.f32 %v2713_v17, %v2673_v60  ;;  %v2722_v49 = vadd.f32 %v2714_v39, %v2674_v2 }
 0x157   : > { %v2723_v56 = vadd.f32 %v2715_v53, %v2675_v36  ;;  %v2724_v58 = vadd.f32 %v2716_v38, %v2676_v27  ;;  %v2725_v26 = vadd.f32 %v2717_v54, %v2677_v42  ;;  %v2729_v47 = vrot.slane %v8358_v45, %v6975_v32 }
 0x158   : > { %v2733_v61 = vrot.slane %v8360_v11, %v6975_v32  ;;  %v2737_v10 = vrot.slane %v8362_v19, %v6975_v32  ;;  %v2741_v48 = vrot.slane %v8364_v12, %v6975_v32  ;;  %v2745_v22 = vrot.slane %v8366_v15, %v6975_v32 }
 0x159   : > { %v2749_v13 = vrot.slane %v8368_v57, %v6975_v32  ;;  %v2753_v1 = vrot.slane %v8370_v35, %v6975_v32  ;;  %v2757_v62 = vrot.slane %v8372_v6, %v6975_v32  ;;  %v2758_v4 = vmul.f32 %v2729_v47, %v8366_v15 }
 0x15a   : > { %v2759_v52 = vmul.f32 %v2733_v61, %v8366_v15  ;;  %v2760_v50 = vmul.f32 %v2737_v10, %v8366_v15  ;;  %v2761_v51 = vmul.f32 %v2741_v48, %v8366_v15  ;;  %v2762_v18 = vmul.f32 %v2745_v22, %v8366_v15 }
 0x15b   : > { %v2763_v7 = vmul.f32 %v2749_v13, %v8366_v15  ;;  %v2764_v8 = vmul.f32 %v2753_v1, %v8366_v15  ;;  %v2765_v3 = vmul.f32 %v2757_v62, %v8366_v15  ;;  %v2766_v24 = vadd.f32 %v2758_v4, %v2718_v44 }
 0x15c   : > { %v2767_v37 = vadd.f32 %v2759_v52, %v2719_v46  ;;  %v2768_v21 = vadd.f32 %v2760_v50, %v2720_v25  ;;  %v2769_v60 = vadd.f32 %v2761_v51, %v2721_v55  ;;  %v2770_v2 = vadd.f32 %v2762_v18, %v2722_v49 }
 0x15d   : > { %v2771_v36 = vadd.f32 %v2763_v7, %v2723_v56  ;;  %v2772_v27 = vadd.f32 %v2764_v8, %v2724_v58  ;;  %v2773_v42 = vadd.f32 %v2765_v3, %v2725_v26  ;;  %v2777_v40 = vrot.slane %v8358_v45, %v6978_v33 }
 0x15e   : > { %v2781_v41 = vrot.slane %v8360_v11, %v6978_v33  ;;  %v2785_v59 = vrot.slane %v8362_v19, %v6978_v33  ;;  %v2789_v63 = vrot.slane %v8364_v12, %v6978_v33  ;;  %v2793_v0 = vrot.slane %v8366_v15, %v6978_v33 }
 0x15f   : > { %v2797_v5 = vrot.slane %v8368_v57, %v6978_v33  ;;  %v2801_v43 = vrot.slane %v8370_v35, %v6978_v33  ;;  %v2805_v20 = vrot.slane %v8372_v6, %v6978_v33  ;;  %v2806_v23 = vmul.f32 %v2777_v40, %v8368_v57 }
 0x160   : > { %v2807_v16 = vmul.f32 %v2781_v41, %v8368_v57  ;;  %v2808_v14 = vmul.f32 %v2785_v59, %v8368_v57  ;;  %v2809_v17 = vmul.f32 %v2789_v63, %v8368_v57  ;;  %v2810_v39 = vmul.f32 %v2793_v0, %v8368_v57 }
 0x161   : > { %v2811_v53 = vmul.f32 %v2797_v5, %v8368_v57  ;;  %v2812_v38 = vmul.f32 %v2801_v43, %v8368_v57  ;;  %v2813_v54 = vmul.f32 %v2805_v20, %v8368_v57  ;;  %v2814_v44 = vadd.f32 %v2806_v23, %v2766_v24 }
 0x162   : > { %v2815_v46 = vadd.f32 %v2807_v16, %v2767_v37  ;;  %v2816_v25 = vadd.f32 %v2808_v14, %v2768_v21  ;;  %v2817_v55 = vadd.f32 %v2809_v17, %v2769_v60  ;;  %v2818_v49 = vadd.f32 %v2810_v39, %v2770_v2 }
 0x163   : > { %v2819_v56 = vadd.f32 %v2811_v53, %v2771_v36  ;;  %v2820_v58 = vadd.f32 %v2812_v38, %v2772_v27  ;;  %v2821_v26 = vadd.f32 %v2813_v54, %v2773_v42  ;;  %v2825_v47 = vrot.slane %v8358_v45, %v6981_v34 }
 0x164   : > { %v2829_v61 = vrot.slane %v8360_v11, %v6981_v34  ;;  %v2833_v10 = vrot.slane %v8362_v19, %v6981_v34  ;;  %v2837_v48 = vrot.slane %v8364_v12, %v6981_v34  ;;  %v2841_v22 = vrot.slane %v8366_v15, %v6981_v34 }
 0x165   : > { %v2845_v13 = vrot.slane %v8368_v57, %v6981_v34  ;;  %v2849_v1 = vrot.slane %v8370_v35, %v6981_v34  ;;  %v2853_v62 = vrot.slane %v8372_v6, %v6981_v34  ;;  %v2854_v4 = vmul.f32 %v2825_v47, %v8370_v35 }
 0x166   : > { %v2855_v52 = vmul.f32 %v2829_v61, %v8370_v35  ;;  %v2856_v50 = vmul.f32 %v2833_v10, %v8370_v35  ;;  %v2857_v51 = vmul.f32 %v2837_v48, %v8370_v35  ;;  %v2858_v18 = vmul.f32 %v2841_v22, %v8370_v35 }
 0x167   : > { %v2859_v7 = vmul.f32 %v2845_v13, %v8370_v35  ;;  %v2860_v8 = vmul.f32 %v2849_v1, %v8370_v35  ;;  %v2861_v3 = vmul.f32 %v2853_v62, %v8370_v35  ;;  %v2862_v24 = vadd.f32 %v2854_v4, %v2814_v44 }
 0x168   : > { %v2863_v37 = vadd.f32 %v2855_v52, %v2815_v46  ;;  %v2864_v21 = vadd.f32 %v2856_v50, %v2816_v25  ;;  %v2865_v60 = vadd.f32 %v2857_v51, %v2817_v55  ;;  %v2866_v2 = vadd.f32 %v2858_v18, %v2818_v49 }
 0x169   : > { %v2867_v36 = vadd.f32 %v2859_v7, %v2819_v56  ;;  %v2868_v27 = vadd.f32 %v2860_v8, %v2820_v58  ;;  %v2869_v42 = vadd.f32 %v2861_v3, %v2821_v26  ;;  %v2873_v40 = vrot.slane %v8358_v45, %v7166_v9 }
 0x16a   : > { %v2877_v41 = vrot.slane %v8360_v11, %v7166_v9  ;;  %v2881_v59 = vrot.slane %v8362_v19, %v7166_v9  ;;  %v2885_v63 = vrot.slane %v8364_v12, %v7166_v9  ;;  %v2889_v0 = vrot.slane %v8366_v15, %v7166_v9 }
 0x16b   : > { %v2893_v5 = vrot.slane %v8368_v57, %v7166_v9  ;;  %v2897_v43 = vrot.slane %v8370_v35, %v7166_v9  ;;  %v2901_v45 = vrot.slane %v8372_v6, %v7166_v9  ;;  %v2902_v11 = vmul.f32 %v2873_v40, %v8372_v6 }
 0x16c   : > { %v2903_v20 = vmul.f32 %v2877_v41, %v8372_v6  ;;  %v2904_v19 = vmul.f32 %v2881_v59, %v8372_v6  ;;  %v2905_v12 = vmul.f32 %v2885_v63, %v8372_v6  ;;  %v2906_v23 = vmul.f32 %v2889_v0, %v8372_v6 }
 0x16d   : > { %v2907_v15 = vmul.f32 %v2893_v5, %v8372_v6  ;;  %v2908_v57 = vmul.f32 %v2897_v43, %v8372_v6  ;;  %v2909_v16 = vmul.f32 %v2901_v45, %v8372_v6  ;;  %v8566_v35 = vadd.f32 %v2902_v11, %v2862_v24 }
 0x16e   : > { %v8568_v14 = vadd.f32 %v2903_v20, %v2863_v37  ;;  %v8570_v17 = vadd.f32 %v2904_v19, %v2864_v21  ;;  %v8572_v39 = vadd.f32 %v2905_v12, %v2865_v60  ;;  %v8574_v53 = vadd.f32 %v2906_v23, %v2866_v2 }
 0x16f   : > { %v8576_v38 = vadd.f32 %v2907_v15, %v2867_v36  ;;  %v8578_v54 = vadd.f32 %v2908_v57, %v2868_v27  ;;  %v8580_v44 = vadd.f32 %v2909_v16, %v2869_v42  ;;  %v2921_v46 = vrot.slane %v8566_v35, %v6963_v28 }
 0x170   : > { %v2925_v6 = vrot.slane %v8568_v14, %v6963_v28  ;;  %v2929_v25 = vrot.slane %v8570_v17, %v6963_v28  ;;  %v2933_v55 = vrot.slane %v8572_v39, %v6963_v28  ;;  %v2937_v49 = vrot.slane %v8574_v53, %v6963_v28 }
 0x171   : > { %v2941_v56 = vrot.slane %v8576_v38, %v6963_v28  ;;  %v2945_v58 = vrot.slane %v8578_v54, %v6963_v28  ;;  %v2949_v26 = vrot.slane %v8580_v44, %v6963_v28  ;;  %v2950_v47 = vmul.f32 %v2921_v46, %v8566_v35 }
 0x172   : > { %v2951_v61 = vmul.f32 %v2925_v6, %v8566_v35  ;;  %v2952_v10 = vmul.f32 %v2929_v25, %v8566_v35  ;;  %v2953_v48 = vmul.f32 %v2933_v55, %v8566_v35  ;;  %v2954_v22 = vmul.f32 %v2937_v49, %v8566_v35 }
 0x173   : > { %v2955_v13 = vmul.f32 %v2941_v56, %v8566_v35  ;;  %v2956_v1 = vmul.f32 %v2945_v58, %v8566_v35  ;;  %v2957_v62 = vmul.f32 %v2949_v26, %v8566_v35  ;;  %v2961_v4 = vrot.slane %v8566_v35, %v6966_v29 }
 0x174   : > { %v2965_v52 = vrot.slane %v8568_v14, %v6966_v29  ;;  %v2969_v50 = vrot.slane %v8570_v17, %v6966_v29  ;;  %v2973_v51 = vrot.slane %v8572_v39, %v6966_v29  ;;  %v2977_v18 = vrot.slane %v8574_v53, %v6966_v29 }
 0x175   : > { %v2981_v7 = vrot.slane %v8576_v38, %v6966_v29  ;;  %v2985_v8 = vrot.slane %v8578_v54, %v6966_v29  ;;  %v2989_v3 = vrot.slane %v8580_v44, %v6966_v29  ;;  %v2990_v24 = vmul.f32 %v2961_v4, %v8568_v14 }
 0x176   : > { %v2991_v37 = vmul.f32 %v2965_v52, %v8568_v14  ;;  %v2992_v21 = vmul.f32 %v2969_v50, %v8568_v14  ;;  %v2993_v60 = vmul.f32 %v2973_v51, %v8568_v14  ;;  %v2994_v2 = vmul.f32 %v2977_v18, %v8568_v14 }
 0x177   : > { %v2995_v36 = vmul.f32 %v2981_v7, %v8568_v14  ;;  %v2996_v27 = vmul.f32 %v2985_v8, %v8568_v14  ;;  %v2997_v42 = vmul.f32 %v2989_v3, %v8568_v14  ;;  %v2998_v40 = vadd.f32 %v2990_v24, %v2950_v47 }
 0x178   : > { %v2999_v41 = vadd.f32 %v2991_v37, %v2951_v61  ;;  %v3000_v59 = vadd.f32 %v2992_v21, %v2952_v10  ;;  %v3001_v63 = vadd.f32 %v2993_v60, %v2953_v48  ;;  %v3002_v0 = vadd.f32 %v2994_v2, %v2954_v22 }
 0x179   : > { %v3003_v5 = vadd.f32 %v2995_v36, %v2955_v13  ;;  %v3004_v43 = vadd.f32 %v2996_v27, %v2956_v1  ;;  %v3005_v45 = vadd.f32 %v2997_v42, %v2957_v62  ;;  %v3009_v11 = vrot.slane %v8566_v35, %v6969_v30 }
 0x17a   : > { %v3013_v20 = vrot.slane %v8568_v14, %v6969_v30  ;;  %v3017_v19 = vrot.slane %v8570_v17, %v6969_v30  ;;  %v3021_v12 = vrot.slane %v8572_v39, %v6969_v30  ;;  %v3025_v23 = vrot.slane %v8574_v53, %v6969_v30 }
 0x17b   : > { %v3029_v15 = vrot.slane %v8576_v38, %v6969_v30  ;;  %v3033_v57 = vrot.slane %v8578_v54, %v6969_v30  ;;  %v3037_v16 = vrot.slane %v8580_v44, %v6969_v30  ;;  %v3038_v46 = vmul.f32 %v3009_v11, %v8570_v17 }
 0x17c   : > { %v3039_v6 = vmul.f32 %v3013_v20, %v8570_v17  ;;  %v3040_v25 = vmul.f32 %v3017_v19, %v8570_v17  ;;  %v3041_v55 = vmul.f32 %v3021_v12, %v8570_v17  ;;  %v3042_v49 = vmul.f32 %v3025_v23, %v8570_v17 }
 0x17d   : > { %v3043_v56 = vmul.f32 %v3029_v15, %v8570_v17  ;;  %v3044_v58 = vmul.f32 %v3033_v57, %v8570_v17  ;;  %v3045_v26 = vmul.f32 %v3037_v16, %v8570_v17  ;;  %v3046_v47 = vadd.f32 %v3038_v46, %v2998_v40 }
 0x17e   : > { %v3047_v61 = vadd.f32 %v3039_v6, %v2999_v41  ;;  %v3048_v10 = vadd.f32 %v3040_v25, %v3000_v59  ;;  %v3049_v48 = vadd.f32 %v3041_v55, %v3001_v63  ;;  %v3050_v22 = vadd.f32 %v3042_v49, %v3002_v0 }
 0x17f   : > { %v3051_v13 = vadd.f32 %v3043_v56, %v3003_v5  ;;  %v3052_v1 = vadd.f32 %v3044_v58, %v3004_v43  ;;  %v3053_v62 = vadd.f32 %v3045_v26, %v3005_v45  ;;  %v3057_v4 = vrot.slane %v8566_v35, %v6972_v31 }
 0x180   : > { %v3061_v52 = vrot.slane %v8568_v14, %v6972_v31  ;;  %v3065_v50 = vrot.slane %v8570_v17, %v6972_v31  ;;  %v3069_v51 = vrot.slane %v8572_v39, %v6972_v31  ;;  %v3073_v18 = vrot.slane %v8574_v53, %v6972_v31 }
 0x181   : > { %v3077_v7 = vrot.slane %v8576_v38, %v6972_v31  ;;  %v3081_v8 = vrot.slane %v8578_v54, %v6972_v31  ;;  %v3085_v3 = vrot.slane %v8580_v44, %v6972_v31  ;;  %v3086_v24 = vmul.f32 %v3057_v4, %v8572_v39 }
 0x182   : > { %v3087_v37 = vmul.f32 %v3061_v52, %v8572_v39  ;;  %v3088_v21 = vmul.f32 %v3065_v50, %v8572_v39  ;;  %v3089_v60 = vmul.f32 %v3069_v51, %v8572_v39  ;;  %v3090_v2 = vmul.f32 %v3073_v18, %v8572_v39 }
 0x183   : > { %v3091_v36 = vmul.f32 %v3077_v7, %v8572_v39  ;;  %v3092_v27 = vmul.f32 %v3081_v8, %v8572_v39  ;;  %v3093_v42 = vmul.f32 %v3085_v3, %v8572_v39  ;;  %v3094_v40 = vadd.f32 %v3086_v24, %v3046_v47 }
 0x184   : > { %v3095_v41 = vadd.f32 %v3087_v37, %v3047_v61  ;;  %v3096_v59 = vadd.f32 %v3088_v21, %v3048_v10  ;;  %v3097_v63 = vadd.f32 %v3089_v60, %v3049_v48  ;;  %v3098_v0 = vadd.f32 %v3090_v2, %v3050_v22 }
 0x185   : > { %v3099_v5 = vadd.f32 %v3091_v36, %v3051_v13  ;;  %v3100_v43 = vadd.f32 %v3092_v27, %v3052_v1  ;;  %v3101_v45 = vadd.f32 %v3093_v42, %v3053_v62  ;;  %v3105_v11 = vrot.slane %v8566_v35, %v6975_v32 }
 0x186   : > { %v3109_v20 = vrot.slane %v8568_v14, %v6975_v32  ;;  %v3113_v19 = vrot.slane %v8570_v17, %v6975_v32  ;;  %v3117_v12 = vrot.slane %v8572_v39, %v6975_v32  ;;  %v3121_v23 = vrot.slane %v8574_v53, %v6975_v32 }
 0x187   : > { %v3125_v15 = vrot.slane %v8576_v38, %v6975_v32  ;;  %v3129_v57 = vrot.slane %v8578_v54, %v6975_v32  ;;  %v3133_v16 = vrot.slane %v8580_v44, %v6975_v32  ;;  %v3134_v46 = vmul.f32 %v3105_v11, %v8574_v53 }
 0x188   : > { %v3135_v6 = vmul.f32 %v3109_v20, %v8574_v53  ;;  %v3136_v25 = vmul.f32 %v3113_v19, %v8574_v53  ;;  %v3137_v55 = vmul.f32 %v3117_v12, %v8574_v53  ;;  %v3138_v49 = vmul.f32 %v3121_v23, %v8574_v53 }
 0x189   : > { %v3139_v56 = vmul.f32 %v3125_v15, %v8574_v53  ;;  %v3140_v58 = vmul.f32 %v3129_v57, %v8574_v53  ;;  %v3141_v26 = vmul.f32 %v3133_v16, %v8574_v53  ;;  %v3142_v47 = vadd.f32 %v3134_v46, %v3094_v40 }
 0x18a   : > { %v3143_v61 = vadd.f32 %v3135_v6, %v3095_v41  ;;  %v3144_v10 = vadd.f32 %v3136_v25, %v3096_v59  ;;  %v3145_v48 = vadd.f32 %v3137_v55, %v3097_v63  ;;  %v3146_v22 = vadd.f32 %v3138_v49, %v3098_v0 }
 0x18b   : > { %v3147_v13 = vadd.f32 %v3139_v56, %v3099_v5  ;;  %v3148_v1 = vadd.f32 %v3140_v58, %v3100_v43  ;;  %v3149_v62 = vadd.f32 %v3141_v26, %v3101_v45  ;;  %v3153_v4 = vrot.slane %v8566_v35, %v6978_v33 }
 0x18c   : > { %v3157_v52 = vrot.slane %v8568_v14, %v6978_v33  ;;  %v3161_v50 = vrot.slane %v8570_v17, %v6978_v33  ;;  %v3165_v51 = vrot.slane %v8572_v39, %v6978_v33  ;;  %v3169_v18 = vrot.slane %v8574_v53, %v6978_v33 }
 0x18d   : > { %v3173_v7 = vrot.slane %v8576_v38, %v6978_v33  ;;  %v3177_v8 = vrot.slane %v8578_v54, %v6978_v33  ;;  %v3181_v3 = vrot.slane %v8580_v44, %v6978_v33  ;;  %v3182_v24 = vmul.f32 %v3153_v4, %v8576_v38 }
 0x18e   : > { %v3183_v37 = vmul.f32 %v3157_v52, %v8576_v38  ;;  %v3184_v21 = vmul.f32 %v3161_v50, %v8576_v38  ;;  %v3185_v60 = vmul.f32 %v3165_v51, %v8576_v38  ;;  %v3186_v2 = vmul.f32 %v3169_v18, %v8576_v38 }
 0x18f   : > { %v3187_v36 = vmul.f32 %v3173_v7, %v8576_v38  ;;  %v3188_v27 = vmul.f32 %v3177_v8, %v8576_v38  ;;  %v3189_v42 = vmul.f32 %v3181_v3, %v8576_v38  ;;  %v3190_v40 = vadd.f32 %v3182_v24, %v3142_v47 }
 0x190   : > { %v3191_v41 = vadd.f32 %v3183_v37, %v3143_v61  ;;  %v3192_v59 = vadd.f32 %v3184_v21, %v3144_v10  ;;  %v3193_v63 = vadd.f32 %v3185_v60, %v3145_v48  ;;  %v3194_v0 = vadd.f32 %v3186_v2, %v3146_v22 }
 0x191   : > { %v3195_v5 = vadd.f32 %v3187_v36, %v3147_v13  ;;  %v3196_v43 = vadd.f32 %v3188_v27, %v3148_v1  ;;  %v3197_v45 = vadd.f32 %v3189_v42, %v3149_v62  ;;  %v3201_v11 = vrot.slane %v8566_v35, %v6981_v34 }
 0x192   : > { %v3205_v20 = vrot.slane %v8568_v14, %v6981_v34  ;;  %v3209_v19 = vrot.slane %v8570_v17, %v6981_v34  ;;  %v3213_v12 = vrot.slane %v8572_v39, %v6981_v34  ;;  %v3217_v23 = vrot.slane %v8574_v53, %v6981_v34 }
 0x193   : > { %v3221_v15 = vrot.slane %v8576_v38, %v6981_v34  ;;  %v3225_v57 = vrot.slane %v8578_v54, %v6981_v34  ;;  %v3229_v16 = vrot.slane %v8580_v44, %v6981_v34  ;;  %v3230_v46 = vmul.f32 %v3201_v11, %v8578_v54 }
 0x194   : > { %v3231_v6 = vmul.f32 %v3205_v20, %v8578_v54  ;;  %v3232_v25 = vmul.f32 %v3209_v19, %v8578_v54  ;;  %v3233_v55 = vmul.f32 %v3213_v12, %v8578_v54  ;;  %v3234_v49 = vmul.f32 %v3217_v23, %v8578_v54 }
 0x195   : > { %v3235_v56 = vmul.f32 %v3221_v15, %v8578_v54  ;;  %v3236_v58 = vmul.f32 %v3225_v57, %v8578_v54  ;;  %v3237_v26 = vmul.f32 %v3229_v16, %v8578_v54  ;;  %v3238_v47 = vadd.f32 %v3230_v46, %v3190_v40 }
 0x196   : > { %v3239_v61 = vadd.f32 %v3231_v6, %v3191_v41  ;;  %v3240_v10 = vadd.f32 %v3232_v25, %v3192_v59  ;;  %v3241_v48 = vadd.f32 %v3233_v55, %v3193_v63  ;;  %v3242_v22 = vadd.f32 %v3234_v49, %v3194_v0 }
 0x197   : > { %v3243_v13 = vadd.f32 %v3235_v56, %v3195_v5  ;;  %v3244_v1 = vadd.f32 %v3236_v58, %v3196_v43  ;;  %v3245_v62 = vadd.f32 %v3237_v26, %v3197_v45  ;;  %v3249_v4 = vrot.slane %v8566_v35, %v7166_v9 }
 0x198   : > { %v3253_v52 = vrot.slane %v8568_v14, %v7166_v9  ;;  %v3257_v50 = vrot.slane %v8570_v17, %v7166_v9  ;;  %v3261_v51 = vrot.slane %v8572_v39, %v7166_v9  ;;  %v3265_v18 = vrot.slane %v8574_v53, %v7166_v9 }
 0x199   : > { %v3269_v7 = vrot.slane %v8576_v38, %v7166_v9  ;;  %v3273_v8 = vrot.slane %v8578_v54, %v7166_v9  ;;  %v3277_v35 = vrot.slane %v8580_v44, %v7166_v9  ;;  %v3278_v14 = vmul.f32 %v3249_v4, %v8580_v44 }
 0x19a   : > { %v3279_v3 = vmul.f32 %v3253_v52, %v8580_v44  ;;  %v3280_v17 = vmul.f32 %v3257_v50, %v8580_v44  ;;  %v3281_v39 = vmul.f32 %v3261_v51, %v8580_v44  ;;  %v3282_v24 = vmul.f32 %v3265_v18, %v8580_v44 }
 0x19b   : > { %v3283_v53 = vmul.f32 %v3269_v7, %v8580_v44  ;;  %v3284_v38 = vmul.f32 %v3273_v8, %v8580_v44  ;;  %v3285_v37 = vmul.f32 %v3277_v35, %v8580_v44  ;;  %v8774_v54 = vadd.f32 %v3278_v14, %v3238_v47 }
 0x19c   : > { %v8776_v21 = vadd.f32 %v3279_v3, %v3239_v61  ;;  %v8778_v60 = vadd.f32 %v3280_v17, %v3240_v10  ;;  %v8780_v2 = vadd.f32 %v3281_v39, %v3241_v48  ;;  %v8782_v36 = vadd.f32 %v3282_v24, %v3242_v22 }
 0x19d   : > { %v8784_v27 = vadd.f32 %v3283_v53, %v3243_v13  ;;  %v8786_v42 = vadd.f32 %v3284_v38, %v3244_v1  ;;  %v8788_v40 = vadd.f32 %v3285_v37, %v3245_v62  ;;  %v3297_v41 = vrot.slane %v8774_v54, %v6963_v28 }
 0x19e   : > { %v3301_v44 = vrot.slane %v8776_v21, %v6963_v28  ;;  %v3305_v59 = vrot.slane %v8778_v60, %v6963_v28  ;;  %v3309_v63 = vrot.slane %v8780_v2, %v6963_v28  ;;  %v3313_v0 = vrot.slane %v8782_v36, %v6963_v28 }
 0x19f   : > { %v3317_v5 = vrot.slane %v8784_v27, %v6963_v28  ;;  %v3321_v43 = vrot.slane %v8786_v42, %v6963_v28  ;;  %v3325_v45 = vrot.slane %v8788_v40, %v6963_v28  ;;  %v3326_v11 = vmul.f32 %v3297_v41, %v8774_v54 }
 0x1a0   : > { %v3327_v20 = vmul.f32 %v3301_v44, %v8774_v54  ;;  %v3328_v19 = vmul.f32 %v3305_v59, %v8774_v54  ;;  %v3329_v12 = vmul.f32 %v3309_v63, %v8774_v54  ;;  %v3330_v23 = vmul.f32 %v3313_v0, %v8774_v54 }
 0x1a1   : > { %v3331_v15 = vmul.f32 %v3317_v5, %v8774_v54  ;;  %v3332_v57 = vmul.f32 %v3321_v43, %v8774_v54  ;;  %v3333_v16 = vmul.f32 %v3325_v45, %v8774_v54  ;;  %v3337_v46 = vrot.slane %v8774_v54, %v6966_v29 }
 0x1a2   : > { %v3341_v6 = vrot.slane %v8776_v21, %v6966_v29  ;;  %v3345_v25 = vrot.slane %v8778_v60, %v6966_v29  ;;  %v3349_v55 = vrot.slane %v8780_v2, %v6966_v29  ;;  %v3353_v49 = vrot.slane %v8782_v36, %v6966_v29 }
 0x1a3   : > { %v3357_v56 = vrot.slane %v8784_v27, %v6966_v29  ;;  %v3361_v58 = vrot.slane %v8786_v42, %v6966_v29  ;;  %v3365_v26 = vrot.slane %v8788_v40, %v6966_v29  ;;  %v3366_v47 = vmul.f32 %v3337_v46, %v8776_v21 }
 0x1a4   : > { %v3367_v61 = vmul.f32 %v3341_v6, %v8776_v21  ;;  %v3368_v10 = vmul.f32 %v3345_v25, %v8776_v21  ;;  %v3369_v48 = vmul.f32 %v3349_v55, %v8776_v21  ;;  %v3370_v22 = vmul.f32 %v3353_v49, %v8776_v21 }
 0x1a5   : > { %v3371_v13 = vmul.f32 %v3357_v56, %v8776_v21  ;;  %v3372_v1 = vmul.f32 %v3361_v58, %v8776_v21  ;;  %v3373_v62 = vmul.f32 %v3365_v26, %v8776_v21  ;;  %v3374_v4 = vadd.f32 %v3366_v47, %v3326_v11 }
 0x1a6   : > { %v3375_v52 = vadd.f32 %v3367_v61, %v3327_v20  ;;  %v3376_v50 = vadd.f32 %v3368_v10, %v3328_v19  ;;  %v3377_v51 = vadd.f32 %v3369_v48, %v3329_v12  ;;  %v3378_v18 = vadd.f32 %v3370_v22, %v3330_v23 }
 0x1a7   : > { %v3379_v7 = vadd.f32 %v3371_v13, %v3331_v15  ;;  %v3380_v8 = vadd.f32 %v3372_v1, %v3332_v57  ;;  %v3381_v35 = vadd.f32 %v3373_v62, %v3333_v16  ;;  %v3385_v14 = vrot.slane %v8774_v54, %v6969_v30 }
 0x1a8   : > { %v3389_v3 = vrot.slane %v8776_v21, %v6969_v30  ;;  %v3393_v17 = vrot.slane %v8778_v60, %v6969_v30  ;;  %v3397_v39 = vrot.slane %v8780_v2, %v6969_v30  ;;  %v3401_v24 = vrot.slane %v8782_v36, %v6969_v30 }
 0x1a9   : > { %v3405_v53 = vrot.slane %v8784_v27, %v6969_v30  ;;  %v3409_v38 = vrot.slane %v8786_v42, %v6969_v30  ;;  %v3413_v37 = vrot.slane %v8788_v40, %v6969_v30  ;;  %v3414_v41 = vmul.f32 %v3385_v14, %v8778_v60 }
 0x1aa   : > { %v3415_v44 = vmul.f32 %v3389_v3, %v8778_v60  ;;  %v3416_v59 = vmul.f32 %v3393_v17, %v8778_v60  ;;  %v3417_v63 = vmul.f32 %v3397_v39, %v8778_v60  ;;  %v3418_v0 = vmul.f32 %v3401_v24, %v8778_v60 }
 0x1ab   : > { %v3419_v5 = vmul.f32 %v3405_v53, %v8778_v60  ;;  %v3420_v43 = vmul.f32 %v3409_v38, %v8778_v60  ;;  %v3421_v45 = vmul.f32 %v3413_v37, %v8778_v60  ;;  %v3422_v11 = vadd.f32 %v3414_v41, %v3374_v4 }
 0x1ac   : > { %v3423_v20 = vadd.f32 %v3415_v44, %v3375_v52  ;;  %v3424_v19 = vadd.f32 %v3416_v59, %v3376_v50  ;;  %v3425_v12 = vadd.f32 %v3417_v63, %v3377_v51  ;;  %v3426_v23 = vadd.f32 %v3418_v0, %v3378_v18 }
 0x1ad   : > { %v3427_v15 = vadd.f32 %v3419_v5, %v3379_v7  ;;  %v3428_v57 = vadd.f32 %v3420_v43, %v3380_v8  ;;  %v3429_v16 = vadd.f32 %v3421_v45, %v3381_v35  ;;  %v3433_v46 = vrot.slane %v8774_v54, %v6972_v31 }
 0x1ae   : > { %v3437_v6 = vrot.slane %v8776_v21, %v6972_v31  ;;  %v3441_v25 = vrot.slane %v8778_v60, %v6972_v31  ;;  %v3445_v55 = vrot.slane %v8780_v2, %v6972_v31  ;;  %v3449_v49 = vrot.slane %v8782_v36, %v6972_v31 }
 0x1af   : > { %v3453_v56 = vrot.slane %v8784_v27, %v6972_v31  ;;  %v3457_v58 = vrot.slane %v8786_v42, %v6972_v31  ;;  %v3461_v26 = vrot.slane %v8788_v40, %v6972_v31  ;;  %v3462_v47 = vmul.f32 %v3433_v46, %v8780_v2 }
 0x1b0   : > { %v3463_v61 = vmul.f32 %v3437_v6, %v8780_v2  ;;  %v3464_v10 = vmul.f32 %v3441_v25, %v8780_v2  ;;  %v3465_v48 = vmul.f32 %v3445_v55, %v8780_v2  ;;  %v3466_v22 = vmul.f32 %v3449_v49, %v8780_v2 }
 0x1b1   : > { %v3467_v13 = vmul.f32 %v3453_v56, %v8780_v2  ;;  %v3468_v1 = vmul.f32 %v3457_v58, %v8780_v2  ;;  %v3469_v62 = vmul.f32 %v3461_v26, %v8780_v2  ;;  %v3470_v4 = vadd.f32 %v3462_v47, %v3422_v11 }
 0x1b2   : > { %v3471_v52 = vadd.f32 %v3463_v61, %v3423_v20  ;;  %v3472_v50 = vadd.f32 %v3464_v10, %v3424_v19  ;;  %v3473_v51 = vadd.f32 %v3465_v48, %v3425_v12  ;;  %v3474_v18 = vadd.f32 %v3466_v22, %v3426_v23 }
 0x1b3   : > { %v3475_v7 = vadd.f32 %v3467_v13, %v3427_v15  ;;  %v3476_v8 = vadd.f32 %v3468_v1, %v3428_v57  ;;  %v3477_v35 = vadd.f32 %v3469_v62, %v3429_v16  ;;  %v3481_v14 = vrot.slane %v8774_v54, %v6975_v32 }
 0x1b4   : > { %v3485_v3 = vrot.slane %v8776_v21, %v6975_v32  ;;  %v3489_v17 = vrot.slane %v8778_v60, %v6975_v32  ;;  %v3493_v39 = vrot.slane %v8780_v2, %v6975_v32  ;;  %v3497_v24 = vrot.slane %v8782_v36, %v6975_v32 }
 0x1b5   : > { %v3501_v53 = vrot.slane %v8784_v27, %v6975_v32  ;;  %v3505_v38 = vrot.slane %v8786_v42, %v6975_v32  ;;  %v3509_v37 = vrot.slane %v8788_v40, %v6975_v32  ;;  %v3510_v41 = vmul.f32 %v3481_v14, %v8782_v36 }
 0x1b6   : > { %v3511_v44 = vmul.f32 %v3485_v3, %v8782_v36  ;;  %v3512_v59 = vmul.f32 %v3489_v17, %v8782_v36  ;;  %v3513_v63 = vmul.f32 %v3493_v39, %v8782_v36  ;;  %v3514_v0 = vmul.f32 %v3497_v24, %v8782_v36 }
 0x1b7   : > { %v3515_v5 = vmul.f32 %v3501_v53, %v8782_v36  ;;  %v3516_v43 = vmul.f32 %v3505_v38, %v8782_v36  ;;  %v3517_v45 = vmul.f32 %v3509_v37, %v8782_v36  ;;  %v3518_v11 = vadd.f32 %v3510_v41, %v3470_v4 }
 0x1b8   : > { %v3519_v20 = vadd.f32 %v3511_v44, %v3471_v52  ;;  %v3520_v19 = vadd.f32 %v3512_v59, %v3472_v50  ;;  %v3521_v12 = vadd.f32 %v3513_v63, %v3473_v51  ;;  %v3522_v23 = vadd.f32 %v3514_v0, %v3474_v18 }
 0x1b9   : > { %v3523_v15 = vadd.f32 %v3515_v5, %v3475_v7  ;;  %v3524_v57 = vadd.f32 %v3516_v43, %v3476_v8  ;;  %v3525_v16 = vadd.f32 %v3517_v45, %v3477_v35  ;;  %v3529_v46 = vrot.slane %v8774_v54, %v6978_v33 }
 0x1ba   : > { %v3533_v6 = vrot.slane %v8776_v21, %v6978_v33  ;;  %v3537_v25 = vrot.slane %v8778_v60, %v6978_v33  ;;  %v3541_v55 = vrot.slane %v8780_v2, %v6978_v33  ;;  %v3545_v49 = vrot.slane %v8782_v36, %v6978_v33 }
 0x1bb   : > { %v3549_v56 = vrot.slane %v8784_v27, %v6978_v33  ;;  %v3553_v58 = vrot.slane %v8786_v42, %v6978_v33  ;;  %v3557_v26 = vrot.slane %v8788_v40, %v6978_v33  ;;  %v3558_v47 = vmul.f32 %v3529_v46, %v8784_v27 }
 0x1bc   : > { %v3559_v61 = vmul.f32 %v3533_v6, %v8784_v27  ;;  %v3560_v10 = vmul.f32 %v3537_v25, %v8784_v27  ;;  %v3561_v48 = vmul.f32 %v3541_v55, %v8784_v27  ;;  %v3562_v22 = vmul.f32 %v3545_v49, %v8784_v27 }
 0x1bd   : > { %v3563_v13 = vmul.f32 %v3549_v56, %v8784_v27  ;;  %v3564_v1 = vmul.f32 %v3553_v58, %v8784_v27  ;;  %v3565_v62 = vmul.f32 %v3557_v26, %v8784_v27  ;;  %v3566_v4 = vadd.f32 %v3558_v47, %v3518_v11 }
 0x1be   : > { %v3567_v52 = vadd.f32 %v3559_v61, %v3519_v20  ;;  %v3568_v50 = vadd.f32 %v3560_v10, %v3520_v19  ;;  %v3569_v51 = vadd.f32 %v3561_v48, %v3521_v12  ;;  %v3570_v18 = vadd.f32 %v3562_v22, %v3522_v23 }
 0x1bf   : > { %v3571_v7 = vadd.f32 %v3563_v13, %v3523_v15  ;;  %v3572_v8 = vadd.f32 %v3564_v1, %v3524_v57  ;;  %v3573_v35 = vadd.f32 %v3565_v62, %v3525_v16  ;;  %v3577_v14 = vrot.slane %v8774_v54, %v6981_v34 }
 0x1c0   : > { %v3581_v3 = vrot.slane %v8776_v21, %v6981_v34  ;;  %v3585_v17 = vrot.slane %v8778_v60, %v6981_v34  ;;  %v3589_v39 = vrot.slane %v8780_v2, %v6981_v34  ;;  %v3593_v24 = vrot.slane %v8782_v36, %v6981_v34 }
 0x1c1   : > { %v3597_v53 = vrot.slane %v8784_v27, %v6981_v34  ;;  %v3601_v38 = vrot.slane %v8786_v42, %v6981_v34  ;;  %v3605_v37 = vrot.slane %v8788_v40, %v6981_v34  ;;  %v3606_v41 = vmul.f32 %v3577_v14, %v8786_v42 }
 0x1c2   : > { %v3607_v44 = vmul.f32 %v3581_v3, %v8786_v42  ;;  %v3608_v59 = vmul.f32 %v3585_v17, %v8786_v42  ;;  %v3609_v63 = vmul.f32 %v3589_v39, %v8786_v42  ;;  %v3610_v0 = vmul.f32 %v3593_v24, %v8786_v42 }
 0x1c3   : > { %v3611_v5 = vmul.f32 %v3597_v53, %v8786_v42  ;;  %v3612_v43 = vmul.f32 %v3601_v38, %v8786_v42  ;;  %v3613_v45 = vmul.f32 %v3605_v37, %v8786_v42  ;;  %v3614_v11 = vadd.f32 %v3606_v41, %v3566_v4 }
 0x1c4   : > { %v3615_v20 = vadd.f32 %v3607_v44, %v3567_v52  ;;  %v3616_v19 = vadd.f32 %v3608_v59, %v3568_v50  ;;  %v3617_v12 = vadd.f32 %v3609_v63, %v3569_v51  ;;  %v3618_v23 = vadd.f32 %v3610_v0, %v3570_v18 }
 0x1c5   : > { %v3619_v15 = vadd.f32 %v3611_v5, %v3571_v7  ;;  %v3620_v57 = vadd.f32 %v3612_v43, %v3572_v8  ;;  %v3621_v16 = vadd.f32 %v3613_v45, %v3573_v35  ;;  %v3625_v46 = vrot.slane %v8774_v54, %v7166_v9 }
 0x1c6   : > { %v3629_v6 = vrot.slane %v8776_v21, %v7166_v9  ;;  %v3633_v25 = vrot.slane %v8778_v60, %v7166_v9  ;;  %v3637_v55 = vrot.slane %v8780_v2, %v7166_v9  ;;  %v3641_v49 = vrot.slane %v8782_v36, %v7166_v9 }
 0x1c7   : > { %v3645_v56 = vrot.slane %v8784_v27, %v7166_v9  ;;  %v3649_v58 = vrot.slane %v8786_v42, %v7166_v9  ;;  %v3653_v54 = vrot.slane %v8788_v40, %v7166_v9  ;;  %v3654_v21 = vmul.f32 %v3625_v46, %v8788_v40 }
 0x1c8   : > { %v3655_v26 = vmul.f32 %v3629_v6, %v8788_v40  ;;  %v3656_v60 = vmul.f32 %v3633_v25, %v8788_v40  ;;  %v3657_v2 = vmul.f32 %v3637_v55, %v8788_v40  ;;  %v3658_v47 = vmul.f32 %v3641_v49, %v8788_v40 }
 0x1c9   : > { %v3659_v36 = vmul.f32 %v3645_v56, %v8788_v40  ;;  %v3660_v27 = vmul.f32 %v3649_v58, %v8788_v40  ;;  %v3661_v61 = vmul.f32 %v3653_v54, %v8788_v40  ;;  %v8982_v42 = vadd.f32 %v3654_v21, %v3614_v11 }
 0x1ca   : > { %v8984_v10 = vadd.f32 %v3655_v26, %v3615_v20  ;;  %v8986_v48 = vadd.f32 %v3656_v60, %v3616_v19  ;;  %v8988_v22 = vadd.f32 %v3657_v2, %v3617_v12  ;;  %v8990_v13 = vadd.f32 %v3658_v47, %v3618_v23 }
 0x1cb   : > { %v8992_v1 = vadd.f32 %v3659_v36, %v3619_v15  ;;  %v8994_v62 = vadd.f32 %v3660_v27, %v3620_v57  ;;  %v8996_v4 = vadd.f32 %v3661_v61, %v3621_v16  ;;  %v3673_v52 = vrot.slane %v8982_v42, %v6963_v28 }
 0x1cc   : > { %v3677_v40 = vrot.slane %v8984_v10, %v6963_v28  ;;  %v3681_v50 = vrot.slane %v8986_v48, %v6963_v28  ;;  %v3685_v51 = vrot.slane %v8988_v22, %v6963_v28  ;;  %v3689_v18 = vrot.slane %v8990_v13, %v6963_v28 }
 0x1cd   : > { %v3693_v7 = vrot.slane %v8992_v1, %v6963_v28  ;;  %v3697_v8 = vrot.slane %v8994_v62, %v6963_v28  ;;  %v3701_v35 = vrot.slane %v8996_v4, %v6963_v28  ;;  %v3702_v14 = vmul.f32 %v3673_v52, %v8982_v42 }
 0x1ce   : > { %v3703_v3 = vmul.f32 %v3677_v40, %v8982_v42  ;;  %v3704_v17 = vmul.f32 %v3681_v50, %v8982_v42  ;;  %v3705_v39 = vmul.f32 %v3685_v51, %v8982_v42  ;;  %v3706_v24 = vmul.f32 %v3689_v18, %v8982_v42 }
 0x1cf   : > { %v3707_v53 = vmul.f32 %v3693_v7, %v8982_v42  ;;  %v3708_v38 = vmul.f32 %v3697_v8, %v8982_v42  ;;  %v3709_v37 = vmul.f32 %v3701_v35, %v8982_v42  ;;  %v3713_v41 = vrot.slane %v8982_v42, %v6966_v29 }
 0x1d0   : > { %v3717_v44 = vrot.slane %v8984_v10, %v6966_v29  ;;  %v3721_v59 = vrot.slane %v8986_v48, %v6966_v29  ;;  %v3725_v63 = vrot.slane %v8988_v22, %v6966_v29  ;;  %v3729_v0 = vrot.slane %v8990_v13, %v6966_v29 }
 0x1d1   : > { %v3733_v5 = vrot.slane %v8992_v1, %v6966_v29  ;;  %v3737_v43 = vrot.slane %v8994_v62, %v6966_v29  ;;  %v3741_v45 = vrot.slane %v8996_v4, %v6966_v29  ;;  %v3742_v11 = vmul.f32 %v3713_v41, %v8984_v10 }
 0x1d2   : > { %v3743_v20 = vmul.f32 %v3717_v44, %v8984_v10  ;;  %v3744_v19 = vmul.f32 %v3721_v59, %v8984_v10  ;;  %v3745_v12 = vmul.f32 %v3725_v63, %v8984_v10  ;;  %v3746_v23 = vmul.f32 %v3729_v0, %v8984_v10 }
 0x1d3   : > { %v3747_v15 = vmul.f32 %v3733_v5, %v8984_v10  ;;  %v3748_v57 = vmul.f32 %v3737_v43, %v8984_v10  ;;  %v3749_v16 = vmul.f32 %v3741_v45, %v8984_v10  ;;  %v3750_v46 = vadd.f32 %v3742_v11, %v3702_v14 }
 0x1d4   : > { %v3751_v6 = vadd.f32 %v3743_v20, %v3703_v3  ;;  %v3752_v25 = vadd.f32 %v3744_v19, %v3704_v17  ;;  %v3753_v55 = vadd.f32 %v3745_v12, %v3705_v39  ;;  %v3754_v49 = vadd.f32 %v3746_v23, %v3706_v24 }
 0x1d5   : > { %v3755_v56 = vadd.f32 %v3747_v15, %v3707_v53  ;;  %v3756_v58 = vadd.f32 %v3748_v57, %v3708_v38  ;;  %v3757_v54 = vadd.f32 %v3749_v16, %v3709_v37  ;;  %v3761_v21 = vrot.slane %v8982_v42, %v6969_v30 }
 0x1d6   : > { %v3765_v26 = vrot.slane %v8984_v10, %v6969_v30  ;;  %v3769_v60 = vrot.slane %v8986_v48, %v6969_v30  ;;  %v3773_v2 = vrot.slane %v8988_v22, %v6969_v30  ;;  %v3777_v47 = vrot.slane %v8990_v13, %v6969_v30 }
 0x1d7   : > { %v3781_v36 = vrot.slane %v8992_v1, %v6969_v30  ;;  %v3785_v27 = vrot.slane %v8994_v62, %v6969_v30  ;;  %v3789_v61 = vrot.slane %v8996_v4, %v6969_v30  ;;  %v3790_v52 = vmul.f32 %v3761_v21, %v8986_v48 }
 0x1d8   : > { %v3791_v40 = vmul.f32 %v3765_v26, %v8986_v48  ;;  %v3792_v50 = vmul.f32 %v3769_v60, %v8986_v48  ;;  %v3793_v51 = vmul.f32 %v3773_v2, %v8986_v48  ;;  %v3794_v18 = vmul.f32 %v3777_v47, %v8986_v48 }
 0x1d9   : > { %v3795_v7 = vmul.f32 %v3781_v36, %v8986_v48  ;;  %v3796_v8 = vmul.f32 %v3785_v27, %v8986_v48  ;;  %v3797_v35 = vmul.f32 %v3789_v61, %v8986_v48  ;;  %v3798_v14 = vadd.f32 %v3790_v52, %v3750_v46 }
 0x1da   : > { %v3799_v3 = vadd.f32 %v3791_v40, %v3751_v6  ;;  %v3800_v17 = vadd.f32 %v3792_v50, %v3752_v25  ;;  %v3801_v39 = vadd.f32 %v3793_v51, %v3753_v55  ;;  %v3802_v24 = vadd.f32 %v3794_v18, %v3754_v49 }
 0x1db   : > { %v3803_v53 = vadd.f32 %v3795_v7, %v3755_v56  ;;  %v3804_v38 = vadd.f32 %v3796_v8, %v3756_v58  ;;  %v3805_v37 = vadd.f32 %v3797_v35, %v3757_v54  ;;  %v3809_v41 = vrot.slane %v8982_v42, %v6972_v31 }
 0x1dc   : > { %v3813_v44 = vrot.slane %v8984_v10, %v6972_v31  ;;  %v3817_v59 = vrot.slane %v8986_v48, %v6972_v31  ;;  %v3821_v63 = vrot.slane %v8988_v22, %v6972_v31  ;;  %v3825_v0 = vrot.slane %v8990_v13, %v6972_v31 }
 0x1dd   : > { %v3829_v5 = vrot.slane %v8992_v1, %v6972_v31  ;;  %v3833_v43 = vrot.slane %v8994_v62, %v6972_v31  ;;  %v3837_v45 = vrot.slane %v8996_v4, %v6972_v31  ;;  %v3838_v11 = vmul.f32 %v3809_v41, %v8988_v22 }
 0x1de   : > { %v3839_v20 = vmul.f32 %v3813_v44, %v8988_v22  ;;  %v3840_v19 = vmul.f32 %v3817_v59, %v8988_v22  ;;  %v3841_v12 = vmul.f32 %v3821_v63, %v8988_v22  ;;  %v3842_v23 = vmul.f32 %v3825_v0, %v8988_v22 }
 0x1df   : > { %v3843_v15 = vmul.f32 %v3829_v5, %v8988_v22  ;;  %v3844_v57 = vmul.f32 %v3833_v43, %v8988_v22  ;;  %v3845_v16 = vmul.f32 %v3837_v45, %v8988_v22  ;;  %v3846_v46 = vadd.f32 %v3838_v11, %v3798_v14 }
 0x1e0   : > { %v3847_v6 = vadd.f32 %v3839_v20, %v3799_v3  ;;  %v3848_v25 = vadd.f32 %v3840_v19, %v3800_v17  ;;  %v3849_v55 = vadd.f32 %v3841_v12, %v3801_v39  ;;  %v3850_v49 = vadd.f32 %v3842_v23, %v3802_v24 }
 0x1e1   : > { %v3851_v56 = vadd.f32 %v3843_v15, %v3803_v53  ;;  %v3852_v58 = vadd.f32 %v3844_v57, %v3804_v38  ;;  %v3853_v54 = vadd.f32 %v3845_v16, %v3805_v37  ;;  %v3857_v21 = vrot.slane %v8982_v42, %v6975_v32 }
 0x1e2   : > { %v3861_v26 = vrot.slane %v8984_v10, %v6975_v32  ;;  %v3865_v60 = vrot.slane %v8986_v48, %v6975_v32  ;;  %v3869_v2 = vrot.slane %v8988_v22, %v6975_v32  ;;  %v3873_v47 = vrot.slane %v8990_v13, %v6975_v32 }
 0x1e3   : > { %v3877_v36 = vrot.slane %v8992_v1, %v6975_v32  ;;  %v3881_v27 = vrot.slane %v8994_v62, %v6975_v32  ;;  %v3885_v61 = vrot.slane %v8996_v4, %v6975_v32  ;;  %v3886_v52 = vmul.f32 %v3857_v21, %v8990_v13 }
 0x1e4   : > { %v3887_v40 = vmul.f32 %v3861_v26, %v8990_v13  ;;  %v3888_v50 = vmul.f32 %v3865_v60, %v8990_v13  ;;  %v3889_v51 = vmul.f32 %v3869_v2, %v8990_v13  ;;  %v3890_v18 = vmul.f32 %v3873_v47, %v8990_v13 }
 0x1e5   : > { %v3891_v7 = vmul.f32 %v3877_v36, %v8990_v13  ;;  %v3892_v8 = vmul.f32 %v3881_v27, %v8990_v13  ;;  %v3893_v35 = vmul.f32 %v3885_v61, %v8990_v13  ;;  %v3894_v14 = vadd.f32 %v3886_v52, %v3846_v46 }
 0x1e6   : > { %v3895_v3 = vadd.f32 %v3887_v40, %v3847_v6  ;;  %v3896_v17 = vadd.f32 %v3888_v50, %v3848_v25  ;;  %v3897_v39 = vadd.f32 %v3889_v51, %v3849_v55  ;;  %v3898_v24 = vadd.f32 %v3890_v18, %v3850_v49 }
 0x1e7   : > { %v3899_v53 = vadd.f32 %v3891_v7, %v3851_v56  ;;  %v3900_v38 = vadd.f32 %v3892_v8, %v3852_v58  ;;  %v3901_v37 = vadd.f32 %v3893_v35, %v3853_v54  ;;  %v3905_v41 = vrot.slane %v8982_v42, %v6978_v33 }
 0x1e8   : > { %v3909_v44 = vrot.slane %v8984_v10, %v6978_v33  ;;  %v3913_v59 = vrot.slane %v8986_v48, %v6978_v33  ;;  %v3917_v63 = vrot.slane %v8988_v22, %v6978_v33  ;;  %v3921_v0 = vrot.slane %v8990_v13, %v6978_v33 }
 0x1e9   : > { %v3925_v5 = vrot.slane %v8992_v1, %v6978_v33  ;;  %v3929_v43 = vrot.slane %v8994_v62, %v6978_v33  ;;  %v3933_v45 = vrot.slane %v8996_v4, %v6978_v33  ;;  %v3934_v11 = vmul.f32 %v3905_v41, %v8992_v1 }
 0x1ea   : > { %v3935_v20 = vmul.f32 %v3909_v44, %v8992_v1  ;;  %v3936_v19 = vmul.f32 %v3913_v59, %v8992_v1  ;;  %v3937_v12 = vmul.f32 %v3917_v63, %v8992_v1  ;;  %v3938_v23 = vmul.f32 %v3921_v0, %v8992_v1 }
 0x1eb   : > { %v3939_v15 = vmul.f32 %v3925_v5, %v8992_v1  ;;  %v3940_v57 = vmul.f32 %v3929_v43, %v8992_v1  ;;  %v3941_v16 = vmul.f32 %v3933_v45, %v8992_v1  ;;  %v3942_v46 = vadd.f32 %v3934_v11, %v3894_v14 }
 0x1ec   : > { %v3943_v6 = vadd.f32 %v3935_v20, %v3895_v3  ;;  %v3944_v25 = vadd.f32 %v3936_v19, %v3896_v17  ;;  %v3945_v55 = vadd.f32 %v3937_v12, %v3897_v39  ;;  %v3946_v49 = vadd.f32 %v3938_v23, %v3898_v24 }
 0x1ed   : > { %v3947_v56 = vadd.f32 %v3939_v15, %v3899_v53  ;;  %v3948_v58 = vadd.f32 %v3940_v57, %v3900_v38  ;;  %v3949_v54 = vadd.f32 %v3941_v16, %v3901_v37  ;;  %v3953_v21 = vrot.slane %v8982_v42, %v6981_v34 }
 0x1ee   : > { %v3957_v26 = vrot.slane %v8984_v10, %v6981_v34  ;;  %v3961_v60 = vrot.slane %v8986_v48, %v6981_v34  ;;  %v3965_v2 = vrot.slane %v8988_v22, %v6981_v34  ;;  %v3969_v47 = vrot.slane %v8990_v13, %v6981_v34 }
 0x1ef   : > { %v3973_v36 = vrot.slane %v8992_v1, %v6981_v34  ;;  %v3977_v27 = vrot.slane %v8994_v62, %v6981_v34  ;;  %v3981_v61 = vrot.slane %v8996_v4, %v6981_v34  ;;  %v3982_v52 = vmul.f32 %v3953_v21, %v8994_v62 }
 0x1f0   : > { %v3983_v40 = vmul.f32 %v3957_v26, %v8994_v62  ;;  %v3984_v50 = vmul.f32 %v3961_v60, %v8994_v62  ;;  %v3985_v51 = vmul.f32 %v3965_v2, %v8994_v62  ;;  %v3986_v18 = vmul.f32 %v3969_v47, %v8994_v62 }
 0x1f1   : > { %v3987_v7 = vmul.f32 %v3973_v36, %v8994_v62  ;;  %v3988_v8 = vmul.f32 %v3977_v27, %v8994_v62  ;;  %v3989_v35 = vmul.f32 %v3981_v61, %v8994_v62  ;;  %v3990_v14 = vadd.f32 %v3982_v52, %v3942_v46 }
 0x1f2   : > { %v3991_v3 = vadd.f32 %v3983_v40, %v3943_v6  ;;  %v3992_v17 = vadd.f32 %v3984_v50, %v3944_v25  ;;  %v3993_v39 = vadd.f32 %v3985_v51, %v3945_v55  ;;  %v3994_v24 = vadd.f32 %v3986_v18, %v3946_v49 }
 0x1f3   : > { %v3995_v53 = vadd.f32 %v3987_v7, %v3947_v56  ;;  %v3996_v38 = vadd.f32 %v3988_v8, %v3948_v58  ;;  %v3997_v37 = vadd.f32 %v3989_v35, %v3949_v54  ;;  %v4001_v41 = vrot.slane %v8982_v42, %v7166_v9 }
 0x1f4   : > { %v4005_v44 = vrot.slane %v8984_v10, %v7166_v9  ;;  %v4009_v59 = vrot.slane %v8986_v48, %v7166_v9  ;;  %v4013_v63 = vrot.slane %v8988_v22, %v7166_v9  ;;  %v4017_v0 = vrot.slane %v8990_v13, %v7166_v9 }
 0x1f5   : > { %v4021_v5 = vrot.slane %v8992_v1, %v7166_v9  ;;  %v4025_v43 = vrot.slane %v8994_v62, %v7166_v9  ;;  %v4029_v42 = vrot.slane %v8996_v4, %v7166_v9  ;;  %v4030_v10 = vmul.f32 %v4001_v41, %v8996_v4 }
 0x1f6   : > { %v4031_v45 = vmul.f32 %v4005_v44, %v8996_v4  ;;  %v4032_v48 = vmul.f32 %v4009_v59, %v8996_v4  ;;  %v4033_v22 = vmul.f32 %v4013_v63, %v8996_v4  ;;  %v4034_v11 = vmul.f32 %v4017_v0, %v8996_v4 }
 0x1f7   : > { %v4035_v13 = vmul.f32 %v4021_v5, %v8996_v4  ;;  %v4036_v1 = vmul.f32 %v4025_v43, %v8996_v4  ;;  %v4037_v20 = vmul.f32 %v4029_v42, %v8996_v4  ;;  %v9190_v62 = vadd.f32 %v4030_v10, %v3990_v14 }
 0x1f8   : > { %v9192_v19 = vadd.f32 %v4031_v45, %v3991_v3  ;;  %v9194_v12 = vadd.f32 %v4032_v48, %v3992_v17  ;;  %v9196_v23 = vadd.f32 %v4033_v22, %v3993_v39  ;;  %v9198_v15 = vadd.f32 %v4034_v11, %v3994_v24 }
 0x1f9   : > { %v9200_v57 = vadd.f32 %v4035_v13, %v3995_v53  ;;  %v9202_v16 = vadd.f32 %v4036_v1, %v3996_v38  ;;  %v9204_v46 = vadd.f32 %v4037_v20, %v3997_v37  ;;  %v4049_v6 = vrot.slane %v9190_v62, %v6963_v28 }
 0x1fa   : > { %v4053_v4 = vrot.slane %v9192_v19, %v6963_v28  ;;  %v4057_v25 = vrot.slane %v9194_v12, %v6963_v28  ;;  %v4061_v55 = vrot.slane %v9196_v23, %v6963_v28  ;;  %v4065_v49 = vrot.slane %v9198_v15, %v6963_v28 }
 0x1fb   : > { %v4069_v56 = vrot.slane %v9200_v57, %v6963_v28  ;;  %v4073_v58 = vrot.slane %v9202_v16, %v6963_v28  ;;  %v4077_v54 = vrot.slane %v9204_v46, %v6963_v28  ;;  %v4078_v21 = vmul.f32 %v4049_v6, %v9190_v62 }
 0x1fc   : > { %v4079_v26 = vmul.f32 %v4053_v4, %v9190_v62  ;;  %v4080_v60 = vmul.f32 %v4057_v25, %v9190_v62  ;;  %v4081_v2 = vmul.f32 %v4061_v55, %v9190_v62  ;;  %v4082_v47 = vmul.f32 %v4065_v49, %v9190_v62 }
 0x1fd   : > { %v4083_v36 = vmul.f32 %v4069_v56, %v9190_v62  ;;  %v4084_v27 = vmul.f32 %v4073_v58, %v9190_v62  ;;  %v4085_v61 = vmul.f32 %v4077_v54, %v9190_v62  ;;  %v4089_v52 = vrot.slane %v9190_v62, %v6966_v29 }
 0x1fe   : > { %v4093_v40 = vrot.slane %v9192_v19, %v6966_v29  ;;  %v4097_v50 = vrot.slane %v9194_v12, %v6966_v29  ;;  %v4101_v51 = vrot.slane %v9196_v23, %v6966_v29  ;;  %v4105_v18 = vrot.slane %v9198_v15, %v6966_v29 }
 0x1ff   : > { %v4109_v7 = vrot.slane %v9200_v57, %v6966_v29  ;;  %v4113_v8 = vrot.slane %v9202_v16, %v6966_v29  ;;  %v4117_v35 = vrot.slane %v9204_v46, %v6966_v29  ;;  %v4118_v14 = vmul.f32 %v4089_v52, %v9192_v19 }
 0x200   : > { %v4119_v3 = vmul.f32 %v4093_v40, %v9192_v19  ;;  %v4120_v17 = vmul.f32 %v4097_v50, %v9192_v19  ;;  %v4121_v39 = vmul.f32 %v4101_v51, %v9192_v19  ;;  %v4122_v24 = vmul.f32 %v4105_v18, %v9192_v19 }
 0x201   : > { %v4123_v53 = vmul.f32 %v4109_v7, %v9192_v19  ;;  %v4124_v38 = vmul.f32 %v4113_v8, %v9192_v19  ;;  %v4125_v37 = vmul.f32 %v4117_v35, %v9192_v19  ;;  %v4126_v41 = vadd.f32 %v4118_v14, %v4078_v21 }
 0x202   : > { %v4127_v44 = vadd.f32 %v4119_v3, %v4079_v26  ;;  %v4128_v59 = vadd.f32 %v4120_v17, %v4080_v60  ;;  %v4129_v63 = vadd.f32 %v4121_v39, %v4081_v2  ;;  %v4130_v0 = vadd.f32 %v4122_v24, %v4082_v47 }
 0x203   : > { %v4131_v5 = vadd.f32 %v4123_v53, %v4083_v36  ;;  %v4132_v43 = vadd.f32 %v4124_v38, %v4084_v27  ;;  %v4133_v42 = vadd.f32 %v4125_v37, %v4085_v61  ;;  %v4137_v10 = vrot.slane %v9190_v62, %v6969_v30 }
 0x204   : > { %v4141_v45 = vrot.slane %v9192_v19, %v6969_v30  ;;  %v4145_v48 = vrot.slane %v9194_v12, %v6969_v30  ;;  %v4149_v22 = vrot.slane %v9196_v23, %v6969_v30  ;;  %v4153_v11 = vrot.slane %v9198_v15, %v6969_v30 }
 0x205   : > { %v4157_v13 = vrot.slane %v9200_v57, %v6969_v30  ;;  %v4161_v1 = vrot.slane %v9202_v16, %v6969_v30  ;;  %v4165_v20 = vrot.slane %v9204_v46, %v6969_v30  ;;  %v4166_v6 = vmul.f32 %v4137_v10, %v9194_v12 }
 0x206   : > { %v4167_v4 = vmul.f32 %v4141_v45, %v9194_v12  ;;  %v4168_v25 = vmul.f32 %v4145_v48, %v9194_v12  ;;  %v4169_v55 = vmul.f32 %v4149_v22, %v9194_v12  ;;  %v4170_v49 = vmul.f32 %v4153_v11, %v9194_v12 }
 0x207   : > { %v4171_v56 = vmul.f32 %v4157_v13, %v9194_v12  ;;  %v4172_v58 = vmul.f32 %v4161_v1, %v9194_v12  ;;  %v4173_v54 = vmul.f32 %v4165_v20, %v9194_v12  ;;  %v4174_v21 = vadd.f32 %v4166_v6, %v4126_v41 }
 0x208   : > { %v4175_v26 = vadd.f32 %v4167_v4, %v4127_v44  ;;  %v4176_v60 = vadd.f32 %v4168_v25, %v4128_v59  ;;  %v4177_v2 = vadd.f32 %v4169_v55, %v4129_v63  ;;  %v4178_v47 = vadd.f32 %v4170_v49, %v4130_v0 }
 0x209   : > { %v4179_v36 = vadd.f32 %v4171_v56, %v4131_v5  ;;  %v4180_v27 = vadd.f32 %v4172_v58, %v4132_v43  ;;  %v4181_v61 = vadd.f32 %v4173_v54, %v4133_v42  ;;  %v4185_v52 = vrot.slane %v9190_v62, %v6972_v31 }
 0x20a   : > { %v4189_v40 = vrot.slane %v9192_v19, %v6972_v31  ;;  %v4193_v50 = vrot.slane %v9194_v12, %v6972_v31  ;;  %v4197_v51 = vrot.slane %v9196_v23, %v6972_v31  ;;  %v4201_v18 = vrot.slane %v9198_v15, %v6972_v31 }
 0x20b   : > { %v4205_v7 = vrot.slane %v9200_v57, %v6972_v31  ;;  %v4209_v8 = vrot.slane %v9202_v16, %v6972_v31  ;;  %v4213_v35 = vrot.slane %v9204_v46, %v6972_v31  ;;  %v4214_v14 = vmul.f32 %v4185_v52, %v9196_v23 }
 0x20c   : > { %v4215_v3 = vmul.f32 %v4189_v40, %v9196_v23  ;;  %v4216_v17 = vmul.f32 %v4193_v50, %v9196_v23  ;;  %v4217_v39 = vmul.f32 %v4197_v51, %v9196_v23  ;;  %v4218_v24 = vmul.f32 %v4201_v18, %v9196_v23 }
 0x20d   : > { %v4219_v53 = vmul.f32 %v4205_v7, %v9196_v23  ;;  %v4220_v38 = vmul.f32 %v4209_v8, %v9196_v23  ;;  %v4221_v37 = vmul.f32 %v4213_v35, %v9196_v23  ;;  %v4222_v41 = vadd.f32 %v4214_v14, %v4174_v21 }
 0x20e   : > { %v4223_v44 = vadd.f32 %v4215_v3, %v4175_v26  ;;  %v4224_v59 = vadd.f32 %v4216_v17, %v4176_v60  ;;  %v4225_v63 = vadd.f32 %v4217_v39, %v4177_v2  ;;  %v4226_v0 = vadd.f32 %v4218_v24, %v4178_v47 }
 0x20f   : > { %v4227_v5 = vadd.f32 %v4219_v53, %v4179_v36  ;;  %v4228_v43 = vadd.f32 %v4220_v38, %v4180_v27  ;;  %v4229_v42 = vadd.f32 %v4221_v37, %v4181_v61  ;;  %v4233_v10 = vrot.slane %v9190_v62, %v6975_v32 }
 0x210   : > { %v4237_v45 = vrot.slane %v9192_v19, %v6975_v32  ;;  %v4241_v48 = vrot.slane %v9194_v12, %v6975_v32  ;;  %v4245_v22 = vrot.slane %v9196_v23, %v6975_v32  ;;  %v4249_v11 = vrot.slane %v9198_v15, %v6975_v32 }
 0x211   : > { %v4253_v13 = vrot.slane %v9200_v57, %v6975_v32  ;;  %v4257_v1 = vrot.slane %v9202_v16, %v6975_v32  ;;  %v4261_v20 = vrot.slane %v9204_v46, %v6975_v32  ;;  %v4262_v6 = vmul.f32 %v4233_v10, %v9198_v15 }
 0x212   : > { %v4263_v4 = vmul.f32 %v4237_v45, %v9198_v15  ;;  %v4264_v25 = vmul.f32 %v4241_v48, %v9198_v15  ;;  %v4265_v55 = vmul.f32 %v4245_v22, %v9198_v15  ;;  %v4266_v49 = vmul.f32 %v4249_v11, %v9198_v15 }
 0x213   : > { %v4267_v56 = vmul.f32 %v4253_v13, %v9198_v15  ;;  %v4268_v58 = vmul.f32 %v4257_v1, %v9198_v15  ;;  %v4269_v54 = vmul.f32 %v4261_v20, %v9198_v15  ;;  %v4270_v21 = vadd.f32 %v4262_v6, %v4222_v41 }
 0x214   : > { %v4271_v26 = vadd.f32 %v4263_v4, %v4223_v44  ;;  %v4272_v60 = vadd.f32 %v4264_v25, %v4224_v59  ;;  %v4273_v2 = vadd.f32 %v4265_v55, %v4225_v63  ;;  %v4274_v47 = vadd.f32 %v4266_v49, %v4226_v0 }
 0x215   : > { %v4275_v36 = vadd.f32 %v4267_v56, %v4227_v5  ;;  %v4276_v27 = vadd.f32 %v4268_v58, %v4228_v43  ;;  %v4277_v61 = vadd.f32 %v4269_v54, %v4229_v42  ;;  %v4281_v52 = vrot.slane %v9190_v62, %v6978_v33 }
 0x216   : > { %v4285_v40 = vrot.slane %v9192_v19, %v6978_v33  ;;  %v4289_v50 = vrot.slane %v9194_v12, %v6978_v33  ;;  %v4293_v51 = vrot.slane %v9196_v23, %v6978_v33  ;;  %v4297_v18 = vrot.slane %v9198_v15, %v6978_v33 }
 0x217   : > { %v4301_v7 = vrot.slane %v9200_v57, %v6978_v33  ;;  %v4305_v8 = vrot.slane %v9202_v16, %v6978_v33  ;;  %v4309_v35 = vrot.slane %v9204_v46, %v6978_v33  ;;  %v4310_v14 = vmul.f32 %v4281_v52, %v9200_v57 }
 0x218   : > { %v4311_v3 = vmul.f32 %v4285_v40, %v9200_v57  ;;  %v4312_v17 = vmul.f32 %v4289_v50, %v9200_v57  ;;  %v4313_v39 = vmul.f32 %v4293_v51, %v9200_v57  ;;  %v4314_v24 = vmul.f32 %v4297_v18, %v9200_v57 }
 0x219   : > { %v4315_v53 = vmul.f32 %v4301_v7, %v9200_v57  ;;  %v4316_v38 = vmul.f32 %v4305_v8, %v9200_v57  ;;  %v4317_v37 = vmul.f32 %v4309_v35, %v9200_v57  ;;  %v4318_v41 = vadd.f32 %v4310_v14, %v4270_v21 }
 0x21a   : > { %v4319_v44 = vadd.f32 %v4311_v3, %v4271_v26  ;;  %v4320_v59 = vadd.f32 %v4312_v17, %v4272_v60  ;;  %v4321_v63 = vadd.f32 %v4313_v39, %v4273_v2  ;;  %v4322_v0 = vadd.f32 %v4314_v24, %v4274_v47 }
 0x21b   : > { %v4323_v5 = vadd.f32 %v4315_v53, %v4275_v36  ;;  %v4324_v43 = vadd.f32 %v4316_v38, %v4276_v27  ;;  %v4325_v42 = vadd.f32 %v4317_v37, %v4277_v61  ;;  %v4329_v10 = vrot.slane %v9190_v62, %v6981_v34 }
 0x21c   : > { %v4333_v45 = vrot.slane %v9192_v19, %v6981_v34  ;;  %v4337_v48 = vrot.slane %v9194_v12, %v6981_v34  ;;  %v4341_v22 = vrot.slane %v9196_v23, %v6981_v34  ;;  %v4345_v11 = vrot.slane %v9198_v15, %v6981_v34 }
 0x21d   : > { %v4349_v13 = vrot.slane %v9200_v57, %v6981_v34  ;;  %v4353_v1 = vrot.slane %v9202_v16, %v6981_v34  ;;  %v4357_v20 = vrot.slane %v9204_v46, %v6981_v34  ;;  %v4358_v6 = vmul.f32 %v4329_v10, %v9202_v16 }
 0x21e   : > { %v4359_v4 = vmul.f32 %v4333_v45, %v9202_v16  ;;  %v4360_v25 = vmul.f32 %v4337_v48, %v9202_v16  ;;  %v4361_v55 = vmul.f32 %v4341_v22, %v9202_v16  ;;  %v4362_v49 = vmul.f32 %v4345_v11, %v9202_v16 }
 0x21f   : > { %v4363_v56 = vmul.f32 %v4349_v13, %v9202_v16  ;;  %v4364_v58 = vmul.f32 %v4353_v1, %v9202_v16  ;;  %v4365_v54 = vmul.f32 %v4357_v20, %v9202_v16  ;;  %v4366_v21 = vadd.f32 %v4358_v6, %v4318_v41  ;;  %v4423_v13 = vld [vmem:[%s9394_s18 + $0x8] sm:$0xff] }
 0x220   : > { %v4367_v26 = vadd.f32 %v4359_v4, %v4319_v44  ;;  %v4368_v60 = vadd.f32 %v4360_v25, %v4320_v59  ;;  %v4369_v2 = vadd.f32 %v4361_v55, %v4321_v63  ;;  %v4370_v47 = vadd.f32 %v4362_v49, %v4322_v0  ;;  %v4422_v44 = vld [vmem:[%s9394_s18] sm:$0xff] }
 0x221   : > { %v4371_v36 = vadd.f32 %v4363_v56, %v4323_v5  ;;  %v4372_v27 = vadd.f32 %v4364_v58, %v4324_v43  ;;  %v4373_v61 = vadd.f32 %v4365_v54, %v4325_v42  ;;  %v4377_v52 = vrot.slane %v9190_v62, %v7166_v9 }
 0x222   : > { %v4381_v40 = vrot.slane %v9192_v19, %v7166_v9  ;;  %v4385_v50 = vrot.slane %v9194_v12, %v7166_v9  ;;  %v4389_v51 = vrot.slane %v9196_v23, %v7166_v9  ;;  %v4393_v18 = vrot.slane %v9198_v15, %v7166_v9 }
 0x223   : > { %v4397_v7 = vrot.slane %v9200_v57, %v7166_v9  ;;  %v4401_v8 = vrot.slane %v9202_v16, %v7166_v9  ;;  %v4405_v62 = vrot.slane %v9204_v46, %v7166_v9  ;;  %v4406_v19 = vmul.f32 %v4377_v52, %v9204_v46 }
 0x224   : > { %v4407_v12 = vmul.f32 %v4381_v40, %v9204_v46  ;;  %v4408_v23 = vmul.f32 %v4385_v50, %v9204_v46  ;;  %v4409_v15 = vmul.f32 %v4389_v51, %v9204_v46  ;;  %v4410_v57 = vmul.f32 %v4393_v18, %v9204_v46 }
 0x225   : > { %v4411_v16 = vmul.f32 %v4397_v7, %v9204_v46  ;;  %v4412_v35 = vmul.f32 %v4401_v8, %v9204_v46  ;;  %v4413_v14 = vmul.f32 %v4405_v62, %v9204_v46  ;;  %v9404_v3 = vadd.f32 %v4406_v19, %v4366_v21  ;;  %v4424_v8 = vld [vmem:[%s9394_s18 + $0x10] sm:$0xff] }
 0x226   : > { %v9406_v17 = vadd.f32 %v4407_v12, %v4367_v26  ;;  %v9408_v39 = vadd.f32 %v4408_v23, %v4368_v60  ;;  %v9410_v24 = vadd.f32 %v4409_v15, %v4369_v2  ;;  %v9412_v53 = vadd.f32 %v4410_v57, %v4370_v47 }
 0x227   : > { %v9414_v38 = vadd.f32 %v4411_v16, %v4371_v36  ;;  %v9416_v37 = vadd.f32 %v4412_v35, %v4372_v27  ;;  %v9418_v41 = vadd.f32 %v4413_v14, %v4373_v61  ;;  %v4433_v46 = vrot.slane %v9404_v3, %v6963_v28 }
 0x228   : > { %v4437_v59 = vrot.slane %v9406_v17, %v6963_v28  ;;  %v4441_v63 = vrot.slane %v9408_v39, %v6963_v28  ;;  %v4445_v0 = vrot.slane %v9410_v24, %v6963_v28  ;;  %v4449_v5 = vrot.slane %v9412_v53, %v6963_v28 }
 0x229   : > { %v4453_v43 = vrot.slane %v9414_v38, %v6963_v28  ;;  %v4457_v42 = vrot.slane %v9416_v37, %v6963_v28  ;;  %v4461_v10 = vrot.slane %v9418_v41, %v6963_v28  ;;  %v4462_v45 = vmul.f32 %v4433_v46, %v4422_v44 }
 0x22a   : > { %v4463_v48 = vmul.f32 %v4437_v59, %v4422_v44  ;;  %v4464_v22 = vmul.f32 %v4441_v63, %v4422_v44  ;;  %v4465_v11 = vmul.f32 %v4445_v0, %v4422_v44  ;;  %v4466_v1 = vmul.f32 %v4449_v5, %v4422_v44 }
 0x22b   : > { %v4467_v20 = vmul.f32 %v4453_v43, %v4422_v44  ;;  %v4468_v6 = vmul.f32 %v4457_v42, %v4422_v44  ;;  %v4469_v4 = vmul.f32 %v4461_v10, %v4422_v44  ;;  %v4473_v25 = vrot.slane %v9404_v3, %v6966_v29 }
 0x22c   : > { %v4477_v55 = vrot.slane %v9406_v17, %v6966_v29  ;;  %v4481_v49 = vrot.slane %v9408_v39, %v6966_v29  ;;  %v4485_v56 = vrot.slane %v9410_v24, %v6966_v29  ;;  %v4489_v58 = vrot.slane %v9412_v53, %v6966_v29 }
 0x22d   : > { %v4493_v54 = vrot.slane %v9414_v38, %v6966_v29  ;;  %v4497_v21 = vrot.slane %v9416_v37, %v6966_v29  ;;  %v4501_v26 = vrot.slane %v9418_v41, %v6966_v29  ;;  %v4502_v60 = vmul.f32 %v4473_v25, %v4423_v13 }
 0x22e   : > { %v4503_v2 = vmul.f32 %v4477_v55, %v4423_v13  ;;  %v4504_v47 = vmul.f32 %v4481_v49, %v4423_v13  ;;  %v4505_v36 = vmul.f32 %v4485_v56, %v4423_v13  ;;  %v4506_v27 = vmul.f32 %v4489_v58, %v4423_v13 }
 0x22f   : > { %v4507_v61 = vmul.f32 %v4493_v54, %v4423_v13  ;;  %v4508_v52 = vmul.f32 %v4497_v21, %v4423_v13  ;;  %v4509_v40 = vmul.f32 %v4501_v26, %v4423_v13  ;;  %v4510_v50 = vadd.f32 %v4502_v60, %v4462_v45 }
 0x230   : > { %v4511_v51 = vadd.f32 %v4503_v2, %v4463_v48  ;;  %v4512_v18 = vadd.f32 %v4504_v47, %v4464_v22  ;;  %v4513_v7 = vadd.f32 %v4505_v36, %v4465_v11  ;;  %v4514_v62 = vadd.f32 %v4506_v27, %v4466_v1 }
 0x231   : > { %v4515_v19 = vadd.f32 %v4507_v61, %v4467_v20  ;;  %v4516_v12 = vadd.f32 %v4508_v52, %v4468_v6  ;;  %v4517_v23 = vadd.f32 %v4509_v40, %v4469_v4  ;;  %v4521_v15 = vrot.slane %v9404_v3, %v6969_v30  ;;  %v4425_v20 = vld [vmem:[%s9394_s18 + $0x18] sm:$0xff] }
 0x232   : > { %v4525_v57 = vrot.slane %v9406_v17, %v6969_v30  ;;  %v4529_v16 = vrot.slane %v9408_v39, %v6969_v30  ;;  %v4533_v35 = vrot.slane %v9410_v24, %v6969_v30  ;;  %v4537_v14 = vrot.slane %v9412_v53, %v6969_v30 }
 0x233   : > { %v4541_v44 = vrot.slane %v9414_v38, %v6969_v30  ;;  %v4545_v46 = vrot.slane %v9416_v37, %v6969_v30  ;;  %v4549_v59 = vrot.slane %v9418_v41, %v6969_v30  ;;  %v4550_v63 = vmul.f32 %v4521_v15, %v4424_v8 }
 0x234   : > { %v4551_v0 = vmul.f32 %v4525_v57, %v4424_v8  ;;  %v4552_v5 = vmul.f32 %v4529_v16, %v4424_v8  ;;  %v4553_v43 = vmul.f32 %v4533_v35, %v4424_v8  ;;  %v4554_v42 = vmul.f32 %v4537_v14, %v4424_v8 }
 0x235   : > { %v4555_v10 = vmul.f32 %v4541_v44, %v4424_v8  ;;  %v4556_v45 = vmul.f32 %v4545_v46, %v4424_v8  ;;  %v4557_v48 = vmul.f32 %v4549_v59, %v4424_v8  ;;  %v4558_v22 = vadd.f32 %v4550_v63, %v4510_v50 }
 0x236   : > { %v4559_v11 = vadd.f32 %v4551_v0, %v4511_v51  ;;  %v4560_v13 = vadd.f32 %v4552_v5, %v4512_v18  ;;  %v4561_v1 = vadd.f32 %v4553_v43, %v4513_v7  ;;  %v4562_v6 = vadd.f32 %v4554_v42, %v4514_v62 }
 0x237   : > { %v4563_v4 = vadd.f32 %v4555_v10, %v4515_v19  ;;  %v4564_v25 = vadd.f32 %v4556_v45, %v4516_v12  ;;  %v4565_v55 = vadd.f32 %v4557_v48, %v4517_v23  ;;  %v4569_v49 = vrot.slane %v9404_v3, %v6972_v31  ;;  %v4426_v19 = vld [vmem:[%s9394_s18 + $0x20] sm:$0xff] }
 0x238   : > { %v4573_v56 = vrot.slane %v9406_v17, %v6972_v31  ;;  %v4577_v58 = vrot.slane %v9408_v39, %v6972_v31  ;;  %v4581_v54 = vrot.slane %v9410_v24, %v6972_v31  ;;  %v4585_v21 = vrot.slane %v9412_v53, %v6972_v31 }
 0x239   : > { %v4589_v26 = vrot.slane %v9414_v38, %v6972_v31  ;;  %v4593_v60 = vrot.slane %v9416_v37, %v6972_v31  ;;  %v4597_v2 = vrot.slane %v9418_v41, %v6972_v31  ;;  %v4598_v47 = vmul.f32 %v4569_v49, %v4425_v20 }
 0x23a   : > { %v4599_v36 = vmul.f32 %v4573_v56, %v4425_v20  ;;  %v4600_v27 = vmul.f32 %v4577_v58, %v4425_v20  ;;  %v4601_v61 = vmul.f32 %v4581_v54, %v4425_v20  ;;  %v4602_v52 = vmul.f32 %v4585_v21, %v4425_v20 }
 0x23b   : > { %v4603_v40 = vmul.f32 %v4589_v26, %v4425_v20  ;;  %v4604_v50 = vmul.f32 %v4593_v60, %v4425_v20  ;;  %v4605_v51 = vmul.f32 %v4597_v2, %v4425_v20  ;;  %v4606_v18 = vadd.f32 %v4598_v47, %v4558_v22 }
 0x23c   : > { %v4607_v7 = vadd.f32 %v4599_v36, %v4559_v11  ;;  %v4608_v8 = vadd.f32 %v4600_v27, %v4560_v13  ;;  %v4609_v62 = vadd.f32 %v4601_v61, %v4561_v1  ;;  %v4610_v12 = vadd.f32 %v4602_v52, %v4562_v6 }
 0x23d   : > { %v4611_v23 = vadd.f32 %v4603_v40, %v4563_v4  ;;  %v4612_v15 = vadd.f32 %v4604_v50, %v4564_v25  ;;  %v4613_v57 = vadd.f32 %v4605_v51, %v4565_v55  ;;  %v4617_v16 = vrot.slane %v9404_v3, %v6975_v32  ;;  %v4427_v4 = vld [vmem:[%s9394_s18 + $0x28] sm:$0xff] }
 0x23e   : > { %v4621_v35 = vrot.slane %v9406_v17, %v6975_v32  ;;  %v4625_v14 = vrot.slane %v9408_v39, %v6975_v32  ;;  %v4629_v44 = vrot.slane %v9410_v24, %v6975_v32  ;;  %v4633_v46 = vrot.slane %v9412_v53, %v6975_v32 }
 0x23f   : > { %v4637_v59 = vrot.slane %v9414_v38, %v6975_v32  ;;  %v4641_v63 = vrot.slane %v9416_v37, %v6975_v32  ;;  %v4645_v0 = vrot.slane %v9418_v41, %v6975_v32  ;;  %v4646_v5 = vmul.f32 %v4617_v16, %v4426_v19 }
 0x240   : > { %v4647_v43 = vmul.f32 %v4621_v35, %v4426_v19  ;;  %v4648_v42 = vmul.f32 %v4625_v14, %v4426_v19  ;;  %v4649_v10 = vmul.f32 %v4629_v44, %v4426_v19  ;;  %v4650_v45 = vmul.f32 %v4633_v46, %v4426_v19 }
 0x241   : > { %v4651_v48 = vmul.f32 %v4637_v59, %v4426_v19  ;;  %v4652_v22 = vmul.f32 %v4641_v63, %v4426_v19  ;;  %v4653_v11 = vmul.f32 %v4645_v0, %v4426_v19  ;;  %v4654_v13 = vadd.f32 %v4646_v5, %v4606_v18 }
 0x242   : > { %v4655_v1 = vadd.f32 %v4647_v43, %v4607_v7  ;;  %v4656_v20 = vadd.f32 %v4648_v42, %v4608_v8  ;;  %v4657_v6 = vadd.f32 %v4649_v10, %v4609_v62  ;;  %v4658_v25 = vadd.f32 %v4650_v45, %v4610_v12 }
 0x243   : > { %v4659_v55 = vadd.f32 %v4651_v48, %v4611_v23  ;;  %v4660_v49 = vadd.f32 %v4652_v22, %v4612_v15  ;;  %v4661_v56 = vadd.f32 %v4653_v11, %v4613_v57  ;;  %v4665_v58 = vrot.slane %v9404_v3, %v6978_v33  ;;  %v4428_v23 = vld [vmem:[%s9394_s18 + $0x30] sm:$0xff] }
 0x244   : > { %v4669_v54 = vrot.slane %v9406_v17, %v6978_v33  ;;  %v4673_v21 = vrot.slane %v9408_v39, %v6978_v33  ;;  %v4677_v26 = vrot.slane %v9410_v24, %v6978_v33  ;;  %v4681_v60 = vrot.slane %v9412_v53, %v6978_v33 }
 0x245   : > { %v4685_v2 = vrot.slane %v9414_v38, %v6978_v33  ;;  %v4689_v47 = vrot.slane %v9416_v37, %v6978_v33  ;;  %v4693_v36 = vrot.slane %v9418_v41, %v6978_v33  ;;  %v4694_v27 = vmul.f32 %v4665_v58, %v4427_v4 }
 0x246   : > { %v4695_v61 = vmul.f32 %v4669_v54, %v4427_v4  ;;  %v4696_v52 = vmul.f32 %v4673_v21, %v4427_v4  ;;  %v4697_v40 = vmul.f32 %v4677_v26, %v4427_v4  ;;  %v4698_v50 = vmul.f32 %v4681_v60, %v4427_v4 }
 0x247   : > { %v4699_v51 = vmul.f32 %v4685_v2, %v4427_v4  ;;  %v4700_v18 = vmul.f32 %v4689_v47, %v4427_v4  ;;  %v4701_v7 = vmul.f32 %v4693_v36, %v4427_v4  ;;  %v4702_v8 = vadd.f32 %v4694_v27, %v4654_v13 }
 0x248   : > { %v4703_v62 = vadd.f32 %v4695_v61, %v4655_v1  ;;  %v4704_v19 = vadd.f32 %v4696_v52, %v4656_v20  ;;  %v4705_v12 = vadd.f32 %v4697_v40, %v4657_v6  ;;  %v4706_v15 = vadd.f32 %v4698_v50, %v4658_v25 }
 0x249   : > { %v4707_v57 = vadd.f32 %v4699_v51, %v4659_v55  ;;  %v4708_v16 = vadd.f32 %v4700_v18, %v4660_v49  ;;  %v4709_v35 = vadd.f32 %v4701_v7, %v4661_v56  ;;  %v4713_v14 = vrot.slane %v9404_v3, %v6981_v34  ;;  %v4429_v55 = vld [vmem:[%s9394_s18 + $0x38] sm:$0xff] }
 0x24a   : > { %v4717_v44 = vrot.slane %v9406_v17, %v6981_v34  ;;  %v4721_v46 = vrot.slane %v9408_v39, %v6981_v34  ;;  %v4725_v59 = vrot.slane %v9410_v24, %v6981_v34  ;;  %v4729_v63 = vrot.slane %v9412_v53, %v6981_v34 }
 0x24b   : > { %v4733_v0 = vrot.slane %v9414_v38, %v6981_v34  ;;  %v4737_v5 = vrot.slane %v9416_v37, %v6981_v34  ;;  %v4741_v43 = vrot.slane %v9418_v41, %v6981_v34  ;;  %v4742_v42 = vmul.f32 %v4713_v14, %v4428_v23 }
 0x24c   : > { %v4743_v10 = vmul.f32 %v4717_v44, %v4428_v23  ;;  %v4744_v45 = vmul.f32 %v4721_v46, %v4428_v23  ;;  %v4745_v48 = vmul.f32 %v4725_v59, %v4428_v23  ;;  %v4746_v22 = vmul.f32 %v4729_v63, %v4428_v23 }
 0x24d   : > { %v4747_v11 = vmul.f32 %v4733_v0, %v4428_v23  ;;  %v4748_v13 = vmul.f32 %v4737_v5, %v4428_v23  ;;  %v4749_v1 = vmul.f32 %v4741_v43, %v4428_v23  ;;  %v4750_v20 = vadd.f32 %v4742_v42, %v4702_v8  ;;  %v6818_v5 = vld [vmem:[%s9394_s18 + $0x48] sm:$0xff] }
 0x24e   : > { %v4751_v6 = vadd.f32 %v4743_v10, %v4703_v62  ;;  %v4752_v4 = vadd.f32 %v4744_v45, %v4704_v19  ;;  %v4753_v25 = vadd.f32 %v4745_v48, %v4705_v12  ;;  %v4754_v49 = vadd.f32 %v4746_v22, %v4706_v15  ;;  %v6817_v19 = vld [vmem:[%s9394_s18 + $0x40] sm:$0xff] }
 0x24f   : > { %v4755_v56 = vadd.f32 %v4747_v11, %v4707_v57  ;;  %v4756_v58 = vadd.f32 %v4748_v13, %v4708_v16  ;;  %v4757_v54 = vadd.f32 %v4749_v1, %v4709_v35  ;;  %v4761_v21 = vrot.slane %v9404_v3, %v7166_v9 }
 0x250   : > { %v4765_v26 = vrot.slane %v9406_v17, %v7166_v9  ;;  %v4769_v60 = vrot.slane %v9408_v39, %v7166_v9  ;;  %v4773_v2 = vrot.slane %v9410_v24, %v7166_v9  ;;  %v4777_v47 = vrot.slane %v9412_v53, %v7166_v9 }
 0x251   : > { %v4781_v36 = vrot.slane %v9414_v38, %v7166_v9  ;;  %v4785_v27 = vrot.slane %v9416_v37, %v7166_v9  ;;  %v4789_v3 = vrot.slane %v9418_v41, %v7166_v9  ;;  %v4790_v61 = vmul.f32 %v4761_v21, %v4429_v55 }
 0x252   : > { %v4791_v17 = vmul.f32 %v4765_v26, %v4429_v55  ;;  %v4792_v52 = vmul.f32 %v4769_v60, %v4429_v55  ;;  %v4793_v39 = vmul.f32 %v4773_v2, %v4429_v55  ;;  %v4794_v40 = vmul.f32 %v4777_v47, %v4429_v55 }
 0x253   : > { %v4795_v50 = vmul.f32 %v4781_v36, %v4429_v55  ;;  %v4796_v24 = vmul.f32 %v4785_v27, %v4429_v55  ;;  %v4797_v51 = vmul.f32 %v4789_v3, %v4429_v55  ;;  %v9556_v18 = vadd.f32 %v4790_v61, %v4750_v20  ;;  %v6819_v27 = vld [vmem:[%s9394_s18 + $0x50] sm:$0xff] }
 0x254   : > { %v9558_v53 = vadd.f32 %v4791_v17, %v4751_v6  ;;  %v9560_v38 = vadd.f32 %v4792_v52, %v4752_v4  ;;  %v9562_v7 = vadd.f32 %v4793_v39, %v4753_v25  ;;  %v9564_v37 = vadd.f32 %v4794_v40, %v4754_v49 }
 0x255   : > { %v9566_v41 = vadd.f32 %v4795_v50, %v4755_v56  ;;  %v9568_v8 = vadd.f32 %v4796_v24, %v4756_v58  ;;  %v9570_v62 = vadd.f32 %v4797_v51, %v4757_v54  ;;  %v4818_v12 = vrot.slane %v9556_v18, %v6963_v28 }
 0x256   : > { %v4822_v23 = vrot.slane %v9558_v53, %v6963_v28  ;;  %v4826_v15 = vrot.slane %v9560_v38, %v6963_v28  ;;  %v4830_v57 = vrot.slane %v9562_v7, %v6963_v28  ;;  %v4834_v16 = vrot.slane %v9564_v37, %v6963_v28 }
 0x257   : > { %v4838_v35 = vrot.slane %v9566_v41, %v6963_v28  ;;  %v4842_v14 = vrot.slane %v9568_v8, %v6963_v28  ;;  %v4846_v44 = vrot.slane %v9570_v62, %v6963_v28  ;;  %v4847_v46 = vmul.f32 %v6817_v19, %v4818_v12 }
 0x258   : > { %v4848_v59 = vmul.f32 %v6817_v19, %v4822_v23  ;;  %v4849_v63 = vmul.f32 %v6817_v19, %v4826_v15  ;;  %v4850_v0 = vmul.f32 %v6817_v19, %v4830_v57  ;;  %v4851_v43 = vmul.f32 %v6817_v19, %v4834_v16 }
 0x259   : > { %v4852_v42 = vmul.f32 %v6817_v19, %v4838_v35  ;;  %v4853_v10 = vmul.f32 %v6817_v19, %v4842_v14  ;;  %v4854_v45 = vmul.f32 %v6817_v19, %v4846_v44  ;;  %v4858_v48 = vrot.slane %v9556_v18, %v6966_v29 }
 0x25a   : > { %v4862_v22 = vrot.slane %v9558_v53, %v6966_v29  ;;  %v4866_v11 = vrot.slane %v9560_v38, %v6966_v29  ;;  %v4870_v13 = vrot.slane %v9562_v7, %v6966_v29  ;;  %v4874_v1 = vrot.slane %v9564_v37, %v6966_v29 }
 0x25b   : > { %v4878_v20 = vrot.slane %v9566_v41, %v6966_v29  ;;  %v4882_v6 = vrot.slane %v9568_v8, %v6966_v29  ;;  %v4886_v4 = vrot.slane %v9570_v62, %v6966_v29  ;;  %v4887_v25 = vmul.f32 %v6818_v5, %v4858_v48 }
 0x25c   : > { %v4888_v55 = vmul.f32 %v6818_v5, %v4862_v22  ;;  %v4889_v49 = vmul.f32 %v6818_v5, %v4866_v11  ;;  %v4890_v56 = vmul.f32 %v6818_v5, %v4870_v13  ;;  %v4891_v58 = vmul.f32 %v6818_v5, %v4874_v1 }
 0x25d   : > { %v4892_v54 = vmul.f32 %v6818_v5, %v4878_v20  ;;  %v4893_v21 = vmul.f32 %v6818_v5, %v4882_v6  ;;  %v4894_v26 = vmul.f32 %v6818_v5, %v4886_v4  ;;  %v4895_v60 = vadd.f32 %v4887_v25, %v4847_v46 }
 0x25e   : > { %v4896_v2 = vadd.f32 %v4888_v55, %v4848_v59  ;;  %v4897_v47 = vadd.f32 %v4889_v49, %v4849_v63  ;;  %v4898_v36 = vadd.f32 %v4890_v56, %v4850_v0  ;;  %v4899_v3 = vadd.f32 %v4891_v58, %v4851_v43 }
 0x25f   : > { %v4900_v61 = vadd.f32 %v4892_v54, %v4852_v42  ;;  %v4901_v17 = vadd.f32 %v4893_v21, %v4853_v10  ;;  %v4902_v52 = vadd.f32 %v4894_v26, %v4854_v45  ;;  %v4906_v39 = vrot.slane %v9556_v18, %v6969_v30  ;;  %v6820_v42 = vld [vmem:[%s9394_s18 + $0x58] sm:$0xff] }
 0x260   : > { %v4910_v40 = vrot.slane %v9558_v53, %v6969_v30  ;;  %v4914_v50 = vrot.slane %v9560_v38, %v6969_v30  ;;  %v4918_v24 = vrot.slane %v9562_v7, %v6969_v30  ;;  %v4922_v51 = vrot.slane %v9564_v37, %v6969_v30 }
 0x261   : > { %v4926_v19 = vrot.slane %v9566_v41, %v6969_v30  ;;  %v4930_v12 = vrot.slane %v9568_v8, %v6969_v30  ;;  %v4934_v23 = vrot.slane %v9570_v62, %v6969_v30  ;;  %v4935_v15 = vmul.f32 %v6819_v27, %v4906_v39 }
 0x262   : > { %v4936_v57 = vmul.f32 %v6819_v27, %v4910_v40  ;;  %v4937_v16 = vmul.f32 %v6819_v27, %v4914_v50  ;;  %v4938_v35 = vmul.f32 %v6819_v27, %v4918_v24  ;;  %v4939_v14 = vmul.f32 %v6819_v27, %v4922_v51 }
 0x263   : > { %v4940_v44 = vmul.f32 %v6819_v27, %v4926_v19  ;;  %v4941_v46 = vmul.f32 %v6819_v27, %v4930_v12  ;;  %v4942_v59 = vmul.f32 %v6819_v27, %v4934_v23  ;;  %v4943_v63 = vadd.f32 %v4935_v15, %v4895_v60 }
 0x264   : > { %v4944_v0 = vadd.f32 %v4936_v57, %v4896_v2  ;;  %v4945_v5 = vadd.f32 %v4937_v16, %v4897_v47  ;;  %v4946_v43 = vadd.f32 %v4938_v35, %v4898_v36  ;;  %v4947_v10 = vadd.f32 %v4939_v14, %v4899_v3 }
 0x265   : > { %v4948_v45 = vadd.f32 %v4940_v44, %v4900_v61  ;;  %v4949_v48 = vadd.f32 %v4941_v46, %v4901_v17  ;;  %v4950_v22 = vadd.f32 %v4942_v59, %v4902_v52  ;;  %v4954_v11 = vrot.slane %v9556_v18, %v6972_v31  ;;  %v6821_v61 = vld [vmem:[%s9394_s18 + $0x60] sm:$0xff] }
 0x266   : > { %v4958_v13 = vrot.slane %v9558_v53, %v6972_v31  ;;  %v4962_v1 = vrot.slane %v9560_v38, %v6972_v31  ;;  %v4966_v20 = vrot.slane %v9562_v7, %v6972_v31  ;;  %v4970_v6 = vrot.slane %v9564_v37, %v6972_v31 }
 0x267   : > { %v4974_v4 = vrot.slane %v9566_v41, %v6972_v31  ;;  %v4978_v25 = vrot.slane %v9568_v8, %v6972_v31  ;;  %v4982_v55 = vrot.slane %v9570_v62, %v6972_v31  ;;  %v4983_v49 = vmul.f32 %v6820_v42, %v4954_v11 }
 0x268   : > { %v4984_v56 = vmul.f32 %v6820_v42, %v4958_v13  ;;  %v4985_v58 = vmul.f32 %v6820_v42, %v4962_v1  ;;  %v4986_v54 = vmul.f32 %v6820_v42, %v4966_v20  ;;  %v4987_v21 = vmul.f32 %v6820_v42, %v4970_v6 }
 0x269   : > { %v4988_v26 = vmul.f32 %v6820_v42, %v4974_v4  ;;  %v4989_v60 = vmul.f32 %v6820_v42, %v4978_v25  ;;  %v4990_v2 = vmul.f32 %v6820_v42, %v4982_v55  ;;  %v4991_v47 = vadd.f32 %v4983_v49, %v4943_v63 }
 0x26a   : > { %v4992_v36 = vadd.f32 %v4984_v56, %v4944_v0  ;;  %v4993_v27 = vadd.f32 %v4985_v58, %v4945_v5  ;;  %v4994_v3 = vadd.f32 %v4986_v54, %v4946_v43  ;;  %v4995_v17 = vadd.f32 %v4987_v21, %v4947_v10 }
 0x26b   : > { %v4996_v52 = vadd.f32 %v4988_v26, %v4948_v45  ;;  %v4997_v39 = vadd.f32 %v4989_v60, %v4949_v48  ;;  %v4998_v40 = vadd.f32 %v4990_v2, %v4950_v22  ;;  %v5002_v50 = vrot.slane %v9556_v18, %v6975_v32  ;;  %v6822_v45 = vld [vmem:[%s9394_s18 + $0x68] sm:$0xff] }
 0x26c   : > { %v5006_v24 = vrot.slane %v9558_v53, %v6975_v32  ;;  %v5010_v51 = vrot.slane %v9560_v38, %v6975_v32  ;;  %v5014_v19 = vrot.slane %v9562_v7, %v6975_v32  ;;  %v5018_v12 = vrot.slane %v9564_v37, %v6975_v32 }
 0x26d   : > { %v5022_v23 = vrot.slane %v9566_v41, %v6975_v32  ;;  %v5026_v15 = vrot.slane %v9568_v8, %v6975_v32  ;;  %v5030_v57 = vrot.slane %v9570_v62, %v6975_v32  ;;  %v5031_v16 = vmul.f32 %v6821_v61, %v5002_v50 }
 0x26e   : > { %v5032_v35 = vmul.f32 %v6821_v61, %v5006_v24  ;;  %v5033_v14 = vmul.f32 %v6821_v61, %v5010_v51  ;;  %v5034_v44 = vmul.f32 %v6821_v61, %v5014_v19  ;;  %v5035_v46 = vmul.f32 %v6821_v61, %v5018_v12 }
 0x26f   : > { %v5036_v59 = vmul.f32 %v6821_v61, %v5022_v23  ;;  %v5037_v63 = vmul.f32 %v6821_v61, %v5026_v15  ;;  %v5038_v0 = vmul.f32 %v6821_v61, %v5030_v57  ;;  %v5039_v5 = vadd.f32 %v5031_v16, %v4991_v47 }
 0x270   : > { %v5040_v43 = vadd.f32 %v5032_v35, %v4992_v36  ;;  %v5041_v42 = vadd.f32 %v5033_v14, %v4993_v27  ;;  %v5042_v10 = vadd.f32 %v5034_v44, %v4994_v3  ;;  %v5043_v48 = vadd.f32 %v5035_v46, %v4995_v17 }
 0x271   : > { %v5044_v22 = vadd.f32 %v5036_v59, %v4996_v52  ;;  %v5045_v11 = vadd.f32 %v5037_v63, %v4997_v39  ;;  %v5046_v13 = vadd.f32 %v5038_v0, %v4998_v40  ;;  %v5050_v1 = vrot.slane %v9556_v18, %v6978_v33  ;;  %v6823_v52 = vld [vmem:[%s9394_s18 + $0x70] sm:$0xff] }
 0x272   : > { %v5054_v20 = vrot.slane %v9558_v53, %v6978_v33  ;;  %v5058_v6 = vrot.slane %v9560_v38, %v6978_v33  ;;  %v5062_v4 = vrot.slane %v9562_v7, %v6978_v33  ;;  %v5066_v25 = vrot.slane %v9564_v37, %v6978_v33 }
 0x273   : > { %v5070_v55 = vrot.slane %v9566_v41, %v6978_v33  ;;  %v5074_v49 = vrot.slane %v9568_v8, %v6978_v33  ;;  %v5078_v56 = vrot.slane %v9570_v62, %v6978_v33  ;;  %v5079_v58 = vmul.f32 %v6822_v45, %v5050_v1 }
 0x274   : > { %v5080_v54 = vmul.f32 %v6822_v45, %v5054_v20  ;;  %v5081_v21 = vmul.f32 %v6822_v45, %v5058_v6  ;;  %v5082_v26 = vmul.f32 %v6822_v45, %v5062_v4  ;;  %v5083_v60 = vmul.f32 %v6822_v45, %v5066_v25 }
 0x275   : > { %v5084_v2 = vmul.f32 %v6822_v45, %v5070_v55  ;;  %v5085_v47 = vmul.f32 %v6822_v45, %v5074_v49  ;;  %v5086_v36 = vmul.f32 %v6822_v45, %v5078_v56  ;;  %v5087_v27 = vadd.f32 %v5079_v58, %v5039_v5 }
 0x276   : > { %v5088_v3 = vadd.f32 %v5080_v54, %v5040_v43  ;;  %v5089_v61 = vadd.f32 %v5081_v21, %v5041_v42  ;;  %v5090_v17 = vadd.f32 %v5082_v26, %v5042_v10  ;;  %v5091_v39 = vadd.f32 %v5083_v60, %v5043_v48 }
 0x277   : > { %v5092_v40 = vadd.f32 %v5084_v2, %v5044_v22  ;;  %v5093_v50 = vadd.f32 %v5085_v47, %v5045_v11  ;;  %v5094_v24 = vadd.f32 %v5086_v36, %v5046_v13  ;;  %v5098_v51 = vrot.slane %v9556_v18, %v6981_v34  ;;  %v6824_v22 = vld [vmem:[%s9394_s18 + $0x78] sm:$0xff] }
 0x278   : > { %v5102_v19 = vrot.slane %v9558_v53, %v6981_v34  ;;  %v5106_v12 = vrot.slane %v9560_v38, %v6981_v34  ;;  %v5110_v23 = vrot.slane %v9562_v7, %v6981_v34  ;;  %v5114_v15 = vrot.slane %v9564_v37, %v6981_v34 }
 0x279   : > { %v5118_v57 = vrot.slane %v9566_v41, %v6981_v34  ;;  %v5122_v16 = vrot.slane %v9568_v8, %v6981_v34  ;;  %v5126_v35 = vrot.slane %v9570_v62, %v6981_v34  ;;  %v5127_v14 = vmul.f32 %v6823_v52, %v5098_v51 }
 0x27a   : > { %v5128_v44 = vmul.f32 %v6823_v52, %v5102_v19  ;;  %v5129_v46 = vmul.f32 %v6823_v52, %v5106_v12  ;;  %v5130_v59 = vmul.f32 %v6823_v52, %v5110_v23  ;;  %v5131_v63 = vmul.f32 %v6823_v52, %v5114_v15 }
 0x27b   : > { %v5132_v0 = vmul.f32 %v6823_v52, %v5118_v57  ;;  %v5133_v5 = vmul.f32 %v6823_v52, %v5122_v16  ;;  %v5134_v43 = vmul.f32 %v6823_v52, %v5126_v35  ;;  %v5135_v42 = vadd.f32 %v5127_v14, %v5087_v27  ;;  %v6826_v16 = vld [vmem:[%s9394_s18 + $0x88] sm:$0xff] }
 0x27c   : > { %v5136_v10 = vadd.f32 %v5128_v44, %v5088_v3  ;;  %v5137_v45 = vadd.f32 %v5129_v46, %v5089_v61  ;;  %v5138_v48 = vadd.f32 %v5130_v59, %v5090_v17  ;;  %v5139_v11 = vadd.f32 %v5131_v63, %v5091_v39  ;;  %v6825_v61 = vld [vmem:[%s9394_s18 + $0x80] sm:$0xff] }
 0x27d   : > { %v5140_v13 = vadd.f32 %v5132_v0, %v5092_v40  ;;  %v5141_v1 = vadd.f32 %v5133_v5, %v5093_v50  ;;  %v5142_v20 = vadd.f32 %v5134_v43, %v5094_v24  ;;  %v5146_v6 = vrot.slane %v9556_v18, %v7166_v9 }
 0x27e   : > { %v5150_v4 = vrot.slane %v9558_v53, %v7166_v9  ;;  %v5154_v25 = vrot.slane %v9560_v38, %v7166_v9  ;;  %v5158_v55 = vrot.slane %v9562_v7, %v7166_v9  ;;  %v5162_v49 = vrot.slane %v9564_v37, %v7166_v9 }
 0x27f   : > { %v5166_v56 = vrot.slane %v9566_v41, %v7166_v9  ;;  %v5170_v58 = vrot.slane %v9568_v8, %v7166_v9  ;;  %v5174_v18 = vrot.slane %v9570_v62, %v7166_v9  ;;  %v5175_v54 = vmul.f32 %v6824_v22, %v5146_v6 }
 0x280   : > { %v5176_v53 = vmul.f32 %v6824_v22, %v5150_v4  ;;  %v5177_v21 = vmul.f32 %v6824_v22, %v5154_v25  ;;  %v5178_v38 = vmul.f32 %v6824_v22, %v5158_v55  ;;  %v5179_v26 = vmul.f32 %v6824_v22, %v5162_v49 }
 0x281   : > { %v5180_v60 = vmul.f32 %v6824_v22, %v5166_v56  ;;  %v5181_v7 = vmul.f32 %v6824_v22, %v5170_v58  ;;  %v5182_v2 = vmul.f32 %v6824_v22, %v5174_v18  ;;  %v9708_v47 = vadd.f32 %v5175_v54, %v5135_v42  ;;  %v6827_v58 = vld [vmem:[%s9394_s18 + $0x90] sm:$0xff] }
 0x282   : > { %v9710_v37 = vadd.f32 %v5176_v53, %v5136_v10  ;;  %v9712_v41 = vadd.f32 %v5177_v21, %v5137_v45  ;;  %v9714_v36 = vadd.f32 %v5178_v38, %v5138_v48  ;;  %v9716_v8 = vadd.f32 %v5179_v26, %v5139_v11 }
 0x283   : > { %v9718_v62 = vadd.f32 %v5180_v60, %v5140_v13  ;;  %v9720_v27 = vadd.f32 %v5181_v7, %v5141_v1  ;;  %v9722_v3 = vadd.f32 %v5182_v2, %v5142_v20  ;;  %v5203_v17 = vrot.slane %v9708_v47, %v6963_v28 }
 0x284   : > { %v5207_v52 = vrot.slane %v9710_v37, %v6963_v28  ;;  %v5211_v39 = vrot.slane %v9712_v41, %v6963_v28  ;;  %v5215_v40 = vrot.slane %v9714_v36, %v6963_v28  ;;  %v5219_v50 = vrot.slane %v9716_v8, %v6963_v28 }
 0x285   : > { %v5223_v24 = vrot.slane %v9718_v62, %v6963_v28  ;;  %v5227_v51 = vrot.slane %v9720_v27, %v6963_v28  ;;  %v5231_v19 = vrot.slane %v9722_v3, %v6963_v28  ;;  %v5232_v12 = vmul.f32 %v6825_v61, %v5203_v17 }
 0x286   : > { %v5233_v23 = vmul.f32 %v6825_v61, %v5207_v52  ;;  %v5234_v15 = vmul.f32 %v6825_v61, %v5211_v39  ;;  %v5235_v57 = vmul.f32 %v6825_v61, %v5215_v40  ;;  %v5236_v35 = vmul.f32 %v6825_v61, %v5219_v50 }
 0x287   : > { %v5237_v14 = vmul.f32 %v6825_v61, %v5223_v24  ;;  %v5238_v44 = vmul.f32 %v6825_v61, %v5227_v51  ;;  %v5239_v46 = vmul.f32 %v6825_v61, %v5231_v19  ;;  %v5243_v59 = vrot.slane %v9708_v47, %v6966_v29 }
 0x288   : > { %v5247_v63 = vrot.slane %v9710_v37, %v6966_v29  ;;  %v5251_v0 = vrot.slane %v9712_v41, %v6966_v29  ;;  %v5255_v5 = vrot.slane %v9714_v36, %v6966_v29  ;;  %v5259_v43 = vrot.slane %v9716_v8, %v6966_v29 }
 0x289   : > { %v5263_v42 = vrot.slane %v9718_v62, %v6966_v29  ;;  %v5267_v10 = vrot.slane %v9720_v27, %v6966_v29  ;;  %v5271_v45 = vrot.slane %v9722_v3, %v6966_v29  ;;  %v5272_v48 = vmul.f32 %v6826_v16, %v5243_v59 }
 0x28a   : > { %v5273_v22 = vmul.f32 %v6826_v16, %v5247_v63  ;;  %v5274_v11 = vmul.f32 %v6826_v16, %v5251_v0  ;;  %v5275_v13 = vmul.f32 %v6826_v16, %v5255_v5  ;;  %v5276_v1 = vmul.f32 %v6826_v16, %v5259_v43 }
 0x28b   : > { %v5277_v20 = vmul.f32 %v6826_v16, %v5263_v42  ;;  %v5278_v6 = vmul.f32 %v6826_v16, %v5267_v10  ;;  %v5279_v4 = vmul.f32 %v6826_v16, %v5271_v45  ;;  %v5280_v25 = vadd.f32 %v5272_v48, %v5232_v12 }
 0x28c   : > { %v5281_v55 = vadd.f32 %v5273_v22, %v5233_v23  ;;  %v5282_v49 = vadd.f32 %v5274_v11, %v5234_v15  ;;  %v5283_v56 = vadd.f32 %v5275_v13, %v5235_v57  ;;  %v5284_v18 = vadd.f32 %v5276_v1, %v5236_v35 }
 0x28d   : > { %v5285_v54 = vadd.f32 %v5277_v20, %v5237_v14  ;;  %v5286_v53 = vadd.f32 %v5278_v6, %v5238_v44  ;;  %v5287_v21 = vadd.f32 %v5279_v4, %v5239_v46  ;;  %v5291_v38 = vrot.slane %v9708_v47, %v6969_v30  ;;  %v6828_v14 = vld [vmem:[%s9394_s18 + $0x98] sm:$0xff] }
 0x28e   : > { %v5295_v26 = vrot.slane %v9710_v37, %v6969_v30  ;;  %v5299_v60 = vrot.slane %v9712_v41, %v6969_v30  ;;  %v5303_v7 = vrot.slane %v9714_v36, %v6969_v30  ;;  %v5307_v2 = vrot.slane %v9716_v8, %v6969_v30 }
 0x28f   : > { %v5311_v61 = vrot.slane %v9718_v62, %v6969_v30  ;;  %v5315_v17 = vrot.slane %v9720_v27, %v6969_v30  ;;  %v5319_v52 = vrot.slane %v9722_v3, %v6969_v30  ;;  %v5320_v39 = vmul.f32 %v6827_v58, %v5291_v38 }
 0x290   : > { %v5321_v40 = vmul.f32 %v6827_v58, %v5295_v26  ;;  %v5322_v50 = vmul.f32 %v6827_v58, %v5299_v60  ;;  %v5323_v24 = vmul.f32 %v6827_v58, %v5303_v7  ;;  %v5324_v51 = vmul.f32 %v6827_v58, %v5307_v2 }
 0x291   : > { %v5325_v19 = vmul.f32 %v6827_v58, %v5311_v61  ;;  %v5326_v12 = vmul.f32 %v6827_v58, %v5315_v17  ;;  %v5327_v23 = vmul.f32 %v6827_v58, %v5319_v52  ;;  %v5328_v15 = vadd.f32 %v5320_v39, %v5280_v25 }
 0x292   : > { %v5329_v57 = vadd.f32 %v5321_v40, %v5281_v55  ;;  %v5330_v16 = vadd.f32 %v5322_v50, %v5282_v49  ;;  %v5331_v35 = vadd.f32 %v5323_v24, %v5283_v56  ;;  %v5332_v44 = vadd.f32 %v5324_v51, %v5284_v18 }
 0x293   : > { %v5333_v46 = vadd.f32 %v5325_v19, %v5285_v54  ;;  %v5334_v59 = vadd.f32 %v5326_v12, %v5286_v53  ;;  %v5335_v63 = vadd.f32 %v5327_v23, %v5287_v21  ;;  %v5339_v0 = vrot.slane %v9708_v47, %v6972_v31  ;;  %v6829_v54 = vld [vmem:[%s9394_s18 + $0xa0] sm:$0xff] }
 0x294   : > { %v5343_v5 = vrot.slane %v9710_v37, %v6972_v31  ;;  %v5347_v43 = vrot.slane %v9712_v41, %v6972_v31  ;;  %v5351_v42 = vrot.slane %v9714_v36, %v6972_v31  ;;  %v5355_v10 = vrot.slane %v9716_v8, %v6972_v31 }
 0x295   : > { %v5359_v45 = vrot.slane %v9718_v62, %v6972_v31  ;;  %v5363_v48 = vrot.slane %v9720_v27, %v6972_v31  ;;  %v5367_v22 = vrot.slane %v9722_v3, %v6972_v31  ;;  %v5368_v11 = vmul.f32 %v6828_v14, %v5339_v0 }
 0x296   : > { %v5369_v13 = vmul.f32 %v6828_v14, %v5343_v5  ;;  %v5370_v1 = vmul.f32 %v6828_v14, %v5347_v43  ;;  %v5371_v20 = vmul.f32 %v6828_v14, %v5351_v42  ;;  %v5372_v6 = vmul.f32 %v6828_v14, %v5355_v10 }
 0x297   : > { %v5373_v4 = vmul.f32 %v6828_v14, %v5359_v45  ;;  %v5374_v25 = vmul.f32 %v6828_v14, %v5363_v48  ;;  %v5375_v55 = vmul.f32 %v6828_v14, %v5367_v22  ;;  %v5376_v49 = vadd.f32 %v5368_v11, %v5328_v15 }
 0x298   : > { %v5377_v56 = vadd.f32 %v5369_v13, %v5329_v57  ;;  %v5378_v58 = vadd.f32 %v5370_v1, %v5330_v16  ;;  %v5379_v18 = vadd.f32 %v5371_v20, %v5331_v35  ;;  %v5380_v53 = vadd.f32 %v5372_v6, %v5332_v44 }
 0x299   : > { %v5381_v21 = vadd.f32 %v5373_v4, %v5333_v46  ;;  %v5382_v38 = vadd.f32 %v5374_v25, %v5334_v59  ;;  %v5383_v26 = vadd.f32 %v5375_v55, %v5335_v63  ;;  %v5387_v60 = vrot.slane %v9708_v47, %v6975_v32  ;;  %v6830_v46 = vld [vmem:[%s9394_s18 + $0xa8] sm:$0xff] }
 0x29a   : > { %v5391_v7 = vrot.slane %v9710_v37, %v6975_v32  ;;  %v5395_v2 = vrot.slane %v9712_v41, %v6975_v32  ;;  %v5399_v61 = vrot.slane %v9714_v36, %v6975_v32  ;;  %v5403_v17 = vrot.slane %v9716_v8, %v6975_v32 }
 0x29b   : > { %v5407_v52 = vrot.slane %v9718_v62, %v6975_v32  ;;  %v5411_v39 = vrot.slane %v9720_v27, %v6975_v32  ;;  %v5415_v40 = vrot.slane %v9722_v3, %v6975_v32  ;;  %v5416_v50 = vmul.f32 %v6829_v54, %v5387_v60 }
 0x29c   : > { %v5417_v24 = vmul.f32 %v6829_v54, %v5391_v7  ;;  %v5418_v51 = vmul.f32 %v6829_v54, %v5395_v2  ;;  %v5419_v19 = vmul.f32 %v6829_v54, %v5399_v61  ;;  %v5420_v12 = vmul.f32 %v6829_v54, %v5403_v17 }
 0x29d   : > { %v5421_v23 = vmul.f32 %v6829_v54, %v5407_v52  ;;  %v5422_v15 = vmul.f32 %v6829_v54, %v5411_v39  ;;  %v5423_v57 = vmul.f32 %v6829_v54, %v5415_v40  ;;  %v5424_v16 = vadd.f32 %v5416_v50, %v5376_v49 }
 0x29e   : > { %v5425_v35 = vadd.f32 %v5417_v24, %v5377_v56  ;;  %v5426_v14 = vadd.f32 %v5418_v51, %v5378_v58  ;;  %v5427_v44 = vadd.f32 %v5419_v19, %v5379_v18  ;;  %v5428_v59 = vadd.f32 %v5420_v12, %v5380_v53 }
 0x29f   : > { %v5429_v63 = vadd.f32 %v5421_v23, %v5381_v21  ;;  %v5430_v0 = vadd.f32 %v5422_v15, %v5382_v38  ;;  %v5431_v5 = vadd.f32 %v5423_v57, %v5383_v26  ;;  %v5435_v43 = vrot.slane %v9708_v47, %v6978_v33  ;;  %v6831_v21 = vld [vmem:[%s9394_s18 + $0xb0] sm:$0xff] }
 0x2a0   : > { %v5439_v42 = vrot.slane %v9710_v37, %v6978_v33  ;;  %v5443_v10 = vrot.slane %v9712_v41, %v6978_v33  ;;  %v5447_v45 = vrot.slane %v9714_v36, %v6978_v33  ;;  %v5451_v48 = vrot.slane %v9716_v8, %v6978_v33 }
 0x2a1   : > { %v5455_v22 = vrot.slane %v9718_v62, %v6978_v33  ;;  %v5459_v11 = vrot.slane %v9720_v27, %v6978_v33  ;;  %v5463_v13 = vrot.slane %v9722_v3, %v6978_v33  ;;  %v5464_v1 = vmul.f32 %v6830_v46, %v5435_v43 }
 0x2a2   : > { %v5465_v20 = vmul.f32 %v6830_v46, %v5439_v42  ;;  %v5466_v6 = vmul.f32 %v6830_v46, %v5443_v10  ;;  %v5467_v4 = vmul.f32 %v6830_v46, %v5447_v45  ;;  %v5468_v25 = vmul.f32 %v6830_v46, %v5451_v48 }
 0x2a3   : > { %v5469_v55 = vmul.f32 %v6830_v46, %v5455_v22  ;;  %v5470_v49 = vmul.f32 %v6830_v46, %v5459_v11  ;;  %v5471_v56 = vmul.f32 %v6830_v46, %v5463_v13  ;;  %v5472_v58 = vadd.f32 %v5464_v1, %v5424_v16 }
 0x2a4   : > { %v5473_v18 = vadd.f32 %v5465_v20, %v5425_v35  ;;  %v5474_v54 = vadd.f32 %v5466_v6, %v5426_v14  ;;  %v5475_v53 = vadd.f32 %v5467_v4, %v5427_v44  ;;  %v5476_v38 = vadd.f32 %v5468_v25, %v5428_v59 }
 0x2a5   : > { %v5477_v26 = vadd.f32 %v5469_v55, %v5429_v63  ;;  %v5478_v60 = vadd.f32 %v5470_v49, %v5430_v0  ;;  %v5479_v7 = vadd.f32 %v5471_v56, %v5431_v5  ;;  %v5483_v2 = vrot.slane %v9708_v47, %v6981_v34  ;;  %v6832_v63 = vld [vmem:[%s9394_s18 + $0xb8] sm:$0xff] }
 0x2a6   : > { %v5487_v61 = vrot.slane %v9710_v37, %v6981_v34  ;;  %v5491_v17 = vrot.slane %v9712_v41, %v6981_v34  ;;  %v5495_v52 = vrot.slane %v9714_v36, %v6981_v34  ;;  %v5499_v39 = vrot.slane %v9716_v8, %v6981_v34 }
 0x2a7   : > { %v5503_v40 = vrot.slane %v9718_v62, %v6981_v34  ;;  %v5507_v50 = vrot.slane %v9720_v27, %v6981_v34  ;;  %v5511_v24 = vrot.slane %v9722_v3, %v6981_v34  ;;  %v5512_v51 = vmul.f32 %v6831_v21, %v5483_v2 }
 0x2a8   : > { %v5513_v19 = vmul.f32 %v6831_v21, %v5487_v61  ;;  %v5514_v12 = vmul.f32 %v6831_v21, %v5491_v17  ;;  %v5515_v23 = vmul.f32 %v6831_v21, %v5495_v52  ;;  %v5516_v15 = vmul.f32 %v6831_v21, %v5499_v39 }
 0x2a9   : > { %v5517_v57 = vmul.f32 %v6831_v21, %v5503_v40  ;;  %v5518_v16 = vmul.f32 %v6831_v21, %v5507_v50  ;;  %v5519_v35 = vmul.f32 %v6831_v21, %v5511_v24  ;;  %v5520_v14 = vadd.f32 %v5512_v51, %v5472_v58  ;;  %v6834_v50 = vld [vmem:[%s9394_s18 + $0xc8] sm:$0xff] }
 0x2aa   : > { %v5521_v44 = vadd.f32 %v5513_v19, %v5473_v18  ;;  %v5522_v46 = vadd.f32 %v5514_v12, %v5474_v54  ;;  %v5523_v59 = vadd.f32 %v5515_v23, %v5475_v53  ;;  %v5524_v0 = vadd.f32 %v5516_v15, %v5476_v38  ;;  %v6833_v54 = vld [vmem:[%s9394_s18 + $0xc0] sm:$0xff] }
 0x2ab   : > { %v5525_v5 = vadd.f32 %v5517_v57, %v5477_v26  ;;  %v5526_v43 = vadd.f32 %v5518_v16, %v5478_v60  ;;  %v5527_v42 = vadd.f32 %v5519_v35, %v5479_v7  ;;  %v5531_v10 = vrot.slane %v9708_v47, %v7166_v9 }
 0x2ac   : > { %v5535_v45 = vrot.slane %v9710_v37, %v7166_v9  ;;  %v5539_v48 = vrot.slane %v9712_v41, %v7166_v9  ;;  %v5543_v22 = vrot.slane %v9714_v36, %v7166_v9  ;;  %v5547_v11 = vrot.slane %v9716_v8, %v7166_v9 }
 0x2ad   : > { %v5551_v13 = vrot.slane %v9718_v62, %v7166_v9  ;;  %v5555_v1 = vrot.slane %v9720_v27, %v7166_v9  ;;  %v5559_v47 = vrot.slane %v9722_v3, %v7166_v9  ;;  %v5560_v20 = vmul.f32 %v6832_v63, %v5531_v10 }
 0x2ae   : > { %v5561_v37 = vmul.f32 %v6832_v63, %v5535_v45  ;;  %v5562_v6 = vmul.f32 %v6832_v63, %v5539_v48  ;;  %v5563_v41 = vmul.f32 %v6832_v63, %v5543_v22  ;;  %v5564_v4 = vmul.f32 %v6832_v63, %v5547_v11 }
 0x2af   : > { %v5565_v25 = vmul.f32 %v6832_v63, %v5551_v13  ;;  %v5566_v36 = vmul.f32 %v6832_v63, %v5555_v1  ;;  %v5567_v55 = vmul.f32 %v6832_v63, %v5559_v47  ;;  %v9860_v49 = vadd.f32 %v5560_v20, %v5520_v14  ;;  %v6835_v1 = vld [vmem:[%s9394_s18 + $0xd0] sm:$0xff] }
 0x2b0   : > { %v9862_v8 = vadd.f32 %v5561_v37, %v5521_v44  ;;  %v9864_v62 = vadd.f32 %v5562_v6, %v5522_v46  ;;  %v9866_v56 = vadd.f32 %v5563_v41, %v5523_v59  ;;  %v9868_v27 = vadd.f32 %v5564_v4, %v5524_v0 }
 0x2b1   : > { %v9870_v3 = vadd.f32 %v5565_v25, %v5525_v5  ;;  %v9872_v58 = vadd.f32 %v5566_v36, %v5526_v43  ;;  %v9874_v18 = vadd.f32 %v5567_v55, %v5527_v42  ;;  %v5588_v53 = vrot.slane %v9860_v49, %v6963_v28 }
 0x2b2   : > { %v5592_v21 = vrot.slane %v9862_v8, %v6963_v28  ;;  %v5596_v38 = vrot.slane %v9864_v62, %v6963_v28  ;;  %v5600_v26 = vrot.slane %v9866_v56, %v6963_v28  ;;  %v5604_v60 = vrot.slane %v9868_v27, %v6963_v28 }
 0x2b3   : > { %v5608_v7 = vrot.slane %v9870_v3, %v6963_v28  ;;  %v5612_v2 = vrot.slane %v9872_v58, %v6963_v28  ;;  %v5616_v61 = vrot.slane %v9874_v18, %v6963_v28  ;;  %v5617_v17 = vmul.f32 %v6833_v54, %v5588_v53 }
 0x2b4   : > { %v5618_v52 = vmul.f32 %v6833_v54, %v5592_v21  ;;  %v5619_v39 = vmul.f32 %v6833_v54, %v5596_v38  ;;  %v5620_v40 = vmul.f32 %v6833_v54, %v5600_v26  ;;  %v5621_v24 = vmul.f32 %v6833_v54, %v5604_v60 }
 0x2b5   : > { %v5622_v51 = vmul.f32 %v6833_v54, %v5608_v7  ;;  %v5623_v19 = vmul.f32 %v6833_v54, %v5612_v2  ;;  %v5624_v12 = vmul.f32 %v6833_v54, %v5616_v61  ;;  %v5628_v23 = vrot.slane %v9860_v49, %v6966_v29 }
 0x2b6   : > { %v5632_v15 = vrot.slane %v9862_v8, %v6966_v29  ;;  %v5636_v57 = vrot.slane %v9864_v62, %v6966_v29  ;;  %v5640_v16 = vrot.slane %v9866_v56, %v6966_v29  ;;  %v5644_v35 = vrot.slane %v9868_v27, %v6966_v29 }
 0x2b7   : > { %v5648_v14 = vrot.slane %v9870_v3, %v6966_v29  ;;  %v5652_v44 = vrot.slane %v9872_v58, %v6966_v29  ;;  %v5656_v46 = vrot.slane %v9874_v18, %v6966_v29  ;;  %v5657_v59 = vmul.f32 %v6834_v50, %v5628_v23 }
 0x2b8   : > { %v5658_v63 = vmul.f32 %v6834_v50, %v5632_v15  ;;  %v5659_v0 = vmul.f32 %v6834_v50, %v5636_v57  ;;  %v5660_v5 = vmul.f32 %v6834_v50, %v5640_v16  ;;  %v5661_v43 = vmul.f32 %v6834_v50, %v5644_v35 }
 0x2b9   : > { %v5662_v42 = vmul.f32 %v6834_v50, %v5648_v14  ;;  %v5663_v10 = vmul.f32 %v6834_v50, %v5652_v44  ;;  %v5664_v45 = vmul.f32 %v6834_v50, %v5656_v46  ;;  %v5665_v48 = vadd.f32 %v5657_v59, %v5617_v17 }
 0x2ba   : > { %v5666_v22 = vadd.f32 %v5658_v63, %v5618_v52  ;;  %v5667_v11 = vadd.f32 %v5659_v0, %v5619_v39  ;;  %v5668_v13 = vadd.f32 %v5660_v5, %v5620_v40  ;;  %v5669_v47 = vadd.f32 %v5661_v43, %v5621_v24 }
 0x2bb   : > { %v5670_v20 = vadd.f32 %v5662_v42, %v5622_v51  ;;  %v5671_v37 = vadd.f32 %v5663_v10, %v5623_v19  ;;  %v5672_v6 = vadd.f32 %v5664_v45, %v5624_v12  ;;  %v5676_v41 = vrot.slane %v9860_v49, %v6969_v30  ;;  %v6836_v51 = vld [vmem:[%s9394_s18 + $0xd8] sm:$0xff] }
 0x2bc   : > { %v5680_v4 = vrot.slane %v9862_v8, %v6969_v30  ;;  %v5684_v25 = vrot.slane %v9864_v62, %v6969_v30  ;;  %v5688_v36 = vrot.slane %v9866_v56, %v6969_v30  ;;  %v5692_v55 = vrot.slane %v9868_v27, %v6969_v30 }
 0x2bd   : > { %v5696_v54 = vrot.slane %v9870_v3, %v6969_v30  ;;  %v5700_v53 = vrot.slane %v9872_v58, %v6969_v30  ;;  %v5704_v21 = vrot.slane %v9874_v18, %v6969_v30  ;;  %v5705_v38 = vmul.f32 %v6835_v1, %v5676_v41 }
 0x2be   : > { %v5706_v26 = vmul.f32 %v6835_v1, %v5680_v4  ;;  %v5707_v60 = vmul.f32 %v6835_v1, %v5684_v25  ;;  %v5708_v7 = vmul.f32 %v6835_v1, %v5688_v36  ;;  %v5709_v2 = vmul.f32 %v6835_v1, %v5692_v55 }
 0x2bf   : > { %v5710_v61 = vmul.f32 %v6835_v1, %v5696_v54  ;;  %v5711_v17 = vmul.f32 %v6835_v1, %v5700_v53  ;;  %v5712_v52 = vmul.f32 %v6835_v1, %v5704_v21  ;;  %v5713_v39 = vadd.f32 %v5705_v38, %v5665_v48 }
 0x2c0   : > { %v5714_v40 = vadd.f32 %v5706_v26, %v5666_v22  ;;  %v5715_v50 = vadd.f32 %v5707_v60, %v5667_v11  ;;  %v5716_v24 = vadd.f32 %v5708_v7, %v5668_v13  ;;  %v5717_v19 = vadd.f32 %v5709_v2, %v5669_v47 }
 0x2c1   : > { %v5718_v12 = vadd.f32 %v5710_v61, %v5670_v20  ;;  %v5719_v23 = vadd.f32 %v5711_v17, %v5671_v37  ;;  %v5720_v15 = vadd.f32 %v5712_v52, %v5672_v6  ;;  %v5724_v57 = vrot.slane %v9860_v49, %v6972_v31  ;;  %v6837_v20 = vld [vmem:[%s9394_s18 + $0xe0] sm:$0xff] }
 0x2c2   : > { %v5728_v16 = vrot.slane %v9862_v8, %v6972_v31  ;;  %v5732_v35 = vrot.slane %v9864_v62, %v6972_v31  ;;  %v5736_v14 = vrot.slane %v9866_v56, %v6972_v31  ;;  %v5740_v44 = vrot.slane %v9868_v27, %v6972_v31 }
 0x2c3   : > { %v5744_v46 = vrot.slane %v9870_v3, %v6972_v31  ;;  %v5748_v59 = vrot.slane %v9872_v58, %v6972_v31  ;;  %v5752_v63 = vrot.slane %v9874_v18, %v6972_v31  ;;  %v5753_v0 = vmul.f32 %v6836_v51, %v5724_v57 }
 0x2c4   : > { %v5754_v5 = vmul.f32 %v6836_v51, %v5728_v16  ;;  %v5755_v43 = vmul.f32 %v6836_v51, %v5732_v35  ;;  %v5756_v42 = vmul.f32 %v6836_v51, %v5736_v14  ;;  %v5757_v10 = vmul.f32 %v6836_v51, %v5740_v44 }
 0x2c5   : > { %v5758_v45 = vmul.f32 %v6836_v51, %v5744_v46  ;;  %v5759_v48 = vmul.f32 %v6836_v51, %v5748_v59  ;;  %v5760_v22 = vmul.f32 %v6836_v51, %v5752_v63  ;;  %v5761_v11 = vadd.f32 %v5753_v0, %v5713_v39 }
 0x2c6   : > { %v5762_v13 = vadd.f32 %v5754_v5, %v5714_v40  ;;  %v5763_v1 = vadd.f32 %v5755_v43, %v5715_v50  ;;  %v5764_v47 = vadd.f32 %v5756_v42, %v5716_v24  ;;  %v5765_v37 = vadd.f32 %v5757_v10, %v5717_v19 }
 0x2c7   : > { %v5766_v6 = vadd.f32 %v5758_v45, %v5718_v12  ;;  %v5767_v41 = vadd.f32 %v5759_v48, %v5719_v23  ;;  %v5768_v4 = vadd.f32 %v5760_v22, %v5720_v15  ;;  %v5772_v25 = vrot.slane %v9860_v49, %v6975_v32  ;;  %v6838_v12 = vld [vmem:[%s9394_s18 + $0xe8] sm:$0xff] }
 0x2c8   : > { %v5776_v36 = vrot.slane %v9862_v8, %v6975_v32  ;;  %v5780_v55 = vrot.slane %v9864_v62, %v6975_v32  ;;  %v5784_v54 = vrot.slane %v9866_v56, %v6975_v32  ;;  %v5788_v53 = vrot.slane %v9868_v27, %v6975_v32 }
 0x2c9   : > { %v5792_v21 = vrot.slane %v9870_v3, %v6975_v32  ;;  %v5796_v38 = vrot.slane %v9872_v58, %v6975_v32  ;;  %v5800_v26 = vrot.slane %v9874_v18, %v6975_v32  ;;  %v5801_v60 = vmul.f32 %v6837_v20, %v5772_v25 }
 0x2ca   : > { %v5802_v7 = vmul.f32 %v6837_v20, %v5776_v36  ;;  %v5803_v2 = vmul.f32 %v6837_v20, %v5780_v55  ;;  %v5804_v61 = vmul.f32 %v6837_v20, %v5784_v54  ;;  %v5805_v17 = vmul.f32 %v6837_v20, %v5788_v53 }
 0x2cb   : > { %v5806_v52 = vmul.f32 %v6837_v20, %v5792_v21  ;;  %v5807_v39 = vmul.f32 %v6837_v20, %v5796_v38  ;;  %v5808_v40 = vmul.f32 %v6837_v20, %v5800_v26  ;;  %v5809_v50 = vadd.f32 %v5801_v60, %v5761_v11 }
 0x2cc   : > { %v5810_v24 = vadd.f32 %v5802_v7, %v5762_v13  ;;  %v5811_v51 = vadd.f32 %v5803_v2, %v5763_v1  ;;  %v5812_v19 = vadd.f32 %v5804_v61, %v5764_v47  ;;  %v5813_v23 = vadd.f32 %v5805_v17, %v5765_v37 }
 0x2cd   : > { %v5814_v15 = vadd.f32 %v5806_v52, %v5766_v6  ;;  %v5815_v57 = vadd.f32 %v5807_v39, %v5767_v41  ;;  %v5816_v16 = vadd.f32 %v5808_v40, %v5768_v4  ;;  %v5820_v35 = vrot.slane %v9860_v49, %v6978_v33  ;;  %v6839_v6 = vld [vmem:[%s9394_s18 + $0xf0] sm:$0xff] }
 0x2ce   : > { %v5824_v14 = vrot.slane %v9862_v8, %v6978_v33  ;;  %v5828_v44 = vrot.slane %v9864_v62, %v6978_v33  ;;  %v5832_v46 = vrot.slane %v9866_v56, %v6978_v33  ;;  %v5836_v59 = vrot.slane %v9868_v27, %v6978_v33 }
 0x2cf   : > { %v5840_v63 = vrot.slane %v9870_v3, %v6978_v33  ;;  %v5844_v0 = vrot.slane %v9872_v58, %v6978_v33  ;;  %v5848_v5 = vrot.slane %v9874_v18, %v6978_v33  ;;  %v5849_v43 = vmul.f32 %v6838_v12, %v5820_v35 }
 0x2d0   : > { %v5850_v42 = vmul.f32 %v6838_v12, %v5824_v14  ;;  %v5851_v10 = vmul.f32 %v6838_v12, %v5828_v44  ;;  %v5852_v45 = vmul.f32 %v6838_v12, %v5832_v46  ;;  %v5853_v48 = vmul.f32 %v6838_v12, %v5836_v59 }
 0x2d1   : > { %v5854_v22 = vmul.f32 %v6838_v12, %v5840_v63  ;;  %v5855_v11 = vmul.f32 %v6838_v12, %v5844_v0  ;;  %v5856_v13 = vmul.f32 %v6838_v12, %v5848_v5  ;;  %v5857_v1 = vadd.f32 %v5849_v43, %v5809_v50 }
 0x2d2   : > { %v5858_v47 = vadd.f32 %v5850_v42, %v5810_v24  ;;  %v5859_v20 = vadd.f32 %v5851_v10, %v5811_v51  ;;  %v5860_v37 = vadd.f32 %v5852_v45, %v5812_v19  ;;  %v5861_v41 = vadd.f32 %v5853_v48, %v5813_v23 }
 0x2d3   : > { %v5862_v4 = vadd.f32 %v5854_v22, %v5814_v15  ;;  %v5863_v25 = vadd.f32 %v5855_v11, %v5815_v57  ;;  %v5864_v36 = vadd.f32 %v5856_v13, %v5816_v16  ;;  %v5868_v55 = vrot.slane %v9860_v49, %v6981_v34  ;;  %v6840_v15 = vld [vmem:[%s9394_s18 + $0xf8] sm:$0xff] }
 0x2d4   : > { %v5872_v54 = vrot.slane %v9862_v8, %v6981_v34  ;;  %v5876_v53 = vrot.slane %v9864_v62, %v6981_v34  ;;  %v5880_v21 = vrot.slane %v9866_v56, %v6981_v34  ;;  %v5884_v38 = vrot.slane %v9868_v27, %v6981_v34 }
 0x2d5   : > { %v5888_v26 = vrot.slane %v9870_v3, %v6981_v34  ;;  %v5892_v60 = vrot.slane %v9872_v58, %v6981_v34  ;;  %v5896_v7 = vrot.slane %v9874_v18, %v6981_v34  ;;  %v5897_v2 = vmul.f32 %v6839_v6, %v5868_v55 }
 0x2d6   : > { %v5898_v61 = vmul.f32 %v6839_v6, %v5872_v54  ;;  %v5899_v17 = vmul.f32 %v6839_v6, %v5876_v53  ;;  %v5900_v52 = vmul.f32 %v6839_v6, %v5880_v21  ;;  %v5901_v39 = vmul.f32 %v6839_v6, %v5884_v38 }
 0x2d7   : > { %v5902_v40 = vmul.f32 %v6839_v6, %v5888_v26  ;;  %v5903_v50 = vmul.f32 %v6839_v6, %v5892_v60  ;;  %v5904_v24 = vmul.f32 %v6839_v6, %v5896_v7  ;;  %v5905_v51 = vadd.f32 %v5897_v2, %v5857_v1  ;;  %v6842_v60 = vld [vmem:[%s9394_s18 + $0x108] sm:$0xff] }
 0x2d8   : > { %v5906_v19 = vadd.f32 %v5898_v61, %v5858_v47  ;;  %v5907_v12 = vadd.f32 %v5899_v17, %v5859_v20  ;;  %v5908_v23 = vadd.f32 %v5900_v52, %v5860_v37  ;;  %v5909_v57 = vadd.f32 %v5901_v39, %v5861_v41  ;;  %v6841_v20 = vld [vmem:[%s9394_s18 + $0x100] sm:$0xff] }
 0x2d9   : > { %v5910_v16 = vadd.f32 %v5902_v40, %v5862_v4  ;;  %v5911_v35 = vadd.f32 %v5903_v50, %v5863_v25  ;;  %v5912_v14 = vadd.f32 %v5904_v24, %v5864_v36  ;;  %v5916_v44 = vrot.slane %v9860_v49, %v7166_v9 }
 0x2da   : > { %v5920_v46 = vrot.slane %v9862_v8, %v7166_v9  ;;  %v5924_v59 = vrot.slane %v9864_v62, %v7166_v9  ;;  %v5928_v63 = vrot.slane %v9866_v56, %v7166_v9  ;;  %v5932_v0 = vrot.slane %v9868_v27, %v7166_v9 }
 0x2db   : > { %v5936_v5 = vrot.slane %v9870_v3, %v7166_v9  ;;  %v5940_v43 = vrot.slane %v9872_v58, %v7166_v9  ;;  %v5944_v49 = vrot.slane %v9874_v18, %v7166_v9  ;;  %v5945_v42 = vmul.f32 %v6840_v15, %v5916_v44 }
 0x2dc   : > { %v5946_v8 = vmul.f32 %v6840_v15, %v5920_v46  ;;  %v5947_v10 = vmul.f32 %v6840_v15, %v5924_v59  ;;  %v5948_v62 = vmul.f32 %v6840_v15, %v5928_v63  ;;  %v5949_v45 = vmul.f32 %v6840_v15, %v5932_v0 }
 0x2dd   : > { %v5950_v48 = vmul.f32 %v6840_v15, %v5936_v5  ;;  %v5951_v56 = vmul.f32 %v6840_v15, %v5940_v43  ;;  %v5952_v22 = vmul.f32 %v6840_v15, %v5944_v49  ;;  %v10012_v11 = vadd.f32 %v5945_v42, %v5905_v51  ;;  %v6843_v43 = vld [vmem:[%s9394_s18 + $0x110] sm:$0xff] }
 0x2de   : > { %v10014_v27 = vadd.f32 %v5946_v8, %v5906_v19  ;;  %v10016_v3 = vadd.f32 %v5947_v10, %v5907_v12  ;;  %v10018_v13 = vadd.f32 %v5948_v62, %v5908_v23  ;;  %v10020_v58 = vadd.f32 %v5949_v45, %v5909_v57 }
 0x2df   : > { %v10022_v18 = vadd.f32 %v5950_v48, %v5910_v16  ;;  %v10024_v1 = vadd.f32 %v5951_v56, %v5911_v35  ;;  %v10026_v47 = vadd.f32 %v5952_v22, %v5912_v14  ;;  %v5973_v37 = vrot.slane %v10012_v11, %v6963_v28 }
 0x2e0   : > { %v5977_v6 = vrot.slane %v10014_v27, %v6963_v28  ;;  %v5981_v41 = vrot.slane %v10016_v3, %v6963_v28  ;;  %v5985_v4 = vrot.slane %v10018_v13, %v6963_v28  ;;  %v5989_v25 = vrot.slane %v10020_v58, %v6963_v28 }
 0x2e1   : > { %v5993_v36 = vrot.slane %v10022_v18, %v6963_v28  ;;  %v5997_v55 = vrot.slane %v10024_v1, %v6963_v28  ;;  %v6001_v54 = vrot.slane %v10026_v47, %v6963_v28  ;;  %v6002_v53 = vmul.f32 %v6841_v20, %v5973_v37 }
 0x2e2   : > { %v6003_v21 = vmul.f32 %v6841_v20, %v5977_v6  ;;  %v6004_v38 = vmul.f32 %v6841_v20, %v5981_v41  ;;  %v6005_v26 = vmul.f32 %v6841_v20, %v5985_v4  ;;  %v6006_v7 = vmul.f32 %v6841_v20, %v5989_v25 }
 0x2e3   : > { %v6007_v2 = vmul.f32 %v6841_v20, %v5993_v36  ;;  %v6008_v61 = vmul.f32 %v6841_v20, %v5997_v55  ;;  %v6009_v17 = vmul.f32 %v6841_v20, %v6001_v54  ;;  %v6013_v52 = vrot.slane %v10012_v11, %v6966_v29 }
 0x2e4   : > { %v6017_v39 = vrot.slane %v10014_v27, %v6966_v29  ;;  %v6021_v40 = vrot.slane %v10016_v3, %v6966_v29  ;;  %v6025_v50 = vrot.slane %v10018_v13, %v6966_v29  ;;  %v6029_v24 = vrot.slane %v10020_v58, %v6966_v29 }
 0x2e5   : > { %v6033_v51 = vrot.slane %v10022_v18, %v6966_v29  ;;  %v6037_v19 = vrot.slane %v10024_v1, %v6966_v29  ;;  %v6041_v12 = vrot.slane %v10026_v47, %v6966_v29  ;;  %v6042_v23 = vmul.f32 %v6842_v60, %v6013_v52 }
 0x2e6   : > { %v6043_v15 = vmul.f32 %v6842_v60, %v6017_v39  ;;  %v6044_v57 = vmul.f32 %v6842_v60, %v6021_v40  ;;  %v6045_v16 = vmul.f32 %v6842_v60, %v6025_v50  ;;  %v6046_v35 = vmul.f32 %v6842_v60, %v6029_v24 }
 0x2e7   : > { %v6047_v14 = vmul.f32 %v6842_v60, %v6033_v51  ;;  %v6048_v44 = vmul.f32 %v6842_v60, %v6037_v19  ;;  %v6049_v46 = vmul.f32 %v6842_v60, %v6041_v12  ;;  %v6050_v59 = vadd.f32 %v6042_v23, %v6002_v53 }
 0x2e8   : > { %v6051_v63 = vadd.f32 %v6043_v15, %v6003_v21  ;;  %v6052_v0 = vadd.f32 %v6044_v57, %v6004_v38  ;;  %v6053_v5 = vadd.f32 %v6045_v16, %v6005_v26  ;;  %v6054_v49 = vadd.f32 %v6046_v35, %v6006_v7 }
 0x2e9   : > { %v6055_v42 = vadd.f32 %v6047_v14, %v6007_v2  ;;  %v6056_v8 = vadd.f32 %v6048_v44, %v6008_v61  ;;  %v6057_v10 = vadd.f32 %v6049_v46, %v6009_v17  ;;  %v6061_v62 = vrot.slane %v10012_v11, %v6969_v30  ;;  %v6844_v2 = vld [vmem:[%s9394_s18 + $0x118] sm:$0xff] }
 0x2ea   : > { %v6065_v45 = vrot.slane %v10014_v27, %v6969_v30  ;;  %v6069_v48 = vrot.slane %v10016_v3, %v6969_v30  ;;  %v6073_v56 = vrot.slane %v10018_v13, %v6969_v30  ;;  %v6077_v22 = vrot.slane %v10020_v58, %v6969_v30 }
 0x2eb   : > { %v6081_v20 = vrot.slane %v10022_v18, %v6969_v30  ;;  %v6085_v37 = vrot.slane %v10024_v1, %v6969_v30  ;;  %v6089_v6 = vrot.slane %v10026_v47, %v6969_v30  ;;  %v6090_v41 = vmul.f32 %v6843_v43, %v6061_v62 }
 0x2ec   : > { %v6091_v4 = vmul.f32 %v6843_v43, %v6065_v45  ;;  %v6092_v25 = vmul.f32 %v6843_v43, %v6069_v48  ;;  %v6093_v36 = vmul.f32 %v6843_v43, %v6073_v56  ;;  %v6094_v55 = vmul.f32 %v6843_v43, %v6077_v22 }
 0x2ed   : > { %v6095_v54 = vmul.f32 %v6843_v43, %v6081_v20  ;;  %v6096_v53 = vmul.f32 %v6843_v43, %v6085_v37  ;;  %v6097_v21 = vmul.f32 %v6843_v43, %v6089_v6  ;;  %v6098_v38 = vadd.f32 %v6090_v41, %v6050_v59 }
 0x2ee   : > { %v6099_v26 = vadd.f32 %v6091_v4, %v6051_v63  ;;  %v6100_v60 = vadd.f32 %v6092_v25, %v6052_v0  ;;  %v6101_v7 = vadd.f32 %v6093_v36, %v6053_v5  ;;  %v6102_v61 = vadd.f32 %v6094_v55, %v6054_v49 }
 0x2ef   : > { %v6103_v17 = vadd.f32 %v6095_v54, %v6055_v42  ;;  %v6104_v52 = vadd.f32 %v6096_v53, %v6056_v8  ;;  %v6105_v39 = vadd.f32 %v6097_v21, %v6057_v10  ;;  %v6109_v40 = vrot.slane %v10012_v11, %v6972_v31  ;;  %v6845_v42 = vld [vmem:[%s9394_s18 + $0x120] sm:$0xff] }
 0x2f0   : > { %v6113_v50 = vrot.slane %v10014_v27, %v6972_v31  ;;  %v6117_v24 = vrot.slane %v10016_v3, %v6972_v31  ;;  %v6121_v51 = vrot.slane %v10018_v13, %v6972_v31  ;;  %v6125_v19 = vrot.slane %v10020_v58, %v6972_v31 }
 0x2f1   : > { %v6129_v12 = vrot.slane %v10022_v18, %v6972_v31  ;;  %v6133_v23 = vrot.slane %v10024_v1, %v6972_v31  ;;  %v6137_v15 = vrot.slane %v10026_v47, %v6972_v31  ;;  %v6138_v57 = vmul.f32 %v6844_v2, %v6109_v40 }
 0x2f2   : > { %v6139_v16 = vmul.f32 %v6844_v2, %v6113_v50  ;;  %v6140_v35 = vmul.f32 %v6844_v2, %v6117_v24  ;;  %v6141_v14 = vmul.f32 %v6844_v2, %v6121_v51  ;;  %v6142_v44 = vmul.f32 %v6844_v2, %v6125_v19 }
 0x2f3   : > { %v6143_v46 = vmul.f32 %v6844_v2, %v6129_v12  ;;  %v6144_v59 = vmul.f32 %v6844_v2, %v6133_v23  ;;  %v6145_v63 = vmul.f32 %v6844_v2, %v6137_v15  ;;  %v6146_v0 = vadd.f32 %v6138_v57, %v6098_v38 }
 0x2f4   : > { %v6147_v5 = vadd.f32 %v6139_v16, %v6099_v26  ;;  %v6148_v43 = vadd.f32 %v6140_v35, %v6100_v60  ;;  %v6149_v49 = vadd.f32 %v6141_v14, %v6101_v7  ;;  %v6150_v8 = vadd.f32 %v6142_v44, %v6102_v61 }
 0x2f5   : > { %v6151_v10 = vadd.f32 %v6143_v46, %v6103_v17  ;;  %v6152_v62 = vadd.f32 %v6144_v59, %v6104_v52  ;;  %v6153_v45 = vadd.f32 %v6145_v63, %v6105_v39  ;;  %v6157_v48 = vrot.slane %v10012_v11, %v6975_v32  ;;  %v6846_v17 = vld [vmem:[%s9394_s18 + $0x128] sm:$0xff] }
 0x2f6   : > { %v6161_v56 = vrot.slane %v10014_v27, %v6975_v32  ;;  %v6165_v22 = vrot.slane %v10016_v3, %v6975_v32  ;;  %v6169_v20 = vrot.slane %v10018_v13, %v6975_v32  ;;  %v6173_v37 = vrot.slane %v10020_v58, %v6975_v32 }
 0x2f7   : > { %v6177_v6 = vrot.slane %v10022_v18, %v6975_v32  ;;  %v6181_v41 = vrot.slane %v10024_v1, %v6975_v32  ;;  %v6185_v4 = vrot.slane %v10026_v47, %v6975_v32  ;;  %v6186_v25 = vmul.f32 %v6845_v42, %v6157_v48 }
 0x2f8   : > { %v6187_v36 = vmul.f32 %v6845_v42, %v6161_v56  ;;  %v6188_v55 = vmul.f32 %v6845_v42, %v6165_v22  ;;  %v6189_v54 = vmul.f32 %v6845_v42, %v6169_v20  ;;  %v6190_v53 = vmul.f32 %v6845_v42, %v6173_v37 }
 0x2f9   : > { %v6191_v21 = vmul.f32 %v6845_v42, %v6177_v6  ;;  %v6192_v38 = vmul.f32 %v6845_v42, %v6181_v41  ;;  %v6193_v26 = vmul.f32 %v6845_v42, %v6185_v4  ;;  %v6194_v60 = vadd.f32 %v6186_v25, %v6146_v0 }
 0x2fa   : > { %v6195_v7 = vadd.f32 %v6187_v36, %v6147_v5  ;;  %v6196_v2 = vadd.f32 %v6188_v55, %v6148_v43  ;;  %v6197_v61 = vadd.f32 %v6189_v54, %v6149_v49  ;;  %v6198_v52 = vadd.f32 %v6190_v53, %v6150_v8 }
 0x2fb   : > { %v6199_v39 = vadd.f32 %v6191_v21, %v6151_v10  ;;  %v6200_v40 = vadd.f32 %v6192_v38, %v6152_v62  ;;  %v6201_v50 = vadd.f32 %v6193_v26, %v6153_v45  ;;  %v6205_v24 = vrot.slane %v10012_v11, %v6978_v33  ;;  %v6847_v10 = vld [vmem:[%s9394_s18 + $0x130] sm:$0xff] }
 0x2fc   : > { %v6209_v51 = vrot.slane %v10014_v27, %v6978_v33  ;;  %v6213_v19 = vrot.slane %v10016_v3, %v6978_v33  ;;  %v6217_v12 = vrot.slane %v10018_v13, %v6978_v33  ;;  %v6221_v23 = vrot.slane %v10020_v58, %v6978_v33 }
 0x2fd   : > { %v6225_v15 = vrot.slane %v10022_v18, %v6978_v33  ;;  %v6229_v57 = vrot.slane %v10024_v1, %v6978_v33  ;;  %v6233_v16 = vrot.slane %v10026_v47, %v6978_v33  ;;  %v6234_v35 = vmul.f32 %v6846_v17, %v6205_v24 }
 0x2fe   : > { %v6235_v14 = vmul.f32 %v6846_v17, %v6209_v51  ;;  %v6236_v44 = vmul.f32 %v6846_v17, %v6213_v19  ;;  %v6237_v46 = vmul.f32 %v6846_v17, %v6217_v12  ;;  %v6238_v59 = vmul.f32 %v6846_v17, %v6221_v23 }
 0x2ff   : > { %v6239_v63 = vmul.f32 %v6846_v17, %v6225_v15  ;;  %v6240_v0 = vmul.f32 %v6846_v17, %v6229_v57  ;;  %v6241_v5 = vmul.f32 %v6846_v17, %v6233_v16  ;;  %v6242_v43 = vadd.f32 %v6234_v35, %v6194_v60 }
 0x300   : > { %v6243_v49 = vadd.f32 %v6235_v14, %v6195_v7  ;;  %v6244_v42 = vadd.f32 %v6236_v44, %v6196_v2  ;;  %v6245_v8 = vadd.f32 %v6237_v46, %v6197_v61  ;;  %v6246_v62 = vadd.f32 %v6238_v59, %v6198_v52 }
 0x301   : > { %v6247_v45 = vadd.f32 %v6239_v63, %v6199_v39  ;;  %v6248_v48 = vadd.f32 %v6240_v0, %v6200_v40  ;;  %v6249_v56 = vadd.f32 %v6241_v5, %v6201_v50  ;;  %v6253_v22 = vrot.slane %v10012_v11, %v6981_v34  ;;  %v6848_v39 = vld [vmem:[%s9394_s18 + $0x138] sm:$0xff] }
 0x302   : > { %v6257_v20 = vrot.slane %v10014_v27, %v6981_v34  ;;  %v6261_v37 = vrot.slane %v10016_v3, %v6981_v34  ;;  %v6265_v6 = vrot.slane %v10018_v13, %v6981_v34  ;;  %v6269_v41 = vrot.slane %v10020_v58, %v6981_v34 }
 0x303   : > { %v6273_v4 = vrot.slane %v10022_v18, %v6981_v34  ;;  %v6277_v25 = vrot.slane %v10024_v1, %v6981_v34  ;;  %v6281_v36 = vrot.slane %v10026_v47, %v6981_v34  ;;  %v6282_v55 = vmul.f32 %v6847_v10, %v6253_v22 }
 0x304   : > { %v6283_v54 = vmul.f32 %v6847_v10, %v6257_v20  ;;  %v6284_v53 = vmul.f32 %v6847_v10, %v6261_v37  ;;  %v6285_v21 = vmul.f32 %v6847_v10, %v6265_v6  ;;  %v6286_v38 = vmul.f32 %v6847_v10, %v6269_v41 }
 0x305   : > { %v6287_v26 = vmul.f32 %v6847_v10, %v6273_v4  ;;  %v6288_v60 = vmul.f32 %v6847_v10, %v6277_v25  ;;  %v6289_v7 = vmul.f32 %v6847_v10, %v6281_v36  ;;  %v6290_v2 = vadd.f32 %v6282_v55, %v6242_v43  ;;  %v6850_v25 = vld [vmem:[%s9394_s18 + $0x148] sm:$0xff] }
 0x306   : > { %v6291_v61 = vadd.f32 %v6283_v54, %v6243_v49  ;;  %v6292_v17 = vadd.f32 %v6284_v53, %v6244_v42  ;;  %v6293_v52 = vadd.f32 %v6285_v21, %v6245_v8  ;;  %v6294_v40 = vadd.f32 %v6286_v38, %v6246_v62  ;;  %v6849_v42 = vld [vmem:[%s9394_s18 + $0x140] sm:$0xff] }
 0x307   : > { %v6295_v50 = vadd.f32 %v6287_v26, %v6247_v45  ;;  %v6296_v24 = vadd.f32 %v6288_v60, %v6248_v48  ;;  %v6297_v51 = vadd.f32 %v6289_v7, %v6249_v56  ;;  %v6301_v19 = vrot.slane %v10012_v11, %v7166_v9 }
 0x308   : > { %v6305_v12 = vrot.slane %v10014_v27, %v7166_v9  ;;  %v6309_v23 = vrot.slane %v10016_v3, %v7166_v9  ;;  %v6313_v15 = vrot.slane %v10018_v13, %v7166_v9  ;;  %v6317_v57 = vrot.slane %v10020_v58, %v7166_v9 }
 0x309   : > { %v6321_v16 = vrot.slane %v10022_v18, %v7166_v9  ;;  %v6325_v35 = vrot.slane %v10024_v1, %v7166_v9  ;;  %v6329_v11 = vrot.slane %v10026_v47, %v7166_v9  ;;  %v6330_v14 = vmul.f32 %v6848_v39, %v6301_v19 }
 0x30a   : > { %v6331_v27 = vmul.f32 %v6848_v39, %v6305_v12  ;;  %v6332_v44 = vmul.f32 %v6848_v39, %v6309_v23  ;;  %v6333_v3 = vmul.f32 %v6848_v39, %v6313_v15  ;;  %v6334_v46 = vmul.f32 %v6848_v39, %v6317_v57 }
 0x30b   : > { %v6335_v59 = vmul.f32 %v6848_v39, %v6321_v16  ;;  %v6336_v13 = vmul.f32 %v6848_v39, %v6325_v35  ;;  %v6337_v63 = vmul.f32 %v6848_v39, %v6329_v11  ;;  %v10164_v0 = vadd.f32 %v6330_v14, %v6290_v2  ;;  %v6851_v16 = vld [vmem:[%s9394_s18 + $0x150] sm:$0xff] }
 0x30c   : > { %v10166_v58 = vadd.f32 %v6331_v27, %v6291_v61  ;;  %v10168_v18 = vadd.f32 %v6332_v44, %v6292_v17  ;;  %v10170_v5 = vadd.f32 %v6333_v3, %v6293_v52  ;;  %v10172_v1 = vadd.f32 %v6334_v46, %v6294_v40 }
 0x30d   : > { %v10174_v47 = vadd.f32 %v6335_v59, %v6295_v50  ;;  %v10176_v43 = vadd.f32 %v6336_v13, %v6296_v24  ;;  %v10178_v49 = vadd.f32 %v6337_v63, %v6297_v51  ;;  %v6358_v8 = vrot.slane %v10164_v0, %v6963_v28 }
 0x30e   : > { %v6362_v10 = vrot.slane %v10166_v58, %v6963_v28  ;;  %v6366_v62 = vrot.slane %v10168_v18, %v6963_v28  ;;  %v6370_v45 = vrot.slane %v10170_v5, %v6963_v28  ;;  %v6374_v48 = vrot.slane %v10172_v1, %v6963_v28 }
 0x30f   : > { %v6378_v56 = vrot.slane %v10174_v47, %v6963_v28  ;;  %v6382_v22 = vrot.slane %v10176_v43, %v6963_v28  ;;  %v6386_v20 = vrot.slane %v10178_v49, %v6963_v28  ;;  %v6387_v37 = vmul.f32 %v6849_v42, %v6358_v8 }
 0x310   : > { %v6388_v6 = vmul.f32 %v6849_v42, %v6362_v10  ;;  %v6389_v41 = vmul.f32 %v6849_v42, %v6366_v62  ;;  %v6390_v4 = vmul.f32 %v6849_v42, %v6370_v45  ;;  %v6391_v36 = vmul.f32 %v6849_v42, %v6374_v48 }
 0x311   : > { %v6392_v55 = vmul.f32 %v6849_v42, %v6378_v56  ;;  %v6393_v54 = vmul.f32 %v6849_v42, %v6382_v22  ;;  %v6394_v53 = vmul.f32 %v6849_v42, %v6386_v20  ;;  %v6398_v21 = vrot.slane %v10164_v0, %v6966_v29 }
 0x312   : > { %v6402_v38 = vrot.slane %v10166_v58, %v6966_v29  ;;  %v6406_v26 = vrot.slane %v10168_v18, %v6966_v29  ;;  %v6410_v28 = vrot.slane %v10170_v5, %v6966_v29  ;;  %v6414_v60 = vrot.slane %v10172_v1, %v6966_v29 }
 0x313   : > { %v6418_v7 = vrot.slane %v10174_v47, %v6966_v29  ;;  %v6422_v2 = vrot.slane %v10176_v43, %v6966_v29  ;;  %v6426_v61 = vrot.slane %v10178_v49, %v6966_v29  ;;  %v6427_v17 = vmul.f32 %v6850_v25, %v6398_v21 }
 0x314   : > { %v6428_v52 = vmul.f32 %v6850_v25, %v6402_v38  ;;  %v6429_v39 = vmul.f32 %v6850_v25, %v6406_v26  ;;  %v6430_v40 = vmul.f32 %v6850_v25, %v6410_v28  ;;  %v6431_v50 = vmul.f32 %v6850_v25, %v6414_v60 }
 0x315   : > { %v6432_v24 = vmul.f32 %v6850_v25, %v6418_v7  ;;  %v6433_v51 = vmul.f32 %v6850_v25, %v6422_v2  ;;  %v6434_v19 = vmul.f32 %v6850_v25, %v6426_v61  ;;  %v6435_v12 = vadd.f32 %v6427_v17, %v6387_v37  ;;  %v6852_v25 = vld [vmem:[%s9394_s18 + $0x158] sm:$0xff] }
 0x316   : > { %v6436_v23 = vadd.f32 %v6428_v52, %v6388_v6  ;;  %v6437_v15 = vadd.f32 %v6429_v39, %v6389_v41  ;;  %v6438_v57 = vadd.f32 %v6430_v40, %v6390_v4  ;;  %v6439_v35 = vadd.f32 %v6431_v50, %v6391_v36 }
 0x317   : > { %v6440_v11 = vadd.f32 %v6432_v24, %v6392_v55  ;;  %v6441_v14 = vadd.f32 %v6433_v51, %v6393_v54  ;;  %v6442_v27 = vadd.f32 %v6434_v19, %v6394_v53  ;;  %v6446_v29 = vrot.slane %v10164_v0, %v6969_v30 }
 0x318   : > { %v6450_v44 = vrot.slane %v10166_v58, %v6969_v30  ;;  %v6454_v3 = vrot.slane %v10168_v18, %v6969_v30  ;;  %v6458_v46 = vrot.slane %v10170_v5, %v6969_v30  ;;  %v6462_v59 = vrot.slane %v10172_v1, %v6969_v30 }
 0x319   : > { %v6466_v13 = vrot.slane %v10174_v47, %v6969_v30  ;;  %v6470_v63 = vrot.slane %v10176_v43, %v6969_v30  ;;  %v6474_v42 = vrot.slane %v10178_v49, %v6969_v30  ;;  %v6475_v8 = vmul.f32 %v6851_v16, %v6446_v29 }
 0x31a   : > { %v6476_v10 = vmul.f32 %v6851_v16, %v6450_v44  ;;  %v6477_v62 = vmul.f32 %v6851_v16, %v6454_v3  ;;  %v6478_v45 = vmul.f32 %v6851_v16, %v6458_v46  ;;  %v6479_v48 = vmul.f32 %v6851_v16, %v6462_v59 }
 0x31b   : > { %v6480_v56 = vmul.f32 %v6851_v16, %v6466_v13  ;;  %v6481_v22 = vmul.f32 %v6851_v16, %v6470_v63  ;;  %v6482_v20 = vmul.f32 %v6851_v16, %v6474_v42  ;;  %v6483_v37 = vadd.f32 %v6475_v8, %v6435_v12 }
 0x31c   : > { %v6484_v6 = vadd.f32 %v6476_v10, %v6436_v23  ;;  %v6485_v41 = vadd.f32 %v6477_v62, %v6437_v15  ;;  %v6486_v4 = vadd.f32 %v6478_v45, %v6438_v57  ;;  %v6487_v36 = vadd.f32 %v6479_v48, %v6439_v35  ;;  %v6853_v57 = vld [vmem:[%s9394_s18 + $0x160] sm:$0xff] }
 0x31d   : > { %v6488_v55 = vadd.f32 %v6480_v56, %v6440_v11  ;;  %v6489_v54 = vadd.f32 %v6481_v22, %v6441_v14  ;;  %v6490_v53 = vadd.f32 %v6482_v20, %v6442_v27  ;;  %v6494_v30 = vrot.slane %v10164_v0, %v6972_v31 }
 0x31e   : > { %v6498_v21 = vrot.slane %v10166_v58, %v6972_v31  ;;  %v6502_v38 = vrot.slane %v10168_v18, %v6972_v31  ;;  %v6506_v26 = vrot.slane %v10170_v5, %v6972_v31  ;;  %v6510_v28 = vrot.slane %v10172_v1, %v6972_v31 }
 0x31f   : > { %v6514_v60 = vrot.slane %v10174_v47, %v6972_v31  ;;  %v6518_v7 = vrot.slane %v10176_v43, %v6972_v31  ;;  %v6522_v2 = vrot.slane %v10178_v49, %v6972_v31  ;;  %v6523_v61 = vmul.f32 %v6852_v25, %v6494_v30 }
 0x320   : > { %v6524_v17 = vmul.f32 %v6852_v25, %v6498_v21  ;;  %v6525_v52 = vmul.f32 %v6852_v25, %v6502_v38  ;;  %v6526_v39 = vmul.f32 %v6852_v25, %v6506_v26  ;;  %v6527_v40 = vmul.f32 %v6852_v25, %v6510_v28 }
 0x321   : > { %v6528_v50 = vmul.f32 %v6852_v25, %v6514_v60  ;;  %v6529_v24 = vmul.f32 %v6852_v25, %v6518_v7  ;;  %v6530_v51 = vmul.f32 %v6852_v25, %v6522_v2  ;;  %v6531_v19 = vadd.f32 %v6523_v61, %v6483_v37 }
 0x322   : > { %v6532_v12 = vadd.f32 %v6524_v17, %v6484_v6  ;;  %v6533_v23 = vadd.f32 %v6525_v52, %v6485_v41  ;;  %v6534_v15 = vadd.f32 %v6526_v39, %v6486_v4  ;;  %v6535_v16 = vadd.f32 %v6527_v40, %v6487_v36  ;;  %v6854_v41 = vld [vmem:[%s9394_s18 + $0x168] sm:$0xff] }
 0x323   : > { %v6536_v35 = vadd.f32 %v6528_v50, %v6488_v55  ;;  %v6537_v11 = vadd.f32 %v6529_v24, %v6489_v54  ;;  %v6538_v14 = vadd.f32 %v6530_v51, %v6490_v53  ;;  %v6542_v31 = vrot.slane %v10164_v0, %v6975_v32 }
 0x324   : > { %v6546_v27 = vrot.slane %v10166_v58, %v6975_v32  ;;  %v6550_v29 = vrot.slane %v10168_v18, %v6975_v32  ;;  %v6554_v44 = vrot.slane %v10170_v5, %v6975_v32  ;;  %v6558_v3 = vrot.slane %v10172_v1, %v6975_v32 }
 0x325   : > { %v6562_v46 = vrot.slane %v10174_v47, %v6975_v32  ;;  %v6566_v59 = vrot.slane %v10176_v43, %v6975_v32  ;;  %v6570_v13 = vrot.slane %v10178_v49, %v6975_v32  ;;  %v6571_v63 = vmul.f32 %v6853_v57, %v6542_v31 }
 0x326   : > { %v6572_v42 = vmul.f32 %v6853_v57, %v6546_v27  ;;  %v6573_v8 = vmul.f32 %v6853_v57, %v6550_v29  ;;  %v6574_v10 = vmul.f32 %v6853_v57, %v6554_v44  ;;  %v6575_v62 = vmul.f32 %v6853_v57, %v6558_v3 }
 0x327   : > { %v6576_v45 = vmul.f32 %v6853_v57, %v6562_v46  ;;  %v6577_v48 = vmul.f32 %v6853_v57, %v6566_v59  ;;  %v6578_v56 = vmul.f32 %v6853_v57, %v6570_v13  ;;  %v6579_v22 = vadd.f32 %v6571_v63, %v6531_v19 }
 0x328   : > { %v6580_v20 = vadd.f32 %v6572_v42, %v6532_v12  ;;  %v6581_v37 = vadd.f32 %v6573_v8, %v6533_v23  ;;  %v6582_v6 = vadd.f32 %v6574_v10, %v6534_v15  ;;  %v6583_v4 = vadd.f32 %v6575_v62, %v6535_v16  ;;  %v6855_v12 = vld [vmem:[%s9394_s18 + $0x170] sm:$0xff] }
 0x329   : > { %v6584_v25 = vadd.f32 %v6576_v45, %v6536_v35  ;;  %v6585_v36 = vadd.f32 %v6577_v48, %v6537_v11  ;;  %v6586_v55 = vadd.f32 %v6578_v56, %v6538_v14  ;;  %v6590_v32 = vrot.slane %v10164_v0, %v6978_v33 }
 0x32a   : > { %v6594_v54 = vrot.slane %v10166_v58, %v6978_v33  ;;  %v6598_v53 = vrot.slane %v10168_v18, %v6978_v33  ;;  %v6602_v30 = vrot.slane %v10170_v5, %v6978_v33  ;;  %v6606_v21 = vrot.slane %v10172_v1, %v6978_v33 }
 0x32b   : > { %v6610_v38 = vrot.slane %v10174_v47, %v6978_v33  ;;  %v6614_v26 = vrot.slane %v10176_v43, %v6978_v33  ;;  %v6618_v28 = vrot.slane %v10178_v49, %v6978_v33  ;;  %v6619_v60 = vmul.f32 %v6854_v41, %v6590_v32 }
 0x32c   : > { %v6620_v7 = vmul.f32 %v6854_v41, %v6594_v54  ;;  %v6621_v2 = vmul.f32 %v6854_v41, %v6598_v53  ;;  %v6622_v61 = vmul.f32 %v6854_v41, %v6602_v30  ;;  %v6623_v17 = vmul.f32 %v6854_v41, %v6606_v21 }
 0x32d   : > { %v6624_v52 = vmul.f32 %v6854_v41, %v6610_v38  ;;  %v6625_v39 = vmul.f32 %v6854_v41, %v6614_v26  ;;  %v6626_v40 = vmul.f32 %v6854_v41, %v6618_v28  ;;  %v6627_v50 = vadd.f32 %v6619_v60, %v6579_v22  ;;  %v6856_v22 = vld [vmem:[%s9394_s18 + $0x178] sm:$0xff] }
 0x32e   : > { %v6628_v24 = vadd.f32 %v6620_v7, %v6580_v20  ;;  %v6629_v51 = vadd.f32 %v6621_v2, %v6581_v37  ;;  %v6630_v19 = vadd.f32 %v6622_v61, %v6582_v6  ;;  %v6631_v23 = vadd.f32 %v6623_v17, %v6583_v4 }
 0x32f   : > { %v6632_v15 = vadd.f32 %v6624_v52, %v6584_v25  ;;  %v6633_v57 = vadd.f32 %v6625_v39, %v6585_v36  ;;  %v6634_v16 = vadd.f32 %v6626_v40, %v6586_v55  ;;  %v6638_v33 = vrot.slane %v10164_v0, %v6981_v34 }
 0x330   : > { %v6642_v35 = vrot.slane %v10166_v58, %v6981_v34  ;;  %v6646_v11 = vrot.slane %v10168_v18, %v6981_v34  ;;  %v6650_v14 = vrot.slane %v10170_v5, %v6981_v34  ;;  %v6654_v31 = vrot.slane %v10172_v1, %v6981_v34 }
 0x331   : > { %v6658_v27 = vrot.slane %v10174_v47, %v6981_v34  ;;  %v6662_v29 = vrot.slane %v10176_v43, %v6981_v34  ;;  %v6666_v44 = vrot.slane %v10178_v49, %v6981_v34  ;;  %v6667_v3 = vmul.f32 %v6855_v12, %v6638_v33 }
 0x332   : > { %v6668_v46 = vmul.f32 %v6855_v12, %v6642_v35  ;;  %v6669_v59 = vmul.f32 %v6855_v12, %v6646_v11  ;;  %v6670_v13 = vmul.f32 %v6855_v12, %v6650_v14  ;;  %v6671_v63 = vmul.f32 %v6855_v12, %v6654_v31 }
 0x333   : > { %v6672_v42 = vmul.f32 %v6855_v12, %v6658_v27  ;;  %v6673_v8 = vmul.f32 %v6855_v12, %v6662_v29  ;;  %v6674_v10 = vmul.f32 %v6855_v12, %v6666_v44  ;;  %v6675_v62 = vadd.f32 %v6667_v3, %v6627_v50 }
 0x334   : > { %v6676_v45 = vadd.f32 %v6668_v46, %v6628_v24  ;;  %v6677_v48 = vadd.f32 %v6669_v59, %v6629_v51  ;;  %v6678_v56 = vadd.f32 %v6670_v13, %v6630_v19  ;;  %v6679_v20 = vadd.f32 %v6671_v63, %v6631_v23 }
 0x335   : > { %v6680_v37 = vadd.f32 %v6672_v42, %v6632_v15  ;;  %v6681_v6 = vadd.f32 %v6673_v8, %v6633_v57  ;;  %v6682_v41 = vadd.f32 %v6674_v10, %v6634_v16  ;;  %v6686_v34 = vrot.slane %v10164_v0, %v7166_v9 }
 0x336   : > { %v6690_v4 = vrot.slane %v10166_v58, %v7166_v9  ;;  %v6694_v25 = vrot.slane %v10168_v18, %v7166_v9  ;;  %v6698_v36 = vrot.slane %v10170_v5, %v7166_v9  ;;  %v6702_v55 = vrot.slane %v10172_v1, %v7166_v9 }
 0x337   : > { %v6706_v32 = vrot.slane %v10174_v47, %v7166_v9  ;;  %v6710_v54 = vrot.slane %v10176_v43, %v7166_v9  ;;  %v6714_v0 = vrot.slane %v10178_v49, %v7166_v9  ;;  %v6715_v53 = vmul.f32 %v6856_v22, %v6686_v34 }
 0x338   : > { %v6716_v58 = vmul.f32 %v6856_v22, %v6690_v4  ;;  %v6717_v30 = vmul.f32 %v6856_v22, %v6694_v25  ;;  %v6718_v21 = vmul.f32 %v6856_v22, %v6698_v36  ;;  %v6719_v18 = vmul.f32 %v6856_v22, %v6702_v55 }
 0x339   : > { %v6720_v38 = vmul.f32 %v6856_v22, %v6706_v32  ;;  %v6721_v26 = vmul.f32 %v6856_v22, %v6710_v54  ;;  %v6722_v5 = vmul.f32 %v6856_v22, %v6714_v0  ;;  %v6723_v1 = vadd.f32 %v6715_v53, %v6675_v62 }
 0x33a   : > { %v6724_v47 = vadd.f32 %v6716_v58, %v6676_v45  ;;  %v6725_v28 = vadd.f32 %v6717_v30, %v6677_v48  ;;  %v6726_v43 = vadd.f32 %v6718_v21, %v6678_v56  ;;  %v6727_v60 = vadd.f32 %v6719_v18, %v6679_v20 }
 0x33b   : > { %v6728_v7 = vadd.f32 %v6720_v38, %v6680_v37  ;;  %v6729_v9 = vadd.f32 %v6721_v26, %v6681_v6  ;;  %v6730_v49 = vadd.f32 %v6722_v5, %v6682_v41  ;;  %6732 = vst.msk [vmem:[%s163_s21] sm:$0xff] %vm6731_vm8, %v6723_v1 }
 0x33c   : > { %6733 = vst.msk [vmem:[%s163_s21 + $0x8] sm:$0xff] %vm6731_vm8, %v6724_v47  ;;  %6734 = vst.msk [vmem:[%s163_s21 + $0x10] sm:$0xff] %vm6731_vm8, %v6725_v28 }
 0x33d   : > { %6735 = vst.msk [vmem:[%s163_s21 + $0x18] sm:$0xff] %vm6731_vm8, %v6726_v43  ;;  %6736 = vst.msk [vmem:[%s163_s21 + $0x20] sm:$0xff] %vm6731_vm8, %v6727_v60 }
 0x33e   : > { %6737 = vst.msk [vmem:[%s163_s21 + $0x28] sm:$0xff] %vm6731_vm8, %v6728_v7  ;;  %6738 = vst.msk [vmem:[%s163_s21 + $0x30] sm:$0xff] %vm6731_vm8, %v6729_v9 }
 0x33f   : > { %6739 = vst.msk [vmem:[%s163_s21 + $0x38] sm:$0xff] %vm6731_vm8, %v6730_v49 }
 0x340 PF: > { %s12_s9 = sadd.s32 1, %s6877_s9  }
 0x341   : > { %p9_p4 = scmp.ge.s32.totalorder %s12_s9, 4  }
 0x343   :  { %11 = sbr.rel (!%p9_p4) target bundleno = 1 (0x1), region = 66 }

</bundles_post_ra>
